<compile_context>
chip_gen: v7x
topology: tpu7x:2x2x1
jax: 0.10.0
libtpu: 0.0.40
codegen_flags: <defaults>
</compile_context>

<pallas_src>
import math
import functools

import jax
import jax.numpy as jnp
from jax.experimental import pallas as pl
from jax.experimental.pallas import tpu as pltpu


def _sigmoidlinear(x):
    # piecewise-linear sigmoid approximation
    return jnp.clip(0.25 * x + 0.5, 0.0, 1.0)


def _round_up(x, m):
    return (x + m - 1) // m * m


# ---------------------------------------------------------------------------
# Capability probes / VMEM budgeting
# ---------------------------------------------------------------------------
def _probe_buffered_one():
    """Check whether pipeline_mode=pl.Buffered(1) compiles & runs correctly."""
    if not hasattr(pl, "Buffered"):
        return False
    try:
        def _k(x_ref, o_ref):
            o_ref[...] = x_ref[...] + 1.0

        x = jnp.arange(8 * 128, dtype=jnp.float32).reshape(8, 128)
        out = pl.pallas_call(
            _k,
            grid=(2,),
            in_specs=[pl.BlockSpec((8, 128), lambda i: (0, 0),
                                   pipeline_mode=pl.Buffered(1))],
            out_specs=pl.BlockSpec((8, 128), lambda i: (i, 0)),
            out_shape=jax.ShapeDtypeStruct((16, 128), jnp.float32),
        )(x)
        out = jax.block_until_ready(out)
        return bool(jnp.allclose(out, jnp.concatenate([x + 1.0, x + 1.0], 0)))
    except Exception:
        return False


_HAS_BUFFERED_ONE = _probe_buffered_one()


def _resident_spec(shape, index_map):
    """Constant-index (resident) input; single-buffered when supported so the
    largest blocks (W, U) do not pay for a useless second VMEM copy."""
    if _HAS_BUFFERED_ONE:
        return pl.BlockSpec(shape, index_map, pipeline_mode=pl.Buffered(1))
    return pl.BlockSpec(shape, index_map)


@functools.lru_cache(maxsize=None)
def _vmem_budget_bytes():
    """~80% of physical VMEM (64 MiB on v7x, 128 MiB on v5e/v6e)."""
    try:
        cap = int(pltpu.get_tpu_info().vmem_capacity_bytes)
    except Exception:
        cap = 64 * 1024 * 1024            # conservative (v7x-sized) fallback
    return int(cap * 0.8)


def _plan_time_block(seq_len, bp, d_max, hp, itemsize, budget, cap):
    """Largest timesteps-per-grid-step <= cap whose buffers fit the VMEM budget."""
    g = 4 * hp
    tb = max(1, min(cap, seq_len))
    if itemsize < 4 and tb % 2:
        tb += 1                           # keep tb*bp a multiple of 16 for bf16
    floor = 2 if itemsize < 4 else 1
    while True:
        need = (2 * tb * bp * d_max * itemsize       # x blocks (double-buffered)
                + 2 * tb * bp * hp * 4               # hidden_seq blocks
                + tb * bp * g * 4                    # fused x-projection scratch
                + 2 * (d_max + hp) * g * itemsize    # W + U (worst case 2 bufs)
                + 2 * g * 4 + 8 * bp * hp * 4)       # bias / state / scratch
        if need <= budget or tb <= floor:
            return tb
        tb = max(floor, tb // 2)
        if itemsize < 4 and tb % 2:
            tb += 1


# ---------------------------------------------------------------------------
# Weight packing: gate-stripe the 4H axis to 4*Hp so every gate occupies a
# 128-lane-aligned stripe, and zero-pad recurrent/input rows so padded hidden
# lanes can never contaminate valid outputs.
# ---------------------------------------------------------------------------
def _pad_gate_axis(m, h, hp):
    if hp == h:
        return m
    zeros = jnp.zeros(m.shape[:-1] + (hp - h,), m.dtype)
    parts = []
    for g in range(4):
        parts.append(m[..., g * h:(g + 1) * h])
        parts.append(zeros)
    return jnp.concatenate(parts, axis=-1)


def _pad_rows_grouped(m, h, hp, groups):
    if hp == h:
        return m
    zeros = jnp.zeros((hp - h,) + m.shape[1:], m.dtype)
    parts = []
    for d in range(groups):
        parts.append(m[d * h:(d + 1) * h])
        parts.append(zeros)
    return jnp.concatenate(parts, axis=0)


def _pack_params(W, U, b, layer, H, Hp, num_dirs, param_dtype):
    Wg = _pad_gate_axis(W, H, Hp)                       # (in, 4Hp)
    Ug = _pad_gate_axis(U, H, Hp)                       # (H, 4Hp)
    bg = _pad_gate_axis(b[None, :], H, Hp)              # (1, 4Hp)
    Up = _pad_rows_grouped(Ug, H, Hp, 1)                # (Hp, 4Hp)
    if layer == 0:
        Wp = Wg                                         # rows = raw input features
    else:
        Wp = _pad_rows_grouped(Wg, H, Hp, num_dirs)     # rows match padded hseq layout
    return (Wp.astype(param_dtype), Up.astype(param_dtype),
            bg.astype(jnp.float32))


# ---------------------------------------------------------------------------
# Pallas kernel: one LSTM direction, Tb timesteps per grid step.
#   inputs : x   (Tb*Bp, D)   time-major input slab for this block
#            W   (D, 4Hp)     input weights   (resident)
#            U   (Hp, 4Hp)    recurrent weights (resident)
#            b   (1, 4Hp)     bias             (resident)
#            h0, c0 (Bp, Hp)  initial state
#   outputs: hseq (Tb*Bp, Hp) per-step hidden states, hT/cT (Bp, Hp)
#   scratch: gx (Tb*Bp, 4Hp) fused x-projection slab; h/c (Bp, Hp) carried state
# ---------------------------------------------------------------------------
def _lstm_rec_kernel(x_ref, w_ref, u_ref, b_ref, h0_ref, c0_ref,
                     hseq_ref, hT_ref, cT_ref,
                     gx_scr, h_scr, c_scr,
                     *, tb, bp, hp, seq_len, reverse, needs_mask):
    blk = pl.program_id(0)
    nblk = pl.num_programs(0)

    @pl.when(blk == 0)
    def _():
        h_scr[...] = h0_ref[...]
        c_scr[...] = c0_ref[...]

    # Fused input projection: one big (Tb*Bp, D) @ (D, 4Hp) MXU GEMM per block,
    # bias folded in.  Replaces the old precomputed HBM gates slab.
    gx_scr[...] = (jnp.dot(x_ref[...], w_ref[...],
                           preferred_element_type=jnp.float32)
                   + b_ref[...])

    # Carry state in values across the unrolled inner loop (one scratch store
    # per block instead of per step).
    h = h_scr[...]
    c = c_scr[...]
    u = u_ref[...]
    rec_dtype = u.dtype                    # bf16 weights -> bf16 recurrent matmul

    blk_eff = (nblk - 1 - blk) if reverse else blk

    order = range(tb - 1, -1, -1) if reverse else range(tb)
    for tt in order:                       # statically unrolled (Tb kept modest)
        gates = (gx_scr[tt * bp:(tt + 1) * bp, :]
                 + jnp.dot(h.astype(rec_dtype), u,
                           preferred_element_type=jnp.float32))
        i_t = _sigmoidlinear(gates[:, 0 * hp:1 * hp])     # lane-aligned stripes
        f_t = _sigmoidlinear(gates[:, 1 * hp:2 * hp])
        g_t = jnp.maximum(gates[:, 2 * hp:3 * hp], 0.0)   # relu
        o_t = _sigmoidlinear(gates[:, 3 * hp:4 * hp])
        c_new = f_t * c + i_t * g_t
        h_new = o_t * _sigmoidlinear(c_new)
        if needs_mask:
            valid = (blk_eff * tb + tt) < seq_len          # tail-padding guard
            c = jnp.where(valid, c_new, c)
            h = jnp.where(valid, h_new, h)
        else:
            c, h = c_new, h_new
        hseq_ref[tt * bp:(tt + 1) * bp, :] = h             # full-lane store

    h_scr[...] = h
    c_scr[...] = c

    @pl.when(blk == nblk - 1)
    def _():
        hT_ref[...] = h
        cT_ref[...] = c


def _lstm_direction_pass(xs2, W, U, b, h0, c0, *, reverse, tb, bp, hp,
                         seq_len, vmem_limit):
    """One direction of one layer. xs2: flattened time-major (Sp*Bp, D)."""
    SB, D = xs2.shape
    G = 4 * hp
    ntb = SB // (tb * bp)
    needs_mask = (SB // bp) != seq_len

    if reverse:
        t_map = lambda i: (ntb - 1 - i, 0)     # walk time blocks backwards
    else:
        t_map = lambda i: (i, 0)
    cmap = lambda i: (0, 0)

    kernel = functools.partial(_lstm_rec_kernel, tb=tb, bp=bp, hp=hp,
                               seq_len=seq_len, reverse=reverse,
                               needs_mask=needs_mask)

    grid_spec = pltpu.PrefetchScalarGridSpec(
        num_scalar_prefetch=0,
        grid=(ntb,),
        in_specs=[
            pl.BlockSpec((tb * bp, D), t_map),        # x slab
            _resident_spec((D, G), cmap),             # W (resident)
            _resident_spec((hp, G), cmap),            # U (resident)
            _resident_spec((1, G), cmap),             # bias (resident)
            pl.BlockSpec((bp, hp), cmap),             # h0
            pl.BlockSpec((bp, hp), cmap),             # c0
        ],
        out_specs=[
            pl.BlockSpec((tb * bp, hp), t_map),       # hidden_seq (time-major)
            pl.BlockSpec((bp, hp), cmap),             # h_T (written once)
            pl.BlockSpec((bp, hp), cmap),             # c_T (written once)
        ],
        scratch_shapes=[
            pltpu.VMEM((tb * bp, G), jnp.float32),    # fused x-projection slab
            pltpu.VMEM((bp, hp), jnp.float32),        # carried h state
            pltpu.VMEM((bp, hp), jnp.float32),        # carried c state
        ],
    )

    hseq, hT, cT = pl.pallas_call(
        kernel,
        grid_spec=grid_spec,
        out_shape=(
            jax.ShapeDtypeStruct((SB, hp), jnp.float32),
            jax.ShapeDtypeStruct((bp, hp), jnp.float32),
            jax.ShapeDtypeStruct((bp, hp), jnp.float32),
        ),
        compiler_params=pltpu.CompilerParams(
            dimension_semantics=("arbitrary",),       # true recurrence
            vmem_limit_bytes=vmem_limit),
    )(xs2, W, U, b, h0, c0)
    return hseq, hT, cT


# ---------------------------------------------------------------------------
# Full module forward (glue in plain JAX, recurrence + x-projection in Pallas).
# ---------------------------------------------------------------------------
def _forward_impl(x, params, hidden_size, num_layers, bidirectional,
                  param_dtype, time_block_cap):
    B, S, Din = x.shape
    num_dirs = 2 if bidirectional else 1
    H = hidden_size
    Hp = _round_up(H, 128)                 # lane-aligned gates + lane-dense stores
    Bp = _round_up(B, 8)                   # sublane-aligned batch

    budget = _vmem_budget_bytes()
    isz = jnp.dtype(param_dtype).itemsize
    D_max = max(Din, num_dirs * Hp)
    Tb = _plan_time_block(S, Bp, D_max, Hp, isz, budget, cap=time_block_cap)
    Sp = -(-S // Tb) * Tb                  # time padded to a multiple of Tb

    # One-time relayout: batch-major -> time-major, pad batch/time, flatten.
    xs = jnp.transpose(x, (1, 0, 2)).astype(jnp.float32)
    xs = jnp.pad(xs, ((0, Sp - S), (0, Bp - B), (0, 0)))
    xs2 = xs.reshape(Sp * Bp, Din)

    # zero init once; carried across layers AND directions (PyTorch quirk).
    h_t = jnp.zeros((Bp, Hp), jnp.float32)
    c_t = jnp.zeros((Bp, Hp), jnp.float32)

    hidden = None
    for layer in range(num_layers):
        xk = xs2.astype(param_dtype)
        outs = []
        for direction in range(num_dirs):
            W, U, b = params[layer][direction]
            Wp, Up, bias_p = _pack_params(W, U, b, layer, H, Hp, num_dirs,
                                          param_dtype)
            hs, h_t, c_t = _lstm_direction_pass(
                xk, Wp, Up, bias_p, h_t, c_t,
                reverse=(direction == 1), tb=Tb, bp=Bp, hp=Hp,
                seq_len=S, vmem_limit=budget)
            outs.append(hs)
        hidden = outs[0] if num_dirs == 1 else jnp.concatenate(outs, axis=1)
        # inter-layer nn.Dropout(p=0.1) -> identity (eval mode)
        xs2 = hidden                        # (Sp*Bp, num_dirs*Hp)

    hseq = hidden.reshape(Sp, Bp, num_dirs * Hp)
    if num_dirs == 2:
        hseq = jnp.concatenate([hseq[..., :H], hseq[..., Hp:Hp + H]], axis=-1)
    else:
        hseq = hseq[..., :H]
    hseq = hseq[:S, :B]
    return jnp.transpose(hseq, (1, 0, 2)), (h_t[:B, :H], c_t[:B, :H])


@functools.partial(jax.jit, static_argnames=("hidden_size", "num_layers",
                                             "bidirectional", "param_dtype",
                                             "time_block_cap"))
def quantized_lstm_forward(x, params, *, hidden_size, num_layers, bidirectional,
                           param_dtype=jnp.float32, time_block_cap=16):
    return _forward_impl(x, params, hidden_size, num_layers, bidirectional,
                         param_dtype, time_block_cap)


# ---------------------------------------------------------------------------
# Pure-JAX reference (mirrors the PyTorch loop exactly, explicit flips).
# ---------------------------------------------------------------------------
def _ref_direction_pass(x_bsd, W, U, b, h0, c0):
    B, S, D = x_bsd.shape
    H = h0.shape[-1]
    h, c = h0, c0
    hs = []
    for t in range(S):
        x_t = x_bsd[:, t, :]
        gates = x_t @ W + h @ U + b
        i_t = _sigmoidlinear(gates[:, :H])
        f_t = _sigmoidlinear(gates[:, H:2 * H])
        g_t = jnp.maximum(gates[:, 2 * H:3 * H], 0.0)
        o_t = _sigmoidlinear(gates[:, 3 * H:])
        c = f_t * c + i_t * g_t
        h = o_t * _sigmoidlinear(c)
        hs.append(h[:, None, :])
    return jnp.concatenate(hs, axis=1), h, c


def _ref_forward(x, params, hidden_size, num_layers, bidirectional):
    B, S, _ = x.shape
    num_dirs = 2 if bidirectional else 1
    h_t = jnp.zeros((B, hidden_size), jnp.float32)
    c_t = jnp.zeros((B, hidden_size), jnp.float32)
    hidden_seq = None
    for layer in range(num_layers):
        hidden_seq = None
        for direction in range(num_dirs):
            W, U, b = params[layer][direction]
            hs, h_t, c_t = _ref_direction_pass(x, W, U, b, h_t, c_t)
            if direction == 0:
                hidden_seq = hs
            else:
                hidden_seq = jnp.concatenate(
                    [hidden_seq, jnp.flip(hs, axis=1)], axis=2)
            x = jnp.flip(x, axis=1)                   # PyTorch quirk reproduced
        x = hidden_seq
    return hidden_seq, (h_t, c_t)


# ---------------------------------------------------------------------------
# Deterministic parameter init (mirrors module __init__ / init_weights).
# ---------------------------------------------------------------------------
def init_params(key, input_size, hidden_size, num_layers, bidirectional):
    num_dirs = 2 if bidirectional else 1
    stdv = 1.0 / math.sqrt(hidden_size)
    params = []
    for layer in range(num_layers):
        in_sz = input_size if layer == 0 else hidden_size * num_dirs
        layer_params = []
        for _ in range(num_dirs):
            key, k1, k2, k3 = jax.random.split(key, 4)
            W = jax.random.uniform(k1, (in_sz, 4 * hidden_size),
                                   jnp.float32, -stdv, stdv)
            U = jax.random.uniform(k2, (hidden_size, 4 * hidden_size),
                                   jnp.float32, -stdv, stdv)
            b = jax.random.uniform(k3, (4 * hidden_size,),
                                   jnp.float32, -stdv, stdv)
            layer_params.append((W, U, b))
        params.append(layer_params)
    return params


if __name__ == "__main__":
    def run_case(input_size, hidden_size, num_layers, bidirectional, batch, seq,
                 param_dtype, time_block_cap, tol):
        key = jax.random.PRNGKey(0)
        key, pkey, xkey = jax.random.split(key, 3)
        params = init_params(pkey, input_size, hidden_size, num_layers,
                             bidirectional)
        x = jax.random.normal(xkey, (batch, seq, input_size), jnp.float32)

        out, (h, c) = quantized_lstm_forward(
            x, params, hidden_size=hidden_size, num_layers=num_layers,
            bidirectional=bidirectional, param_dtype=param_dtype,
            time_block_cap=time_block_cap)
        jax.block_until_ready((out, h, c))

        ref_seq, (ref_h, ref_c) = _ref_forward(
            x, params, hidden_size, num_layers, bidirectional)
        nd = 2 if bidirectional else 1
        assert out.shape == (batch, seq, hidden_size * nd)
        assert h.shape == (batch, hidden_size)
        assert c.shape == (batch, hidden_size)
        assert jnp.allclose(out, ref_seq, atol=tol, rtol=tol), \
            float(jnp.max(jnp.abs(out - ref_seq)))
        assert jnp.allclose(h, ref_h, atol=tol, rtol=tol)
        assert jnp.allclose(c, ref_c, atol=tol, rtol=tol)

    # primary toy config
    run_case(16, 32, 2, True, 2, 8, jnp.float32, 16, 1e-4)
    # awkward sequence length + non-multiple-of-8 batch -> exercises time
    # padding / in-kernel tail masking and batch padding
    run_case(16, 32, 2, True, 3, 11, jnp.float32, 4, 1e-4)
    # bf16 weight/activation storage (f32 accumulation) -> looser tolerance
    run_case(16, 32, 2, True, 2, 8, jnp.bfloat16, 16, 5e-2)

    print("KERNEL_OK")
</pallas_src>

<mosaic_0001>
module attributes {stable_mosaic.version = 11 : i64} {
  func.func @_k(%arg0: i32, %arg1: memref<8x128xf32, #tpu.memory_space<vmem>>, %arg2: memref<8x128xf32, #tpu.memory_space<vmem>>) attributes {dimension_semantics = [#tpu.dimension_semantics<arbitrary>], iteration_bounds = array<i64: 2>, scalar_prefetch = 0 : i64, scratch_operands = 0 : i64, tpu.core_type = #tpu.core_type<tc>, window_params = [{pipeline_mode = #tpu.pipeline_mode<synchronous>, transform_indices = @transform_0, window_bounds = array<i64: 8, 128>}, {transform_indices = @transform_1, window_bounds = array<i64: 8, 128>}]} {
    %c0 = arith.constant 0 : index
    %c0_0 = arith.constant 0 : index
    %0 = vector.load %arg1[%c0, %c0_0] : memref<8x128xf32, #tpu.memory_space<vmem>>, vector<8x128xf32>
    %cst = arith.constant 1.000000e+00 : f32
    %1 = vector.broadcast %cst : f32 to vector<8x128xf32>
    %2 = arith.addf %0, %1 : vector<8x128xf32>
    %c0_1 = arith.constant 0 : index
    %c0_2 = arith.constant 0 : index
    %3 = vector.load %arg2[%c0_1, %c0_2] : memref<8x128xf32, #tpu.memory_space<vmem>>, vector<8x128xf32>
    tpu.vector_store %arg2[%c0_1, %c0_2], %2 {strides = array<i32>} : memref<8x128xf32, #tpu.memory_space<vmem>>, vector<8x128xf32>,
    return
  }
  func.func @transform_0(%arg0: i32) -> (i32, i32) {
    %c0_i32 = arith.constant 0 : i32
    %c0_i32_0 = arith.constant 0 : i32
    %c0_i32_1 = arith.constant 0 : i32
    return %c0_i32, %c0_i32_0 : i32, i32
  }
  func.func @transform_1(%arg0: i32) -> (i32, i32) {
    %c0_i32 = arith.constant 0 : i32
    %c0_i32_0 = arith.constant 0 : i32
    return %arg0, %c0_i32 : i32, i32
  }
}

module attributes {stable_mosaic.version = 11 : i64} {
  func.func @_lstm_rec_kernel(%arg0: i32, %arg1: memref<64x16xf32, #tpu.memory_space<vmem>>, %arg2: memref<16x512xf32, #tpu.memory_space<vmem>>, %arg3: memref<128x512xf32, #tpu.memory_space<vmem>>, %arg4: memref<1x512xf32, #tpu.memory_space<vmem>>, %arg5: memref<8x128xf32, #tpu.memory_space<vmem>>, %arg6: memref<8x128xf32, #tpu.memory_space<vmem>>, %arg7: memref<64x128xf32, #tpu.memory_space<vmem>>, %arg8: memref<8x128xf32, #tpu.memory_space<vmem>>, %arg9: memref<8x128xf32, #tpu.memory_space<vmem>>, %arg10: memref<64x512xf32, #tpu.memory_space<vmem>>, %arg11: memref<8x128xf32, #tpu.memory_space<vmem>>, %arg12: memref<8x128xf32, #tpu.memory_space<vmem>>) attributes {dimension_semantics = [#tpu.dimension_semantics<arbitrary>], iteration_bounds = array<i64: 1>, scalar_prefetch = 0 : i64, scratch_operands = 3 : i64, tpu.core_type = #tpu.core_type<tc>, window_params = [{transform_indices = @transform_0, window_bounds = array<i64: 64, 16>}, {pipeline_mode = #tpu.pipeline_mode<synchronous>, transform_indices = @transform_1, window_bounds = array<i64: 16, 512>}, {pipeline_mode = #tpu.pipeline_mode<synchronous>, transform_indices = @transform_2, window_bounds = array<i64: 128, 512>}, {pipeline_mode = #tpu.pipeline_mode<synchronous>, transform_indices = @transform_3, window_bounds = array<i64: 1, 512>}, {pipeline_mode = #tpu.pipeline_mode<synchronous>, transform_indices = @transform_4, window_bounds = array<i64: 8, 128>}, {pipeline_mode = #tpu.pipeline_mode<synchronous>, transform_indices = @transform_5, window_bounds = array<i64: 8, 128>}, {transform_indices = @transform_6, window_bounds = array<i64: 64, 128>}, {pipeline_mode = #tpu.pipeline_mode<synchronous>, transform_indices = @transform_7, window_bounds = array<i64: 8, 128>}, {pipeline_mode = #tpu.pipeline_mode<synchronous>, transform_indices = @transform_8, window_bounds = array<i64: 8, 128>}]} {
    %c0_i32 = arith.constant 0 : i32
    %0 = arith.cmpi eq, %arg0, %c0_i32 : i32
    %1 = arith.extui %0 : i1 to i32
    %c0_i32_0 = arith.constant 0 : i32
    %2 = arith.cmpi ne, %1, %c0_i32_0 : i32
    scf.if %2 {
      %c0_189 = arith.constant 0 : index
      %c0_190 = arith.constant 0 : index
      %386 = vector.load %arg5[%c0_189, %c0_190] : memref<8x128xf32, #tpu.memory_space<vmem>>, vector<8x128xf32>
      %c0_191 = arith.constant 0 : index
      %c0_192 = arith.constant 0 : index
      %387 = vector.load %arg11[%c0_191, %c0_192] : memref<8x128xf32, #tpu.memory_space<vmem>>, vector<8x128xf32>
      tpu.vector_store %arg11[%c0_191, %c0_192], %386 {strides = array<i32>} : memref<8x128xf32, #tpu.memory_space<vmem>>, vector<8x128xf32>,
      %c0_193 = arith.constant 0 : index
      %c0_194 = arith.constant 0 : index
      %388 = vector.load %arg6[%c0_193, %c0_194] : memref<8x128xf32, #tpu.memory_space<vmem>>, vector<8x128xf32>
      %c0_195 = arith.constant 0 : index
      %c0_196 = arith.constant 0 : index
      %389 = vector.load %arg12[%c0_195, %c0_196] : memref<8x128xf32, #tpu.memory_space<vmem>>, vector<8x128xf32>
      tpu.vector_store %arg12[%c0_195, %c0_196], %388 {strides = array<i32>} : memref<8x128xf32, #tpu.memory_space<vmem>>, vector<8x128xf32>,
    } else {
    }
    %c0 = arith.constant 0 : index
    %c0_1 = arith.constant 0 : index
    %3 = vector.load %arg1[%c0, %c0_1] : memref<64x16xf32, #tpu.memory_space<vmem>>, vector<64x16xf32>
    %c0_2 = arith.constant 0 : index
    %c0_3 = arith.constant 0 : index
    %4 = vector.load %arg2[%c0_2, %c0_3] : memref<16x512xf32, #tpu.memory_space<vmem>>, vector<16x512xf32>
    %cst = arith.constant dense<0.000000e+00> : vector<64x512xf32>
    %5 = tpu.matmul %3, %4, %cst {dimension_numbers = #tpu.dot_dimension_numbers<[1], [0], [0], [1], [0, 0, 1, 1], [], []>} : vector<64x16xf32>, vector<16x512xf32>, vector<64x512xf32> -> vector<64x512xf32>
    %c0_4 = arith.constant 0 : index
    %c0_5 = arith.constant 0 : index
    %6 = vector.load %arg4[%c0_4, %c0_5] : memref<1x512xf32, #tpu.memory_space<vmem>>, vector<1x512xf32>
    %7 = vector.broadcast %6 : vector<1x512xf32> to vector<64x512xf32>
    %8 = arith.addf %5, %7 : vector<64x512xf32>
    %c0_6 = arith.constant 0 : index
    %c0_7 = arith.constant 0 : index
    %9 = vector.load %arg10[%c0_6, %c0_7] : memref<64x512xf32, #tpu.memory_space<vmem>>, vector<64x512xf32>
    tpu.vector_store %arg10[%c0_6, %c0_7], %8 {strides = array<i32>} : memref<64x512xf32, #tpu.memory_space<vmem>>, vector<64x512xf32>,
    %c0_8 = arith.constant 0 : index
    %c0_9 = arith.constant 0 : index
    %10 = vector.load %arg11[%c0_8, %c0_9] : memref<8x128xf32, #tpu.memory_space<vmem>>, vector<8x128xf32>
    %c0_10 = arith.constant 0 : index
    %c0_11 = arith.constant 0 : index
    %11 = vector.load %arg12[%c0_10, %c0_11] : memref<8x128xf32, #tpu.memory_space<vmem>>, vector<8x128xf32>
    %c0_12 = arith.constant 0 : index
    %c0_13 = arith.constant 0 : index
    %12 = vector.load %arg3[%c0_12, %c0_13] : memref<128x512xf32, #tpu.memory_space<vmem>>, vector<128x512xf32>
    %c56 = arith.constant 56 : index
    %c0_14 = arith.constant 0 : index
    %13 = vector.load %arg10[%c56, %c0_14] : memref<64x512xf32, #tpu.memory_space<vmem>>, vector<8x512xf32>
    %cst_15 = arith.constant dense<0.000000e+00> : vector<8x512xf32>
    %14 = tpu.matmul %10, %12, %cst_15 {dimension_numbers = #tpu.dot_dimension_numbers<[1], [0], [0], [1], [0, 0, 1, 1], [], []>} : vector<8x128xf32>, vector<128x512xf32>, vector<8x512xf32> -> vector<8x512xf32>
    %15 = arith.addf %13, %14 : vector<8x512xf32>
    %16 = vector.extract_strided_slice %15 {offsets = [0, 0], sizes = [8, 128], strides = [1, 1]} : vector<8x512xf32> to vector<8x128xf32>
    %cst_16 = arith.constant 2.500000e-01 : f32
    %17 = vector.broadcast %cst_16 : f32 to vector<8x128xf32>
    %18 = arith.mulf %17, %16 : vector<8x128xf32>
    %cst_17 = arith.constant 5.000000e-01 : f32
    %19 = vector.broadcast %cst_17 : f32 to vector<8x128xf32>
    %20 = arith.addf %18, %19 : vector<8x128xf32>
    %cst_18 = arith.constant 0.000000e+00 : f32
    %cst_19 = arith.constant 1.000000e+00 : f32
    %21 = vector.broadcast %cst_18 : f32 to vector<8x128xf32>
    %22 = arith.maximumf %21, %20 : vector<8x128xf32>
    %23 = vector.broadcast %cst_19 : f32 to vector<8x128xf32>
    %24 = arith.minimumf %23, %22 : vector<8x128xf32>
    %25 = vector.extract_strided_slice %15 {offsets = [0, 128], sizes = [8, 128], strides = [1, 1]} : vector<8x512xf32> to vector<8x128xf32>
    %cst_20 = arith.constant 2.500000e-01 : f32
    %26 = vector.broadcast %cst_20 : f32 to vector<8x128xf32>
    %27 = arith.mulf %26, %25 : vector<8x128xf32>
    %cst_21 = arith.constant 5.000000e-01 : f32
    %28 = vector.broadcast %cst_21 : f32 to vector<8x128xf32>
    %29 = arith.addf %27, %28 : vector<8x128xf32>
    %cst_22 = arith.constant 0.000000e+00 : f32
    %cst_23 = arith.constant 1.000000e+00 : f32
    %30 = vector.broadcast %cst_22 : f32 to vector<8x128xf32>
    %31 = arith.maximumf %30, %29 : vector<8x128xf32>
    %32 = vector.broadcast %cst_23 : f32 to vector<8x128xf32>
    %33 = arith.minimumf %32, %31 : vector<8x128xf32>
    %34 = vector.extract_strided_slice %15 {offsets = [0, 256], sizes = [8, 128], strides = [1, 1]} : vector<8x512xf32> to vector<8x128xf32>
    %cst_24 = arith.constant 0.000000e+00 : f32
    %35 = vector.broadcast %cst_24 : f32 to vector<8x128xf32>
    %36 = arith.maximumf %34, %35 : vector<8x128xf32>
    %37 = vector.extract_strided_slice %15 {offsets = [0, 384], sizes = [8, 128], strides = [1, 1]} : vector<8x512xf32> to vector<8x128xf32>
    %cst_25 = arith.constant 2.500000e-01 : f32
    %38 = vector.broadcast %cst_25 : f32 to vector<8x128xf32>
    %39 = arith.mulf %38, %37 : vector<8x128xf32>
    %cst_26 = arith.constant 5.000000e-01 : f32
    %40 = vector.broadcast %cst_26 : f32 to vector<8x128xf32>
    %41 = arith.addf %39, %40 : vector<8x128xf32>
    %cst_27 = arith.constant 0.000000e+00 : f32
    %cst_28 = arith.constant 1.000000e+00 : f32
    %42 = vector.broadcast %cst_27 : f32 to vector<8x128xf32>
    %43 = arith.maximumf %42, %41 : vector<8x128xf32>
    %44 = vector.broadcast %cst_28 : f32 to vector<8x128xf32>
    %45 = arith.minimumf %44, %43 : vector<8x128xf32>
    %46 = arith.mulf %33, %11 : vector<8x128xf32>
    %47 = arith.mulf %24, %36 : vector<8x128xf32>
    %48 = arith.addf %46, %47 : vector<8x128xf32>
    %cst_29 = arith.constant 2.500000e-01 : f32
    %49 = vector.broadcast %cst_29 : f32 to vector<8x128xf32>
    %50 = arith.mulf %49, %48 : vector<8x128xf32>
    %cst_30 = arith.constant 5.000000e-01 : f32
    %51 = vector.broadcast %cst_30 : f32 to vector<8x128xf32>
    %52 = arith.addf %50, %51 : vector<8x128xf32>
    %cst_31 = arith.constant 0.000000e+00 : f32
    %cst_32 = arith.constant 1.000000e+00 : f32
    %53 = vector.broadcast %cst_31 : f32 to vector<8x128xf32>
    %54 = arith.maximumf %53, %52 : vector<8x128xf32>
    %55 = vector.broadcast %cst_32 : f32 to vector<8x128xf32>
    %56 = arith.minimumf %55, %54 : vector<8x128xf32>
    %57 = arith.mulf %45, %56 : vector<8x128xf32>
    %c56_33 = arith.constant 56 : index
    %c0_34 = arith.constant 0 : index
    %58 = vector.load %arg7[%c56_33, %c0_34] : memref<64x128xf32, #tpu.memory_space<vmem>>, vector<8x128xf32>
    tpu.vector_store %arg7[%c56_33, %c0_34], %57 {strides = array<i32>} : memref<64x128xf32, #tpu.memory_space<vmem>>, vector<8x128xf32>,
    %c48 = arith.constant 48 : index
    %c0_35 = arith.constant 0 : index
    %59 = vector.load %arg10[%c48, %c0_35] : memref<64x512xf32, #tpu.memory_space<vmem>>, vector<8x512xf32>
    %cst_36 = arith.constant dense<0.000000e+00> : vector<8x512xf32>
    %60 = tpu.matmul %57, %12, %cst_36 {dimension_numbers = #tpu.dot_dimension_numbers<[1], [0], [0], [1], [0, 0, 1, 1], [], []>} : vector<8x128xf32>, vector<128x512xf32>, vector<8x512xf32> -> vector<8x512xf32>
    %61 = arith.addf %59, %60 : vector<8x512xf32>
    %62 = vector.extract_strided_slice %61 {offsets = [0, 0], sizes = [8, 128], strides = [1, 1]} : vector<8x512xf32> to vector<8x128xf32>
    %cst_37 = arith.constant 2.500000e-01 : f32
    %63 = vector.broadcast %cst_37 : f32 to vector<8x128xf32>
    %64 = arith.mulf %63, %62 : vector<8x128xf32>
    %cst_38 = arith.constant 5.000000e-01 : f32
    %65 = vector.broadcast %cst_38 : f32 to vector<8x128xf32>
    %66 = arith.addf %64, %65 : vector<8x128xf32>
    %cst_39 = arith.constant 0.000000e+00 : f32
    %cst_40 = arith.constant 1.000000e+00 : f32
    %67 = vector.broadcast %cst_39 : f32 to vector<8x128xf32>
    %68 = arith.maximumf %67, %66 : vector<8x128xf32>
    %69 = vector.broadcast %cst_40 : f32 to vector<8x128xf32>
    %70 = arith.minimumf %69, %68 : vector<8x128xf32>
    %71 = vector.extract_strided_slice %61 {offsets = [0, 128], sizes = [8, 128], strides = [1, 1]} : vector<8x512xf32> to vector<8x128xf32>
    %cst_41 = arith.constant 2.500000e-01 : f32
    %72 = vector.broadcast %cst_41 : f32 to vector<8x128xf32>
    %73 = arith.mulf %72, %71 : vector<8x128xf32>
    %cst_42 = arith.constant 5.000000e-01 : f32
    %74 = vector.broadcast %cst_42 : f32 to vector<8x128xf32>
    %75 = arith.addf %73, %74 : vector<8x128xf32>
    %cst_43 = arith.constant 0.000000e+00 : f32
    %cst_44 = arith.constant 1.000000e+00 : f32
    %76 = vector.broadcast %cst_43 : f32 to vector<8x128xf32>
    %77 = arith.maximumf %76, %75 : vector<8x128xf32>
    %78 = vector.broadcast %cst_44 : f32 to vector<8x128xf32>
    %79 = arith.minimumf %78, %77 : vector<8x128xf32>
    %80 = vector.extract_strided_slice %61 {offsets = [0, 256], sizes = [8, 128], strides = [1, 1]} : vector<8x512xf32> to vector<8x128xf32>
    %cst_45 = arith.constant 0.000000e+00 : f32
    %81 = vector.broadcast %cst_45 : f32 to vector<8x128xf32>
    %82 = arith.maximumf %80, %81 : vector<8x128xf32>
    %83 = vector.extract_strided_slice %61 {offsets = [0, 384], sizes = [8, 128], strides = [1, 1]} : vector<8x512xf32> to vector<8x128xf32>
    %cst_46 = arith.constant 2.500000e-01 : f32
    %84 = vector.broadcast %cst_46 : f32 to vector<8x128xf32>
    %85 = arith.mulf %84, %83 : vector<8x128xf32>
    %cst_47 = arith.constant 5.000000e-01 : f32
    %86 = vector.broadcast %cst_47 : f32 to vector<8x128xf32>
    %87 = arith.addf %85, %86 : vector<8x128xf32>
    %cst_48 = arith.constant 0.000000e+00 : f32
    %cst_49 = arith.constant 1.000000e+00 : f32
    %88 = vector.broadcast %cst_48 : f32 to vector<8x128xf32>
    %89 = arith.maximumf %88, %87 : vector<8x128xf32>
    %90 = vector.broadcast %cst_49 : f32 to vector<8x128xf32>
    %91 = arith.minimumf %90, %89 : vector<8x128xf32>
    %92 = arith.mulf %79, %48 : vector<8x128xf32>
    %93 = arith.mulf %70, %82 : vector<8x128xf32>
    %94 = arith.addf %92, %93 : vector<8x128xf32>
    %cst_50 = arith.constant 2.500000e-01 : f32
    %95 = vector.broadcast %cst_50 : f32 to vector<8x128xf32>
    %96 = arith.mulf %95, %94 : vector<8x128xf32>
    %cst_51 = arith.constant 5.000000e-01 : f32
    %97 = vector.broadcast %cst_51 : f32 to vector<8x128xf32>
    %98 = arith.addf %96, %97 : vector<8x128xf32>
    %cst_52 = arith.constant 0.000000e+00 : f32
    %cst_53 = arith.constant 1.000000e+00 : f32
    %99 = vector.broadcast %cst_52 : f32 to vector<8x128xf32>
    %100 = arith.maximumf %99, %98 : vector<8x128xf32>
    %101 = vector.broadcast %cst_53 : f32 to vector<8x128xf32>
    %102 = arith.minimumf %101, %100 : vector<8x128xf32>
    %103 = arith.mulf %91, %102 : vector<8x128xf32>
    %c48_54 = arith.constant 48 : index
    %c0_55 = arith.constant 0 : index
    %104 = vector.load %arg7[%c48_54, %c0_55] : memref<64x128xf32, #tpu.memory_space<vmem>>, vector<8x128xf32>
    tpu.vector_store %arg7[%c48_54, %c0_55], %103 {strides = array<i32>} : memref<64x128xf32, #tpu.memory_space<vmem>>, vector<8x128xf32>,
    %c40 = arith.constant 40 : index
    %c0_56 = arith.constant 0 : index
    %105 = vector.load %arg10[%c40, %c0_56] : memref<64x512xf32, #tpu.memory_space<vmem>>, vector<8x512xf32>
    %cst_57 = arith.constant dense<0.000000e+00> : vector<8x512xf32>
    %106 = tpu.matmul %103, %12, %cst_57 {dimension_numbers = #tpu.dot_dimension_numbers<[1], [0], [0], [1], [0, 0, 1, 1], [], []>} : vector<8x128xf32>, vector<128x512xf32>, vector<8x512xf32> -> vector<8x512xf32>
    %107 = arith.addf %105, %106 : vector<8x512xf32>
    %108 = vector.extract_strided_slice %107 {offsets = [0, 0], sizes = [8, 128], strides = [1, 1]} : vector<8x512xf32> to vector<8x128xf32>
    %cst_58 = arith.constant 2.500000e-01 : f32
    %109 = vector.broadcast %cst_58 : f32 to vector<8x128xf32>
    %110 = arith.mulf %109, %108 : vector<8x128xf32>
    %cst_59 = arith.constant 5.000000e-01 : f32
    %111 = vector.broadcast %cst_59 : f32 to vector<8x128xf32>
    %112 = arith.addf %110, %111 : vector<8x128xf32>
    %cst_60 = arith.constant 0.000000e+00 : f32
    %cst_61 = arith.constant 1.000000e+00 : f32
    %113 = vector.broadcast %cst_60 : f32 to vector<8x128xf32>
    %114 = arith.maximumf %113, %112 : vector<8x128xf32>
    %115 = vector.broadcast %cst_61 : f32 to vector<8x128xf32>
    %116 = arith.minimumf %115, %114 : vector<8x128xf32>
    %117 = vector.extract_strided_slice %107 {offsets = [0, 128], sizes = [8, 128], strides = [1, 1]} : vector<8x512xf32> to vector<8x128xf32>
    %cst_62 = arith.constant 2.500000e-01 : f32
    %118 = vector.broadcast %cst_62 : f32 to vector<8x128xf32>
    %119 = arith.mulf %118, %117 : vector<8x128xf32>
    %cst_63 = arith.constant 5.000000e-01 : f32
    %120 = vector.broadcast %cst_63 : f32 to vector<8x128xf32>
    %121 = arith.addf %119, %120 : vector<8x128xf32>
    %cst_64 = arith.constant 0.000000e+00 : f32
    %cst_65 = arith.constant 1.000000e+00 : f32
    %122 = vector.broadcast %cst_64 : f32 to vector<8x128xf32>
    %123 = arith.maximumf %122, %121 : vector<8x128xf32>
    %124 = vector.broadcast %cst_65 : f32 to vector<8x128xf32>
    %125 = arith.minimumf %124, %123 : vector<8x128xf32>
    %126 = vector.extract_strided_slice %107 {offsets = [0, 256], sizes = [8, 128], strides = [1, 1]} : vector<8x512xf32> to vector<8x128xf32>
    %cst_66 = arith.constant 0.000000e+00 : f32
    %127 = vector.broadcast %cst_66 : f32 to vector<8x128xf32>
    %128 = arith.maximumf %126, %127 : vector<8x128xf32>
    %129 = vector.extract_strided_slice %107 {offsets = [0, 384], sizes = [8, 128], strides = [1, 1]} : vector<8x512xf32> to vector<8x128xf32>
    %cst_67 = arith.constant 2.500000e-01 : f32
    %130 = vector.broadcast %cst_67 : f32 to vector<8x128xf32>
    %131 = arith.mulf %130, %129 : vector<8x128xf32>
    %cst_68 = arith.constant 5.000000e-01 : f32
    %132 = vector.broadcast %cst_68 : f32 to vector<8x128xf32>
    %133 = arith.addf %131, %132 : vector<8x128xf32>
    %cst_69 = arith.constant 0.000000e+00 : f32
    %cst_70 = arith.constant 1.000000e+00 : f32
    %134 = vector.broadcast %cst_69 : f32 to vector<8x128xf32>
    %135 = arith.maximumf %134, %133 : vector<8x128xf32>
    %136 = vector.broadcast %cst_70 : f32 to vector<8x128xf32>
    %137 = arith.minimumf %136, %135 : vector<8x128xf32>
    %138 = arith.mulf %125, %94 : vector<8x128xf32>
    %139 = arith.mulf %116, %128 : vector<8x128xf32>
    %140 = arith.addf %138, %139 : vector<8x128xf32>
    %cst_71 = arith.constant 2.500000e-01 : f32
    %141 = vector.broadcast %cst_71 : f32 to vector<8x128xf32>
    %142 = arith.mulf %141, %140 : vector<8x128xf32>
    %cst_72 = arith.constant 5.000000e-01 : f32
    %143 = vector.broadcast %cst_72 : f32 to vector<8x128xf32>
    %144 = arith.addf %142, %143 : vector<8x128xf32>
    %cst_73 = arith.constant 0.000000e+00 : f32
    %cst_74 = arith.constant 1.000000e+00 : f32
    %145 = vector.broadcast %cst_73 : f32 to vector<8x128xf32>
    %146 = arith.maximumf %145, %144 : vector<8x128xf32>
    %147 = vector.broadcast %cst_74 : f32 to vector<8x128xf32>
    %148 = arith.minimumf %147, %146 : vector<8x128xf32>
    %149 = arith.mulf %137, %148 : vector<8x128xf32>
    %c40_75 = arith.constant 40 : index
    %c0_76 = arith.constant 0 : index
    %150 = vector.load %arg7[%c40_75, %c0_76] : memref<64x128xf32, #tpu.memory_space<vmem>>, vector<8x128xf32>
    tpu.vector_store %arg7[%c40_75, %c0_76], %149 {strides = array<i32>} : memref<64x128xf32, #tpu.memory_space<vmem>>, vector<8x128xf32>,
    %c32 = arith.constant 32 : index
    %c0_77 = arith.constant 0 : index
    %151 = vector.load %arg10[%c32, %c0_77] : memref<64x512xf32, #tpu.memory_space<vmem>>, vector<8x512xf32>
    %cst_78 = arith.constant dense<0.000000e+00> : vector<8x512xf32>
    %152 = tpu.matmul %149, %12, %cst_78 {dimension_numbers = #tpu.dot_dimension_numbers<[1], [0], [0], [1], [0, 0, 1, 1], [], []>} : vector<8x128xf32>, vector<128x512xf32>, vector<8x512xf32> -> vector<8x512xf32>
    %153 = arith.addf %151, %152 : vector<8x512xf32>
    %154 = vector.extract_strided_slice %153 {offsets = [0, 0], sizes = [8, 128], strides = [1, 1]} : vector<8x512xf32> to vector<8x128xf32>
    %cst_79 = arith.constant 2.500000e-01 : f32
    %155 = vector.broadcast %cst_79 : f32 to vector<8x128xf32>
    %156 = arith.mulf %155, %154 : vector<8x128xf32>
    %cst_80 = arith.constant 5.000000e-01 : f32
    %157 = vector.broadcast %cst_80 : f32 to vector<8x128xf32>
    %158 = arith.addf %156, %157 : vector<8x128xf32>
    %cst_81 = arith.constant 0.000000e+00 : f32
    %cst_82 = arith.constant 1.000000e+00 : f32
    %159 = vector.broadcast %cst_81 : f32 to vector<8x128xf32>
    %160 = arith.maximumf %159, %158 : vector<8x128xf32>
    %161 = vector.broadcast %cst_82 : f32 to vector<8x128xf32>
    %162 = arith.minimumf %161, %160 : vector<8x128xf32>
    %163 = vector.extract_strided_slice %153 {offsets = [0, 128], sizes = [8, 128], strides = [1, 1]} : vector<8x512xf32> to vector<8x128xf32>
    %cst_83 = arith.constant 2.500000e-01 : f32
    %164 = vector.broadcast %cst_83 : f32 to vector<8x128xf32>
    %165 = arith.mulf %164, %163 : vector<8x128xf32>
    %cst_84 = arith.constant 5.000000e-01 : f32
    %166 = vector.broadcast %cst_84 : f32 to vector<8x128xf32>
    %167 = arith.addf %165, %166 : vector<8x128xf32>
    %cst_85 = arith.constant 0.000000e+00 : f32
    %cst_86 = arith.constant 1.000000e+00 : f32
    %168 = vector.broadcast %cst_85 : f32 to vector<8x128xf32>
    %169 = arith.maximumf %168, %167 : vector<8x128xf32>
    %170 = vector.broadcast %cst_86 : f32 to vector<8x128xf32>
    %171 = arith.minimumf %170, %169 : vector<8x128xf32>
    %172 = vector.extract_strided_slice %153 {offsets = [0, 256], sizes = [8, 128], strides = [1, 1]} : vector<8x512xf32> to vector<8x128xf32>
    %cst_87 = arith.constant 0.000000e+00 : f32
    %173 = vector.broadcast %cst_87 : f32 to vector<8x128xf32>
    %174 = arith.maximumf %172, %173 : vector<8x128xf32>
    %175 = vector.extract_strided_slice %153 {offsets = [0, 384], sizes = [8, 128], strides = [1, 1]} : vector<8x512xf32> to vector<8x128xf32>
    %cst_88 = arith.constant 2.500000e-01 : f32
    %176 = vector.broadcast %cst_88 : f32 to vector<8x128xf32>
    %177 = arith.mulf %176, %175 : vector<8x128xf32>
    %cst_89 = arith.constant 5.000000e-01 : f32
    %178 = vector.broadcast %cst_89 : f32 to vector<8x128xf32>
    %179 = arith.addf %177, %178 : vector<8x128xf32>
    %cst_90 = arith.constant 0.000000e+00 : f32
    %cst_91 = arith.constant 1.000000e+00 : f32
    %180 = vector.broadcast %cst_90 : f32 to vector<8x128xf32>
    %181 = arith.maximumf %180, %179 : vector<8x128xf32>
    %182 = vector.broadcast %cst_91 : f32 to vector<8x128xf32>
    %183 = arith.minimumf %182, %181 : vector<8x128xf32>
    %184 = arith.mulf %171, %140 : vector<8x128xf32>
    %185 = arith.mulf %162, %174 : vector<8x128xf32>
    %186 = arith.addf %184, %185 : vector<8x128xf32>
    %cst_92 = arith.constant 2.500000e-01 : f32
    %187 = vector.broadcast %cst_92 : f32 to vector<8x128xf32>
    %188 = arith.mulf %187, %186 : vector<8x128xf32>
    %cst_93 = arith.constant 5.000000e-01 : f32
    %189 = vector.broadcast %cst_93 : f32 to vector<8x128xf32>
    %190 = arith.addf %188, %189 : vector<8x128xf32>
    %cst_94 = arith.constant 0.000000e+00 : f32
    %cst_95 = arith.constant 1.000000e+00 : f32
    %191 = vector.broadcast %cst_94 : f32 to vector<8x128xf32>
    %192 = arith.maximumf %191, %190 : vector<8x128xf32>
    %193 = vector.broadcast %cst_95 : f32 to vector<8x128xf32>
    %194 = arith.minimumf %193, %192 : vector<8x128xf32>
    %195 = arith.mulf %183, %194 : vector<8x128xf32>
    %c32_96 = arith.constant 32 : index
    %c0_97 = arith.constant 0 : index
    %196 = vector.load %arg7[%c32_96, %c0_97] : memref<64x128xf32, #tpu.memory_space<vmem>>, vector<8x128xf32>
    tpu.vector_store %arg7[%c32_96, %c0_97], %195 {strides = array<i32>} : memref<64x128xf32, #tpu.memory_space<vmem>>, vector<8x128xf32>,
    %c24 = arith.constant 24 : index
    %c0_98 = arith.constant 0 : index
    %197 = vector.load %arg10[%c24, %c0_98] : memref<64x512xf32, #tpu.memory_space<vmem>>, vector<8x512xf32>
    %cst_99 = arith.constant dense<0.000000e+00> : vector<8x512xf32>
    %198 = tpu.matmul %195, %12, %cst_99 {dimension_numbers = #tpu.dot_dimension_numbers<[1], [0], [0], [1], [0, 0, 1, 1], [], []>} : vector<8x128xf32>, vector<128x512xf32>, vector<8x512xf32> -> vector<8x512xf32>
    %199 = arith.addf %197, %198 : vector<8x512xf32>
    %200 = vector.extract_strided_slice %199 {offsets = [0, 0], sizes = [8, 128], strides = [1, 1]} : vector<8x512xf32> to vector<8x128xf32>
    %cst_100 = arith.constant 2.500000e-01 : f32
    %201 = vector.broadcast %cst_100 : f32 to vector<8x128xf32>
    %202 = arith.mulf %201, %200 : vector<8x128xf32>
    %cst_101 = arith.constant 5.000000e-01 : f32
    %203 = vector.broadcast %cst_101 : f32 to vector<8x128xf32>
    %204 = arith.addf %202, %203 : vector<8x128xf32>
    %cst_102 = arith.constant 0.000000e+00 : f32
    %cst_103 = arith.constant 1.000000e+00 : f32
    %205 = vector.broadcast %cst_102 : f32 to vector<8x128xf32>
    %206 = arith.maximumf %205, %204 : vector<8x128xf32>
    %207 = vector.broadcast %cst_103 : f32 to vector<8x128xf32>
    %208 = arith.minimumf %207, %206 : vector<8x128xf32>
    %209 = vector.extract_strided_slice %199 {offsets = [0, 128], sizes = [8, 128], strides = [1, 1]} : vector<8x512xf32> to vector<8x128xf32>
    %cst_104 = arith.constant 2.500000e-01 : f32
    %210 = vector.broadcast %cst_104 : f32 to vector<8x128xf32>
    %211 = arith.mulf %210, %209 : vector<8x128xf32>
    %cst_105 = arith.constant 5.000000e-01 : f32
    %212 = vector.broadcast %cst_105 : f32 to vector<8x128xf32>
    %213 = arith.addf %211, %212 : vector<8x128xf32>
    %cst_106 = arith.constant 0.000000e+00 : f32
    %cst_107 = arith.constant 1.000000e+00 : f32
    %214 = vector.broadcast %cst_106 : f32 to vector<8x128xf32>
    %215 = arith.maximumf %214, %213 : vector<8x128xf32>
    %216 = vector.broadcast %cst_107 : f32 to vector<8x128xf32>
    %217 = arith.minimumf %216, %215 : vector<8x128xf32>
    %218 = vector.extract_strided_slice %199 {offsets = [0, 256], sizes = [8, 128], strides = [1, 1]} : vector<8x512xf32> to vector<8x128xf32>
    %cst_108 = arith.constant 0.000000e+00 : f32
    %219 = vector.broadcast %cst_108 : f32 to vector<8x128xf32>
    %220 = arith.maximumf %218, %219 : vector<8x128xf32>
    %221 = vector.extract_strided_slice %199 {offsets = [0, 384], sizes = [8, 128], strides = [1, 1]} : vector<8x512xf32> to vector<8x128xf32>
    %cst_109 = arith.constant 2.500000e-01 : f32
    %222 = vector.broadcast %cst_109 : f32 to vector<8x128xf32>
    %223 = arith.mulf %222, %221 : vector<8x128xf32>
    %cst_110 = arith.constant 5.000000e-01 : f32
    %224 = vector.broadcast %cst_110 : f32 to vector<8x128xf32>
    %225 = arith.addf %223, %224 : vector<8x128xf32>
    %cst_111 = arith.constant 0.000000e+00 : f32
    %cst_112 = arith.constant 1.000000e+00 : f32
    %226 = vector.broadcast %cst_111 : f32 to vector<8x128xf32>
    %227 = arith.maximumf %226, %225 : vector<8x128xf32>
    %228 = vector.broadcast %cst_112 : f32 to vector<8x128xf32>
    %229 = arith.minimumf %228, %227 : vector<8x128xf32>
    %230 = arith.mulf %217, %186 : vector<8x128xf32>
    %231 = arith.mulf %208, %220 : vector<8x128xf32>
    %232 = arith.addf %230, %231 : vector<8x128xf32>
    %cst_113 = arith.constant 2.500000e-01 : f32
    %233 = vector.broadcast %cst_113 : f32 to vector<8x128xf32>
    %234 = arith.mulf %233, %232 : vector<8x128xf32>
    %cst_114 = arith.constant 5.000000e-01 : f32
    %235 = vector.broadcast %cst_114 : f32 to vector<8x128xf32>
    %236 = arith.addf %234, %235 : vector<8x128xf32>
    %cst_115 = arith.constant 0.000000e+00 : f32
    %cst_116 = arith.constant 1.000000e+00 : f32
    %237 = vector.broadcast %cst_115 : f32 to vector<8x128xf32>
    %238 = arith.maximumf %237, %236 : vector<8x128xf32>
    %239 = vector.broadcast %cst_116 : f32 to vector<8x128xf32>
    %240 = arith.minimumf %239, %238 : vector<8x128xf32>
    %241 = arith.mulf %229, %240 : vector<8x128xf32>
    %c24_117 = arith.constant 24 : index
    %c0_118 = arith.constant 0 : index
    %242 = vector.load %arg7[%c24_117, %c0_118] : memref<64x128xf32, #tpu.memory_space<vmem>>, vector<8x128xf32>
    tpu.vector_store %arg7[%c24_117, %c0_118], %241 {strides = array<i32>} : memref<64x128xf32, #tpu.memory_space<vmem>>, vector<8x128xf32>,
    %c16 = arith.constant 16 : index
    %c0_119 = arith.constant 0 : index
    %243 = vector.load %arg10[%c16, %c0_119] : memref<64x512xf32, #tpu.memory_space<vmem>>, vector<8x512xf32>
    %cst_120 = arith.constant dense<0.000000e+00> : vector<8x512xf32>
    %244 = tpu.matmul %241, %12, %cst_120 {dimension_numbers = #tpu.dot_dimension_numbers<[1], [0], [0], [1], [0, 0, 1, 1], [], []>} : vector<8x128xf32>, vector<128x512xf32>, vector<8x512xf32> -> vector<8x512xf32>
    %245 = arith.addf %243, %244 : vector<8x512xf32>
    %246 = vector.extract_strided_slice %245 {offsets = [0, 0], sizes = [8, 128], strides = [1, 1]} : vector<8x512xf32> to vector<8x128xf32>
    %cst_121 = arith.constant 2.500000e-01 : f32
    %247 = vector.broadcast %cst_121 : f32 to vector<8x128xf32>
    %248 = arith.mulf %247, %246 : vector<8x128xf32>
    %cst_122 = arith.constant 5.000000e-01 : f32
    %249 = vector.broadcast %cst_122 : f32 to vector<8x128xf32>
    %250 = arith.addf %248, %249 : vector<8x128xf32>
    %cst_123 = arith.constant 0.000000e+00 : f32
    %cst_124 = arith.constant 1.000000e+00 : f32
    %251 = vector.broadcast %cst_123 : f32 to vector<8x128xf32>
    %252 = arith.maximumf %251, %250 : vector<8x128xf32>
    %253 = vector.broadcast %cst_124 : f32 to vector<8x128xf32>
    %254 = arith.minimumf %253, %252 : vector<8x128xf32>
    %255 = vector.extract_strided_slice %245 {offsets = [0, 128], sizes = [8, 128], strides = [1, 1]} : vector<8x512xf32> to vector<8x128xf32>
    %cst_125 = arith.constant 2.500000e-01 : f32
    %256 = vector.broadcast %cst_125 : f32 to vector<8x128xf32>
    %257 = arith.mulf %256, %255 : vector<8x128xf32>
    %cst_126 = arith.constant 5.000000e-01 : f32
    %258 = vector.broadcast %cst_126 : f32 to vector<8x128xf32>
    %259 = arith.addf %257, %258 : vector<8x128xf32>
    %cst_127 = arith.constant 0.000000e+00 : f32
    %cst_128 = arith.constant 1.000000e+00 : f32
    %260 = vector.broadcast %cst_127 : f32 to vector<8x128xf32>
    %261 = arith.maximumf %260, %259 : vector<8x128xf32>
    %262 = vector.broadcast %cst_128 : f32 to vector<8x128xf32>
    %263 = arith.minimumf %262, %261 : vector<8x128xf32>
    %264 = vector.extract_strided_slice %245 {offsets = [0, 256], sizes = [8, 128], strides = [1, 1]} : vector<8x512xf32> to vector<8x128xf32>
    %cst_129 = arith.constant 0.000000e+00 : f32
    %265 = vector.broadcast %cst_129 : f32 to vector<8x128xf32>
    %266 = arith.maximumf %264, %265 : vector<8x128xf32>
    %267 = vector.extract_strided_slice %245 {offsets = [0, 384], sizes = [8, 128], strides = [1, 1]} : vector<8x512xf32> to vector<8x128xf32>
    %cst_130 = arith.constant 2.500000e-01 : f32
    %268 = vector.broadcast %cst_130 : f32 to vector<8x128xf32>
    %269 = arith.mulf %268, %267 : vector<8x128xf32>
    %cst_131 = arith.constant 5.000000e-01 : f32
    %270 = vector.broadcast %cst_131 : f32 to vector<8x128xf32>
    %271 = arith.addf %269, %270 : vector<8x128xf32>
    %cst_132 = arith.constant 0.000000e+00 : f32
    %cst_133 = arith.constant 1.000000e+00 : f32
    %272 = vector.broadcast %cst_132 : f32 to vector<8x128xf32>
    %273 = arith.maximumf %272, %271 : vector<8x128xf32>
    %274 = vector.broadcast %cst_133 : f32 to vector<8x128xf32>
    %275 = arith.minimumf %274, %273 : vector<8x128xf32>
    %276 = arith.mulf %263, %232 : vector<8x128xf32>
    %277 = arith.mulf %254, %266 : vector<8x128xf32>
    %278 = arith.addf %276, %277 : vector<8x128xf32>
    %cst_134 = arith.constant 2.500000e-01 : f32
    %279 = vector.broadcast %cst_134 : f32 to vector<8x128xf32>
    %280 = arith.mulf %279, %278 : vector<8x128xf32>
    %cst_135 = arith.constant 5.000000e-01 : f32
    %281 = vector.broadcast %cst_135 : f32 to vector<8x128xf32>
    %282 = arith.addf %280, %281 : vector<8x128xf32>
    %cst_136 = arith.constant 0.000000e+00 : f32
    %cst_137 = arith.constant 1.000000e+00 : f32
    %283 = vector.broadcast %cst_136 : f32 to vector<8x128xf32>
    %284 = arith.maximumf %283, %282 : vector<8x128xf32>
    %285 = vector.broadcast %cst_137 : f32 to vector<8x128xf32>
    %286 = arith.minimumf %285, %284 : vector<8x128xf32>
    %287 = arith.mulf %275, %286 : vector<8x128xf32>
    %c16_138 = arith.constant 16 : index
    %c0_139 = arith.constant 0 : index
    %288 = vector.load %arg7[%c16_138, %c0_139] : memref<64x128xf32, #tpu.memory_space<vmem>>, vector<8x128xf32>
    tpu.vector_store %arg7[%c16_138, %c0_139], %287 {strides = array<i32>} : memref<64x128xf32, #tpu.memory_space<vmem>>, vector<8x128xf32>,
    %c8 = arith.constant 8 : index
    %c0_140 = arith.constant 0 : index
    %289 = vector.load %arg10[%c8, %c0_140] : memref<64x512xf32, #tpu.memory_space<vmem>>, vector<8x512xf32>
    %cst_141 = arith.constant dense<0.000000e+00> : vector<8x512xf32>
    %290 = tpu.matmul %287, %12, %cst_141 {dimension_numbers = #tpu.dot_dimension_numbers<[1], [0], [0], [1], [0, 0, 1, 1], [], []>} : vector<8x128xf32>, vector<128x512xf32>, vector<8x512xf32> -> vector<8x512xf32>
    %291 = arith.addf %289, %290 : vector<8x512xf32>
    %292 = vector.extract_strided_slice %291 {offsets = [0, 0], sizes = [8, 128], strides = [1, 1]} : vector<8x512xf32> to vector<8x128xf32>
    %cst_142 = arith.constant 2.500000e-01 : f32
    %293 = vector.broadcast %cst_142 : f32 to vector<8x128xf32>
    %294 = arith.mulf %293, %292 : vector<8x128xf32>
    %cst_143 = arith.constant 5.000000e-01 : f32
    %295 = vector.broadcast %cst_143 : f32 to vector<8x128xf32>
    %296 = arith.addf %294, %295 : vector<8x128xf32>
    %cst_144 = arith.constant 0.000000e+00 : f32
    %cst_145 = arith.constant 1.000000e+00 : f32
    %297 = vector.broadcast %cst_144 : f32 to vector<8x128xf32>
    %298 = arith.maximumf %297, %296 : vector<8x128xf32>
    %299 = vector.broadcast %cst_145 : f32 to vector<8x128xf32>
    %300 = arith.minimumf %299, %298 : vector<8x128xf32>
    %301 = vector.extract_strided_slice %291 {offsets = [0, 128], sizes = [8, 128], strides = [1, 1]} : vector<8x512xf32> to vector<8x128xf32>
    %cst_146 = arith.constant 2.500000e-01 : f32
    %302 = vector.broadcast %cst_146 : f32 to vector<8x128xf32>
    %303 = arith.mulf %302, %301 : vector<8x128xf32>
    %cst_147 = arith.constant 5.000000e-01 : f32
    %304 = vector.broadcast %cst_147 : f32 to vector<8x128xf32>
    %305 = arith.addf %303, %304 : vector<8x128xf32>
    %cst_148 = arith.constant 0.000000e+00 : f32
    %cst_149 = arith.constant 1.000000e+00 : f32
    %306 = vector.broadcast %cst_148 : f32 to vector<8x128xf32>
    %307 = arith.maximumf %306, %305 : vector<8x128xf32>
    %308 = vector.broadcast %cst_149 : f32 to vector<8x128xf32>
    %309 = arith.minimumf %308, %307 : vector<8x128xf32>
    %310 = vector.extract_strided_slice %291 {offsets = [0, 256], sizes = [8, 128], strides = [1, 1]} : vector<8x512xf32> to vector<8x128xf32>
    %cst_150 = arith.constant 0.000000e+00 : f32
    %311 = vector.broadcast %cst_150 : f32 to vector<8x128xf32>
    %312 = arith.maximumf %310, %311 : vector<8x128xf32>
    %313 = vector.extract_strided_slice %291 {offsets = [0, 384], sizes = [8, 128], strides = [1, 1]} : vector<8x512xf32> to vector<8x128xf32>
    %cst_151 = arith.constant 2.500000e-01 : f32
    %314 = vector.broadcast %cst_151 : f32 to vector<8x128xf32>
    %315 = arith.mulf %314, %313 : vector<8x128xf32>
    %cst_152 = arith.constant 5.000000e-01 : f32
    %316 = vector.broadcast %cst_152 : f32 to vector<8x128xf32>
    %317 = arith.addf %315, %316 : vector<8x128xf32>
    %cst_153 = arith.constant 0.000000e+00 : f32
    %cst_154 = arith.constant 1.000000e+00 : f32
    %318 = vector.broadcast %cst_153 : f32 to vector<8x128xf32>
    %319 = arith.maximumf %318, %317 : vector<8x128xf32>
    %320 = vector.broadcast %cst_154 : f32 to vector<8x128xf32>
    %321 = arith.minimumf %320, %319 : vector<8x128xf32>
    %322 = arith.mulf %309, %278 : vector<8x128xf32>
    %323 = arith.mulf %300, %312 : vector<8x128xf32>
    %324 = arith.addf %322, %323 : vector<8x128xf32>
    %cst_155 = arith.constant 2.500000e-01 : f32
    %325 = vector.broadcast %cst_155 : f32 to vector<8x128xf32>
    %326 = arith.mulf %325, %324 : vector<8x128xf32>
    %cst_156 = arith.constant 5.000000e-01 : f32
    %327 = vector.broadcast %cst_156 : f32 to vector<8x128xf32>
    %328 = arith.addf %326, %327 : vector<8x128xf32>
    %cst_157 = arith.constant 0.000000e+00 : f32
    %cst_158 = arith.constant 1.000000e+00 : f32
    %329 = vector.broadcast %cst_157 : f32 to vector<8x128xf32>
    %330 = arith.maximumf %329, %328 : vector<8x128xf32>
    %331 = vector.broadcast %cst_158 : f32 to vector<8x128xf32>
    %332 = arith.minimumf %331, %330 : vector<8x128xf32>
    %333 = arith.mulf %321, %332 : vector<8x128xf32>
    %c8_159 = arith.constant 8 : index
    %c0_160 = arith.constant 0 : index
    %334 = vector.load %arg7[%c8_159, %c0_160] : memref<64x128xf32, #tpu.memory_space<vmem>>, vector<8x128xf32>
    tpu.vector_store %arg7[%c8_159, %c0_160], %333 {strides = array<i32>} : memref<64x128xf32, #tpu.memory_space<vmem>>, vector<8x128xf32>,
    %c0_161 = arith.constant 0 : index
    %c0_162 = arith.constant 0 : index
    %335 = vector.load %arg10[%c0_161, %c0_162] : memref<64x512xf32, #tpu.memory_space<vmem>>, vector<8x512xf32>
    %cst_163 = arith.constant dense<0.000000e+00> : vector<8x512xf32>
    %336 = tpu.matmul %333, %12, %cst_163 {dimension_numbers = #tpu.dot_dimension_numbers<[1], [0], [0], [1], [0, 0, 1, 1], [], []>} : vector<8x128xf32>, vector<128x512xf32>, vector<8x512xf32> -> vector<8x512xf32>
    %337 = arith.addf %335, %336 : vector<8x512xf32>
    %338 = vector.extract_strided_slice %337 {offsets = [0, 0], sizes = [8, 128], strides = [1, 1]} : vector<8x512xf32> to vector<8x128xf32>
    %cst_164 = arith.constant 2.500000e-01 : f32
    %339 = vector.broadcast %cst_164 : f32 to vector<8x128xf32>
    %340 = arith.mulf %339, %338 : vector<8x128xf32>
    %cst_165 = arith.constant 5.000000e-01 : f32
    %341 = vector.broadcast %cst_165 : f32 to vector<8x128xf32>
    %342 = arith.addf %340, %341 : vector<8x128xf32>
    %cst_166 = arith.constant 0.000000e+00 : f32
    %cst_167 = arith.constant 1.000000e+00 : f32
    %343 = vector.broadcast %cst_166 : f32 to vector<8x128xf32>
    %344 = arith.maximumf %343, %342 : vector<8x128xf32>
    %345 = vector.broadcast %cst_167 : f32 to vector<8x128xf32>
    %346 = arith.minimumf %345, %344 : vector<8x128xf32>
    %347 = vector.extract_strided_slice %337 {offsets = [0, 128], sizes = [8, 128], strides = [1, 1]} : vector<8x512xf32> to vector<8x128xf32>
    %cst_168 = arith.constant 2.500000e-01 : f32
    %348 = vector.broadcast %cst_168 : f32 to vector<8x128xf32>
    %349 = arith.mulf %348, %347 : vector<8x128xf32>
    %cst_169 = arith.constant 5.000000e-01 : f32
    %350 = vector.broadcast %cst_169 : f32 to vector<8x128xf32>
    %351 = arith.addf %349, %350 : vector<8x128xf32>
    %cst_170 = arith.constant 0.000000e+00 : f32
    %cst_171 = arith.constant 1.000000e+00 : f32
    %352 = vector.broadcast %cst_170 : f32 to vector<8x128xf32>
    %353 = arith.maximumf %352, %351 : vector<8x128xf32>
    %354 = vector.broadcast %cst_171 : f32 to vector<8x128xf32>
    %355 = arith.minimumf %354, %353 : vector<8x128xf32>
    %356 = vector.extract_strided_slice %337 {offsets = [0, 256], sizes = [8, 128], strides = [1, 1]} : vector<8x512xf32> to vector<8x128xf32>
    %cst_172 = arith.constant 0.000000e+00 : f32
    %357 = vector.broadcast %cst_172 : f32 to vector<8x128xf32>
    %358 = arith.maximumf %356, %357 : vector<8x128xf32>
    %359 = vector.extract_strided_slice %337 {offsets = [0, 384], sizes = [8, 128], strides = [1, 1]} : vector<8x512xf32> to vector<8x128xf32>
    %cst_173 = arith.constant 2.500000e-01 : f32
    %360 = vector.broadcast %cst_173 : f32 to vector<8x128xf32>
    %361 = arith.mulf %360, %359 : vector<8x128xf32>
    %cst_174 = arith.constant 5.000000e-01 : f32
    %362 = vector.broadcast %cst_174 : f32 to vector<8x128xf32>
    %363 = arith.addf %361, %362 : vector<8x128xf32>
    %cst_175 = arith.constant 0.000000e+00 : f32
    %cst_176 = arith.constant 1.000000e+00 : f32
    %364 = vector.broadcast %cst_175 : f32 to vector<8x128xf32>
    %365 = arith.maximumf %364, %363 : vector<8x128xf32>
    %366 = vector.broadcast %cst_176 : f32 to vector<8x128xf32>
    %367 = arith.minimumf %366, %365 : vector<8x128xf32>
    %368 = arith.mulf %355, %324 : vector<8x128xf32>
    %369 = arith.mulf %346, %358 : vector<8x128xf32>
    %370 = arith.addf %368, %369 : vector<8x128xf32>
    %cst_177 = arith.constant 2.500000e-01 : f32
    %371 = vector.broadcast %cst_177 : f32 to vector<8x128xf32>
    %372 = arith.mulf %371, %370 : vector<8x128xf32>
    %cst_178 = arith.constant 5.000000e-01 : f32
    %373 = vector.broadcast %cst_178 : f32 to vector<8x128xf32>
    %374 = arith.addf %372, %373 : vector<8x128xf32>
    %cst_179 = arith.constant 0.000000e+00 : f32
    %cst_180 = arith.constant 1.000000e+00 : f32
    %375 = vector.broadcast %cst_179 : f32 to vector<8x128xf32>
    %376 = arith.maximumf %375, %374 : vector<8x128xf32>
    %377 = vector.broadcast %cst_180 : f32 to vector<8x128xf32>
    %378 = arith.minimumf %377, %376 : vector<8x128xf32>
    %379 = arith.mulf %367, %378 : vector<8x128xf32>
    %c0_181 = arith.constant 0 : index
    %c0_182 = arith.constant 0 : index
    %380 = vector.load %arg7[%c0_181, %c0_182] : memref<64x128xf32, #tpu.memory_space<vmem>>, vector<8x128xf32>
    tpu.vector_store %arg7[%c0_181, %c0_182], %379 {strides = array<i32>} : memref<64x128xf32, #tpu.memory_space<vmem>>, vector<8x128xf32>,
    %c0_183 = arith.constant 0 : index
    %c0_184 = arith.constant 0 : index
    %381 = vector.load %arg11[%c0_183, %c0_184] : memref<8x128xf32, #tpu.memory_space<vmem>>, vector<8x128xf32>
    tpu.vector_store %arg11[%c0_183, %c0_184], %379 {strides = array<i32>} : memref<8x128xf32, #tpu.memory_space<vmem>>, vector<8x128xf32>,
    %c0_185 = arith.constant 0 : index
    %c0_186 = arith.constant 0 : index
    %382 = vector.load %arg12[%c0_185, %c0_186] : memref<8x128xf32, #tpu.memory_space<vmem>>, vector<8x128xf32>
    tpu.vector_store %arg12[%c0_185, %c0_186], %370 {strides = array<i32>} : memref<8x128xf32, #tpu.memory_space<vmem>>, vector<8x128xf32>,
    %c0_i32_187 = arith.constant 0 : i32
    %383 = arith.cmpi eq, %arg0, %c0_i32_187 : i32
    %384 = arith.extui %383 : i1 to i32
    %c0_i32_188 = arith.constant 0 : i32
    %385 = arith.cmpi ne, %384, %c0_i32_188 : i32
    scf.if %385 {
      %c0_189 = arith.constant 0 : index
      %c0_190 = arith.constant 0 : index
      %386 = vector.load %arg8[%c0_189, %c0_190] : memref<8x128xf32, #tpu.memory_space<vmem>>, vector<8x128xf32>
      tpu.vector_store %arg8[%c0_189, %c0_190], %379 {strides = array<i32>} : memref<8x128xf32, #tpu.memory_space<vmem>>, vector<8x128xf32>,
      %c0_191 = arith.constant 0 : index
      %c0_192 = arith.constant 0 : index
      %387 = vector.load %arg9[%c0_191, %c0_192] : memref<8x128xf32, #tpu.memory_space<vmem>>, vector<8x128xf32>
      tpu.vector_store %arg9[%c0_191, %c0_192], %370 {strides = array<i32>} : memref<8x128xf32, #tpu.memory_space<vmem>>, vector<8x128xf32>,
    } else {
    }
    return
  }
  func.func @transform_0(%arg0: i32) -> (i32, i32) {
    %c0_i32 = arith.constant 0 : i32
    %0 = arith.subi %c0_i32, %arg0 : i32
    %c0_i32_0 = arith.constant 0 : i32
    %c0_i32_1 = arith.constant 0 : i32
    return %0, %c0_i32_0 : i32, i32
  }
  func.func @transform_1(%arg0: i32) -> (i32, i32) {
    %c0_i32 = arith.constant 0 : i32
    %c0_i32_0 = arith.constant 0 : i32
    %c0_i32_1 = arith.constant 0 : i32
    return %c0_i32, %c0_i32_0 : i32, i32
  }
  func.func @transform_2(%arg0: i32) -> (i32, i32) {
    %c0_i32 = arith.constant 0 : i32
    %c0_i32_0 = arith.constant 0 : i32
    %c0_i32_1 = arith.constant 0 : i32
    return %c0_i32, %c0_i32_0 : i32, i32
  }
  func.func @transform_3(%arg0: i32) -> (i32, i32) {
    %c0_i32 = arith.constant 0 : i32
    %c0_i32_0 = arith.constant 0 : i32
    %c0_i32_1 = arith.constant 0 : i32
    return %c0_i32, %c0_i32_0 : i32, i32
  }
  func.func @transform_4(%arg0: i32) -> (i32, i32) {
    %c0_i32 = arith.constant 0 : i32
    %c0_i32_0 = arith.constant 0 : i32
    %c0_i32_1 = arith.constant 0 : i32
    return %c0_i32, %c0_i32_0 : i32, i32
  }
  func.func @transform_5(%arg0: i32) -> (i32, i32) {
    %c0_i32 = arith.constant 0 : i32
    %c0_i32_0 = arith.constant 0 : i32
    %c0_i32_1 = arith.constant 0 : i32
    return %c0_i32, %c0_i32_0 : i32, i32
  }
  func.func @transform_6(%arg0: i32) -> (i32, i32) {
    %c0_i32 = arith.constant 0 : i32
    %0 = arith.subi %c0_i32, %arg0 : i32
    %c0_i32_0 = arith.constant 0 : i32
    %c0_i32_1 = arith.constant 0 : i32
    return %0, %c0_i32_0 : i32, i32
  }
  func.func @transform_7(%arg0: i32) -> (i32, i32) {
    %c0_i32 = arith.constant 0 : i32
    %c0_i32_0 = arith.constant 0 : i32
    %c0_i32_1 = arith.constant 0 : i32
    return %c0_i32, %c0_i32_0 : i32, i32
  }
  func.func @transform_8(%arg0: i32) -> (i32, i32) {
    %c0_i32 = arith.constant 0 : i32
    %c0_i32_0 = arith.constant 0 : i32
    %c0_i32_1 = arith.constant 0 : i32
    return %c0_i32, %c0_i32_0 : i32, i32
  }
}

module attributes {stable_mosaic.version = 11 : i64} {
  func.func @_lstm_rec_kernel(%arg0: i32, %arg1: memref<64x16xf32, #tpu.memory_space<vmem>>, %arg2: memref<16x512xf32, #tpu.memory_space<vmem>>, %arg3: memref<128x512xf32, #tpu.memory_space<vmem>>, %arg4: memref<1x512xf32, #tpu.memory_space<vmem>>, %arg5: memref<8x128xf32, #tpu.memory_space<vmem>>, %arg6: memref<8x128xf32, #tpu.memory_space<vmem>>, %arg7: memref<64x128xf32, #tpu.memory_space<vmem>>, %arg8: memref<8x128xf32, #tpu.memory_space<vmem>>, %arg9: memref<8x128xf32, #tpu.memory_space<vmem>>, %arg10: memref<64x512xf32, #tpu.memory_space<vmem>>, %arg11: memref<8x128xf32, #tpu.memory_space<vmem>>, %arg12: memref<8x128xf32, #tpu.memory_space<vmem>>) attributes {dimension_semantics = [#tpu.dimension_semantics<arbitrary>], iteration_bounds = array<i64: 1>, scalar_prefetch = 0 : i64, scratch_operands = 3 : i64, tpu.core_type = #tpu.core_type<tc>, window_params = [{transform_indices = @transform_0, window_bounds = array<i64: 64, 16>}, {pipeline_mode = #tpu.pipeline_mode<synchronous>, transform_indices = @transform_1, window_bounds = array<i64: 16, 512>}, {pipeline_mode = #tpu.pipeline_mode<synchronous>, transform_indices = @transform_2, window_bounds = array<i64: 128, 512>}, {pipeline_mode = #tpu.pipeline_mode<synchronous>, transform_indices = @transform_3, window_bounds = array<i64: 1, 512>}, {pipeline_mode = #tpu.pipeline_mode<synchronous>, transform_indices = @transform_4, window_bounds = array<i64: 8, 128>}, {pipeline_mode = #tpu.pipeline_mode<synchronous>, transform_indices = @transform_5, window_bounds = array<i64: 8, 128>}, {transform_indices = @transform_6, window_bounds = array<i64: 64, 128>}, {pipeline_mode = #tpu.pipeline_mode<synchronous>, transform_indices = @transform_7, window_bounds = array<i64: 8, 128>}, {pipeline_mode = #tpu.pipeline_mode<synchronous>, transform_indices = @transform_8, window_bounds = array<i64: 8, 128>}]} {
    %c0_i32 = arith.constant 0 : i32
    %0 = arith.cmpi eq, %arg0, %c0_i32 : i32
    %1 = arith.extui %0 : i1 to i32
    %c0_i32_0 = arith.constant 0 : i32
    %2 = arith.cmpi ne, %1, %c0_i32_0 : i32
    scf.if %2 {
      %c0_189 = arith.constant 0 : index
      %c0_190 = arith.constant 0 : index
      %386 = vector.load %arg5[%c0_189, %c0_190] : memref<8x128xf32, #tpu.memory_space<vmem>>, vector<8x128xf32>
      %c0_191 = arith.constant 0 : index
      %c0_192 = arith.constant 0 : index
      %387 = vector.load %arg11[%c0_191, %c0_192] : memref<8x128xf32, #tpu.memory_space<vmem>>, vector<8x128xf32>
      tpu.vector_store %arg11[%c0_191, %c0_192], %386 {strides = array<i32>} : memref<8x128xf32, #tpu.memory_space<vmem>>, vector<8x128xf32>,
      %c0_193 = arith.constant 0 : index
      %c0_194 = arith.constant 0 : index
      %388 = vector.load %arg6[%c0_193, %c0_194] : memref<8x128xf32, #tpu.memory_space<vmem>>, vector<8x128xf32>
      %c0_195 = arith.constant 0 : index
      %c0_196 = arith.constant 0 : index
      %389 = vector.load %arg12[%c0_195, %c0_196] : memref<8x128xf32, #tpu.memory_space<vmem>>, vector<8x128xf32>
      tpu.vector_store %arg12[%c0_195, %c0_196], %388 {strides = array<i32>} : memref<8x128xf32, #tpu.memory_space<vmem>>, vector<8x128xf32>,
    } else {
    }
    %c0 = arith.constant 0 : index
    %c0_1 = arith.constant 0 : index
    %3 = vector.load %arg1[%c0, %c0_1] : memref<64x16xf32, #tpu.memory_space<vmem>>, vector<64x16xf32>
    %c0_2 = arith.constant 0 : index
    %c0_3 = arith.constant 0 : index
    %4 = vector.load %arg2[%c0_2, %c0_3] : memref<16x512xf32, #tpu.memory_space<vmem>>, vector<16x512xf32>
    %cst = arith.constant dense<0.000000e+00> : vector<64x512xf32>
    %5 = tpu.matmul %3, %4, %cst {dimension_numbers = #tpu.dot_dimension_numbers<[1], [0], [0], [1], [0, 0, 1, 1], [], []>} : vector<64x16xf32>, vector<16x512xf32>, vector<64x512xf32> -> vector<64x512xf32>
    %c0_4 = arith.constant 0 : index
    %c0_5 = arith.constant 0 : index
    %6 = vector.load %arg4[%c0_4, %c0_5] : memref<1x512xf32, #tpu.memory_space<vmem>>, vector<1x512xf32>
    %7 = vector.broadcast %6 : vector<1x512xf32> to vector<64x512xf32>
    %8 = arith.addf %5, %7 : vector<64x512xf32>
    %c0_6 = arith.constant 0 : index
    %c0_7 = arith.constant 0 : index
    %9 = vector.load %arg10[%c0_6, %c0_7] : memref<64x512xf32, #tpu.memory_space<vmem>>, vector<64x512xf32>
    tpu.vector_store %arg10[%c0_6, %c0_7], %8 {strides = array<i32>} : memref<64x512xf32, #tpu.memory_space<vmem>>, vector<64x512xf32>,
    %c0_8 = arith.constant 0 : index
    %c0_9 = arith.constant 0 : index
    %10 = vector.load %arg11[%c0_8, %c0_9] : memref<8x128xf32, #tpu.memory_space<vmem>>, vector<8x128xf32>
    %c0_10 = arith.constant 0 : index
    %c0_11 = arith.constant 0 : index
    %11 = vector.load %arg12[%c0_10, %c0_11] : memref<8x128xf32, #tpu.memory_space<vmem>>, vector<8x128xf32>
    %c0_12 = arith.constant 0 : index
    %c0_13 = arith.constant 0 : index
    %12 = vector.load %arg3[%c0_12, %c0_13] : memref<128x512xf32, #tpu.memory_space<vmem>>, vector<128x512xf32>
    %c0_14 = arith.constant 0 : index
    %c0_15 = arith.constant 0 : index
    %13 = vector.load %arg10[%c0_14, %c0_15] : memref<64x512xf32, #tpu.memory_space<vmem>>, vector<8x512xf32>
    %cst_16 = arith.constant dense<0.000000e+00> : vector<8x512xf32>
    %14 = tpu.matmul %10, %12, %cst_16 {dimension_numbers = #tpu.dot_dimension_numbers<[1], [0], [0], [1], [0, 0, 1, 1], [], []>} : vector<8x128xf32>, vector<128x512xf32>, vector<8x512xf32> -> vector<8x512xf32>
    %15 = arith.addf %13, %14 : vector<8x512xf32>
    %16 = vector.extract_strided_slice %15 {offsets = [0, 0], sizes = [8, 128], strides = [1, 1]} : vector<8x512xf32> to vector<8x128xf32>
    %cst_17 = arith.constant 2.500000e-01 : f32
    %17 = vector.broadcast %cst_17 : f32 to vector<8x128xf32>
    %18 = arith.mulf %17, %16 : vector<8x128xf32>
    %cst_18 = arith.constant 5.000000e-01 : f32
    %19 = vector.broadcast %cst_18 : f32 to vector<8x128xf32>
    %20 = arith.addf %18, %19 : vector<8x128xf32>
    %cst_19 = arith.constant 0.000000e+00 : f32
    %cst_20 = arith.constant 1.000000e+00 : f32
    %21 = vector.broadcast %cst_19 : f32 to vector<8x128xf32>
    %22 = arith.maximumf %21, %20 : vector<8x128xf32>
    %23 = vector.broadcast %cst_20 : f32 to vector<8x128xf32>
    %24 = arith.minimumf %23, %22 : vector<8x128xf32>
    %25 = vector.extract_strided_slice %15 {offsets = [0, 128], sizes = [8, 128], strides = [1, 1]} : vector<8x512xf32> to vector<8x128xf32>
    %cst_21 = arith.constant 2.500000e-01 : f32
    %26 = vector.broadcast %cst_21 : f32 to vector<8x128xf32>
    %27 = arith.mulf %26, %25 : vector<8x128xf32>
    %cst_22 = arith.constant 5.000000e-01 : f32
    %28 = vector.broadcast %cst_22 : f32 to vector<8x128xf32>
    %29 = arith.addf %27, %28 : vector<8x128xf32>
    %cst_23 = arith.constant 0.000000e+00 : f32
    %cst_24 = arith.constant 1.000000e+00 : f32
    %30 = vector.broadcast %cst_23 : f32 to vector<8x128xf32>
    %31 = arith.maximumf %30, %29 : vector<8x128xf32>
    %32 = vector.broadcast %cst_24 : f32 to vector<8x128xf32>
    %33 = arith.minimumf %32, %31 : vector<8x128xf32>
    %34 = vector.extract_strided_slice %15 {offsets = [0, 256], sizes = [8, 128], strides = [1, 1]} : vector<8x512xf32> to vector<8x128xf32>
    %cst_25 = arith.constant 0.000000e+00 : f32
    %35 = vector.broadcast %cst_25 : f32 to vector<8x128xf32>
    %36 = arith.maximumf %34, %35 : vector<8x128xf32>
    %37 = vector.extract_strided_slice %15 {offsets = [0, 384], sizes = [8, 128], strides = [1, 1]} : vector<8x512xf32> to vector<8x128xf32>
    %cst_26 = arith.constant 2.500000e-01 : f32
    %38 = vector.broadcast %cst_26 : f32 to vector<8x128xf32>
    %39 = arith.mulf %38, %37 : vector<8x128xf32>
    %cst_27 = arith.constant 5.000000e-01 : f32
    %40 = vector.broadcast %cst_27 : f32 to vector<8x128xf32>
    %41 = arith.addf %39, %40 : vector<8x128xf32>
    %cst_28 = arith.constant 0.000000e+00 : f32
    %cst_29 = arith.constant 1.000000e+00 : f32
    %42 = vector.broadcast %cst_28 : f32 to vector<8x128xf32>
    %43 = arith.maximumf %42, %41 : vector<8x128xf32>
    %44 = vector.broadcast %cst_29 : f32 to vector<8x128xf32>
    %45 = arith.minimumf %44, %43 : vector<8x128xf32>
    %46 = arith.mulf %33, %11 : vector<8x128xf32>
    %47 = arith.mulf %24, %36 : vector<8x128xf32>
    %48 = arith.addf %46, %47 : vector<8x128xf32>
    %cst_30 = arith.constant 2.500000e-01 : f32
    %49 = vector.broadcast %cst_30 : f32 to vector<8x128xf32>
    %50 = arith.mulf %49, %48 : vector<8x128xf32>
    %cst_31 = arith.constant 5.000000e-01 : f32
    %51 = vector.broadcast %cst_31 : f32 to vector<8x128xf32>
    %52 = arith.addf %50, %51 : vector<8x128xf32>
    %cst_32 = arith.constant 0.000000e+00 : f32
    %cst_33 = arith.constant 1.000000e+00 : f32
    %53 = vector.broadcast %cst_32 : f32 to vector<8x128xf32>
    %54 = arith.maximumf %53, %52 : vector<8x128xf32>
    %55 = vector.broadcast %cst_33 : f32 to vector<8x128xf32>
    %56 = arith.minimumf %55, %54 : vector<8x128xf32>
    %57 = arith.mulf %45, %56 : vector<8x128xf32>
    %c0_34 = arith.constant 0 : index
    %c0_35 = arith.constant 0 : index
    %58 = vector.load %arg7[%c0_34, %c0_35] : memref<64x128xf32, #tpu.memory_space<vmem>>, vector<8x128xf32>
    tpu.vector_store %arg7[%c0_34, %c0_35], %57 {strides = array<i32>} : memref<64x128xf32, #tpu.memory_space<vmem>>, vector<8x128xf32>,
    %c8 = arith.constant 8 : index
    %c0_36 = arith.constant 0 : index
    %59 = vector.load %arg10[%c8, %c0_36] : memref<64x512xf32, #tpu.memory_space<vmem>>, vector<8x512xf32>
    %cst_37 = arith.constant dense<0.000000e+00> : vector<8x512xf32>
    %60 = tpu.matmul %57, %12, %cst_37 {dimension_numbers = #tpu.dot_dimension_numbers<[1], [0], [0], [1], [0, 0, 1, 1], [], []>} : vector<8x128xf32>, vector<128x512xf32>, vector<8x512xf32> -> vector<8x512xf32>
    %61 = arith.addf %59, %60 : vector<8x512xf32>
    %62 = vector.extract_strided_slice %61 {offsets = [0, 0], sizes = [8, 128], strides = [1, 1]} : vector<8x512xf32> to vector<8x128xf32>
    %cst_38 = arith.constant 2.500000e-01 : f32
    %63 = vector.broadcast %cst_38 : f32 to vector<8x128xf32>
    %64 = arith.mulf %63, %62 : vector<8x128xf32>
    %cst_39 = arith.constant 5.000000e-01 : f32
    %65 = vector.broadcast %cst_39 : f32 to vector<8x128xf32>
    %66 = arith.addf %64, %65 : vector<8x128xf32>
    %cst_40 = arith.constant 0.000000e+00 : f32
    %cst_41 = arith.constant 1.000000e+00 : f32
    %67 = vector.broadcast %cst_40 : f32 to vector<8x128xf32>
    %68 = arith.maximumf %67, %66 : vector<8x128xf32>
    %69 = vector.broadcast %cst_41 : f32 to vector<8x128xf32>
    %70 = arith.minimumf %69, %68 : vector<8x128xf32>
    %71 = vector.extract_strided_slice %61 {offsets = [0, 128], sizes = [8, 128], strides = [1, 1]} : vector<8x512xf32> to vector<8x128xf32>
    %cst_42 = arith.constant 2.500000e-01 : f32
    %72 = vector.broadcast %cst_42 : f32 to vector<8x128xf32>
    %73 = arith.mulf %72, %71 : vector<8x128xf32>
    %cst_43 = arith.constant 5.000000e-01 : f32
    %74 = vector.broadcast %cst_43 : f32 to vector<8x128xf32>
    %75 = arith.addf %73, %74 : vector<8x128xf32>
    %cst_44 = arith.constant 0.000000e+00 : f32
    %cst_45 = arith.constant 1.000000e+00 : f32
    %76 = vector.broadcast %cst_44 : f32 to vector<8x128xf32>
    %77 = arith.maximumf %76, %75 : vector<8x128xf32>
    %78 = vector.broadcast %cst_45 : f32 to vector<8x128xf32>
    %79 = arith.minimumf %78, %77 : vector<8x128xf32>
    %80 = vector.extract_strided_slice %61 {offsets = [0, 256], sizes = [8, 128], strides = [1, 1]} : vector<8x512xf32> to vector<8x128xf32>
    %cst_46 = arith.constant 0.000000e+00 : f32
    %81 = vector.broadcast %cst_46 : f32 to vector<8x128xf32>
    %82 = arith.maximumf %80, %81 : vector<8x128xf32>
    %83 = vector.extract_strided_slice %61 {offsets = [0, 384], sizes = [8, 128], strides = [1, 1]} : vector<8x512xf32> to vector<8x128xf32>
    %cst_47 = arith.constant 2.500000e-01 : f32
    %84 = vector.broadcast %cst_47 : f32 to vector<8x128xf32>
    %85 = arith.mulf %84, %83 : vector<8x128xf32>
    %cst_48 = arith.constant 5.000000e-01 : f32
    %86 = vector.broadcast %cst_48 : f32 to vector<8x128xf32>
    %87 = arith.addf %85, %86 : vector<8x128xf32>
    %cst_49 = arith.constant 0.000000e+00 : f32
    %cst_50 = arith.constant 1.000000e+00 : f32
    %88 = vector.broadcast %cst_49 : f32 to vector<8x128xf32>
    %89 = arith.maximumf %88, %87 : vector<8x128xf32>
    %90 = vector.broadcast %cst_50 : f32 to vector<8x128xf32>
    %91 = arith.minimumf %90, %89 : vector<8x128xf32>
    %92 = arith.mulf %79, %48 : vector<8x128xf32>
    %93 = arith.mulf %70, %82 : vector<8x128xf32>
    %94 = arith.addf %92, %93 : vector<8x128xf32>
    %cst_51 = arith.constant 2.500000e-01 : f32
    %95 = vector.broadcast %cst_51 : f32 to vector<8x128xf32>
    %96 = arith.mulf %95, %94 : vector<8x128xf32>
    %cst_52 = arith.constant 5.000000e-01 : f32
    %97 = vector.broadcast %cst_52 : f32 to vector<8x128xf32>
    %98 = arith.addf %96, %97 : vector<8x128xf32>
    %cst_53 = arith.constant 0.000000e+00 : f32
    %cst_54 = arith.constant 1.000000e+00 : f32
    %99 = vector.broadcast %cst_53 : f32 to vector<8x128xf32>
    %100 = arith.maximumf %99, %98 : vector<8x128xf32>
    %101 = vector.broadcast %cst_54 : f32 to vector<8x128xf32>
    %102 = arith.minimumf %101, %100 : vector<8x128xf32>
    %103 = arith.mulf %91, %102 : vector<8x128xf32>
    %c8_55 = arith.constant 8 : index
    %c0_56 = arith.constant 0 : index
    %104 = vector.load %arg7[%c8_55, %c0_56] : memref<64x128xf32, #tpu.memory_space<vmem>>, vector<8x128xf32>
    tpu.vector_store %arg7[%c8_55, %c0_56], %103 {strides = array<i32>} : memref<64x128xf32, #tpu.memory_space<vmem>>, vector<8x128xf32>,
    %c16 = arith.constant 16 : index
    %c0_57 = arith.constant 0 : index
    %105 = vector.load %arg10[%c16, %c0_57] : memref<64x512xf32, #tpu.memory_space<vmem>>, vector<8x512xf32>
    %cst_58 = arith.constant dense<0.000000e+00> : vector<8x512xf32>
    %106 = tpu.matmul %103, %12, %cst_58 {dimension_numbers = #tpu.dot_dimension_numbers<[1], [0], [0], [1], [0, 0, 1, 1], [], []>} : vector<8x128xf32>, vector<128x512xf32>, vector<8x512xf32> -> vector<8x512xf32>
    %107 = arith.addf %105, %106 : vector<8x512xf32>
    %108 = vector.extract_strided_slice %107 {offsets = [0, 0], sizes = [8, 128], strides = [1, 1]} : vector<8x512xf32> to vector<8x128xf32>
    %cst_59 = arith.constant 2.500000e-01 : f32
    %109 = vector.broadcast %cst_59 : f32 to vector<8x128xf32>
    %110 = arith.mulf %109, %108 : vector<8x128xf32>
    %cst_60 = arith.constant 5.000000e-01 : f32
    %111 = vector.broadcast %cst_60 : f32 to vector<8x128xf32>
    %112 = arith.addf %110, %111 : vector<8x128xf32>
    %cst_61 = arith.constant 0.000000e+00 : f32
    %cst_62 = arith.constant 1.000000e+00 : f32
    %113 = vector.broadcast %cst_61 : f32 to vector<8x128xf32>
    %114 = arith.maximumf %113, %112 : vector<8x128xf32>
    %115 = vector.broadcast %cst_62 : f32 to vector<8x128xf32>
    %116 = arith.minimumf %115, %114 : vector<8x128xf32>
    %117 = vector.extract_strided_slice %107 {offsets = [0, 128], sizes = [8, 128], strides = [1, 1]} : vector<8x512xf32> to vector<8x128xf32>
    %cst_63 = arith.constant 2.500000e-01 : f32
    %118 = vector.broadcast %cst_63 : f32 to vector<8x128xf32>
    %119 = arith.mulf %118, %117 : vector<8x128xf32>
    %cst_64 = arith.constant 5.000000e-01 : f32
    %120 = vector.broadcast %cst_64 : f32 to vector<8x128xf32>
    %121 = arith.addf %119, %120 : vector<8x128xf32>
    %cst_65 = arith.constant 0.000000e+00 : f32
    %cst_66 = arith.constant 1.000000e+00 : f32
    %122 = vector.broadcast %cst_65 : f32 to vector<8x128xf32>
    %123 = arith.maximumf %122, %121 : vector<8x128xf32>
    %124 = vector.broadcast %cst_66 : f32 to vector<8x128xf32>
    %125 = arith.minimumf %124, %123 : vector<8x128xf32>
    %126 = vector.extract_strided_slice %107 {offsets = [0, 256], sizes = [8, 128], strides = [1, 1]} : vector<8x512xf32> to vector<8x128xf32>
    %cst_67 = arith.constant 0.000000e+00 : f32
    %127 = vector.broadcast %cst_67 : f32 to vector<8x128xf32>
    %128 = arith.maximumf %126, %127 : vector<8x128xf32>
    %129 = vector.extract_strided_slice %107 {offsets = [0, 384], sizes = [8, 128], strides = [1, 1]} : vector<8x512xf32> to vector<8x128xf32>
    %cst_68 = arith.constant 2.500000e-01 : f32
    %130 = vector.broadcast %cst_68 : f32 to vector<8x128xf32>
    %131 = arith.mulf %130, %129 : vector<8x128xf32>
    %cst_69 = arith.constant 5.000000e-01 : f32
    %132 = vector.broadcast %cst_69 : f32 to vector<8x128xf32>
    %133 = arith.addf %131, %132 : vector<8x128xf32>
    %cst_70 = arith.constant 0.000000e+00 : f32
    %cst_71 = arith.constant 1.000000e+00 : f32
    %134 = vector.broadcast %cst_70 : f32 to vector<8x128xf32>
    %135 = arith.maximumf %134, %133 : vector<8x128xf32>
    %136 = vector.broadcast %cst_71 : f32 to vector<8x128xf32>
    %137 = arith.minimumf %136, %135 : vector<8x128xf32>
    %138 = arith.mulf %125, %94 : vector<8x128xf32>
    %139 = arith.mulf %116, %128 : vector<8x128xf32>
    %140 = arith.addf %138, %139 : vector<8x128xf32>
    %cst_72 = arith.constant 2.500000e-01 : f32
    %141 = vector.broadcast %cst_72 : f32 to vector<8x128xf32>
    %142 = arith.mulf %141, %140 : vector<8x128xf32>
    %cst_73 = arith.constant 5.000000e-01 : f32
    %143 = vector.broadcast %cst_73 : f32 to vector<8x128xf32>
    %144 = arith.addf %142, %143 : vector<8x128xf32>
    %cst_74 = arith.constant 0.000000e+00 : f32
    %cst_75 = arith.constant 1.000000e+00 : f32
    %145 = vector.broadcast %cst_74 : f32 to vector<8x128xf32>
    %146 = arith.maximumf %145, %144 : vector<8x128xf32>
    %147 = vector.broadcast %cst_75 : f32 to vector<8x128xf32>
    %148 = arith.minimumf %147, %146 : vector<8x128xf32>
    %149 = arith.mulf %137, %148 : vector<8x128xf32>
    %c16_76 = arith.constant 16 : index
    %c0_77 = arith.constant 0 : index
    %150 = vector.load %arg7[%c16_76, %c0_77] : memref<64x128xf32, #tpu.memory_space<vmem>>, vector<8x128xf32>
    tpu.vector_store %arg7[%c16_76, %c0_77], %149 {strides = array<i32>} : memref<64x128xf32, #tpu.memory_space<vmem>>, vector<8x128xf32>,
    %c24 = arith.constant 24 : index
    %c0_78 = arith.constant 0 : index
    %151 = vector.load %arg10[%c24, %c0_78] : memref<64x512xf32, #tpu.memory_space<vmem>>, vector<8x512xf32>
    %cst_79 = arith.constant dense<0.000000e+00> : vector<8x512xf32>
    %152 = tpu.matmul %149, %12, %cst_79 {dimension_numbers = #tpu.dot_dimension_numbers<[1], [0], [0], [1], [0, 0, 1, 1], [], []>} : vector<8x128xf32>, vector<128x512xf32>, vector<8x512xf32> -> vector<8x512xf32>
    %153 = arith.addf %151, %152 : vector<8x512xf32>
    %154 = vector.extract_strided_slice %153 {offsets = [0, 0], sizes = [8, 128], strides = [1, 1]} : vector<8x512xf32> to vector<8x128xf32>
    %cst_80 = arith.constant 2.500000e-01 : f32
    %155 = vector.broadcast %cst_80 : f32 to vector<8x128xf32>
    %156 = arith.mulf %155, %154 : vector<8x128xf32>
    %cst_81 = arith.constant 5.000000e-01 : f32
    %157 = vector.broadcast %cst_81 : f32 to vector<8x128xf32>
    %158 = arith.addf %156, %157 : vector<8x128xf32>
    %cst_82 = arith.constant 0.000000e+00 : f32
    %cst_83 = arith.constant 1.000000e+00 : f32
    %159 = vector.broadcast %cst_82 : f32 to vector<8x128xf32>
    %160 = arith.maximumf %159, %158 : vector<8x128xf32>
    %161 = vector.broadcast %cst_83 : f32 to vector<8x128xf32>
    %162 = arith.minimumf %161, %160 : vector<8x128xf32>
    %163 = vector.extract_strided_slice %153 {offsets = [0, 128], sizes = [8, 128], strides = [1, 1]} : vector<8x512xf32> to vector<8x128xf32>
    %cst_84 = arith.constant 2.500000e-01 : f32
    %164 = vector.broadcast %cst_84 : f32 to vector<8x128xf32>
    %165 = arith.mulf %164, %163 : vector<8x128xf32>
    %cst_85 = arith.constant 5.000000e-01 : f32
    %166 = vector.broadcast %cst_85 : f32 to vector<8x128xf32>
    %167 = arith.addf %165, %166 : vector<8x128xf32>
    %cst_86 = arith.constant 0.000000e+00 : f32
    %cst_87 = arith.constant 1.000000e+00 : f32
    %168 = vector.broadcast %cst_86 : f32 to vector<8x128xf32>
    %169 = arith.maximumf %168, %167 : vector<8x128xf32>
    %170 = vector.broadcast %cst_87 : f32 to vector<8x128xf32>
    %171 = arith.minimumf %170, %169 : vector<8x128xf32>
    %172 = vector.extract_strided_slice %153 {offsets = [0, 256], sizes = [8, 128], strides = [1, 1]} : vector<8x512xf32> to vector<8x128xf32>
    %cst_88 = arith.constant 0.000000e+00 : f32
    %173 = vector.broadcast %cst_88 : f32 to vector<8x128xf32>
    %174 = arith.maximumf %172, %173 : vector<8x128xf32>
    %175 = vector.extract_strided_slice %153 {offsets = [0, 384], sizes = [8, 128], strides = [1, 1]} : vector<8x512xf32> to vector<8x128xf32>
    %cst_89 = arith.constant 2.500000e-01 : f32
    %176 = vector.broadcast %cst_89 : f32 to vector<8x128xf32>
    %177 = arith.mulf %176, %175 : vector<8x128xf32>
    %cst_90 = arith.constant 5.000000e-01 : f32
    %178 = vector.broadcast %cst_90 : f32 to vector<8x128xf32>
    %179 = arith.addf %177, %178 : vector<8x128xf32>
    %cst_91 = arith.constant 0.000000e+00 : f32
    %cst_92 = arith.constant 1.000000e+00 : f32
    %180 = vector.broadcast %cst_91 : f32 to vector<8x128xf32>
    %181 = arith.maximumf %180, %179 : vector<8x128xf32>
    %182 = vector.broadcast %cst_92 : f32 to vector<8x128xf32>
    %183 = arith.minimumf %182, %181 : vector<8x128xf32>
    %184 = arith.mulf %171, %140 : vector<8x128xf32>
    %185 = arith.mulf %162, %174 : vector<8x128xf32>
    %186 = arith.addf %184, %185 : vector<8x128xf32>
    %cst_93 = arith.constant 2.500000e-01 : f32
    %187 = vector.broadcast %cst_93 : f32 to vector<8x128xf32>
    %188 = arith.mulf %187, %186 : vector<8x128xf32>
    %cst_94 = arith.constant 5.000000e-01 : f32
    %189 = vector.broadcast %cst_94 : f32 to vector<8x128xf32>
    %190 = arith.addf %188, %189 : vector<8x128xf32>
    %cst_95 = arith.constant 0.000000e+00 : f32
    %cst_96 = arith.constant 1.000000e+00 : f32
    %191 = vector.broadcast %cst_95 : f32 to vector<8x128xf32>
    %192 = arith.maximumf %191, %190 : vector<8x128xf32>
    %193 = vector.broadcast %cst_96 : f32 to vector<8x128xf32>
    %194 = arith.minimumf %193, %192 : vector<8x128xf32>
    %195 = arith.mulf %183, %194 : vector<8x128xf32>
    %c24_97 = arith.constant 24 : index
    %c0_98 = arith.constant 0 : index
    %196 = vector.load %arg7[%c24_97, %c0_98] : memref<64x128xf32, #tpu.memory_space<vmem>>, vector<8x128xf32>
    tpu.vector_store %arg7[%c24_97, %c0_98], %195 {strides = array<i32>} : memref<64x128xf32, #tpu.memory_space<vmem>>, vector<8x128xf32>,
    %c32 = arith.constant 32 : index
    %c0_99 = arith.constant 0 : index
    %197 = vector.load %arg10[%c32, %c0_99] : memref<64x512xf32, #tpu.memory_space<vmem>>, vector<8x512xf32>
    %cst_100 = arith.constant dense<0.000000e+00> : vector<8x512xf32>
    %198 = tpu.matmul %195, %12, %cst_100 {dimension_numbers = #tpu.dot_dimension_numbers<[1], [0], [0], [1], [0, 0, 1, 1], [], []>} : vector<8x128xf32>, vector<128x512xf32>, vector<8x512xf32> -> vector<8x512xf32>
    %199 = arith.addf %197, %198 : vector<8x512xf32>
    %200 = vector.extract_strided_slice %199 {offsets = [0, 0], sizes = [8, 128], strides = [1, 1]} : vector<8x512xf32> to vector<8x128xf32>
    %cst_101 = arith.constant 2.500000e-01 : f32
    %201 = vector.broadcast %cst_101 : f32 to vector<8x128xf32>
    %202 = arith.mulf %201, %200 : vector<8x128xf32>
    %cst_102 = arith.constant 5.000000e-01 : f32
    %203 = vector.broadcast %cst_102 : f32 to vector<8x128xf32>
    %204 = arith.addf %202, %203 : vector<8x128xf32>
    %cst_103 = arith.constant 0.000000e+00 : f32
    %cst_104 = arith.constant 1.000000e+00 : f32
    %205 = vector.broadcast %cst_103 : f32 to vector<8x128xf32>
    %206 = arith.maximumf %205, %204 : vector<8x128xf32>
    %207 = vector.broadcast %cst_104 : f32 to vector<8x128xf32>
    %208 = arith.minimumf %207, %206 : vector<8x128xf32>
    %209 = vector.extract_strided_slice %199 {offsets = [0, 128], sizes = [8, 128], strides = [1, 1]} : vector<8x512xf32> to vector<8x128xf32>
    %cst_105 = arith.constant 2.500000e-01 : f32
    %210 = vector.broadcast %cst_105 : f32 to vector<8x128xf32>
    %211 = arith.mulf %210, %209 : vector<8x128xf32>
    %cst_106 = arith.constant 5.000000e-01 : f32
    %212 = vector.broadcast %cst_106 : f32 to vector<8x128xf32>
    %213 = arith.addf %211, %212 : vector<8x128xf32>
    %cst_107 = arith.constant 0.000000e+00 : f32
    %cst_108 = arith.constant 1.000000e+00 : f32
    %214 = vector.broadcast %cst_107 : f32 to vector<8x128xf32>
    %215 = arith.maximumf %214, %213 : vector<8x128xf32>
    %216 = vector.broadcast %cst_108 : f32 to vector<8x128xf32>
    %217 = arith.minimumf %216, %215 : vector<8x128xf32>
    %218 = vector.extract_strided_slice %199 {offsets = [0, 256], sizes = [8, 128], strides = [1, 1]} : vector<8x512xf32> to vector<8x128xf32>
    %cst_109 = arith.constant 0.000000e+00 : f32
    %219 = vector.broadcast %cst_109 : f32 to vector<8x128xf32>
    %220 = arith.maximumf %218, %219 : vector<8x128xf32>
    %221 = vector.extract_strided_slice %199 {offsets = [0, 384], sizes = [8, 128], strides = [1, 1]} : vector<8x512xf32> to vector<8x128xf32>
    %cst_110 = arith.constant 2.500000e-01 : f32
    %222 = vector.broadcast %cst_110 : f32 to vector<8x128xf32>
    %223 = arith.mulf %222, %221 : vector<8x128xf32>
    %cst_111 = arith.constant 5.000000e-01 : f32
    %224 = vector.broadcast %cst_111 : f32 to vector<8x128xf32>
    %225 = arith.addf %223, %224 : vector<8x128xf32>
    %cst_112 = arith.constant 0.000000e+00 : f32
    %cst_113 = arith.constant 1.000000e+00 : f32
    %226 = vector.broadcast %cst_112 : f32 to vector<8x128xf32>
    %227 = arith.maximumf %226, %225 : vector<8x128xf32>
    %228 = vector.broadcast %cst_113 : f32 to vector<8x128xf32>
    %229 = arith.minimumf %228, %227 : vector<8x128xf32>
    %230 = arith.mulf %217, %186 : vector<8x128xf32>
    %231 = arith.mulf %208, %220 : vector<8x128xf32>
    %232 = arith.addf %230, %231 : vector<8x128xf32>
    %cst_114 = arith.constant 2.500000e-01 : f32
    %233 = vector.broadcast %cst_114 : f32 to vector<8x128xf32>
    %234 = arith.mulf %233, %232 : vector<8x128xf32>
    %cst_115 = arith.constant 5.000000e-01 : f32
    %235 = vector.broadcast %cst_115 : f32 to vector<8x128xf32>
    %236 = arith.addf %234, %235 : vector<8x128xf32>
    %cst_116 = arith.constant 0.000000e+00 : f32
    %cst_117 = arith.constant 1.000000e+00 : f32
    %237 = vector.broadcast %cst_116 : f32 to vector<8x128xf32>
    %238 = arith.maximumf %237, %236 : vector<8x128xf32>
    %239 = vector.broadcast %cst_117 : f32 to vector<8x128xf32>
    %240 = arith.minimumf %239, %238 : vector<8x128xf32>
    %241 = arith.mulf %229, %240 : vector<8x128xf32>
    %c32_118 = arith.constant 32 : index
    %c0_119 = arith.constant 0 : index
    %242 = vector.load %arg7[%c32_118, %c0_119] : memref<64x128xf32, #tpu.memory_space<vmem>>, vector<8x128xf32>
    tpu.vector_store %arg7[%c32_118, %c0_119], %241 {strides = array<i32>} : memref<64x128xf32, #tpu.memory_space<vmem>>, vector<8x128xf32>,
    %c40 = arith.constant 40 : index
    %c0_120 = arith.constant 0 : index
    %243 = vector.load %arg10[%c40, %c0_120] : memref<64x512xf32, #tpu.memory_space<vmem>>, vector<8x512xf32>
    %cst_121 = arith.constant dense<0.000000e+00> : vector<8x512xf32>
    %244 = tpu.matmul %241, %12, %cst_121 {dimension_numbers = #tpu.dot_dimension_numbers<[1], [0], [0], [1], [0, 0, 1, 1], [], []>} : vector<8x128xf32>, vector<128x512xf32>, vector<8x512xf32> -> vector<8x512xf32>
    %245 = arith.addf %243, %244 : vector<8x512xf32>
    %246 = vector.extract_strided_slice %245 {offsets = [0, 0], sizes = [8, 128], strides = [1, 1]} : vector<8x512xf32> to vector<8x128xf32>
    %cst_122 = arith.constant 2.500000e-01 : f32
    %247 = vector.broadcast %cst_122 : f32 to vector<8x128xf32>
    %248 = arith.mulf %247, %246 : vector<8x128xf32>
    %cst_123 = arith.constant 5.000000e-01 : f32
    %249 = vector.broadcast %cst_123 : f32 to vector<8x128xf32>
    %250 = arith.addf %248, %249 : vector<8x128xf32>
    %cst_124 = arith.constant 0.000000e+00 : f32
    %cst_125 = arith.constant 1.000000e+00 : f32
    %251 = vector.broadcast %cst_124 : f32 to vector<8x128xf32>
    %252 = arith.maximumf %251, %250 : vector<8x128xf32>
    %253 = vector.broadcast %cst_125 : f32 to vector<8x128xf32>
    %254 = arith.minimumf %253, %252 : vector<8x128xf32>
    %255 = vector.extract_strided_slice %245 {offsets = [0, 128], sizes = [8, 128], strides = [1, 1]} : vector<8x512xf32> to vector<8x128xf32>
    %cst_126 = arith.constant 2.500000e-01 : f32
    %256 = vector.broadcast %cst_126 : f32 to vector<8x128xf32>
    %257 = arith.mulf %256, %255 : vector<8x128xf32>
    %cst_127 = arith.constant 5.000000e-01 : f32
    %258 = vector.broadcast %cst_127 : f32 to vector<8x128xf32>
    %259 = arith.addf %257, %258 : vector<8x128xf32>
    %cst_128 = arith.constant 0.000000e+00 : f32
    %cst_129 = arith.constant 1.000000e+00 : f32
    %260 = vector.broadcast %cst_128 : f32 to vector<8x128xf32>
    %261 = arith.maximumf %260, %259 : vector<8x128xf32>
    %262 = vector.broadcast %cst_129 : f32 to vector<8x128xf32>
    %263 = arith.minimumf %262, %261 : vector<8x128xf32>
    %264 = vector.extract_strided_slice %245 {offsets = [0, 256], sizes = [8, 128], strides = [1, 1]} : vector<8x512xf32> to vector<8x128xf32>
    %cst_130 = arith.constant 0.000000e+00 : f32
    %265 = vector.broadcast %cst_130 : f32 to vector<8x128xf32>
    %266 = arith.maximumf %264, %265 : vector<8x128xf32>
    %267 = vector.extract_strided_slice %245 {offsets = [0, 384], sizes = [8, 128], strides = [1, 1]} : vector<8x512xf32> to vector<8x128xf32>
    %cst_131 = arith.constant 2.500000e-01 : f32
    %268 = vector.broadcast %cst_131 : f32 to vector<8x128xf32>
    %269 = arith.mulf %268, %267 : vector<8x128xf32>
    %cst_132 = arith.constant 5.000000e-01 : f32
    %270 = vector.broadcast %cst_132 : f32 to vector<8x128xf32>
    %271 = arith.addf %269, %270 : vector<8x128xf32>
    %cst_133 = arith.constant 0.000000e+00 : f32
    %cst_134 = arith.constant 1.000000e+00 : f32
    %272 = vector.broadcast %cst_133 : f32 to vector<8x128xf32>
    %273 = arith.maximumf %272, %271 : vector<8x128xf32>
    %274 = vector.broadcast %cst_134 : f32 to vector<8x128xf32>
    %275 = arith.minimumf %274, %273 : vector<8x128xf32>
    %276 = arith.mulf %263, %232 : vector<8x128xf32>
    %277 = arith.mulf %254, %266 : vector<8x128xf32>
    %278 = arith.addf %276, %277 : vector<8x128xf32>
    %cst_135 = arith.constant 2.500000e-01 : f32
    %279 = vector.broadcast %cst_135 : f32 to vector<8x128xf32>
    %280 = arith.mulf %279, %278 : vector<8x128xf32>
    %cst_136 = arith.constant 5.000000e-01 : f32
    %281 = vector.broadcast %cst_136 : f32 to vector<8x128xf32>
    %282 = arith.addf %280, %281 : vector<8x128xf32>
    %cst_137 = arith.constant 0.000000e+00 : f32
    %cst_138 = arith.constant 1.000000e+00 : f32
    %283 = vector.broadcast %cst_137 : f32 to vector<8x128xf32>
    %284 = arith.maximumf %283, %282 : vector<8x128xf32>
    %285 = vector.broadcast %cst_138 : f32 to vector<8x128xf32>
    %286 = arith.minimumf %285, %284 : vector<8x128xf32>
    %287 = arith.mulf %275, %286 : vector<8x128xf32>
    %c40_139 = arith.constant 40 : index
    %c0_140 = arith.constant 0 : index
    %288 = vector.load %arg7[%c40_139, %c0_140] : memref<64x128xf32, #tpu.memory_space<vmem>>, vector<8x128xf32>
    tpu.vector_store %arg7[%c40_139, %c0_140], %287 {strides = array<i32>} : memref<64x128xf32, #tpu.memory_space<vmem>>, vector<8x128xf32>,
    %c48 = arith.constant 48 : index
    %c0_141 = arith.constant 0 : index
    %289 = vector.load %arg10[%c48, %c0_141] : memref<64x512xf32, #tpu.memory_space<vmem>>, vector<8x512xf32>
    %cst_142 = arith.constant dense<0.000000e+00> : vector<8x512xf32>
    %290 = tpu.matmul %287, %12, %cst_142 {dimension_numbers = #tpu.dot_dimension_numbers<[1], [0], [0], [1], [0, 0, 1, 1], [], []>} : vector<8x128xf32>, vector<128x512xf32>, vector<8x512xf32> -> vector<8x512xf32>
    %291 = arith.addf %289, %290 : vector<8x512xf32>
    %292 = vector.extract_strided_slice %291 {offsets = [0, 0], sizes = [8, 128], strides = [1, 1]} : vector<8x512xf32> to vector<8x128xf32>
    %cst_143 = arith.constant 2.500000e-01 : f32
    %293 = vector.broadcast %cst_143 : f32 to vector<8x128xf32>
    %294 = arith.mulf %293, %292 : vector<8x128xf32>
    %cst_144 = arith.constant 5.000000e-01 : f32
    %295 = vector.broadcast %cst_144 : f32 to vector<8x128xf32>
    %296 = arith.addf %294, %295 : vector<8x128xf32>
    %cst_145 = arith.constant 0.000000e+00 : f32
    %cst_146 = arith.constant 1.000000e+00 : f32
    %297 = vector.broadcast %cst_145 : f32 to vector<8x128xf32>
    %298 = arith.maximumf %297, %296 : vector<8x128xf32>
    %299 = vector.broadcast %cst_146 : f32 to vector<8x128xf32>
    %300 = arith.minimumf %299, %298 : vector<8x128xf32>
    %301 = vector.extract_strided_slice %291 {offsets = [0, 128], sizes = [8, 128], strides = [1, 1]} : vector<8x512xf32> to vector<8x128xf32>
    %cst_147 = arith.constant 2.500000e-01 : f32
    %302 = vector.broadcast %cst_147 : f32 to vector<8x128xf32>
    %303 = arith.mulf %302, %301 : vector<8x128xf32>
    %cst_148 = arith.constant 5.000000e-01 : f32
    %304 = vector.broadcast %cst_148 : f32 to vector<8x128xf32>
    %305 = arith.addf %303, %304 : vector<8x128xf32>
    %cst_149 = arith.constant 0.000000e+00 : f32
    %cst_150 = arith.constant 1.000000e+00 : f32
    %306 = vector.broadcast %cst_149 : f32 to vector<8x128xf32>
    %307 = arith.maximumf %306, %305 : vector<8x128xf32>
    %308 = vector.broadcast %cst_150 : f32 to vector<8x128xf32>
    %309 = arith.minimumf %308, %307 : vector<8x128xf32>
    %310 = vector.extract_strided_slice %291 {offsets = [0, 256], sizes = [8, 128], strides = [1, 1]} : vector<8x512xf32> to vector<8x128xf32>
    %cst_151 = arith.constant 0.000000e+00 : f32
    %311 = vector.broadcast %cst_151 : f32 to vector<8x128xf32>
    %312 = arith.maximumf %310, %311 : vector<8x128xf32>
    %313 = vector.extract_strided_slice %291 {offsets = [0, 384], sizes = [8, 128], strides = [1, 1]} : vector<8x512xf32> to vector<8x128xf32>
    %cst_152 = arith.constant 2.500000e-01 : f32
    %314 = vector.broadcast %cst_152 : f32 to vector<8x128xf32>
    %315 = arith.mulf %314, %313 : vector<8x128xf32>
    %cst_153 = arith.constant 5.000000e-01 : f32
    %316 = vector.broadcast %cst_153 : f32 to vector<8x128xf32>
    %317 = arith.addf %315, %316 : vector<8x128xf32>
    %cst_154 = arith.constant 0.000000e+00 : f32
    %cst_155 = arith.constant 1.000000e+00 : f32
    %318 = vector.broadcast %cst_154 : f32 to vector<8x128xf32>
    %319 = arith.maximumf %318, %317 : vector<8x128xf32>
    %320 = vector.broadcast %cst_155 : f32 to vector<8x128xf32>
    %321 = arith.minimumf %320, %319 : vector<8x128xf32>
    %322 = arith.mulf %309, %278 : vector<8x128xf32>
    %323 = arith.mulf %300, %312 : vector<8x128xf32>
    %324 = arith.addf %322, %323 : vector<8x128xf32>
    %cst_156 = arith.constant 2.500000e-01 : f32
    %325 = vector.broadcast %cst_156 : f32 to vector<8x128xf32>
    %326 = arith.mulf %325, %324 : vector<8x128xf32>
    %cst_157 = arith.constant 5.000000e-01 : f32
    %327 = vector.broadcast %cst_157 : f32 to vector<8x128xf32>
    %328 = arith.addf %326, %327 : vector<8x128xf32>
    %cst_158 = arith.constant 0.000000e+00 : f32
    %cst_159 = arith.constant 1.000000e+00 : f32
    %329 = vector.broadcast %cst_158 : f32 to vector<8x128xf32>
    %330 = arith.maximumf %329, %328 : vector<8x128xf32>
    %331 = vector.broadcast %cst_159 : f32 to vector<8x128xf32>
    %332 = arith.minimumf %331, %330 : vector<8x128xf32>
    %333 = arith.mulf %321, %332 : vector<8x128xf32>
    %c48_160 = arith.constant 48 : index
    %c0_161 = arith.constant 0 : index
    %334 = vector.load %arg7[%c48_160, %c0_161] : memref<64x128xf32, #tpu.memory_space<vmem>>, vector<8x128xf32>
    tpu.vector_store %arg7[%c48_160, %c0_161], %333 {strides = array<i32>} : memref<64x128xf32, #tpu.memory_space<vmem>>, vector<8x128xf32>,
    %c56 = arith.constant 56 : index
    %c0_162 = arith.constant 0 : index
    %335 = vector.load %arg10[%c56, %c0_162] : memref<64x512xf32, #tpu.memory_space<vmem>>, vector<8x512xf32>
    %cst_163 = arith.constant dense<0.000000e+00> : vector<8x512xf32>
    %336 = tpu.matmul %333, %12, %cst_163 {dimension_numbers = #tpu.dot_dimension_numbers<[1], [0], [0], [1], [0, 0, 1, 1], [], []>} : vector<8x128xf32>, vector<128x512xf32>, vector<8x512xf32> -> vector<8x512xf32>
    %337 = arith.addf %335, %336 : vector<8x512xf32>
    %338 = vector.extract_strided_slice %337 {offsets = [0, 0], sizes = [8, 128], strides = [1, 1]} : vector<8x512xf32> to vector<8x128xf32>
    %cst_164 = arith.constant 2.500000e-01 : f32
    %339 = vector.broadcast %cst_164 : f32 to vector<8x128xf32>
    %340 = arith.mulf %339, %338 : vector<8x128xf32>
    %cst_165 = arith.constant 5.000000e-01 : f32
    %341 = vector.broadcast %cst_165 : f32 to vector<8x128xf32>
    %342 = arith.addf %340, %341 : vector<8x128xf32>
    %cst_166 = arith.constant 0.000000e+00 : f32
    %cst_167 = arith.constant 1.000000e+00 : f32
    %343 = vector.broadcast %cst_166 : f32 to vector<8x128xf32>
    %344 = arith.maximumf %343, %342 : vector<8x128xf32>
    %345 = vector.broadcast %cst_167 : f32 to vector<8x128xf32>
    %346 = arith.minimumf %345, %344 : vector<8x128xf32>
    %347 = vector.extract_strided_slice %337 {offsets = [0, 128], sizes = [8, 128], strides = [1, 1]} : vector<8x512xf32> to vector<8x128xf32>
    %cst_168 = arith.constant 2.500000e-01 : f32
    %348 = vector.broadcast %cst_168 : f32 to vector<8x128xf32>
    %349 = arith.mulf %348, %347 : vector<8x128xf32>
    %cst_169 = arith.constant 5.000000e-01 : f32
    %350 = vector.broadcast %cst_169 : f32 to vector<8x128xf32>
    %351 = arith.addf %349, %350 : vector<8x128xf32>
    %cst_170 = arith.constant 0.000000e+00 : f32
    %cst_171 = arith.constant 1.000000e+00 : f32
    %352 = vector.broadcast %cst_170 : f32 to vector<8x128xf32>
    %353 = arith.maximumf %352, %351 : vector<8x128xf32>
    %354 = vector.broadcast %cst_171 : f32 to vector<8x128xf32>
    %355 = arith.minimumf %354, %353 : vector<8x128xf32>
    %356 = vector.extract_strided_slice %337 {offsets = [0, 256], sizes = [8, 128], strides = [1, 1]} : vector<8x512xf32> to vector<8x128xf32>
    %cst_172 = arith.constant 0.000000e+00 : f32
    %357 = vector.broadcast %cst_172 : f32 to vector<8x128xf32>
    %358 = arith.maximumf %356, %357 : vector<8x128xf32>
    %359 = vector.extract_strided_slice %337 {offsets = [0, 384], sizes = [8, 128], strides = [1, 1]} : vector<8x512xf32> to vector<8x128xf32>
    %cst_173 = arith.constant 2.500000e-01 : f32
    %360 = vector.broadcast %cst_173 : f32 to vector<8x128xf32>
    %361 = arith.mulf %360, %359 : vector<8x128xf32>
    %cst_174 = arith.constant 5.000000e-01 : f32
    %362 = vector.broadcast %cst_174 : f32 to vector<8x128xf32>
    %363 = arith.addf %361, %362 : vector<8x128xf32>
    %cst_175 = arith.constant 0.000000e+00 : f32
    %cst_176 = arith.constant 1.000000e+00 : f32
    %364 = vector.broadcast %cst_175 : f32 to vector<8x128xf32>
    %365 = arith.maximumf %364, %363 : vector<8x128xf32>
    %366 = vector.broadcast %cst_176 : f32 to vector<8x128xf32>
    %367 = arith.minimumf %366, %365 : vector<8x128xf32>
    %368 = arith.mulf %355, %324 : vector<8x128xf32>
    %369 = arith.mulf %346, %358 : vector<8x128xf32>
    %370 = arith.addf %368, %369 : vector<8x128xf32>
    %cst_177 = arith.constant 2.500000e-01 : f32
    %371 = vector.broadcast %cst_177 : f32 to vector<8x128xf32>
    %372 = arith.mulf %371, %370 : vector<8x128xf32>
    %cst_178 = arith.constant 5.000000e-01 : f32
    %373 = vector.broadcast %cst_178 : f32 to vector<8x128xf32>
    %374 = arith.addf %372, %373 : vector<8x128xf32>
    %cst_179 = arith.constant 0.000000e+00 : f32
    %cst_180 = arith.constant 1.000000e+00 : f32
    %375 = vector.broadcast %cst_179 : f32 to vector<8x128xf32>
    %376 = arith.maximumf %375, %374 : vector<8x128xf32>
    %377 = vector.broadcast %cst_180 : f32 to vector<8x128xf32>
    %378 = arith.minimumf %377, %376 : vector<8x128xf32>
    %379 = arith.mulf %367, %378 : vector<8x128xf32>
    %c56_181 = arith.constant 56 : index
    %c0_182 = arith.constant 0 : index
    %380 = vector.load %arg7[%c56_181, %c0_182] : memref<64x128xf32, #tpu.memory_space<vmem>>, vector<8x128xf32>
    tpu.vector_store %arg7[%c56_181, %c0_182], %379 {strides = array<i32>} : memref<64x128xf32, #tpu.memory_space<vmem>>, vector<8x128xf32>,
    %c0_183 = arith.constant 0 : index
    %c0_184 = arith.constant 0 : index
    %381 = vector.load %arg11[%c0_183, %c0_184] : memref<8x128xf32, #tpu.memory_space<vmem>>, vector<8x128xf32>
    tpu.vector_store %arg11[%c0_183, %c0_184], %379 {strides = array<i32>} : memref<8x128xf32, #tpu.memory_space<vmem>>, vector<8x128xf32>,
    %c0_185 = arith.constant 0 : index
    %c0_186 = arith.constant 0 : index
    %382 = vector.load %arg12[%c0_185, %c0_186] : memref<8x128xf32, #tpu.memory_space<vmem>>, vector<8x128xf32>
    tpu.vector_store %arg12[%c0_185, %c0_186], %370 {strides = array<i32>} : memref<8x128xf32, #tpu.memory_space<vmem>>, vector<8x128xf32>,
    %c0_i32_187 = arith.constant 0 : i32
    %383 = arith.cmpi eq, %arg0, %c0_i32_187 : i32
    %384 = arith.extui %383 : i1 to i32
    %c0_i32_188 = arith.constant 0 : i32
    %385 = arith.cmpi ne, %384, %c0_i32_188 : i32
    scf.if %385 {
      %c0_189 = arith.constant 0 : index
      %c0_190 = arith.constant 0 : index
      %386 = vector.load %arg8[%c0_189, %c0_190] : memref<8x128xf32, #tpu.memory_space<vmem>>, vector<8x128xf32>
      tpu.vector_store %arg8[%c0_189, %c0_190], %379 {strides = array<i32>} : memref<8x128xf32, #tpu.memory_space<vmem>>, vector<8x128xf32>,
      %c0_191 = arith.constant 0 : index
      %c0_192 = arith.constant 0 : index
      %387 = vector.load %arg9[%c0_191, %c0_192] : memref<8x128xf32, #tpu.memory_space<vmem>>, vector<8x128xf32>
      tpu.vector_store %arg9[%c0_191, %c0_192], %370 {strides = array<i32>} : memref<8x128xf32, #tpu.memory_space<vmem>>, vector<8x128xf32>,
    } else {
    }
    return
  }
  func.func @transform_0(%arg0: i32) -> (i32, i32) {
    %c0_i32 = arith.constant 0 : i32
    %c0_i32_0 = arith.constant 0 : i32
    return %arg0, %c0_i32 : i32, i32
  }
  func.func @transform_1(%arg0: i32) -> (i32, i32) {
    %c0_i32 = arith.constant 0 : i32
    %c0_i32_0 = arith.constant 0 : i32
    %c0_i32_1 = arith.constant 0 : i32
    return %c0_i32, %c0_i32_0 : i32, i32
  }
  func.func @transform_2(%arg0: i32) -> (i32, i32) {
    %c0_i32 = arith.constant 0 : i32
    %c0_i32_0 = arith.constant 0 : i32
    %c0_i32_1 = arith.constant 0 : i32
    return %c0_i32, %c0_i32_0 : i32, i32
  }
  func.func @transform_3(%arg0: i32) -> (i32, i32) {
    %c0_i32 = arith.constant 0 : i32
    %c0_i32_0 = arith.constant 0 : i32
    %c0_i32_1 = arith.constant 0 : i32
    return %c0_i32, %c0_i32_0 : i32, i32
  }
  func.func @transform_4(%arg0: i32) -> (i32, i32) {
    %c0_i32 = arith.constant 0 : i32
    %c0_i32_0 = arith.constant 0 : i32
    %c0_i32_1 = arith.constant 0 : i32
    return %c0_i32, %c0_i32_0 : i32, i32
  }
  func.func @transform_5(%arg0: i32) -> (i32, i32) {
    %c0_i32 = arith.constant 0 : i32
    %c0_i32_0 = arith.constant 0 : i32
    %c0_i32_1 = arith.constant 0 : i32
    return %c0_i32, %c0_i32_0 : i32, i32
  }
  func.func @transform_6(%arg0: i32) -> (i32, i32) {
    %c0_i32 = arith.constant 0 : i32
    %c0_i32_0 = arith.constant 0 : i32
    return %arg0, %c0_i32 : i32, i32
  }
  func.func @transform_7(%arg0: i32) -> (i32, i32) {
    %c0_i32 = arith.constant 0 : i32
    %c0_i32_0 = arith.constant 0 : i32
    %c0_i32_1 = arith.constant 0 : i32
    return %c0_i32, %c0_i32_0 : i32, i32
  }
  func.func @transform_8(%arg0: i32) -> (i32, i32) {
    %c0_i32 = arith.constant 0 : i32
    %c0_i32_0 = arith.constant 0 : i32
    %c0_i32_1 = arith.constant 0 : i32
    return %c0_i32, %c0_i32_0 : i32, i32
  }
}

module attributes {stable_mosaic.version = 11 : i64} {
  func.func @_lstm_rec_kernel(%arg0: i32, %arg1: memref<64x256xf32, #tpu.memory_space<vmem>>, %arg2: memref<256x512xf32, #tpu.memory_space<vmem>>, %arg3: memref<128x512xf32, #tpu.memory_space<vmem>>, %arg4: memref<1x512xf32, #tpu.memory_space<vmem>>, %arg5: memref<8x128xf32, #tpu.memory_space<vmem>>, %arg6: memref<8x128xf32, #tpu.memory_space<vmem>>, %arg7: memref<64x128xf32, #tpu.memory_space<vmem>>, %arg8: memref<8x128xf32, #tpu.memory_space<vmem>>, %arg9: memref<8x128xf32, #tpu.memory_space<vmem>>, %arg10: memref<64x512xf32, #tpu.memory_space<vmem>>, %arg11: memref<8x128xf32, #tpu.memory_space<vmem>>, %arg12: memref<8x128xf32, #tpu.memory_space<vmem>>) attributes {dimension_semantics = [#tpu.dimension_semantics<arbitrary>], iteration_bounds = array<i64: 1>, scalar_prefetch = 0 : i64, scratch_operands = 3 : i64, tpu.core_type = #tpu.core_type<tc>, window_params = [{transform_indices = @transform_0, window_bounds = array<i64: 64, 256>}, {pipeline_mode = #tpu.pipeline_mode<synchronous>, transform_indices = @transform_1, window_bounds = array<i64: 256, 512>}, {pipeline_mode = #tpu.pipeline_mode<synchronous>, transform_indices = @transform_2, window_bounds = array<i64: 128, 512>}, {pipeline_mode = #tpu.pipeline_mode<synchronous>, transform_indices = @transform_3, window_bounds = array<i64: 1, 512>}, {pipeline_mode = #tpu.pipeline_mode<synchronous>, transform_indices = @transform_4, window_bounds = array<i64: 8, 128>}, {pipeline_mode = #tpu.pipeline_mode<synchronous>, transform_indices = @transform_5, window_bounds = array<i64: 8, 128>}, {transform_indices = @transform_6, window_bounds = array<i64: 64, 128>}, {pipeline_mode = #tpu.pipeline_mode<synchronous>, transform_indices = @transform_7, window_bounds = array<i64: 8, 128>}, {pipeline_mode = #tpu.pipeline_mode<synchronous>, transform_indices = @transform_8, window_bounds = array<i64: 8, 128>}]} {
    %c0_i32 = arith.constant 0 : i32
    %0 = arith.cmpi eq, %arg0, %c0_i32 : i32
    %1 = arith.extui %0 : i1 to i32
    %c0_i32_0 = arith.constant 0 : i32
    %2 = arith.cmpi ne, %1, %c0_i32_0 : i32
    scf.if %2 {
      %c0_189 = arith.constant 0 : index
      %c0_190 = arith.constant 0 : index
      %386 = vector.load %arg5[%c0_189, %c0_190] : memref<8x128xf32, #tpu.memory_space<vmem>>, vector<8x128xf32>
      %c0_191 = arith.constant 0 : index
      %c0_192 = arith.constant 0 : index
      %387 = vector.load %arg11[%c0_191, %c0_192] : memref<8x128xf32, #tpu.memory_space<vmem>>, vector<8x128xf32>
      tpu.vector_store %arg11[%c0_191, %c0_192], %386 {strides = array<i32>} : memref<8x128xf32, #tpu.memory_space<vmem>>, vector<8x128xf32>,
      %c0_193 = arith.constant 0 : index
      %c0_194 = arith.constant 0 : index
      %388 = vector.load %arg6[%c0_193, %c0_194] : memref<8x128xf32, #tpu.memory_space<vmem>>, vector<8x128xf32>
      %c0_195 = arith.constant 0 : index
      %c0_196 = arith.constant 0 : index
      %389 = vector.load %arg12[%c0_195, %c0_196] : memref<8x128xf32, #tpu.memory_space<vmem>>, vector<8x128xf32>
      tpu.vector_store %arg12[%c0_195, %c0_196], %388 {strides = array<i32>} : memref<8x128xf32, #tpu.memory_space<vmem>>, vector<8x128xf32>,
    } else {
    }
    %c0 = arith.constant 0 : index
    %c0_1 = arith.constant 0 : index
    %3 = vector.load %arg1[%c0, %c0_1] : memref<64x256xf32, #tpu.memory_space<vmem>>, vector<64x256xf32>
    %c0_2 = arith.constant 0 : index
    %c0_3 = arith.constant 0 : index
    %4 = vector.load %arg2[%c0_2, %c0_3] : memref<256x512xf32, #tpu.memory_space<vmem>>, vector<256x512xf32>
    %cst = arith.constant dense<0.000000e+00> : vector<64x512xf32>
    %5 = tpu.matmul %3, %4, %cst {dimension_numbers = #tpu.dot_dimension_numbers<[1], [0], [0], [1], [0, 0, 1, 1], [], []>} : vector<64x256xf32>, vector<256x512xf32>, vector<64x512xf32> -> vector<64x512xf32>
    %c0_4 = arith.constant 0 : index
    %c0_5 = arith.constant 0 : index
    %6 = vector.load %arg4[%c0_4, %c0_5] : memref<1x512xf32, #tpu.memory_space<vmem>>, vector<1x512xf32>
    %7 = vector.broadcast %6 : vector<1x512xf32> to vector<64x512xf32>
    %8 = arith.addf %5, %7 : vector<64x512xf32>
    %c0_6 = arith.constant 0 : index
    %c0_7 = arith.constant 0 : index
    %9 = vector.load %arg10[%c0_6, %c0_7] : memref<64x512xf32, #tpu.memory_space<vmem>>, vector<64x512xf32>
    tpu.vector_store %arg10[%c0_6, %c0_7], %8 {strides = array<i32>} : memref<64x512xf32, #tpu.memory_space<vmem>>, vector<64x512xf32>,
    %c0_8 = arith.constant 0 : index
    %c0_9 = arith.constant 0 : index
    %10 = vector.load %arg11[%c0_8, %c0_9] : memref<8x128xf32, #tpu.memory_space<vmem>>, vector<8x128xf32>
    %c0_10 = arith.constant 0 : index
    %c0_11 = arith.constant 0 : index
    %11 = vector.load %arg12[%c0_10, %c0_11] : memref<8x128xf32, #tpu.memory_space<vmem>>, vector<8x128xf32>
    %c0_12 = arith.constant 0 : index
    %c0_13 = arith.constant 0 : index
    %12 = vector.load %arg3[%c0_12, %c0_13] : memref<128x512xf32, #tpu.memory_space<vmem>>, vector<128x512xf32>
    %c0_14 = arith.constant 0 : index
    %c0_15 = arith.constant 0 : index
    %13 = vector.load %arg10[%c0_14, %c0_15] : memref<64x512xf32, #tpu.memory_space<vmem>>, vector<8x512xf32>
    %cst_16 = arith.constant dense<0.000000e+00> : vector<8x512xf32>
    %14 = tpu.matmul %10, %12, %cst_16 {dimension_numbers = #tpu.dot_dimension_numbers<[1], [0], [0], [1], [0, 0, 1, 1], [], []>} : vector<8x128xf32>, vector<128x512xf32>, vector<8x512xf32> -> vector<8x512xf32>
    %15 = arith.addf %13, %14 : vector<8x512xf32>
    %16 = vector.extract_strided_slice %15 {offsets = [0, 0], sizes = [8, 128], strides = [1, 1]} : vector<8x512xf32> to vector<8x128xf32>
    %cst_17 = arith.constant 2.500000e-01 : f32
    %17 = vector.broadcast %cst_17 : f32 to vector<8x128xf32>
    %18 = arith.mulf %17, %16 : vector<8x128xf32>
    %cst_18 = arith.constant 5.000000e-01 : f32
    %19 = vector.broadcast %cst_18 : f32 to vector<8x128xf32>
    %20 = arith.addf %18, %19 : vector<8x128xf32>
    %cst_19 = arith.constant 0.000000e+00 : f32
    %cst_20 = arith.constant 1.000000e+00 : f32
    %21 = vector.broadcast %cst_19 : f32 to vector<8x128xf32>
    %22 = arith.maximumf %21, %20 : vector<8x128xf32>
    %23 = vector.broadcast %cst_20 : f32 to vector<8x128xf32>
    %24 = arith.minimumf %23, %22 : vector<8x128xf32>
    %25 = vector.extract_strided_slice %15 {offsets = [0, 128], sizes = [8, 128], strides = [1, 1]} : vector<8x512xf32> to vector<8x128xf32>
    %cst_21 = arith.constant 2.500000e-01 : f32
    %26 = vector.broadcast %cst_21 : f32 to vector<8x128xf32>
    %27 = arith.mulf %26, %25 : vector<8x128xf32>
    %cst_22 = arith.constant 5.000000e-01 : f32
    %28 = vector.broadcast %cst_22 : f32 to vector<8x128xf32>
    %29 = arith.addf %27, %28 : vector<8x128xf32>
    %cst_23 = arith.constant 0.000000e+00 : f32
    %cst_24 = arith.constant 1.000000e+00 : f32
    %30 = vector.broadcast %cst_23 : f32 to vector<8x128xf32>
    %31 = arith.maximumf %30, %29 : vector<8x128xf32>
    %32 = vector.broadcast %cst_24 : f32 to vector<8x128xf32>
    %33 = arith.minimumf %32, %31 : vector<8x128xf32>
    %34 = vector.extract_strided_slice %15 {offsets = [0, 256], sizes = [8, 128], strides = [1, 1]} : vector<8x512xf32> to vector<8x128xf32>
    %cst_25 = arith.constant 0.000000e+00 : f32
    %35 = vector.broadcast %cst_25 : f32 to vector<8x128xf32>
    %36 = arith.maximumf %34, %35 : vector<8x128xf32>
    %37 = vector.extract_strided_slice %15 {offsets = [0, 384], sizes = [8, 128], strides = [1, 1]} : vector<8x512xf32> to vector<8x128xf32>
    %cst_26 = arith.constant 2.500000e-01 : f32
    %38 = vector.broadcast %cst_26 : f32 to vector<8x128xf32>
    %39 = arith.mulf %38, %37 : vector<8x128xf32>
    %cst_27 = arith.constant 5.000000e-01 : f32
    %40 = vector.broadcast %cst_27 : f32 to vector<8x128xf32>
    %41 = arith.addf %39, %40 : vector<8x128xf32>
    %cst_28 = arith.constant 0.000000e+00 : f32
    %cst_29 = arith.constant 1.000000e+00 : f32
    %42 = vector.broadcast %cst_28 : f32 to vector<8x128xf32>
    %43 = arith.maximumf %42, %41 : vector<8x128xf32>
    %44 = vector.broadcast %cst_29 : f32 to vector<8x128xf32>
    %45 = arith.minimumf %44, %43 : vector<8x128xf32>
    %46 = arith.mulf %33, %11 : vector<8x128xf32>
    %47 = arith.mulf %24, %36 : vector<8x128xf32>
    %48 = arith.addf %46, %47 : vector<8x128xf32>
    %cst_30 = arith.constant 2.500000e-01 : f32
    %49 = vector.broadcast %cst_30 : f32 to vector<8x128xf32>
    %50 = arith.mulf %49, %48 : vector<8x128xf32>
    %cst_31 = arith.constant 5.000000e-01 : f32
    %51 = vector.broadcast %cst_31 : f32 to vector<8x128xf32>
    %52 = arith.addf %50, %51 : vector<8x128xf32>
    %cst_32 = arith.constant 0.000000e+00 : f32
    %cst_33 = arith.constant 1.000000e+00 : f32
    %53 = vector.broadcast %cst_32 : f32 to vector<8x128xf32>
    %54 = arith.maximumf %53, %52 : vector<8x128xf32>
    %55 = vector.broadcast %cst_33 : f32 to vector<8x128xf32>
    %56 = arith.minimumf %55, %54 : vector<8x128xf32>
    %57 = arith.mulf %45, %56 : vector<8x128xf32>
    %c0_34 = arith.constant 0 : index
    %c0_35 = arith.constant 0 : index
    %58 = vector.load %arg7[%c0_34, %c0_35] : memref<64x128xf32, #tpu.memory_space<vmem>>, vector<8x128xf32>
    tpu.vector_store %arg7[%c0_34, %c0_35], %57 {strides = array<i32>} : memref<64x128xf32, #tpu.memory_space<vmem>>, vector<8x128xf32>,
    %c8 = arith.constant 8 : index
    %c0_36 = arith.constant 0 : index
    %59 = vector.load %arg10[%c8, %c0_36] : memref<64x512xf32, #tpu.memory_space<vmem>>, vector<8x512xf32>
    %cst_37 = arith.constant dense<0.000000e+00> : vector<8x512xf32>
    %60 = tpu.matmul %57, %12, %cst_37 {dimension_numbers = #tpu.dot_dimension_numbers<[1], [0], [0], [1], [0, 0, 1, 1], [], []>} : vector<8x128xf32>, vector<128x512xf32>, vector<8x512xf32> -> vector<8x512xf32>
    %61 = arith.addf %59, %60 : vector<8x512xf32>
    %62 = vector.extract_strided_slice %61 {offsets = [0, 0], sizes = [8, 128], strides = [1, 1]} : vector<8x512xf32> to vector<8x128xf32>
    %cst_38 = arith.constant 2.500000e-01 : f32
    %63 = vector.broadcast %cst_38 : f32 to vector<8x128xf32>
    %64 = arith.mulf %63, %62 : vector<8x128xf32>
    %cst_39 = arith.constant 5.000000e-01 : f32
    %65 = vector.broadcast %cst_39 : f32 to vector<8x128xf32>
    %66 = arith.addf %64, %65 : vector<8x128xf32>
    %cst_40 = arith.constant 0.000000e+00 : f32
    %cst_41 = arith.constant 1.000000e+00 : f32
    %67 = vector.broadcast %cst_40 : f32 to vector<8x128xf32>
    %68 = arith.maximumf %67, %66 : vector<8x128xf32>
    %69 = vector.broadcast %cst_41 : f32 to vector<8x128xf32>
    %70 = arith.minimumf %69, %68 : vector<8x128xf32>
    %71 = vector.extract_strided_slice %61 {offsets = [0, 128], sizes = [8, 128], strides = [1, 1]} : vector<8x512xf32> to vector<8x128xf32>
    %cst_42 = arith.constant 2.500000e-01 : f32
    %72 = vector.broadcast %cst_42 : f32 to vector<8x128xf32>
    %73 = arith.mulf %72, %71 : vector<8x128xf32>
    %cst_43 = arith.constant 5.000000e-01 : f32
    %74 = vector.broadcast %cst_43 : f32 to vector<8x128xf32>
    %75 = arith.addf %73, %74 : vector<8x128xf32>
    %cst_44 = arith.constant 0.000000e+00 : f32
    %cst_45 = arith.constant 1.000000e+00 : f32
    %76 = vector.broadcast %cst_44 : f32 to vector<8x128xf32>
    %77 = arith.maximumf %76, %75 : vector<8x128xf32>
    %78 = vector.broadcast %cst_45 : f32 to vector<8x128xf32>
    %79 = arith.minimumf %78, %77 : vector<8x128xf32>
    %80 = vector.extract_strided_slice %61 {offsets = [0, 256], sizes = [8, 128], strides = [1, 1]} : vector<8x512xf32> to vector<8x128xf32>
    %cst_46 = arith.constant 0.000000e+00 : f32
    %81 = vector.broadcast %cst_46 : f32 to vector<8x128xf32>
    %82 = arith.maximumf %80, %81 : vector<8x128xf32>
    %83 = vector.extract_strided_slice %61 {offsets = [0, 384], sizes = [8, 128], strides = [1, 1]} : vector<8x512xf32> to vector<8x128xf32>
    %cst_47 = arith.constant 2.500000e-01 : f32
    %84 = vector.broadcast %cst_47 : f32 to vector<8x128xf32>
    %85 = arith.mulf %84, %83 : vector<8x128xf32>
    %cst_48 = arith.constant 5.000000e-01 : f32
    %86 = vector.broadcast %cst_48 : f32 to vector<8x128xf32>
    %87 = arith.addf %85, %86 : vector<8x128xf32>
    %cst_49 = arith.constant 0.000000e+00 : f32
    %cst_50 = arith.constant 1.000000e+00 : f32
    %88 = vector.broadcast %cst_49 : f32 to vector<8x128xf32>
    %89 = arith.maximumf %88, %87 : vector<8x128xf32>
    %90 = vector.broadcast %cst_50 : f32 to vector<8x128xf32>
    %91 = arith.minimumf %90, %89 : vector<8x128xf32>
    %92 = arith.mulf %79, %48 : vector<8x128xf32>
    %93 = arith.mulf %70, %82 : vector<8x128xf32>
    %94 = arith.addf %92, %93 : vector<8x128xf32>
    %cst_51 = arith.constant 2.500000e-01 : f32
    %95 = vector.broadcast %cst_51 : f32 to vector<8x128xf32>
    %96 = arith.mulf %95, %94 : vector<8x128xf32>
    %cst_52 = arith.constant 5.000000e-01 : f32
    %97 = vector.broadcast %cst_52 : f32 to vector<8x128xf32>
    %98 = arith.addf %96, %97 : vector<8x128xf32>
    %cst_53 = arith.constant 0.000000e+00 : f32
    %cst_54 = arith.constant 1.000000e+00 : f32
    %99 = vector.broadcast %cst_53 : f32 to vector<8x128xf32>
    %100 = arith.maximumf %99, %98 : vector<8x128xf32>
    %101 = vector.broadcast %cst_54 : f32 to vector<8x128xf32>
    %102 = arith.minimumf %101, %100 : vector<8x128xf32>
    %103 = arith.mulf %91, %102 : vector<8x128xf32>
    %c8_55 = arith.constant 8 : index
    %c0_56 = arith.constant 0 : index
    %104 = vector.load %arg7[%c8_55, %c0_56] : memref<64x128xf32, #tpu.memory_space<vmem>>, vector<8x128xf32>
    tpu.vector_store %arg7[%c8_55, %c0_56], %103 {strides = array<i32>} : memref<64x128xf32, #tpu.memory_space<vmem>>, vector<8x128xf32>,
    %c16 = arith.constant 16 : index
    %c0_57 = arith.constant 0 : index
    %105 = vector.load %arg10[%c16, %c0_57] : memref<64x512xf32, #tpu.memory_space<vmem>>, vector<8x512xf32>
    %cst_58 = arith.constant dense<0.000000e+00> : vector<8x512xf32>
    %106 = tpu.matmul %103, %12, %cst_58 {dimension_numbers = #tpu.dot_dimension_numbers<[1], [0], [0], [1], [0, 0, 1, 1], [], []>} : vector<8x128xf32>, vector<128x512xf32>, vector<8x512xf32> -> vector<8x512xf32>
    %107 = arith.addf %105, %106 : vector<8x512xf32>
    %108 = vector.extract_strided_slice %107 {offsets = [0, 0], sizes = [8, 128], strides = [1, 1]} : vector<8x512xf32> to vector<8x128xf32>
    %cst_59 = arith.constant 2.500000e-01 : f32
    %109 = vector.broadcast %cst_59 : f32 to vector<8x128xf32>
    %110 = arith.mulf %109, %108 : vector<8x128xf32>
    %cst_60 = arith.constant 5.000000e-01 : f32
    %111 = vector.broadcast %cst_60 : f32 to vector<8x128xf32>
    %112 = arith.addf %110, %111 : vector<8x128xf32>
    %cst_61 = arith.constant 0.000000e+00 : f32
    %cst_62 = arith.constant 1.000000e+00 : f32
    %113 = vector.broadcast %cst_61 : f32 to vector<8x128xf32>
    %114 = arith.maximumf %113, %112 : vector<8x128xf32>
    %115 = vector.broadcast %cst_62 : f32 to vector<8x128xf32>
    %116 = arith.minimumf %115, %114 : vector<8x128xf32>
    %117 = vector.extract_strided_slice %107 {offsets = [0, 128], sizes = [8, 128], strides = [1, 1]} : vector<8x512xf32> to vector<8x128xf32>
    %cst_63 = arith.constant 2.500000e-01 : f32
    %118 = vector.broadcast %cst_63 : f32 to vector<8x128xf32>
    %119 = arith.mulf %118, %117 : vector<8x128xf32>
    %cst_64 = arith.constant 5.000000e-01 : f32
    %120 = vector.broadcast %cst_64 : f32 to vector<8x128xf32>
    %121 = arith.addf %119, %120 : vector<8x128xf32>
    %cst_65 = arith.constant 0.000000e+00 : f32
    %cst_66 = arith.constant 1.000000e+00 : f32
    %122 = vector.broadcast %cst_65 : f32 to vector<8x128xf32>
    %123 = arith.maximumf %122, %121 : vector<8x128xf32>
    %124 = vector.broadcast %cst_66 : f32 to vector<8x128xf32>
    %125 = arith.minimumf %124, %123 : vector<8x128xf32>
    %126 = vector.extract_strided_slice %107 {offsets = [0, 256], sizes = [8, 128], strides = [1, 1]} : vector<8x512xf32> to vector<8x128xf32>
    %cst_67 = arith.constant 0.000000e+00 : f32
    %127 = vector.broadcast %cst_67 : f32 to vector<8x128xf32>
    %128 = arith.maximumf %126, %127 : vector<8x128xf32>
    %129 = vector.extract_strided_slice %107 {offsets = [0, 384], sizes = [8, 128], strides = [1, 1]} : vector<8x512xf32> to vector<8x128xf32>
    %cst_68 = arith.constant 2.500000e-01 : f32
    %130 = vector.broadcast %cst_68 : f32 to vector<8x128xf32>
    %131 = arith.mulf %130, %129 : vector<8x128xf32>
    %cst_69 = arith.constant 5.000000e-01 : f32
    %132 = vector.broadcast %cst_69 : f32 to vector<8x128xf32>
    %133 = arith.addf %131, %132 : vector<8x128xf32>
    %cst_70 = arith.constant 0.000000e+00 : f32
    %cst_71 = arith.constant 1.000000e+00 : f32
    %134 = vector.broadcast %cst_70 : f32 to vector<8x128xf32>
    %135 = arith.maximumf %134, %133 : vector<8x128xf32>
    %136 = vector.broadcast %cst_71 : f32 to vector<8x128xf32>
    %137 = arith.minimumf %136, %135 : vector<8x128xf32>
    %138 = arith.mulf %125, %94 : vector<8x128xf32>
    %139 = arith.mulf %116, %128 : vector<8x128xf32>
    %140 = arith.addf %138, %139 : vector<8x128xf32>
    %cst_72 = arith.constant 2.500000e-01 : f32
    %141 = vector.broadcast %cst_72 : f32 to vector<8x128xf32>
    %142 = arith.mulf %141, %140 : vector<8x128xf32>
    %cst_73 = arith.constant 5.000000e-01 : f32
    %143 = vector.broadcast %cst_73 : f32 to vector<8x128xf32>
    %144 = arith.addf %142, %143 : vector<8x128xf32>
    %cst_74 = arith.constant 0.000000e+00 : f32
    %cst_75 = arith.constant 1.000000e+00 : f32
    %145 = vector.broadcast %cst_74 : f32 to vector<8x128xf32>
    %146 = arith.maximumf %145, %144 : vector<8x128xf32>
    %147 = vector.broadcast %cst_75 : f32 to vector<8x128xf32>
    %148 = arith.minimumf %147, %146 : vector<8x128xf32>
    %149 = arith.mulf %137, %148 : vector<8x128xf32>
    %c16_76 = arith.constant 16 : index
    %c0_77 = arith.constant 0 : index
    %150 = vector.load %arg7[%c16_76, %c0_77] : memref<64x128xf32, #tpu.memory_space<vmem>>, vector<8x128xf32>
    tpu.vector_store %arg7[%c16_76, %c0_77], %149 {strides = array<i32>} : memref<64x128xf32, #tpu.memory_space<vmem>>, vector<8x128xf32>,
    %c24 = arith.constant 24 : index
    %c0_78 = arith.constant 0 : index
    %151 = vector.load %arg10[%c24, %c0_78] : memref<64x512xf32, #tpu.memory_space<vmem>>, vector<8x512xf32>
    %cst_79 = arith.constant dense<0.000000e+00> : vector<8x512xf32>
    %152 = tpu.matmul %149, %12, %cst_79 {dimension_numbers = #tpu.dot_dimension_numbers<[1], [0], [0], [1], [0, 0, 1, 1], [], []>} : vector<8x128xf32>, vector<128x512xf32>, vector<8x512xf32> -> vector<8x512xf32>
    %153 = arith.addf %151, %152 : vector<8x512xf32>
    %154 = vector.extract_strided_slice %153 {offsets = [0, 0], sizes = [8, 128], strides = [1, 1]} : vector<8x512xf32> to vector<8x128xf32>
    %cst_80 = arith.constant 2.500000e-01 : f32
    %155 = vector.broadcast %cst_80 : f32 to vector<8x128xf32>
    %156 = arith.mulf %155, %154 : vector<8x128xf32>
    %cst_81 = arith.constant 5.000000e-01 : f32
    %157 = vector.broadcast %cst_81 : f32 to vector<8x128xf32>
    %158 = arith.addf %156, %157 : vector<8x128xf32>
    %cst_82 = arith.constant 0.000000e+00 : f32
    %cst_83 = arith.constant 1.000000e+00 : f32
    %159 = vector.broadcast %cst_82 : f32 to vector<8x128xf32>
    %160 = arith.maximumf %159, %158 : vector<8x128xf32>
    %161 = vector.broadcast %cst_83 : f32 to vector<8x128xf32>
    %162 = arith.minimumf %161, %160 : vector<8x128xf32>
    %163 = vector.extract_strided_slice %153 {offsets = [0, 128], sizes = [8, 128], strides = [1, 1]} : vector<8x512xf32> to vector<8x128xf32>
    %cst_84 = arith.constant 2.500000e-01 : f32
    %164 = vector.broadcast %cst_84 : f32 to vector<8x128xf32>
    %165 = arith.mulf %164, %163 : vector<8x128xf32>
    %cst_85 = arith.constant 5.000000e-01 : f32
    %166 = vector.broadcast %cst_85 : f32 to vector<8x128xf32>
    %167 = arith.addf %165, %166 : vector<8x128xf32>
    %cst_86 = arith.constant 0.000000e+00 : f32
    %cst_87 = arith.constant 1.000000e+00 : f32
    %168 = vector.broadcast %cst_86 : f32 to vector<8x128xf32>
    %169 = arith.maximumf %168, %167 : vector<8x128xf32>
    %170 = vector.broadcast %cst_87 : f32 to vector<8x128xf32>
    %171 = arith.minimumf %170, %169 : vector<8x128xf32>
    %172 = vector.extract_strided_slice %153 {offsets = [0, 256], sizes = [8, 128], strides = [1, 1]} : vector<8x512xf32> to vector<8x128xf32>
    %cst_88 = arith.constant 0.000000e+00 : f32
    %173 = vector.broadcast %cst_88 : f32 to vector<8x128xf32>
    %174 = arith.maximumf %172, %173 : vector<8x128xf32>
    %175 = vector.extract_strided_slice %153 {offsets = [0, 384], sizes = [8, 128], strides = [1, 1]} : vector<8x512xf32> to vector<8x128xf32>
    %cst_89 = arith.constant 2.500000e-01 : f32
    %176 = vector.broadcast %cst_89 : f32 to vector<8x128xf32>
    %177 = arith.mulf %176, %175 : vector<8x128xf32>
    %cst_90 = arith.constant 5.000000e-01 : f32
    %178 = vector.broadcast %cst_90 : f32 to vector<8x128xf32>
    %179 = arith.addf %177, %178 : vector<8x128xf32>
    %cst_91 = arith.constant 0.000000e+00 : f32
    %cst_92 = arith.constant 1.000000e+00 : f32
    %180 = vector.broadcast %cst_91 : f32 to vector<8x128xf32>
    %181 = arith.maximumf %180, %179 : vector<8x128xf32>
    %182 = vector.broadcast %cst_92 : f32 to vector<8x128xf32>
    %183 = arith.minimumf %182, %181 : vector<8x128xf32>
    %184 = arith.mulf %171, %140 : vector<8x128xf32>
    %185 = arith.mulf %162, %174 : vector<8x128xf32>
    %186 = arith.addf %184, %185 : vector<8x128xf32>
    %cst_93 = arith.constant 2.500000e-01 : f32
    %187 = vector.broadcast %cst_93 : f32 to vector<8x128xf32>
    %188 = arith.mulf %187, %186 : vector<8x128xf32>
    %cst_94 = arith.constant 5.000000e-01 : f32
    %189 = vector.broadcast %cst_94 : f32 to vector<8x128xf32>
    %190 = arith.addf %188, %189 : vector<8x128xf32>
    %cst_95 = arith.constant 0.000000e+00 : f32
    %cst_96 = arith.constant 1.000000e+00 : f32
    %191 = vector.broadcast %cst_95 : f32 to vector<8x128xf32>
    %192 = arith.maximumf %191, %190 : vector<8x128xf32>
    %193 = vector.broadcast %cst_96 : f32 to vector<8x128xf32>
    %194 = arith.minimumf %193, %192 : vector<8x128xf32>
    %195 = arith.mulf %183, %194 : vector<8x128xf32>
    %c24_97 = arith.constant 24 : index
    %c0_98 = arith.constant 0 : index
    %196 = vector.load %arg7[%c24_97, %c0_98] : memref<64x128xf32, #tpu.memory_space<vmem>>, vector<8x128xf32>
    tpu.vector_store %arg7[%c24_97, %c0_98], %195 {strides = array<i32>} : memref<64x128xf32, #tpu.memory_space<vmem>>, vector<8x128xf32>,
    %c32 = arith.constant 32 : index
    %c0_99 = arith.constant 0 : index
    %197 = vector.load %arg10[%c32, %c0_99] : memref<64x512xf32, #tpu.memory_space<vmem>>, vector<8x512xf32>
    %cst_100 = arith.constant dense<0.000000e+00> : vector<8x512xf32>
    %198 = tpu.matmul %195, %12, %cst_100 {dimension_numbers = #tpu.dot_dimension_numbers<[1], [0], [0], [1], [0, 0, 1, 1], [], []>} : vector<8x128xf32>, vector<128x512xf32>, vector<8x512xf32> -> vector<8x512xf32>
    %199 = arith.addf %197, %198 : vector<8x512xf32>
    %200 = vector.extract_strided_slice %199 {offsets = [0, 0], sizes = [8, 128], strides = [1, 1]} : vector<8x512xf32> to vector<8x128xf32>
    %cst_101 = arith.constant 2.500000e-01 : f32
    %201 = vector.broadcast %cst_101 : f32 to vector<8x128xf32>
    %202 = arith.mulf %201, %200 : vector<8x128xf32>
    %cst_102 = arith.constant 5.000000e-01 : f32
    %203 = vector.broadcast %cst_102 : f32 to vector<8x128xf32>
    %204 = arith.addf %202, %203 : vector<8x128xf32>
    %cst_103 = arith.constant 0.000000e+00 : f32
    %cst_104 = arith.constant 1.000000e+00 : f32
    %205 = vector.broadcast %cst_103 : f32 to vector<8x128xf32>
    %206 = arith.maximumf %205, %204 : vector<8x128xf32>
    %207 = vector.broadcast %cst_104 : f32 to vector<8x128xf32>
    %208 = arith.minimumf %207, %206 : vector<8x128xf32>
    %209 = vector.extract_strided_slice %199 {offsets = [0, 128], sizes = [8, 128], strides = [1, 1]} : vector<8x512xf32> to vector<8x128xf32>
    %cst_105 = arith.constant 2.500000e-01 : f32
    %210 = vector.broadcast %cst_105 : f32 to vector<8x128xf32>
    %211 = arith.mulf %210, %209 : vector<8x128xf32>
    %cst_106 = arith.constant 5.000000e-01 : f32
    %212 = vector.broadcast %cst_106 : f32 to vector<8x128xf32>
    %213 = arith.addf %211, %212 : vector<8x128xf32>
    %cst_107 = arith.constant 0.000000e+00 : f32
    %cst_108 = arith.constant 1.000000e+00 : f32
    %214 = vector.broadcast %cst_107 : f32 to vector<8x128xf32>
    %215 = arith.maximumf %214, %213 : vector<8x128xf32>
    %216 = vector.broadcast %cst_108 : f32 to vector<8x128xf32>
    %217 = arith.minimumf %216, %215 : vector<8x128xf32>
    %218 = vector.extract_strided_slice %199 {offsets = [0, 256], sizes = [8, 128], strides = [1, 1]} : vector<8x512xf32> to vector<8x128xf32>
    %cst_109 = arith.constant 0.000000e+00 : f32
    %219 = vector.broadcast %cst_109 : f32 to vector<8x128xf32>
    %220 = arith.maximumf %218, %219 : vector<8x128xf32>
    %221 = vector.extract_strided_slice %199 {offsets = [0, 384], sizes = [8, 128], strides = [1, 1]} : vector<8x512xf32> to vector<8x128xf32>
    %cst_110 = arith.constant 2.500000e-01 : f32
    %222 = vector.broadcast %cst_110 : f32 to vector<8x128xf32>
    %223 = arith.mulf %222, %221 : vector<8x128xf32>
    %cst_111 = arith.constant 5.000000e-01 : f32
    %224 = vector.broadcast %cst_111 : f32 to vector<8x128xf32>
    %225 = arith.addf %223, %224 : vector<8x128xf32>
    %cst_112 = arith.constant 0.000000e+00 : f32
    %cst_113 = arith.constant 1.000000e+00 : f32
    %226 = vector.broadcast %cst_112 : f32 to vector<8x128xf32>
    %227 = arith.maximumf %226, %225 : vector<8x128xf32>
    %228 = vector.broadcast %cst_113 : f32 to vector<8x128xf32>
    %229 = arith.minimumf %228, %227 : vector<8x128xf32>
    %230 = arith.mulf %217, %186 : vector<8x128xf32>
    %231 = arith.mulf %208, %220 : vector<8x128xf32>
    %232 = arith.addf %230, %231 : vector<8x128xf32>
    %cst_114 = arith.constant 2.500000e-01 : f32
    %233 = vector.broadcast %cst_114 : f32 to vector<8x128xf32>
    %234 = arith.mulf %233, %232 : vector<8x128xf32>
    %cst_115 = arith.constant 5.000000e-01 : f32
    %235 = vector.broadcast %cst_115 : f32 to vector<8x128xf32>
    %236 = arith.addf %234, %235 : vector<8x128xf32>
    %cst_116 = arith.constant 0.000000e+00 : f32
    %cst_117 = arith.constant 1.000000e+00 : f32
    %237 = vector.broadcast %cst_116 : f32 to vector<8x128xf32>
    %238 = arith.maximumf %237, %236 : vector<8x128xf32>
    %239 = vector.broadcast %cst_117 : f32 to vector<8x128xf32>
    %240 = arith.minimumf %239, %238 : vector<8x128xf32>
    %241 = arith.mulf %229, %240 : vector<8x128xf32>
    %c32_118 = arith.constant 32 : index
    %c0_119 = arith.constant 0 : index
    %242 = vector.load %arg7[%c32_118, %c0_119] : memref<64x128xf32, #tpu.memory_space<vmem>>, vector<8x128xf32>
    tpu.vector_store %arg7[%c32_118, %c0_119], %241 {strides = array<i32>} : memref<64x128xf32, #tpu.memory_space<vmem>>, vector<8x128xf32>,
    %c40 = arith.constant 40 : index
    %c0_120 = arith.constant 0 : index
    %243 = vector.load %arg10[%c40, %c0_120] : memref<64x512xf32, #tpu.memory_space<vmem>>, vector<8x512xf32>
    %cst_121 = arith.constant dense<0.000000e+00> : vector<8x512xf32>
    %244 = tpu.matmul %241, %12, %cst_121 {dimension_numbers = #tpu.dot_dimension_numbers<[1], [0], [0], [1], [0, 0, 1, 1], [], []>} : vector<8x128xf32>, vector<128x512xf32>, vector<8x512xf32> -> vector<8x512xf32>
    %245 = arith.addf %243, %244 : vector<8x512xf32>
    %246 = vector.extract_strided_slice %245 {offsets = [0, 0], sizes = [8, 128], strides = [1, 1]} : vector<8x512xf32> to vector<8x128xf32>
    %cst_122 = arith.constant 2.500000e-01 : f32
    %247 = vector.broadcast %cst_122 : f32 to vector<8x128xf32>
    %248 = arith.mulf %247, %246 : vector<8x128xf32>
    %cst_123 = arith.constant 5.000000e-01 : f32
    %249 = vector.broadcast %cst_123 : f32 to vector<8x128xf32>
    %250 = arith.addf %248, %249 : vector<8x128xf32>
    %cst_124 = arith.constant 0.000000e+00 : f32
    %cst_125 = arith.constant 1.000000e+00 : f32
    %251 = vector.broadcast %cst_124 : f32 to vector<8x128xf32>
    %252 = arith.maximumf %251, %250 : vector<8x128xf32>
    %253 = vector.broadcast %cst_125 : f32 to vector<8x128xf32>
    %254 = arith.minimumf %253, %252 : vector<8x128xf32>
    %255 = vector.extract_strided_slice %245 {offsets = [0, 128], sizes = [8, 128], strides = [1, 1]} : vector<8x512xf32> to vector<8x128xf32>
    %cst_126 = arith.constant 2.500000e-01 : f32
    %256 = vector.broadcast %cst_126 : f32 to vector<8x128xf32>
    %257 = arith.mulf %256, %255 : vector<8x128xf32>
    %cst_127 = arith.constant 5.000000e-01 : f32
    %258 = vector.broadcast %cst_127 : f32 to vector<8x128xf32>
    %259 = arith.addf %257, %258 : vector<8x128xf32>
    %cst_128 = arith.constant 0.000000e+00 : f32
    %cst_129 = arith.constant 1.000000e+00 : f32
    %260 = vector.broadcast %cst_128 : f32 to vector<8x128xf32>
    %261 = arith.maximumf %260, %259 : vector<8x128xf32>
    %262 = vector.broadcast %cst_129 : f32 to vector<8x128xf32>
    %263 = arith.minimumf %262, %261 : vector<8x128xf32>
    %264 = vector.extract_strided_slice %245 {offsets = [0, 256], sizes = [8, 128], strides = [1, 1]} : vector<8x512xf32> to vector<8x128xf32>
    %cst_130 = arith.constant 0.000000e+00 : f32
    %265 = vector.broadcast %cst_130 : f32 to vector<8x128xf32>
    %266 = arith.maximumf %264, %265 : vector<8x128xf32>
    %267 = vector.extract_strided_slice %245 {offsets = [0, 384], sizes = [8, 128], strides = [1, 1]} : vector<8x512xf32> to vector<8x128xf32>
    %cst_131 = arith.constant 2.500000e-01 : f32
    %268 = vector.broadcast %cst_131 : f32 to vector<8x128xf32>
    %269 = arith.mulf %268, %267 : vector<8x128xf32>
    %cst_132 = arith.constant 5.000000e-01 : f32
    %270 = vector.broadcast %cst_132 : f32 to vector<8x128xf32>
    %271 = arith.addf %269, %270 : vector<8x128xf32>
    %cst_133 = arith.constant 0.000000e+00 : f32
    %cst_134 = arith.constant 1.000000e+00 : f32
    %272 = vector.broadcast %cst_133 : f32 to vector<8x128xf32>
    %273 = arith.maximumf %272, %271 : vector<8x128xf32>
    %274 = vector.broadcast %cst_134 : f32 to vector<8x128xf32>
    %275 = arith.minimumf %274, %273 : vector<8x128xf32>
    %276 = arith.mulf %263, %232 : vector<8x128xf32>
    %277 = arith.mulf %254, %266 : vector<8x128xf32>
    %278 = arith.addf %276, %277 : vector<8x128xf32>
    %cst_135 = arith.constant 2.500000e-01 : f32
    %279 = vector.broadcast %cst_135 : f32 to vector<8x128xf32>
    %280 = arith.mulf %279, %278 : vector<8x128xf32>
    %cst_136 = arith.constant 5.000000e-01 : f32
    %281 = vector.broadcast %cst_136 : f32 to vector<8x128xf32>
    %282 = arith.addf %280, %281 : vector<8x128xf32>
    %cst_137 = arith.constant 0.000000e+00 : f32
    %cst_138 = arith.constant 1.000000e+00 : f32
    %283 = vector.broadcast %cst_137 : f32 to vector<8x128xf32>
    %284 = arith.maximumf %283, %282 : vector<8x128xf32>
    %285 = vector.broadcast %cst_138 : f32 to vector<8x128xf32>
    %286 = arith.minimumf %285, %284 : vector<8x128xf32>
    %287 = arith.mulf %275, %286 : vector<8x128xf32>
    %c40_139 = arith.constant 40 : index
    %c0_140 = arith.constant 0 : index
    %288 = vector.load %arg7[%c40_139, %c0_140] : memref<64x128xf32, #tpu.memory_space<vmem>>, vector<8x128xf32>
    tpu.vector_store %arg7[%c40_139, %c0_140], %287 {strides = array<i32>} : memref<64x128xf32, #tpu.memory_space<vmem>>, vector<8x128xf32>,
    %c48 = arith.constant 48 : index
    %c0_141 = arith.constant 0 : index
    %289 = vector.load %arg10[%c48, %c0_141] : memref<64x512xf32, #tpu.memory_space<vmem>>, vector<8x512xf32>
    %cst_142 = arith.constant dense<0.000000e+00> : vector<8x512xf32>
    %290 = tpu.matmul %287, %12, %cst_142 {dimension_numbers = #tpu.dot_dimension_numbers<[1], [0], [0], [1], [0, 0, 1, 1], [], []>} : vector<8x128xf32>, vector<128x512xf32>, vector<8x512xf32> -> vector<8x512xf32>
    %291 = arith.addf %289, %290 : vector<8x512xf32>
    %292 = vector.extract_strided_slice %291 {offsets = [0, 0], sizes = [8, 128], strides = [1, 1]} : vector<8x512xf32> to vector<8x128xf32>
    %cst_143 = arith.constant 2.500000e-01 : f32
    %293 = vector.broadcast %cst_143 : f32 to vector<8x128xf32>
    %294 = arith.mulf %293, %292 : vector<8x128xf32>
    %cst_144 = arith.constant 5.000000e-01 : f32
    %295 = vector.broadcast %cst_144 : f32 to vector<8x128xf32>
    %296 = arith.addf %294, %295 : vector<8x128xf32>
    %cst_145 = arith.constant 0.000000e+00 : f32
    %cst_146 = arith.constant 1.000000e+00 : f32
    %297 = vector.broadcast %cst_145 : f32 to vector<8x128xf32>
    %298 = arith.maximumf %297, %296 : vector<8x128xf32>
    %299 = vector.broadcast %cst_146 : f32 to vector<8x128xf32>
    %300 = arith.minimumf %299, %298 : vector<8x128xf32>
    %301 = vector.extract_strided_slice %291 {offsets = [0, 128], sizes = [8, 128], strides = [1, 1]} : vector<8x512xf32> to vector<8x128xf32>
    %cst_147 = arith.constant 2.500000e-01 : f32
    %302 = vector.broadcast %cst_147 : f32 to vector<8x128xf32>
    %303 = arith.mulf %302, %301 : vector<8x128xf32>
    %cst_148 = arith.constant 5.000000e-01 : f32
    %304 = vector.broadcast %cst_148 : f32 to vector<8x128xf32>
    %305 = arith.addf %303, %304 : vector<8x128xf32>
    %cst_149 = arith.constant 0.000000e+00 : f32
    %cst_150 = arith.constant 1.000000e+00 : f32
    %306 = vector.broadcast %cst_149 : f32 to vector<8x128xf32>
    %307 = arith.maximumf %306, %305 : vector<8x128xf32>
    %308 = vector.broadcast %cst_150 : f32 to vector<8x128xf32>
    %309 = arith.minimumf %308, %307 : vector<8x128xf32>
    %310 = vector.extract_strided_slice %291 {offsets = [0, 256], sizes = [8, 128], strides = [1, 1]} : vector<8x512xf32> to vector<8x128xf32>
    %cst_151 = arith.constant 0.000000e+00 : f32
    %311 = vector.broadcast %cst_151 : f32 to vector<8x128xf32>
    %312 = arith.maximumf %310, %311 : vector<8x128xf32>
    %313 = vector.extract_strided_slice %291 {offsets = [0, 384], sizes = [8, 128], strides = [1, 1]} : vector<8x512xf32> to vector<8x128xf32>
    %cst_152 = arith.constant 2.500000e-01 : f32
    %314 = vector.broadcast %cst_152 : f32 to vector<8x128xf32>
    %315 = arith.mulf %314, %313 : vector<8x128xf32>
    %cst_153 = arith.constant 5.000000e-01 : f32
    %316 = vector.broadcast %cst_153 : f32 to vector<8x128xf32>
    %317 = arith.addf %315, %316 : vector<8x128xf32>
    %cst_154 = arith.constant 0.000000e+00 : f32
    %cst_155 = arith.constant 1.000000e+00 : f32
    %318 = vector.broadcast %cst_154 : f32 to vector<8x128xf32>
    %319 = arith.maximumf %318, %317 : vector<8x128xf32>
    %320 = vector.broadcast %cst_155 : f32 to vector<8x128xf32>
    %321 = arith.minimumf %320, %319 : vector<8x128xf32>
    %322 = arith.mulf %309, %278 : vector<8x128xf32>
    %323 = arith.mulf %300, %312 : vector<8x128xf32>
    %324 = arith.addf %322, %323 : vector<8x128xf32>
    %cst_156 = arith.constant 2.500000e-01 : f32
    %325 = vector.broadcast %cst_156 : f32 to vector<8x128xf32>
    %326 = arith.mulf %325, %324 : vector<8x128xf32>
    %cst_157 = arith.constant 5.000000e-01 : f32
    %327 = vector.broadcast %cst_157 : f32 to vector<8x128xf32>
    %328 = arith.addf %326, %327 : vector<8x128xf32>
    %cst_158 = arith.constant 0.000000e+00 : f32
    %cst_159 = arith.constant 1.000000e+00 : f32
    %329 = vector.broadcast %cst_158 : f32 to vector<8x128xf32>
    %330 = arith.maximumf %329, %328 : vector<8x128xf32>
    %331 = vector.broadcast %cst_159 : f32 to vector<8x128xf32>
    %332 = arith.minimumf %331, %330 : vector<8x128xf32>
    %333 = arith.mulf %321, %332 : vector<8x128xf32>
    %c48_160 = arith.constant 48 : index
    %c0_161 = arith.constant 0 : index
    %334 = vector.load %arg7[%c48_160, %c0_161] : memref<64x128xf32, #tpu.memory_space<vmem>>, vector<8x128xf32>
    tpu.vector_store %arg7[%c48_160, %c0_161], %333 {strides = array<i32>} : memref<64x128xf32, #tpu.memory_space<vmem>>, vector<8x128xf32>,
    %c56 = arith.constant 56 : index
    %c0_162 = arith.constant 0 : index
    %335 = vector.load %arg10[%c56, %c0_162] : memref<64x512xf32, #tpu.memory_space<vmem>>, vector<8x512xf32>
    %cst_163 = arith.constant dense<0.000000e+00> : vector<8x512xf32>
    %336 = tpu.matmul %333, %12, %cst_163 {dimension_numbers = #tpu.dot_dimension_numbers<[1], [0], [0], [1], [0, 0, 1, 1], [], []>} : vector<8x128xf32>, vector<128x512xf32>, vector<8x512xf32> -> vector<8x512xf32>
    %337 = arith.addf %335, %336 : vector<8x512xf32>
    %338 = vector.extract_strided_slice %337 {offsets = [0, 0], sizes = [8, 128], strides = [1, 1]} : vector<8x512xf32> to vector<8x128xf32>
    %cst_164 = arith.constant 2.500000e-01 : f32
    %339 = vector.broadcast %cst_164 : f32 to vector<8x128xf32>
    %340 = arith.mulf %339, %338 : vector<8x128xf32>
    %cst_165 = arith.constant 5.000000e-01 : f32
    %341 = vector.broadcast %cst_165 : f32 to vector<8x128xf32>
    %342 = arith.addf %340, %341 : vector<8x128xf32>
    %cst_166 = arith.constant 0.000000e+00 : f32
    %cst_167 = arith.constant 1.000000e+00 : f32
    %343 = vector.broadcast %cst_166 : f32 to vector<8x128xf32>
    %344 = arith.maximumf %343, %342 : vector<8x128xf32>
    %345 = vector.broadcast %cst_167 : f32 to vector<8x128xf32>
    %346 = arith.minimumf %345, %344 : vector<8x128xf32>
    %347 = vector.extract_strided_slice %337 {offsets = [0, 128], sizes = [8, 128], strides = [1, 1]} : vector<8x512xf32> to vector<8x128xf32>
    %cst_168 = arith.constant 2.500000e-01 : f32
    %348 = vector.broadcast %cst_168 : f32 to vector<8x128xf32>
    %349 = arith.mulf %348, %347 : vector<8x128xf32>
    %cst_169 = arith.constant 5.000000e-01 : f32
    %350 = vector.broadcast %cst_169 : f32 to vector<8x128xf32>
    %351 = arith.addf %349, %350 : vector<8x128xf32>
    %cst_170 = arith.constant 0.000000e+00 : f32
    %cst_171 = arith.constant 1.000000e+00 : f32
    %352 = vector.broadcast %cst_170 : f32 to vector<8x128xf32>
    %353 = arith.maximumf %352, %351 : vector<8x128xf32>
    %354 = vector.broadcast %cst_171 : f32 to vector<8x128xf32>
    %355 = arith.minimumf %354, %353 : vector<8x128xf32>
    %356 = vector.extract_strided_slice %337 {offsets = [0, 256], sizes = [8, 128], strides = [1, 1]} : vector<8x512xf32> to vector<8x128xf32>
    %cst_172 = arith.constant 0.000000e+00 : f32
    %357 = vector.broadcast %cst_172 : f32 to vector<8x128xf32>
    %358 = arith.maximumf %356, %357 : vector<8x128xf32>
    %359 = vector.extract_strided_slice %337 {offsets = [0, 384], sizes = [8, 128], strides = [1, 1]} : vector<8x512xf32> to vector<8x128xf32>
    %cst_173 = arith.constant 2.500000e-01 : f32
    %360 = vector.broadcast %cst_173 : f32 to vector<8x128xf32>
    %361 = arith.mulf %360, %359 : vector<8x128xf32>
    %cst_174 = arith.constant 5.000000e-01 : f32
    %362 = vector.broadcast %cst_174 : f32 to vector<8x128xf32>
    %363 = arith.addf %361, %362 : vector<8x128xf32>
    %cst_175 = arith.constant 0.000000e+00 : f32
    %cst_176 = arith.constant 1.000000e+00 : f32
    %364 = vector.broadcast %cst_175 : f32 to vector<8x128xf32>
    %365 = arith.maximumf %364, %363 : vector<8x128xf32>
    %366 = vector.broadcast %cst_176 : f32 to vector<8x128xf32>
    %367 = arith.minimumf %366, %365 : vector<8x128xf32>
    %368 = arith.mulf %355, %324 : vector<8x128xf32>
    %369 = arith.mulf %346, %358 : vector<8x128xf32>
    %370 = arith.addf %368, %369 : vector<8x128xf32>
    %cst_177 = arith.constant 2.500000e-01 : f32
    %371 = vector.broadcast %cst_177 : f32 to vector<8x128xf32>
    %372 = arith.mulf %371, %370 : vector<8x128xf32>
    %cst_178 = arith.constant 5.000000e-01 : f32
    %373 = vector.broadcast %cst_178 : f32 to vector<8x128xf32>
    %374 = arith.addf %372, %373 : vector<8x128xf32>
    %cst_179 = arith.constant 0.000000e+00 : f32
    %cst_180 = arith.constant 1.000000e+00 : f32
    %375 = vector.broadcast %cst_179 : f32 to vector<8x128xf32>
    %376 = arith.maximumf %375, %374 : vector<8x128xf32>
    %377 = vector.broadcast %cst_180 : f32 to vector<8x128xf32>
    %378 = arith.minimumf %377, %376 : vector<8x128xf32>
    %379 = arith.mulf %367, %378 : vector<8x128xf32>
    %c56_181 = arith.constant 56 : index
    %c0_182 = arith.constant 0 : index
    %380 = vector.load %arg7[%c56_181, %c0_182] : memref<64x128xf32, #tpu.memory_space<vmem>>, vector<8x128xf32>
    tpu.vector_store %arg7[%c56_181, %c0_182], %379 {strides = array<i32>} : memref<64x128xf32, #tpu.memory_space<vmem>>, vector<8x128xf32>,
    %c0_183 = arith.constant 0 : index
    %c0_184 = arith.constant 0 : index
    %381 = vector.load %arg11[%c0_183, %c0_184] : memref<8x128xf32, #tpu.memory_space<vmem>>, vector<8x128xf32>
    tpu.vector_store %arg11[%c0_183, %c0_184], %379 {strides = array<i32>} : memref<8x128xf32, #tpu.memory_space<vmem>>, vector<8x128xf32>,
    %c0_185 = arith.constant 0 : index
    %c0_186 = arith.constant 0 : index
    %382 = vector.load %arg12[%c0_185, %c0_186] : memref<8x128xf32, #tpu.memory_space<vmem>>, vector<8x128xf32>
    tpu.vector_store %arg12[%c0_185, %c0_186], %370 {strides = array<i32>} : memref<8x128xf32, #tpu.memory_space<vmem>>, vector<8x128xf32>,
    %c0_i32_187 = arith.constant 0 : i32
    %383 = arith.cmpi eq, %arg0, %c0_i32_187 : i32
    %384 = arith.extui %383 : i1 to i32
    %c0_i32_188 = arith.constant 0 : i32
    %385 = arith.cmpi ne, %384, %c0_i32_188 : i32
    scf.if %385 {
      %c0_189 = arith.constant 0 : index
      %c0_190 = arith.constant 0 : index
      %386 = vector.load %arg8[%c0_189, %c0_190] : memref<8x128xf32, #tpu.memory_space<vmem>>, vector<8x128xf32>
      tpu.vector_store %arg8[%c0_189, %c0_190], %379 {strides = array<i32>} : memref<8x128xf32, #tpu.memory_space<vmem>>, vector<8x128xf32>,
      %c0_191 = arith.constant 0 : index
      %c0_192 = arith.constant 0 : index
      %387 = vector.load %arg9[%c0_191, %c0_192] : memref<8x128xf32, #tpu.memory_space<vmem>>, vector<8x128xf32>
      tpu.vector_store %arg9[%c0_191, %c0_192], %370 {strides = array<i32>} : memref<8x128xf32, #tpu.memory_space<vmem>>, vector<8x128xf32>,
    } else {
    }
    return
  }
  func.func @transform_0(%arg0: i32) -> (i32, i32) {
    %c0_i32 = arith.constant 0 : i32
    %c0_i32_0 = arith.constant 0 : i32
    return %arg0, %c0_i32 : i32, i32
  }
  func.func @transform_1(%arg0: i32) -> (i32, i32) {
    %c0_i32 = arith.constant 0 : i32
    %c0_i32_0 = arith.constant 0 : i32
    %c0_i32_1 = arith.constant 0 : i32
    return %c0_i32, %c0_i32_0 : i32, i32
  }
  func.func @transform_2(%arg0: i32) -> (i32, i32) {
    %c0_i32 = arith.constant 0 : i32
    %c0_i32_0 = arith.constant 0 : i32
    %c0_i32_1 = arith.constant 0 : i32
    return %c0_i32, %c0_i32_0 : i32, i32
  }
  func.func @transform_3(%arg0: i32) -> (i32, i32) {
    %c0_i32 = arith.constant 0 : i32
    %c0_i32_0 = arith.constant 0 : i32
    %c0_i32_1 = arith.constant 0 : i32
    return %c0_i32, %c0_i32_0 : i32, i32
  }
  func.func @transform_4(%arg0: i32) -> (i32, i32) {
    %c0_i32 = arith.constant 0 : i32
    %c0_i32_0 = arith.constant 0 : i32
    %c0_i32_1 = arith.constant 0 : i32
    return %c0_i32, %c0_i32_0 : i32, i32
  }
  func.func @transform_5(%arg0: i32) -> (i32, i32) {
    %c0_i32 = arith.constant 0 : i32
    %c0_i32_0 = arith.constant 0 : i32
    %c0_i32_1 = arith.constant 0 : i32
    return %c0_i32, %c0_i32_0 : i32, i32
  }
  func.func @transform_6(%arg0: i32) -> (i32, i32) {
    %c0_i32 = arith.constant 0 : i32
    %c0_i32_0 = arith.constant 0 : i32
    return %arg0, %c0_i32 : i32, i32
  }
  func.func @transform_7(%arg0: i32) -> (i32, i32) {
    %c0_i32 = arith.constant 0 : i32
    %c0_i32_0 = arith.constant 0 : i32
    %c0_i32_1 = arith.constant 0 : i32
    return %c0_i32, %c0_i32_0 : i32, i32
  }
  func.func @transform_8(%arg0: i32) -> (i32, i32) {
    %c0_i32 = arith.constant 0 : i32
    %c0_i32_0 = arith.constant 0 : i32
    %c0_i32_1 = arith.constant 0 : i32
    return %c0_i32, %c0_i32_0 : i32, i32
  }
}

module attributes {stable_mosaic.version = 11 : i64} {
  func.func @_lstm_rec_kernel(%arg0: i32, %arg1: memref<64x256xf32, #tpu.memory_space<vmem>>, %arg2: memref<256x512xf32, #tpu.memory_space<vmem>>, %arg3: memref<128x512xf32, #tpu.memory_space<vmem>>, %arg4: memref<1x512xf32, #tpu.memory_space<vmem>>, %arg5: memref<8x128xf32, #tpu.memory_space<vmem>>, %arg6: memref<8x128xf32, #tpu.memory_space<vmem>>, %arg7: memref<64x128xf32, #tpu.memory_space<vmem>>, %arg8: memref<8x128xf32, #tpu.memory_space<vmem>>, %arg9: memref<8x128xf32, #tpu.memory_space<vmem>>, %arg10: memref<64x512xf32, #tpu.memory_space<vmem>>, %arg11: memref<8x128xf32, #tpu.memory_space<vmem>>, %arg12: memref<8x128xf32, #tpu.memory_space<vmem>>) attributes {dimension_semantics = [#tpu.dimension_semantics<arbitrary>], iteration_bounds = array<i64: 1>, scalar_prefetch = 0 : i64, scratch_operands = 3 : i64, tpu.core_type = #tpu.core_type<tc>, window_params = [{transform_indices = @transform_0, window_bounds = array<i64: 64, 256>}, {pipeline_mode = #tpu.pipeline_mode<synchronous>, transform_indices = @transform_1, window_bounds = array<i64: 256, 512>}, {pipeline_mode = #tpu.pipeline_mode<synchronous>, transform_indices = @transform_2, window_bounds = array<i64: 128, 512>}, {pipeline_mode = #tpu.pipeline_mode<synchronous>, transform_indices = @transform_3, window_bounds = array<i64: 1, 512>}, {pipeline_mode = #tpu.pipeline_mode<synchronous>, transform_indices = @transform_4, window_bounds = array<i64: 8, 128>}, {pipeline_mode = #tpu.pipeline_mode<synchronous>, transform_indices = @transform_5, window_bounds = array<i64: 8, 128>}, {transform_indices = @transform_6, window_bounds = array<i64: 64, 128>}, {pipeline_mode = #tpu.pipeline_mode<synchronous>, transform_indices = @transform_7, window_bounds = array<i64: 8, 128>}, {pipeline_mode = #tpu.pipeline_mode<synchronous>, transform_indices = @transform_8, window_bounds = array<i64: 8, 128>}]} {
    %c0_i32 = arith.constant 0 : i32
    %0 = arith.cmpi eq, %arg0, %c0_i32 : i32
    %1 = arith.extui %0 : i1 to i32
    %c0_i32_0 = arith.constant 0 : i32
    %2 = arith.cmpi ne, %1, %c0_i32_0 : i32
    scf.if %2 {
      %c0_189 = arith.constant 0 : index
      %c0_190 = arith.constant 0 : index
      %386 = vector.load %arg5[%c0_189, %c0_190] : memref<8x128xf32, #tpu.memory_space<vmem>>, vector<8x128xf32>
      %c0_191 = arith.constant 0 : index
      %c0_192 = arith.constant 0 : index
      %387 = vector.load %arg11[%c0_191, %c0_192] : memref<8x128xf32, #tpu.memory_space<vmem>>, vector<8x128xf32>
      tpu.vector_store %arg11[%c0_191, %c0_192], %386 {strides = array<i32>} : memref<8x128xf32, #tpu.memory_space<vmem>>, vector<8x128xf32>,
      %c0_193 = arith.constant 0 : index
      %c0_194 = arith.constant 0 : index
      %388 = vector.load %arg6[%c0_193, %c0_194] : memref<8x128xf32, #tpu.memory_space<vmem>>, vector<8x128xf32>
      %c0_195 = arith.constant 0 : index
      %c0_196 = arith.constant 0 : index
      %389 = vector.load %arg12[%c0_195, %c0_196] : memref<8x128xf32, #tpu.memory_space<vmem>>, vector<8x128xf32>
      tpu.vector_store %arg12[%c0_195, %c0_196], %388 {strides = array<i32>} : memref<8x128xf32, #tpu.memory_space<vmem>>, vector<8x128xf32>,
    } else {
    }
    %c0 = arith.constant 0 : index
    %c0_1 = arith.constant 0 : index
    %3 = vector.load %arg1[%c0, %c0_1] : memref<64x256xf32, #tpu.memory_space<vmem>>, vector<64x256xf32>
    %c0_2 = arith.constant 0 : index
    %c0_3 = arith.constant 0 : index
    %4 = vector.load %arg2[%c0_2, %c0_3] : memref<256x512xf32, #tpu.memory_space<vmem>>, vector<256x512xf32>
    %cst = arith.constant dense<0.000000e+00> : vector<64x512xf32>
    %5 = tpu.matmul %3, %4, %cst {dimension_numbers = #tpu.dot_dimension_numbers<[1], [0], [0], [1], [0, 0, 1, 1], [], []>} : vector<64x256xf32>, vector<256x512xf32>, vector<64x512xf32> -> vector<64x512xf32>
    %c0_4 = arith.constant 0 : index
    %c0_5 = arith.constant 0 : index
    %6 = vector.load %arg4[%c0_4, %c0_5] : memref<1x512xf32, #tpu.memory_space<vmem>>, vector<1x512xf32>
    %7 = vector.broadcast %6 : vector<1x512xf32> to vector<64x512xf32>
    %8 = arith.addf %5, %7 : vector<64x512xf32>
    %c0_6 = arith.constant 0 : index
    %c0_7 = arith.constant 0 : index
    %9 = vector.load %arg10[%c0_6, %c0_7] : memref<64x512xf32, #tpu.memory_space<vmem>>, vector<64x512xf32>
    tpu.vector_store %arg10[%c0_6, %c0_7], %8 {strides = array<i32>} : memref<64x512xf32, #tpu.memory_space<vmem>>, vector<64x512xf32>,
    %c0_8 = arith.constant 0 : index
    %c0_9 = arith.constant 0 : index
    %10 = vector.load %arg11[%c0_8, %c0_9] : memref<8x128xf32, #tpu.memory_space<vmem>>, vector<8x128xf32>
    %c0_10 = arith.constant 0 : index
    %c0_11 = arith.constant 0 : index
    %11 = vector.load %arg12[%c0_10, %c0_11] : memref<8x128xf32, #tpu.memory_space<vmem>>, vector<8x128xf32>
    %c0_12 = arith.constant 0 : index
    %c0_13 = arith.constant 0 : index
    %12 = vector.load %arg3[%c0_12, %c0_13] : memref<128x512xf32, #tpu.memory_space<vmem>>, vector<128x512xf32>
    %c56 = arith.constant 56 : index
    %c0_14 = arith.constant 0 : index
    %13 = vector.load %arg10[%c56, %c0_14] : memref<64x512xf32, #tpu.memory_space<vmem>>, vector<8x512xf32>
    %cst_15 = arith.constant dense<0.000000e+00> : vector<8x512xf32>
    %14 = tpu.matmul %10, %12, %cst_15 {dimension_numbers = #tpu.dot_dimension_numbers<[1], [0], [0], [1], [0, 0, 1, 1], [], []>} : vector<8x128xf32>, vector<128x512xf32>, vector<8x512xf32> -> vector<8x512xf32>
    %15 = arith.addf %13, %14 : vector<8x512xf32>
    %16 = vector.extract_strided_slice %15 {offsets = [0, 0], sizes = [8, 128], strides = [1, 1]} : vector<8x512xf32> to vector<8x128xf32>
    %cst_16 = arith.constant 2.500000e-01 : f32
    %17 = vector.broadcast %cst_16 : f32 to vector<8x128xf32>
    %18 = arith.mulf %17, %16 : vector<8x128xf32>
    %cst_17 = arith.constant 5.000000e-01 : f32
    %19 = vector.broadcast %cst_17 : f32 to vector<8x128xf32>
    %20 = arith.addf %18, %19 : vector<8x128xf32>
    %cst_18 = arith.constant 0.000000e+00 : f32
    %cst_19 = arith.constant 1.000000e+00 : f32
    %21 = vector.broadcast %cst_18 : f32 to vector<8x128xf32>
    %22 = arith.maximumf %21, %20 : vector<8x128xf32>
    %23 = vector.broadcast %cst_19 : f32 to vector<8x128xf32>
    %24 = arith.minimumf %23, %22 : vector<8x128xf32>
    %25 = vector.extract_strided_slice %15 {offsets = [0, 128], sizes = [8, 128], strides = [1, 1]} : vector<8x512xf32> to vector<8x128xf32>
    %cst_20 = arith.constant 2.500000e-01 : f32
    %26 = vector.broadcast %cst_20 : f32 to vector<8x128xf32>
    %27 = arith.mulf %26, %25 : vector<8x128xf32>
    %cst_21 = arith.constant 5.000000e-01 : f32
    %28 = vector.broadcast %cst_21 : f32 to vector<8x128xf32>
    %29 = arith.addf %27, %28 : vector<8x128xf32>
    %cst_22 = arith.constant 0.000000e+00 : f32
    %cst_23 = arith.constant 1.000000e+00 : f32
    %30 = vector.broadcast %cst_22 : f32 to vector<8x128xf32>
    %31 = arith.maximumf %30, %29 : vector<8x128xf32>
    %32 = vector.broadcast %cst_23 : f32 to vector<8x128xf32>
    %33 = arith.minimumf %32, %31 : vector<8x128xf32>
    %34 = vector.extract_strided_slice %15 {offsets = [0, 256], sizes = [8, 128], strides = [1, 1]} : vector<8x512xf32> to vector<8x128xf32>
    %cst_24 = arith.constant 0.000000e+00 : f32
    %35 = vector.broadcast %cst_24 : f32 to vector<8x128xf32>
    %36 = arith.maximumf %34, %35 : vector<8x128xf32>
    %37 = vector.extract_strided_slice %15 {offsets = [0, 384], sizes = [8, 128], strides = [1, 1]} : vector<8x512xf32> to vector<8x128xf32>
    %cst_25 = arith.constant 2.500000e-01 : f32
    %38 = vector.broadcast %cst_25 : f32 to vector<8x128xf32>
    %39 = arith.mulf %38, %37 : vector<8x128xf32>
    %cst_26 = arith.constant 5.000000e-01 : f32
    %40 = vector.broadcast %cst_26 : f32 to vector<8x128xf32>
    %41 = arith.addf %39, %40 : vector<8x128xf32>
    %cst_27 = arith.constant 0.000000e+00 : f32
    %cst_28 = arith.constant 1.000000e+00 : f32
    %42 = vector.broadcast %cst_27 : f32 to vector<8x128xf32>
    %43 = arith.maximumf %42, %41 : vector<8x128xf32>
    %44 = vector.broadcast %cst_28 : f32 to vector<8x128xf32>
    %45 = arith.minimumf %44, %43 : vector<8x128xf32>
    %46 = arith.mulf %33, %11 : vector<8x128xf32>
    %47 = arith.mulf %24, %36 : vector<8x128xf32>
    %48 = arith.addf %46, %47 : vector<8x128xf32>
    %cst_29 = arith.constant 2.500000e-01 : f32
    %49 = vector.broadcast %cst_29 : f32 to vector<8x128xf32>
    %50 = arith.mulf %49, %48 : vector<8x128xf32>
    %cst_30 = arith.constant 5.000000e-01 : f32
    %51 = vector.broadcast %cst_30 : f32 to vector<8x128xf32>
    %52 = arith.addf %50, %51 : vector<8x128xf32>
    %cst_31 = arith.constant 0.000000e+00 : f32
    %cst_32 = arith.constant 1.000000e+00 : f32
    %53 = vector.broadcast %cst_31 : f32 to vector<8x128xf32>
    %54 = arith.maximumf %53, %52 : vector<8x128xf32>
    %55 = vector.broadcast %cst_32 : f32 to vector<8x128xf32>
    %56 = arith.minimumf %55, %54 : vector<8x128xf32>
    %57 = arith.mulf %45, %56 : vector<8x128xf32>
    %c56_33 = arith.constant 56 : index
    %c0_34 = arith.constant 0 : index
    %58 = vector.load %arg7[%c56_33, %c0_34] : memref<64x128xf32, #tpu.memory_space<vmem>>, vector<8x128xf32>
    tpu.vector_store %arg7[%c56_33, %c0_34], %57 {strides = array<i32>} : memref<64x128xf32, #tpu.memory_space<vmem>>, vector<8x128xf32>,
    %c48 = arith.constant 48 : index
    %c0_35 = arith.constant 0 : index
    %59 = vector.load %arg10[%c48, %c0_35] : memref<64x512xf32, #tpu.memory_space<vmem>>, vector<8x512xf32>
    %cst_36 = arith.constant dense<0.000000e+00> : vector<8x512xf32>
    %60 = tpu.matmul %57, %12, %cst_36 {dimension_numbers = #tpu.dot_dimension_numbers<[1], [0], [0], [1], [0, 0, 1, 1], [], []>} : vector<8x128xf32>, vector<128x512xf32>, vector<8x512xf32> -> vector<8x512xf32>
    %61 = arith.addf %59, %60 : vector<8x512xf32>
    %62 = vector.extract_strided_slice %61 {offsets = [0, 0], sizes = [8, 128], strides = [1, 1]} : vector<8x512xf32> to vector<8x128xf32>
    %cst_37 = arith.constant 2.500000e-01 : f32
    %63 = vector.broadcast %cst_37 : f32 to vector<8x128xf32>
    %64 = arith.mulf %63, %62 : vector<8x128xf32>
    %cst_38 = arith.constant 5.000000e-01 : f32
    %65 = vector.broadcast %cst_38 : f32 to vector<8x128xf32>
    %66 = arith.addf %64, %65 : vector<8x128xf32>
    %cst_39 = arith.constant 0.000000e+00 : f32
    %cst_40 = arith.constant 1.000000e+00 : f32
    %67 = vector.broadcast %cst_39 : f32 to vector<8x128xf32>
    %68 = arith.maximumf %67, %66 : vector<8x128xf32>
    %69 = vector.broadcast %cst_40 : f32 to vector<8x128xf32>
    %70 = arith.minimumf %69, %68 : vector<8x128xf32>
    %71 = vector.extract_strided_slice %61 {offsets = [0, 128], sizes = [8, 128], strides = [1, 1]} : vector<8x512xf32> to vector<8x128xf32>
    %cst_41 = arith.constant 2.500000e-01 : f32
    %72 = vector.broadcast %cst_41 : f32 to vector<8x128xf32>
    %73 = arith.mulf %72, %71 : vector<8x128xf32>
    %cst_42 = arith.constant 5.000000e-01 : f32
    %74 = vector.broadcast %cst_42 : f32 to vector<8x128xf32>
    %75 = arith.addf %73, %74 : vector<8x128xf32>
    %cst_43 = arith.constant 0.000000e+00 : f32
    %cst_44 = arith.constant 1.000000e+00 : f32
    %76 = vector.broadcast %cst_43 : f32 to vector<8x128xf32>
    %77 = arith.maximumf %76, %75 : vector<8x128xf32>
    %78 = vector.broadcast %cst_44 : f32 to vector<8x128xf32>
    %79 = arith.minimumf %78, %77 : vector<8x128xf32>
    %80 = vector.extract_strided_slice %61 {offsets = [0, 256], sizes = [8, 128], strides = [1, 1]} : vector<8x512xf32> to vector<8x128xf32>
    %cst_45 = arith.constant 0.000000e+00 : f32
    %81 = vector.broadcast %cst_45 : f32 to vector<8x128xf32>
    %82 = arith.maximumf %80, %81 : vector<8x128xf32>
    %83 = vector.extract_strided_slice %61 {offsets = [0, 384], sizes = [8, 128], strides = [1, 1]} : vector<8x512xf32> to vector<8x128xf32>
    %cst_46 = arith.constant 2.500000e-01 : f32
    %84 = vector.broadcast %cst_46 : f32 to vector<8x128xf32>
    %85 = arith.mulf %84, %83 : vector<8x128xf32>
    %cst_47 = arith.constant 5.000000e-01 : f32
    %86 = vector.broadcast %cst_47 : f32 to vector<8x128xf32>
    %87 = arith.addf %85, %86 : vector<8x128xf32>
    %cst_48 = arith.constant 0.000000e+00 : f32
    %cst_49 = arith.constant 1.000000e+00 : f32
    %88 = vector.broadcast %cst_48 : f32 to vector<8x128xf32>
    %89 = arith.maximumf %88, %87 : vector<8x128xf32>
    %90 = vector.broadcast %cst_49 : f32 to vector<8x128xf32>
    %91 = arith.minimumf %90, %89 : vector<8x128xf32>
    %92 = arith.mulf %79, %48 : vector<8x128xf32>
    %93 = arith.mulf %70, %82 : vector<8x128xf32>
    %94 = arith.addf %92, %93 : vector<8x128xf32>
    %cst_50 = arith.constant 2.500000e-01 : f32
    %95 = vector.broadcast %cst_50 : f32 to vector<8x128xf32>
    %96 = arith.mulf %95, %94 : vector<8x128xf32>
    %cst_51 = arith.constant 5.000000e-01 : f32
    %97 = vector.broadcast %cst_51 : f32 to vector<8x128xf32>
    %98 = arith.addf %96, %97 : vector<8x128xf32>
    %cst_52 = arith.constant 0.000000e+00 : f32
    %cst_53 = arith.constant 1.000000e+00 : f32
    %99 = vector.broadcast %cst_52 : f32 to vector<8x128xf32>
    %100 = arith.maximumf %99, %98 : vector<8x128xf32>
    %101 = vector.broadcast %cst_53 : f32 to vector<8x128xf32>
    %102 = arith.minimumf %101, %100 : vector<8x128xf32>
    %103 = arith.mulf %91, %102 : vector<8x128xf32>
    %c48_54 = arith.constant 48 : index
    %c0_55 = arith.constant 0 : index
    %104 = vector.load %arg7[%c48_54, %c0_55] : memref<64x128xf32, #tpu.memory_space<vmem>>, vector<8x128xf32>
    tpu.vector_store %arg7[%c48_54, %c0_55], %103 {strides = array<i32>} : memref<64x128xf32, #tpu.memory_space<vmem>>, vector<8x128xf32>,
    %c40 = arith.constant 40 : index
    %c0_56 = arith.constant 0 : index
    %105 = vector.load %arg10[%c40, %c0_56] : memref<64x512xf32, #tpu.memory_space<vmem>>, vector<8x512xf32>
    %cst_57 = arith.constant dense<0.000000e+00> : vector<8x512xf32>
    %106 = tpu.matmul %103, %12, %cst_57 {dimension_numbers = #tpu.dot_dimension_numbers<[1], [0], [0], [1], [0, 0, 1, 1], [], []>} : vector<8x128xf32>, vector<128x512xf32>, vector<8x512xf32> -> vector<8x512xf32>
    %107 = arith.addf %105, %106 : vector<8x512xf32>
    %108 = vector.extract_strided_slice %107 {offsets = [0, 0], sizes = [8, 128], strides = [1, 1]} : vector<8x512xf32> to vector<8x128xf32>
    %cst_58 = arith.constant 2.500000e-01 : f32
    %109 = vector.broadcast %cst_58 : f32 to vector<8x128xf32>
    %110 = arith.mulf %109, %108 : vector<8x128xf32>
    %cst_59 = arith.constant 5.000000e-01 : f32
    %111 = vector.broadcast %cst_59 : f32 to vector<8x128xf32>
    %112 = arith.addf %110, %111 : vector<8x128xf32>
    %cst_60 = arith.constant 0.000000e+00 : f32
    %cst_61 = arith.constant 1.000000e+00 : f32
    %113 = vector.broadcast %cst_60 : f32 to vector<8x128xf32>
    %114 = arith.maximumf %113, %112 : vector<8x128xf32>
    %115 = vector.broadcast %cst_61 : f32 to vector<8x128xf32>
    %116 = arith.minimumf %115, %114 : vector<8x128xf32>
    %117 = vector.extract_strided_slice %107 {offsets = [0, 128], sizes = [8, 128], strides = [1, 1]} : vector<8x512xf32> to vector<8x128xf32>
    %cst_62 = arith.constant 2.500000e-01 : f32
    %118 = vector.broadcast %cst_62 : f32 to vector<8x128xf32>
    %119 = arith.mulf %118, %117 : vector<8x128xf32>
    %cst_63 = arith.constant 5.000000e-01 : f32
    %120 = vector.broadcast %cst_63 : f32 to vector<8x128xf32>
    %121 = arith.addf %119, %120 : vector<8x128xf32>
    %cst_64 = arith.constant 0.000000e+00 : f32
    %cst_65 = arith.constant 1.000000e+00 : f32
    %122 = vector.broadcast %cst_64 : f32 to vector<8x128xf32>
    %123 = arith.maximumf %122, %121 : vector<8x128xf32>
    %124 = vector.broadcast %cst_65 : f32 to vector<8x128xf32>
    %125 = arith.minimumf %124, %123 : vector<8x128xf32>
    %126 = vector.extract_strided_slice %107 {offsets = [0, 256], sizes = [8, 128], strides = [1, 1]} : vector<8x512xf32> to vector<8x128xf32>
    %cst_66 = arith.constant 0.000000e+00 : f32
    %127 = vector.broadcast %cst_66 : f32 to vector<8x128xf32>
    %128 = arith.maximumf %126, %127 : vector<8x128xf32>
    %129 = vector.extract_strided_slice %107 {offsets = [0, 384], sizes = [8, 128], strides = [1, 1]} : vector<8x512xf32> to vector<8x128xf32>
    %cst_67 = arith.constant 2.500000e-01 : f32
    %130 = vector.broadcast %cst_67 : f32 to vector<8x128xf32>
    %131 = arith.mulf %130, %129 : vector<8x128xf32>
    %cst_68 = arith.constant 5.000000e-01 : f32
    %132 = vector.broadcast %cst_68 : f32 to vector<8x128xf32>
    %133 = arith.addf %131, %132 : vector<8x128xf32>
    %cst_69 = arith.constant 0.000000e+00 : f32
    %cst_70 = arith.constant 1.000000e+00 : f32
    %134 = vector.broadcast %cst_69 : f32 to vector<8x128xf32>
    %135 = arith.maximumf %134, %133 : vector<8x128xf32>
    %136 = vector.broadcast %cst_70 : f32 to vector<8x128xf32>
    %137 = arith.minimumf %136, %135 : vector<8x128xf32>
    %138 = arith.mulf %125, %94 : vector<8x128xf32>
    %139 = arith.mulf %116, %128 : vector<8x128xf32>
    %140 = arith.addf %138, %139 : vector<8x128xf32>
    %cst_71 = arith.constant 2.500000e-01 : f32
    %141 = vector.broadcast %cst_71 : f32 to vector<8x128xf32>
    %142 = arith.mulf %141, %140 : vector<8x128xf32>
    %cst_72 = arith.constant 5.000000e-01 : f32
    %143 = vector.broadcast %cst_72 : f32 to vector<8x128xf32>
    %144 = arith.addf %142, %143 : vector<8x128xf32>
    %cst_73 = arith.constant 0.000000e+00 : f32
    %cst_74 = arith.constant 1.000000e+00 : f32
    %145 = vector.broadcast %cst_73 : f32 to vector<8x128xf32>
    %146 = arith.maximumf %145, %144 : vector<8x128xf32>
    %147 = vector.broadcast %cst_74 : f32 to vector<8x128xf32>
    %148 = arith.minimumf %147, %146 : vector<8x128xf32>
    %149 = arith.mulf %137, %148 : vector<8x128xf32>
    %c40_75 = arith.constant 40 : index
    %c0_76 = arith.constant 0 : index
    %150 = vector.load %arg7[%c40_75, %c0_76] : memref<64x128xf32, #tpu.memory_space<vmem>>, vector<8x128xf32>
    tpu.vector_store %arg7[%c40_75, %c0_76], %149 {strides = array<i32>} : memref<64x128xf32, #tpu.memory_space<vmem>>, vector<8x128xf32>,
    %c32 = arith.constant 32 : index
    %c0_77 = arith.constant 0 : index
    %151 = vector.load %arg10[%c32, %c0_77] : memref<64x512xf32, #tpu.memory_space<vmem>>, vector<8x512xf32>
    %cst_78 = arith.constant dense<0.000000e+00> : vector<8x512xf32>
    %152 = tpu.matmul %149, %12, %cst_78 {dimension_numbers = #tpu.dot_dimension_numbers<[1], [0], [0], [1], [0, 0, 1, 1], [], []>} : vector<8x128xf32>, vector<128x512xf32>, vector<8x512xf32> -> vector<8x512xf32>
    %153 = arith.addf %151, %152 : vector<8x512xf32>
    %154 = vector.extract_strided_slice %153 {offsets = [0, 0], sizes = [8, 128], strides = [1, 1]} : vector<8x512xf32> to vector<8x128xf32>
    %cst_79 = arith.constant 2.500000e-01 : f32
    %155 = vector.broadcast %cst_79 : f32 to vector<8x128xf32>
    %156 = arith.mulf %155, %154 : vector<8x128xf32>
    %cst_80 = arith.constant 5.000000e-01 : f32
    %157 = vector.broadcast %cst_80 : f32 to vector<8x128xf32>
    %158 = arith.addf %156, %157 : vector<8x128xf32>
    %cst_81 = arith.constant 0.000000e+00 : f32
    %cst_82 = arith.constant 1.000000e+00 : f32
    %159 = vector.broadcast %cst_81 : f32 to vector<8x128xf32>
    %160 = arith.maximumf %159, %158 : vector<8x128xf32>
    %161 = vector.broadcast %cst_82 : f32 to vector<8x128xf32>
    %162 = arith.minimumf %161, %160 : vector<8x128xf32>
    %163 = vector.extract_strided_slice %153 {offsets = [0, 128], sizes = [8, 128], strides = [1, 1]} : vector<8x512xf32> to vector<8x128xf32>
    %cst_83 = arith.constant 2.500000e-01 : f32
    %164 = vector.broadcast %cst_83 : f32 to vector<8x128xf32>
    %165 = arith.mulf %164, %163 : vector<8x128xf32>
    %cst_84 = arith.constant 5.000000e-01 : f32
    %166 = vector.broadcast %cst_84 : f32 to vector<8x128xf32>
    %167 = arith.addf %165, %166 : vector<8x128xf32>
    %cst_85 = arith.constant 0.000000e+00 : f32
    %cst_86 = arith.constant 1.000000e+00 : f32
    %168 = vector.broadcast %cst_85 : f32 to vector<8x128xf32>
    %169 = arith.maximumf %168, %167 : vector<8x128xf32>
    %170 = vector.broadcast %cst_86 : f32 to vector<8x128xf32>
    %171 = arith.minimumf %170, %169 : vector<8x128xf32>
    %172 = vector.extract_strided_slice %153 {offsets = [0, 256], sizes = [8, 128], strides = [1, 1]} : vector<8x512xf32> to vector<8x128xf32>
    %cst_87 = arith.constant 0.000000e+00 : f32
    %173 = vector.broadcast %cst_87 : f32 to vector<8x128xf32>
    %174 = arith.maximumf %172, %173 : vector<8x128xf32>
    %175 = vector.extract_strided_slice %153 {offsets = [0, 384], sizes = [8, 128], strides = [1, 1]} : vector<8x512xf32> to vector<8x128xf32>
    %cst_88 = arith.constant 2.500000e-01 : f32
    %176 = vector.broadcast %cst_88 : f32 to vector<8x128xf32>
    %177 = arith.mulf %176, %175 : vector<8x128xf32>
    %cst_89 = arith.constant 5.000000e-01 : f32
    %178 = vector.broadcast %cst_89 : f32 to vector<8x128xf32>
    %179 = arith.addf %177, %178 : vector<8x128xf32>
    %cst_90 = arith.constant 0.000000e+00 : f32
    %cst_91 = arith.constant 1.000000e+00 : f32
    %180 = vector.broadcast %cst_90 : f32 to vector<8x128xf32>
    %181 = arith.maximumf %180, %179 : vector<8x128xf32>
    %182 = vector.broadcast %cst_91 : f32 to vector<8x128xf32>
    %183 = arith.minimumf %182, %181 : vector<8x128xf32>
    %184 = arith.mulf %171, %140 : vector<8x128xf32>
    %185 = arith.mulf %162, %174 : vector<8x128xf32>
    %186 = arith.addf %184, %185 : vector<8x128xf32>
    %cst_92 = arith.constant 2.500000e-01 : f32
    %187 = vector.broadcast %cst_92 : f32 to vector<8x128xf32>
    %188 = arith.mulf %187, %186 : vector<8x128xf32>
    %cst_93 = arith.constant 5.000000e-01 : f32
    %189 = vector.broadcast %cst_93 : f32 to vector<8x128xf32>
    %190 = arith.addf %188, %189 : vector<8x128xf32>
    %cst_94 = arith.constant 0.000000e+00 : f32
    %cst_95 = arith.constant 1.000000e+00 : f32
    %191 = vector.broadcast %cst_94 : f32 to vector<8x128xf32>
    %192 = arith.maximumf %191, %190 : vector<8x128xf32>
    %193 = vector.broadcast %cst_95 : f32 to vector<8x128xf32>
    %194 = arith.minimumf %193, %192 : vector<8x128xf32>
    %195 = arith.mulf %183, %194 : vector<8x128xf32>
    %c32_96 = arith.constant 32 : index
    %c0_97 = arith.constant 0 : index
    %196 = vector.load %arg7[%c32_96, %c0_97] : memref<64x128xf32, #tpu.memory_space<vmem>>, vector<8x128xf32>
    tpu.vector_store %arg7[%c32_96, %c0_97], %195 {strides = array<i32>} : memref<64x128xf32, #tpu.memory_space<vmem>>, vector<8x128xf32>,
    %c24 = arith.constant 24 : index
    %c0_98 = arith.constant 0 : index
    %197 = vector.load %arg10[%c24, %c0_98] : memref<64x512xf32, #tpu.memory_space<vmem>>, vector<8x512xf32>
    %cst_99 = arith.constant dense<0.000000e+00> : vector<8x512xf32>
    %198 = tpu.matmul %195, %12, %cst_99 {dimension_numbers = #tpu.dot_dimension_numbers<[1], [0], [0], [1], [0, 0, 1, 1], [], []>} : vector<8x128xf32>, vector<128x512xf32>, vector<8x512xf32> -> vector<8x512xf32>
    %199 = arith.addf %197, %198 : vector<8x512xf32>
    %200 = vector.extract_strided_slice %199 {offsets = [0, 0], sizes = [8, 128], strides = [1, 1]} : vector<8x512xf32> to vector<8x128xf32>
    %cst_100 = arith.constant 2.500000e-01 : f32
    %201 = vector.broadcast %cst_100 : f32 to vector<8x128xf32>
    %202 = arith.mulf %201, %200 : vector<8x128xf32>
    %cst_101 = arith.constant 5.000000e-01 : f32
    %203 = vector.broadcast %cst_101 : f32 to vector<8x128xf32>
    %204 = arith.addf %202, %203 : vector<8x128xf32>
    %cst_102 = arith.constant 0.000000e+00 : f32
    %cst_103 = arith.constant 1.000000e+00 : f32
    %205 = vector.broadcast %cst_102 : f32 to vector<8x128xf32>
    %206 = arith.maximumf %205, %204 : vector<8x128xf32>
    %207 = vector.broadcast %cst_103 : f32 to vector<8x128xf32>
    %208 = arith.minimumf %207, %206 : vector<8x128xf32>
    %209 = vector.extract_strided_slice %199 {offsets = [0, 128], sizes = [8, 128], strides = [1, 1]} : vector<8x512xf32> to vector<8x128xf32>
    %cst_104 = arith.constant 2.500000e-01 : f32
    %210 = vector.broadcast %cst_104 : f32 to vector<8x128xf32>
    %211 = arith.mulf %210, %209 : vector<8x128xf32>
    %cst_105 = arith.constant 5.000000e-01 : f32
    %212 = vector.broadcast %cst_105 : f32 to vector<8x128xf32>
    %213 = arith.addf %211, %212 : vector<8x128xf32>
    %cst_106 = arith.constant 0.000000e+00 : f32
    %cst_107 = arith.constant 1.000000e+00 : f32
    %214 = vector.broadcast %cst_106 : f32 to vector<8x128xf32>
    %215 = arith.maximumf %214, %213 : vector<8x128xf32>
    %216 = vector.broadcast %cst_107 : f32 to vector<8x128xf32>
    %217 = arith.minimumf %216, %215 : vector<8x128xf32>
    %218 = vector.extract_strided_slice %199 {offsets = [0, 256], sizes = [8, 128], strides = [1, 1]} : vector<8x512xf32> to vector<8x128xf32>
    %cst_108 = arith.constant 0.000000e+00 : f32
    %219 = vector.broadcast %cst_108 : f32 to vector<8x128xf32>
    %220 = arith.maximumf %218, %219 : vector<8x128xf32>
    %221 = vector.extract_strided_slice %199 {offsets = [0, 384], sizes = [8, 128], strides = [1, 1]} : vector<8x512xf32> to vector<8x128xf32>
    %cst_109 = arith.constant 2.500000e-01 : f32
    %222 = vector.broadcast %cst_109 : f32 to vector<8x128xf32>
    %223 = arith.mulf %222, %221 : vector<8x128xf32>
    %cst_110 = arith.constant 5.000000e-01 : f32
    %224 = vector.broadcast %cst_110 : f32 to vector<8x128xf32>
    %225 = arith.addf %223, %224 : vector<8x128xf32>
    %cst_111 = arith.constant 0.000000e+00 : f32
    %cst_112 = arith.constant 1.000000e+00 : f32
    %226 = vector.broadcast %cst_111 : f32 to vector<8x128xf32>
    %227 = arith.maximumf %226, %225 : vector<8x128xf32>
    %228 = vector.broadcast %cst_112 : f32 to vector<8x128xf32>
    %229 = arith.minimumf %228, %227 : vector<8x128xf32>
    %230 = arith.mulf %217, %186 : vector<8x128xf32>
    %231 = arith.mulf %208, %220 : vector<8x128xf32>
    %232 = arith.addf %230, %231 : vector<8x128xf32>
    %cst_113 = arith.constant 2.500000e-01 : f32
    %233 = vector.broadcast %cst_113 : f32 to vector<8x128xf32>
    %234 = arith.mulf %233, %232 : vector<8x128xf32>
    %cst_114 = arith.constant 5.000000e-01 : f32
    %235 = vector.broadcast %cst_114 : f32 to vector<8x128xf32>
    %236 = arith.addf %234, %235 : vector<8x128xf32>
    %cst_115 = arith.constant 0.000000e+00 : f32
    %cst_116 = arith.constant 1.000000e+00 : f32
    %237 = vector.broadcast %cst_115 : f32 to vector<8x128xf32>
    %238 = arith.maximumf %237, %236 : vector<8x128xf32>
    %239 = vector.broadcast %cst_116 : f32 to vector<8x128xf32>
    %240 = arith.minimumf %239, %238 : vector<8x128xf32>
    %241 = arith.mulf %229, %240 : vector<8x128xf32>
    %c24_117 = arith.constant 24 : index
    %c0_118 = arith.constant 0 : index
    %242 = vector.load %arg7[%c24_117, %c0_118] : memref<64x128xf32, #tpu.memory_space<vmem>>, vector<8x128xf32>
    tpu.vector_store %arg7[%c24_117, %c0_118], %241 {strides = array<i32>} : memref<64x128xf32, #tpu.memory_space<vmem>>, vector<8x128xf32>,
    %c16 = arith.constant 16 : index
    %c0_119 = arith.constant 0 : index
    %243 = vector.load %arg10[%c16, %c0_119] : memref<64x512xf32, #tpu.memory_space<vmem>>, vector<8x512xf32>
    %cst_120 = arith.constant dense<0.000000e+00> : vector<8x512xf32>
    %244 = tpu.matmul %241, %12, %cst_120 {dimension_numbers = #tpu.dot_dimension_numbers<[1], [0], [0], [1], [0, 0, 1, 1], [], []>} : vector<8x128xf32>, vector<128x512xf32>, vector<8x512xf32> -> vector<8x512xf32>
    %245 = arith.addf %243, %244 : vector<8x512xf32>
    %246 = vector.extract_strided_slice %245 {offsets = [0, 0], sizes = [8, 128], strides = [1, 1]} : vector<8x512xf32> to vector<8x128xf32>
    %cst_121 = arith.constant 2.500000e-01 : f32
    %247 = vector.broadcast %cst_121 : f32 to vector<8x128xf32>
    %248 = arith.mulf %247, %246 : vector<8x128xf32>
    %cst_122 = arith.constant 5.000000e-01 : f32
    %249 = vector.broadcast %cst_122 : f32 to vector<8x128xf32>
    %250 = arith.addf %248, %249 : vector<8x128xf32>
    %cst_123 = arith.constant 0.000000e+00 : f32
    %cst_124 = arith.constant 1.000000e+00 : f32
    %251 = vector.broadcast %cst_123 : f32 to vector<8x128xf32>
    %252 = arith.maximumf %251, %250 : vector<8x128xf32>
    %253 = vector.broadcast %cst_124 : f32 to vector<8x128xf32>
    %254 = arith.minimumf %253, %252 : vector<8x128xf32>
    %255 = vector.extract_strided_slice %245 {offsets = [0, 128], sizes = [8, 128], strides = [1, 1]} : vector<8x512xf32> to vector<8x128xf32>
    %cst_125 = arith.constant 2.500000e-01 : f32
    %256 = vector.broadcast %cst_125 : f32 to vector<8x128xf32>
    %257 = arith.mulf %256, %255 : vector<8x128xf32>
    %cst_126 = arith.constant 5.000000e-01 : f32
    %258 = vector.broadcast %cst_126 : f32 to vector<8x128xf32>
    %259 = arith.addf %257, %258 : vector<8x128xf32>
    %cst_127 = arith.constant 0.000000e+00 : f32
    %cst_128 = arith.constant 1.000000e+00 : f32
    %260 = vector.broadcast %cst_127 : f32 to vector<8x128xf32>
    %261 = arith.maximumf %260, %259 : vector<8x128xf32>
    %262 = vector.broadcast %cst_128 : f32 to vector<8x128xf32>
    %263 = arith.minimumf %262, %261 : vector<8x128xf32>
    %264 = vector.extract_strided_slice %245 {offsets = [0, 256], sizes = [8, 128], strides = [1, 1]} : vector<8x512xf32> to vector<8x128xf32>
    %cst_129 = arith.constant 0.000000e+00 : f32
    %265 = vector.broadcast %cst_129 : f32 to vector<8x128xf32>
    %266 = arith.maximumf %264, %265 : vector<8x128xf32>
    %267 = vector.extract_strided_slice %245 {offsets = [0, 384], sizes = [8, 128], strides = [1, 1]} : vector<8x512xf32> to vector<8x128xf32>
    %cst_130 = arith.constant 2.500000e-01 : f32
    %268 = vector.broadcast %cst_130 : f32 to vector<8x128xf32>
    %269 = arith.mulf %268, %267 : vector<8x128xf32>
    %cst_131 = arith.constant 5.000000e-01 : f32
    %270 = vector.broadcast %cst_131 : f32 to vector<8x128xf32>
    %271 = arith.addf %269, %270 : vector<8x128xf32>
    %cst_132 = arith.constant 0.000000e+00 : f32
    %cst_133 = arith.constant 1.000000e+00 : f32
    %272 = vector.broadcast %cst_132 : f32 to vector<8x128xf32>
    %273 = arith.maximumf %272, %271 : vector<8x128xf32>
    %274 = vector.broadcast %cst_133 : f32 to vector<8x128xf32>
    %275 = arith.minimumf %274, %273 : vector<8x128xf32>
    %276 = arith.mulf %263, %232 : vector<8x128xf32>
    %277 = arith.mulf %254, %266 : vector<8x128xf32>
    %278 = arith.addf %276, %277 : vector<8x128xf32>
    %cst_134 = arith.constant 2.500000e-01 : f32
    %279 = vector.broadcast %cst_134 : f32 to vector<8x128xf32>
    %280 = arith.mulf %279, %278 : vector<8x128xf32>
    %cst_135 = arith.constant 5.000000e-01 : f32
    %281 = vector.broadcast %cst_135 : f32 to vector<8x128xf32>
    %282 = arith.addf %280, %281 : vector<8x128xf32>
    %cst_136 = arith.constant 0.000000e+00 : f32
    %cst_137 = arith.constant 1.000000e+00 : f32
    %283 = vector.broadcast %cst_136 : f32 to vector<8x128xf32>
    %284 = arith.maximumf %283, %282 : vector<8x128xf32>
    %285 = vector.broadcast %cst_137 : f32 to vector<8x128xf32>
    %286 = arith.minimumf %285, %284 : vector<8x128xf32>
    %287 = arith.mulf %275, %286 : vector<8x128xf32>
    %c16_138 = arith.constant 16 : index
    %c0_139 = arith.constant 0 : index
    %288 = vector.load %arg7[%c16_138, %c0_139] : memref<64x128xf32, #tpu.memory_space<vmem>>, vector<8x128xf32>
    tpu.vector_store %arg7[%c16_138, %c0_139], %287 {strides = array<i32>} : memref<64x128xf32, #tpu.memory_space<vmem>>, vector<8x128xf32>,
    %c8 = arith.constant 8 : index
    %c0_140 = arith.constant 0 : index
    %289 = vector.load %arg10[%c8, %c0_140] : memref<64x512xf32, #tpu.memory_space<vmem>>, vector<8x512xf32>
    %cst_141 = arith.constant dense<0.000000e+00> : vector<8x512xf32>
    %290 = tpu.matmul %287, %12, %cst_141 {dimension_numbers = #tpu.dot_dimension_numbers<[1], [0], [0], [1], [0, 0, 1, 1], [], []>} : vector<8x128xf32>, vector<128x512xf32>, vector<8x512xf32> -> vector<8x512xf32>
    %291 = arith.addf %289, %290 : vector<8x512xf32>
    %292 = vector.extract_strided_slice %291 {offsets = [0, 0], sizes = [8, 128], strides = [1, 1]} : vector<8x512xf32> to vector<8x128xf32>
    %cst_142 = arith.constant 2.500000e-01 : f32
    %293 = vector.broadcast %cst_142 : f32 to vector<8x128xf32>
    %294 = arith.mulf %293, %292 : vector<8x128xf32>
    %cst_143 = arith.constant 5.000000e-01 : f32
    %295 = vector.broadcast %cst_143 : f32 to vector<8x128xf32>
    %296 = arith.addf %294, %295 : vector<8x128xf32>
    %cst_144 = arith.constant 0.000000e+00 : f32
    %cst_145 = arith.constant 1.000000e+00 : f32
    %297 = vector.broadcast %cst_144 : f32 to vector<8x128xf32>
    %298 = arith.maximumf %297, %296 : vector<8x128xf32>
    %299 = vector.broadcast %cst_145 : f32 to vector<8x128xf32>
    %300 = arith.minimumf %299, %298 : vector<8x128xf32>
    %301 = vector.extract_strided_slice %291 {offsets = [0, 128], sizes = [8, 128], strides = [1, 1]} : vector<8x512xf32> to vector<8x128xf32>
    %cst_146 = arith.constant 2.500000e-01 : f32
    %302 = vector.broadcast %cst_146 : f32 to vector<8x128xf32>
    %303 = arith.mulf %302, %301 : vector<8x128xf32>
    %cst_147 = arith.constant 5.000000e-01 : f32
    %304 = vector.broadcast %cst_147 : f32 to vector<8x128xf32>
    %305 = arith.addf %303, %304 : vector<8x128xf32>
    %cst_148 = arith.constant 0.000000e+00 : f32
    %cst_149 = arith.constant 1.000000e+00 : f32
    %306 = vector.broadcast %cst_148 : f32 to vector<8x128xf32>
    %307 = arith.maximumf %306, %305 : vector<8x128xf32>
    %308 = vector.broadcast %cst_149 : f32 to vector<8x128xf32>
    %309 = arith.minimumf %308, %307 : vector<8x128xf32>
    %310 = vector.extract_strided_slice %291 {offsets = [0, 256], sizes = [8, 128], strides = [1, 1]} : vector<8x512xf32> to vector<8x128xf32>
    %cst_150 = arith.constant 0.000000e+00 : f32
    %311 = vector.broadcast %cst_150 : f32 to vector<8x128xf32>
    %312 = arith.maximumf %310, %311 : vector<8x128xf32>
    %313 = vector.extract_strided_slice %291 {offsets = [0, 384], sizes = [8, 128], strides = [1, 1]} : vector<8x512xf32> to vector<8x128xf32>
    %cst_151 = arith.constant 2.500000e-01 : f32
    %314 = vector.broadcast %cst_151 : f32 to vector<8x128xf32>
    %315 = arith.mulf %314, %313 : vector<8x128xf32>
    %cst_152 = arith.constant 5.000000e-01 : f32
    %316 = vector.broadcast %cst_152 : f32 to vector<8x128xf32>
    %317 = arith.addf %315, %316 : vector<8x128xf32>
    %cst_153 = arith.constant 0.000000e+00 : f32
    %cst_154 = arith.constant 1.000000e+00 : f32
    %318 = vector.broadcast %cst_153 : f32 to vector<8x128xf32>
    %319 = arith.maximumf %318, %317 : vector<8x128xf32>
    %320 = vector.broadcast %cst_154 : f32 to vector<8x128xf32>
    %321 = arith.minimumf %320, %319 : vector<8x128xf32>
    %322 = arith.mulf %309, %278 : vector<8x128xf32>
    %323 = arith.mulf %300, %312 : vector<8x128xf32>
    %324 = arith.addf %322, %323 : vector<8x128xf32>
    %cst_155 = arith.constant 2.500000e-01 : f32
    %325 = vector.broadcast %cst_155 : f32 to vector<8x128xf32>
    %326 = arith.mulf %325, %324 : vector<8x128xf32>
    %cst_156 = arith.constant 5.000000e-01 : f32
    %327 = vector.broadcast %cst_156 : f32 to vector<8x128xf32>
    %328 = arith.addf %326, %327 : vector<8x128xf32>
    %cst_157 = arith.constant 0.000000e+00 : f32
    %cst_158 = arith.constant 1.000000e+00 : f32
    %329 = vector.broadcast %cst_157 : f32 to vector<8x128xf32>
    %330 = arith.maximumf %329, %328 : vector<8x128xf32>
    %331 = vector.broadcast %cst_158 : f32 to vector<8x128xf32>
    %332 = arith.minimumf %331, %330 : vector<8x128xf32>
    %333 = arith.mulf %321, %332 : vector<8x128xf32>
    %c8_159 = arith.constant 8 : index
    %c0_160 = arith.constant 0 : index
    %334 = vector.load %arg7[%c8_159, %c0_160] : memref<64x128xf32, #tpu.memory_space<vmem>>, vector<8x128xf32>
    tpu.vector_store %arg7[%c8_159, %c0_160], %333 {strides = array<i32>} : memref<64x128xf32, #tpu.memory_space<vmem>>, vector<8x128xf32>,
    %c0_161 = arith.constant 0 : index
    %c0_162 = arith.constant 0 : index
    %335 = vector.load %arg10[%c0_161, %c0_162] : memref<64x512xf32, #tpu.memory_space<vmem>>, vector<8x512xf32>
    %cst_163 = arith.constant dense<0.000000e+00> : vector<8x512xf32>
    %336 = tpu.matmul %333, %12, %cst_163 {dimension_numbers = #tpu.dot_dimension_numbers<[1], [0], [0], [1], [0, 0, 1, 1], [], []>} : vector<8x128xf32>, vector<128x512xf32>, vector<8x512xf32> -> vector<8x512xf32>
    %337 = arith.addf %335, %336 : vector<8x512xf32>
    %338 = vector.extract_strided_slice %337 {offsets = [0, 0], sizes = [8, 128], strides = [1, 1]} : vector<8x512xf32> to vector<8x128xf32>
    %cst_164 = arith.constant 2.500000e-01 : f32
    %339 = vector.broadcast %cst_164 : f32 to vector<8x128xf32>
    %340 = arith.mulf %339, %338 : vector<8x128xf32>
    %cst_165 = arith.constant 5.000000e-01 : f32
    %341 = vector.broadcast %cst_165 : f32 to vector<8x128xf32>
    %342 = arith.addf %340, %341 : vector<8x128xf32>
    %cst_166 = arith.constant 0.000000e+00 : f32
    %cst_167 = arith.constant 1.000000e+00 : f32
    %343 = vector.broadcast %cst_166 : f32 to vector<8x128xf32>
    %344 = arith.maximumf %343, %342 : vector<8x128xf32>
    %345 = vector.broadcast %cst_167 : f32 to vector<8x128xf32>
    %346 = arith.minimumf %345, %344 : vector<8x128xf32>
    %347 = vector.extract_strided_slice %337 {offsets = [0, 128], sizes = [8, 128], strides = [1, 1]} : vector<8x512xf32> to vector<8x128xf32>
    %cst_168 = arith.constant 2.500000e-01 : f32
    %348 = vector.broadcast %cst_168 : f32 to vector<8x128xf32>
    %349 = arith.mulf %348, %347 : vector<8x128xf32>
    %cst_169 = arith.constant 5.000000e-01 : f32
    %350 = vector.broadcast %cst_169 : f32 to vector<8x128xf32>
    %351 = arith.addf %349, %350 : vector<8x128xf32>
    %cst_170 = arith.constant 0.000000e+00 : f32
    %cst_171 = arith.constant 1.000000e+00 : f32
    %352 = vector.broadcast %cst_170 : f32 to vector<8x128xf32>
    %353 = arith.maximumf %352, %351 : vector<8x128xf32>
    %354 = vector.broadcast %cst_171 : f32 to vector<8x128xf32>
    %355 = arith.minimumf %354, %353 : vector<8x128xf32>
    %356 = vector.extract_strided_slice %337 {offsets = [0, 256], sizes = [8, 128], strides = [1, 1]} : vector<8x512xf32> to vector<8x128xf32>
    %cst_172 = arith.constant 0.000000e+00 : f32
    %357 = vector.broadcast %cst_172 : f32 to vector<8x128xf32>
    %358 = arith.maximumf %356, %357 : vector<8x128xf32>
    %359 = vector.extract_strided_slice %337 {offsets = [0, 384], sizes = [8, 128], strides = [1, 1]} : vector<8x512xf32> to vector<8x128xf32>
    %cst_173 = arith.constant 2.500000e-01 : f32
    %360 = vector.broadcast %cst_173 : f32 to vector<8x128xf32>
    %361 = arith.mulf %360, %359 : vector<8x128xf32>
    %cst_174 = arith.constant 5.000000e-01 : f32
    %362 = vector.broadcast %cst_174 : f32 to vector<8x128xf32>
    %363 = arith.addf %361, %362 : vector<8x128xf32>
    %cst_175 = arith.constant 0.000000e+00 : f32
    %cst_176 = arith.constant 1.000000e+00 : f32
    %364 = vector.broadcast %cst_175 : f32 to vector<8x128xf32>
    %365 = arith.maximumf %364, %363 : vector<8x128xf32>
    %366 = vector.broadcast %cst_176 : f32 to vector<8x128xf32>
    %367 = arith.minimumf %366, %365 : vector<8x128xf32>
    %368 = arith.mulf %355, %324 : vector<8x128xf32>
    %369 = arith.mulf %346, %358 : vector<8x128xf32>
    %370 = arith.addf %368, %369 : vector<8x128xf32>
    %cst_177 = arith.constant 2.500000e-01 : f32
    %371 = vector.broadcast %cst_177 : f32 to vector<8x128xf32>
    %372 = arith.mulf %371, %370 : vector<8x128xf32>
    %cst_178 = arith.constant 5.000000e-01 : f32
    %373 = vector.broadcast %cst_178 : f32 to vector<8x128xf32>
    %374 = arith.addf %372, %373 : vector<8x128xf32>
    %cst_179 = arith.constant 0.000000e+00 : f32
    %cst_180 = arith.constant 1.000000e+00 : f32
    %375 = vector.broadcast %cst_179 : f32 to vector<8x128xf32>
    %376 = arith.maximumf %375, %374 : vector<8x128xf32>
    %377 = vector.broadcast %cst_180 : f32 to vector<8x128xf32>
    %378 = arith.minimumf %377, %376 : vector<8x128xf32>
    %379 = arith.mulf %367, %378 : vector<8x128xf32>
    %c0_181 = arith.constant 0 : index
    %c0_182 = arith.constant 0 : index
    %380 = vector.load %arg7[%c0_181, %c0_182] : memref<64x128xf32, #tpu.memory_space<vmem>>, vector<8x128xf32>
    tpu.vector_store %arg7[%c0_181, %c0_182], %379 {strides = array<i32>} : memref<64x128xf32, #tpu.memory_space<vmem>>, vector<8x128xf32>,
    %c0_183 = arith.constant 0 : index
    %c0_184 = arith.constant 0 : index
    %381 = vector.load %arg11[%c0_183, %c0_184] : memref<8x128xf32, #tpu.memory_space<vmem>>, vector<8x128xf32>
    tpu.vector_store %arg11[%c0_183, %c0_184], %379 {strides = array<i32>} : memref<8x128xf32, #tpu.memory_space<vmem>>, vector<8x128xf32>,
    %c0_185 = arith.constant 0 : index
    %c0_186 = arith.constant 0 : index
    %382 = vector.load %arg12[%c0_185, %c0_186] : memref<8x128xf32, #tpu.memory_space<vmem>>, vector<8x128xf32>
    tpu.vector_store %arg12[%c0_185, %c0_186], %370 {strides = array<i32>} : memref<8x128xf32, #tpu.memory_space<vmem>>, vector<8x128xf32>,
    %c0_i32_187 = arith.constant 0 : i32
    %383 = arith.cmpi eq, %arg0, %c0_i32_187 : i32
    %384 = arith.extui %383 : i1 to i32
    %c0_i32_188 = arith.constant 0 : i32
    %385 = arith.cmpi ne, %384, %c0_i32_188 : i32
    scf.if %385 {
      %c0_189 = arith.constant 0 : index
      %c0_190 = arith.constant 0 : index
      %386 = vector.load %arg8[%c0_189, %c0_190] : memref<8x128xf32, #tpu.memory_space<vmem>>, vector<8x128xf32>
      tpu.vector_store %arg8[%c0_189, %c0_190], %379 {strides = array<i32>} : memref<8x128xf32, #tpu.memory_space<vmem>>, vector<8x128xf32>,
      %c0_191 = arith.constant 0 : index
      %c0_192 = arith.constant 0 : index
      %387 = vector.load %arg9[%c0_191, %c0_192] : memref<8x128xf32, #tpu.memory_space<vmem>>, vector<8x128xf32>
      tpu.vector_store %arg9[%c0_191, %c0_192], %370 {strides = array<i32>} : memref<8x128xf32, #tpu.memory_space<vmem>>, vector<8x128xf32>,
    } else {
    }
    return
  }
  func.func @transform_0(%arg0: i32) -> (i32, i32) {
    %c0_i32 = arith.constant 0 : i32
    %0 = arith.subi %c0_i32, %arg0 : i32
    %c0_i32_0 = arith.constant 0 : i32
    %c0_i32_1 = arith.constant 0 : i32
    return %0, %c0_i32_0 : i32, i32
  }
  func.func @transform_1(%arg0: i32) -> (i32, i32) {
    %c0_i32 = arith.constant 0 : i32
    %c0_i32_0 = arith.constant 0 : i32
    %c0_i32_1 = arith.constant 0 : i32
    return %c0_i32, %c0_i32_0 : i32, i32
  }
  func.func @transform_2(%arg0: i32) -> (i32, i32) {
    %c0_i32 = arith.constant 0 : i32
    %c0_i32_0 = arith.constant 0 : i32
    %c0_i32_1 = arith.constant 0 : i32
    return %c0_i32, %c0_i32_0 : i32, i32
  }
  func.func @transform_3(%arg0: i32) -> (i32, i32) {
    %c0_i32 = arith.constant 0 : i32
    %c0_i32_0 = arith.constant 0 : i32
    %c0_i32_1 = arith.constant 0 : i32
    return %c0_i32, %c0_i32_0 : i32, i32
  }
  func.func @transform_4(%arg0: i32) -> (i32, i32) {
    %c0_i32 = arith.constant 0 : i32
    %c0_i32_0 = arith.constant 0 : i32
    %c0_i32_1 = arith.constant 0 : i32
    return %c0_i32, %c0_i32_0 : i32, i32
  }
  func.func @transform_5(%arg0: i32) -> (i32, i32) {
    %c0_i32 = arith.constant 0 : i32
    %c0_i32_0 = arith.constant 0 : i32
    %c0_i32_1 = arith.constant 0 : i32
    return %c0_i32, %c0_i32_0 : i32, i32
  }
  func.func @transform_6(%arg0: i32) -> (i32, i32) {
    %c0_i32 = arith.constant 0 : i32
    %0 = arith.subi %c0_i32, %arg0 : i32
    %c0_i32_0 = arith.constant 0 : i32
    %c0_i32_1 = arith.constant 0 : i32
    return %0, %c0_i32_0 : i32, i32
  }
  func.func @transform_7(%arg0: i32) -> (i32, i32) {
    %c0_i32 = arith.constant 0 : i32
    %c0_i32_0 = arith.constant 0 : i32
    %c0_i32_1 = arith.constant 0 : i32
    return %c0_i32, %c0_i32_0 : i32, i32
  }
  func.func @transform_8(%arg0: i32) -> (i32, i32) {
    %c0_i32 = arith.constant 0 : i32
    %c0_i32_0 = arith.constant 0 : i32
    %c0_i32_1 = arith.constant 0 : i32
    return %c0_i32, %c0_i32_0 : i32, i32
  }
}

</mosaic_0001>

<bundles_post_ra>
// kernel: tpu_custom_call.1
= control target key start
LH: loop header
LB: loop body
LE: loop exit
PB: predicated region body
PF: predicated region fallthrough
CT: control target
= control target key end

     0   :  { %6 = vsyncpa [#allocation3], 0  ;;  %s482_s0 = inlined_call_operand.hbm [shape: f32[8,128], index: 0, kind: input, shape index: {}]   ;;  %s483_s1 = inlined_call_operand.hbm [shape: f32[16,128], index: 1, kind: output, shape index: {}]  }
   0x1   :  { %7 = vsyncpa [#allocation4], 0 }
   0x2   :  { %9 = vsyncpa [#allocation4 + $0x1], 0  ;;  %s352_s6 = smov 0   ;;  %s354_s7 = smov 0  }
   0x3   :  { %s356_s8 = smov 0   ;;  %s358_s9 = smov 0  }
   0x4 LB: > { %s373_s10 = sadd.s32 4294967295, %s338_s9   ;;  %s184_s11 = sadd.s32 4294967294, %s338_s9   ;;  %s338_s9 = sphi %s358_s9, %s499_s9   ;;  %s334_s8 = sphi %s356_s8, %s498_s8   ;;  %s330_s7 = sphi %s354_s7, %s497_s7   ;;  %s326_s6 = sphi %s352_s6, %s496_s6  }
   0x5   : > { %s377_s12 = sadd.s32 1, %s338_s9   ;;  %s43_s13 = sadd.s32 1, %s334_s8 }
   0x6   : > { %s40_s14 = ssub.s32 %s338_s9, %s377_s12  ;;  %p53_p0 = scmp.ne.s32.totalorder %s334_s8, %s330_s7 }
   0x7   : > { %p41_p1 = scmp.eq.s32.totalorder %s40_s14, 0  ;;  %p54_p2 = scmp.eq.s32.totalorder %s373_s10, 1 }
   0x8   : > { %p59_p3 = scmp.ne.s32.totalorder %s330_s7, %s326_s6  ;;  %p60_p4 = scmp.eq.s32.totalorder %s184_s11, 1 }
   0x9   : > { %s388_s15 = scalar_select %p41_p1, %s334_s8, %s43_s13  }
   0xa   : > { %p390_p5 = por %p54_p2, %p53_p0  ;;  %p394_p6 = por %p60_p4, %p59_p3 }
   0xb   : > { %p185_p7 = scmp.ge.s32.totalorder %s338_s9, 1  ;;  %p67_p8 = scmp.lt.s32.totalorder %s338_s9, 3 }
   0xc   : > { %s487_s16 = scalar_select %p390_p5, 1, 0 }
   0xd   : > { %s488_s17 = scalar_select %p394_p6, 1, 0 }
   0xe   : > { %p484_p9 = scmp.eq.s32.totalorder %s373_s10, 0  ;;  %p401_p10 = pnand %p185_p7, %p67_p8 }
   0xf   : > { %s340_s19 = smov [#allocation2]   ;;  %s244_s24 = scalar_lea.hbm %s482_s0, 128 }
  0x10   : > { %s489_s18 = scalar_select %p401_p10, 1, 0 }
  0x11   : > { %s80_s20 = sshll.u32 %s340_s19, 4  ;;  %p200_p11 = pneg %p401_p10  ;;  %s81_s20 = int_to_ptr.vmem [resolvable:$true] %s80_s20 }
  0x12   : > { %p245_p13 = scmp.ne.s32.totalorder %s482_s0, %s244_s24  ;;  %p251_p3 = scmp.lt.u32.totalorder %s244_s24, %s482_s0 }
  0x13   : > { %p409_p12 = pnand %p484_p9, %p200_p11 }
  0x15   : > { %p246_p0 = pneg %p409_p12 }
  0x17   : > { %p247_p1 = pnand %p246_p0, %p245_p13 }
  0x19   : > { %p248_p2 = pneg %p247_p1 }
  0x1b   : > { %p253_p4 = pnand %p251_p3, %p248_p2 }
  0x1d   : > { %256 = shalt.err (!%p253_p4)
}
  0x1e   : > { %s257_s29 = scalar_lea.vmem %s81_s20, 128  ;;  %p265_p9 = scmp.lt.s32.totalorder %s81_s20, %s81_s20 }
  0x1f   : > { %p258_p7 = scmp.ne.s32.totalorder %s81_s20, %s257_s29  ;;  %p266_p6 = scmp.lt.s32.totalorder %s257_s29, %s257_s29 }
  0x21   : > { %p260_p8 = pnand %p258_p7, %p246_p0  ;;  %p267_p5 = por %p266_p6, %p265_p9 }
  0x23   : > { %p261_p11 = pneg %p260_p8 }
  0x25   : > { %p268_p10 = pnand %p267_p5, %p261_p11 }
  0x27   : > { %271 = shalt.err (!%p268_p10)
}
  0x28   : > { %203 = dma.hbm_to_vmem [thread:$0]  (!%p409_p12), %s482_s0, 128, %s81_s20, [#allocation3]  }
  0x29   : > { %p491_p13 = scmp.ne.s32.totalorder %s489_s18, 0 }
  0x2a   : > { %p492_p1 = scmp.eq.s32.totalorder (!%p491_p13), %s373_s10, 0 }
  0x2b   : > { %93 = sbr.rel (%p491_p13) target bundleno = 77 (0x4d), region = 24 }
  0x32   : > { %317 = dma.done.wait (%p492_p1), [#allocation3], 128   ;;  %p493_p0 = pmov %p492_p1 }
  0x33   : > { %s105_s3 = sand.u32 1, %s330_s7   ;;  %s191_s13 = sshll.u32 %s373_s10, 7  ;;  %v108_v0 = vld [vmem:[#allocation2] sm:$0xff] }
  0x34   : > { %319 = vsyncadd (%p493_p0), [#allocation3], 4294967168  ;;  %s189_s4 = sshll.u32 %s105_s3, 3  ;;  %v109_v1 = vadd.f32 1.0, %v108_v0  ;;  %s442_s19 = scalar_lea.hbm %s483_s1, %s191_s13 }
  0x35   : > { %s107_s5 = scalar_lea.vmem [#allocation5], %s189_s4  ;;  %s112_s20 = scalar_lea.sflag [#allocation4], %s105_s3 }
  0x36   : > { %s125_s11 = sshll.u32 %s107_s5, 4  ;;  %110 = vst [vmem:[%s107_s5] sm:$0xff] %v109_v1  ;;  %p494_p6 = scmp.ne.s32.totalorder %s487_s16, 0  ;;  %s437_s11 = int_to_ptr.vmem [resolvable:$true] %s125_s11 }
  0x37   : > { %s272_s21 = scalar_lea.vmem %s437_s11, 128  ;;  %s341_s10 = smov [#allocation5]  }
  0x38   : > { %p273_p5 = scmp.ne.s32.totalorder %s437_s11, %s272_s21  ;;  %s276_s22 = sshll.u32 %s341_s10, 4  ;;  %s277_s22 = int_to_ptr.vmem [resolvable:$false] %s276_s22 }
  0x39   : > { %s278_s23 = scalar_lea.vmem %s277_s22, 256  ;;  %p279_p12 = scmp.lt.s32.totalorder %s437_s11, %s277_s22 }
  0x3a   : > { %p274_p9 = pnand %p273_p5, %p494_p6  ;;  %p280_p2 = scmp.lt.s32.totalorder %s278_s23, %s272_s21 }
  0x3c   : > { %p275_p10 = pneg %p274_p9  ;;  %p281_p3 = por %p280_p2, %p279_p12 }
  0x3e   : > { %p282_p4 = pnand %p281_p3, %p275_p10 }
  0x40   : > { %285 = shalt.err (!%p282_p4)
}
  0x41   : > { %s286_s24 = scalar_lea.hbm %s442_s19, 128  ;;  %s290_s27 = scalar_lea.hbm %s483_s1, 256 }
  0x42   : > { %p287_p7 = scmp.ne.s32.totalorder %s442_s19, %s286_s24  ;;  %p291_p13 = scmp.lt.u32.totalorder %s442_s19, %s483_s1 }
  0x43   : > { %p292_p1 = scmp.lt.u32.totalorder %s290_s27, %s286_s24  ;;  %p294_p5 = scmp.lt.u32.totalorder %s286_s24, %s442_s19 }
  0x44   : > { %p288_p8 = pnand %p287_p7, %p494_p6 }
  0x45   : > { %p293_p0 = por %p292_p1, %p291_p13 }
  0x46   : > { %p289_p11 = pneg %p288_p8 }
  0x47   : > { %p295_p9 = por %p294_p5, %p293_p0 }
  0x49   : > { %p296_p10 = pnand %p295_p9, %p289_p11 }
  0x4b   : > { %299 = shalt.err (!%p296_p10)
}
  0x4c   : > { %198 = dma.vmem_to_hbm [thread:$0]  (%p494_p6), %s437_s11, 128, %s442_s19, %s112_s20  }
  0x4d PF: > { %p210_p12 = scmp.ge.s32.totalorder %s338_s9, 2  ;;  %s137_s30 = sand.u32 1, %s326_s6  }
  0x4e   : > { %p495_p2 = scmp.ne.s32.totalorder %s488_s17, 0  ;;  %s138_s2 = scalar_lea.sflag [#allocation4], %s137_s30 }
  0x50   : > { %p205_p3 = pnand %p210_p12, %p495_p2 }
  0x52   : > { %321 = dma.done.wait (!%p205_p3), %s138_s2, 128  }
  0x53   : > { %323 = vsyncadd (!%p205_p3), %s138_s2, 4294967168  ;;  %p12_p4 = scmp.ge.s32.totalorder %s377_s12, 4   ;;  %s496_s6 = smov %s330_s7 }
  0x54   : > { %s497_s7 = smov %s334_s8  ;;  %s498_s8 = smov %s388_s15 }
  0x55   : > { %s499_s9 = smov %s377_s12  ;;  %14 = sbr.rel (!%p12_p4) target bundleno = 4 (0x4), region = 61 }
  0x5c   :  { %143 = vsyncpa [#allocation3], 1 }
  0x5d   :  { %145 = vsyncpa [#allocation3 + $0x1], 1 }
  0x5e   :  { %146 = vsyncpa [#allocation4], 1 }
  0x5f   :  { %148 = vsyncpa [#allocation4 + $0x1], 1 }

// kernel: quantized_lstm_forward.5
= control target key start
LH: loop header
LB: loop body
LE: loop exit
PB: predicated region body
PF: predicated region fallthrough
CT: control target
= control target key end

     0   :  { %v2481_v3 = vmov 0.0   ;;  %vm108_vm0 = vcmask 130048   ;;  %s3238_s1 = inlined_call_operand.vmem [shape: f32[16,512], index: 1, kind: input, shape index: {}]   ;;  %s3239_s2 = inlined_call_operand.vmem [shape: f32[128,512], index: 2, kind: input, shape index: {}]   ;;  %s3240_s0 = inlined_call_operand.vmem [shape: f32[64,16], index: 0, kind: input, shape index: {}]   ;;  %s3241_s4 = inlined_call_operand.vmem [shape: f32[8,128], index: 4, kind: input, shape index: {}]   ;;  %s3242_s3 = inlined_call_operand.vmem [shape: f32[1,512], index: 3, kind: input, shape index: {}]   ;;  %s3243_s5 = inlined_call_operand.vmem [shape: f32[8,128], index: 5, kind: input, shape index: {}]   ;;  %s3244_s6 = inlined_call_operand.vmem [shape: f32[64,128], index: 6, kind: output, shape index: {0}]   ;;  %s3245_s8 = inlined_call_operand.vmem [shape: f32[8,128], index: 8, kind: output, shape index: {2}]   ;;  %s3246_s7 = inlined_call_operand.vmem [shape: f32[8,128], index: 7, kind: output, shape index: {1}]  }
   0x1   :  { %v79_v0 = vld [vmem:[%s3238_s1 + $0x8] sm:$0xff]  ;;  %v81_v2 = vld [vmem:[%s3238_s1 + $0x18] sm:$0xff]  ;;  %197 = vmatprep.mubr.f32.mxu0 %v2481_v3  ;;  %310 = vmatprep.mubr.f32.mxu1 %v2481_v3  ;;  %v78_v6 = vld [vmem:[%s3238_s1] sm:$0xff] }
   0x2   :  { %v83_v1 = vld [vmem:[%s3238_s1 + $0x28] sm:$0xff]  ;;  %v85_v5 = vld [vmem:[%s3238_s1 + $0x38] sm:$0xff]  ;;  %v82_v7 = vld [vmem:[%s3238_s1 + $0x20] sm:$0xff] }
   0x3   :  { %v1896_v4 = vpack.c.bf16 %v83_v1, %v79_v0  ;;  %v1900_v8 = vpack.c.bf16 %v85_v5, %v81_v2  ;;  %v1898_v9 = vpack.c.bf16 %v82_v7, %v78_v6  ;;  %v80_v10 = vld [vmem:[%s3238_s1 + $0x10] sm:$0xff]  ;;  %v394_v13 = vld [vmem:[%s3239_s2 + $0x8] sm:$0xff]  ;;  %v393_v15 = vld [vmem:[%s3239_s2] sm:$0xff] }
   0x4   :  { %v84_v11 = vld [vmem:[%s3238_s1 + $0x30] sm:$0xff]  ;;  %v398_v14 = vld [vmem:[%s3239_s2 + $0x28] sm:$0xff]  ;;  %v70_v16 = vld [vmem:[%s3240_s0] sm:$0xff] }
   0x5   :  { %1897 = vmatprep.subr.bf16.mxu0 %v1896_v4  ;;  %v1902_v12 = vpack.c.bf16 %v84_v11, %v80_v10  ;;  %1901 = vmatprep.subr.bf16.mxu1 %v1900_v8  ;;  %v2565_v17 = vpack.c.bf16 %v398_v14, %v394_v13  ;;  %v397_v18 = vld [vmem:[%s3239_s2 + $0x20] sm:$0xff]  ;;  %v396_v19 = vld [vmem:[%s3239_s2 + $0x18] sm:$0xff]  ;;  %v402_v22 = vld [vmem:[%s3239_s2 + $0x48] sm:$0xff] }
   0x6   :  { %1899 = vmatpush1.bf16.msra.mxu0 %v1898_v9  ;;  %v2573_v20 = vpack.c.bf16 %v397_v18, %v393_v15  ;;  %v400_v21 = vld [vmem:[%s3239_s2 + $0x38] sm:$0xff]  ;;  %v406_v23 = vld [vmem:[%s3239_s2 + $0x68] sm:$0xff]  ;;  %v395_v26 = vld [vmem:[%s3239_s2 + $0x10] sm:$0xff] }
   0x7   :  { %1903 = vmatpush1.bf16.msra.mxu1 %v1902_v12  ;;  %1905 = vmatprep.subr.bf16.mxu0 %v2565_v17  ;;  %v2585_v24 = vpack.c.bf16 %v400_v21, %v396_v19  ;;  %v2587_v25 = vpack.c.bf16 %v406_v23, %v402_v22  ;;  %v399_v27 = vld [vmem:[%s3239_s2 + $0x30] sm:$0xff]  ;;  %v401_v28 = vld [vmem:[%s3239_s2 + $0x40] sm:$0xff]  ;;  %v71_v29 = vld [vmem:[%s3240_s0 + $0x8] sm:$0xff] }
   0x8   :  { %v2602_v30 = vpack.c.bf16 %v399_v27, %v395_v26  ;;  %v405_v31 = vld [vmem:[%s3239_s2 + $0x60] sm:$0xff]  ;;  %v404_v32 = vld [vmem:[%s3239_s2 + $0x58] sm:$0xff]  ;;  %v410_v35 = vld [vmem:[%s3239_s2 + $0x88] sm:$0xff] }
   0x9   :  { %1880 = vmatmul.mubr.msk.f32.vlgmr.msra.gmra.mrb[0].mxu0 %vm108_vm0, %v70_v16  ;;  %v2612_v33 = vpack.c.bf16 %v405_v31, %v401_v28  ;;  %v408_v34 = vld [vmem:[%s3239_s2 + $0x78] sm:$0xff]  ;;  %v414_v36 = vld [vmem:[%s3239_s2 + $0xa8] sm:$0xff]  ;;  %v403_v37 = vld [vmem:[%s3239_s2 + $0x50] sm:$0xff]  ;;  %1937 = vmatprep.subr.bf16.mxu1 %v2585_v24 }
   0xa   :  { %1888 = vmatmul.mubr.msk.f32.vlgmr.msra.gmra.mrb[0].mxu1 %vm108_vm0, %v70_v16  ;;  %1907 = vmatpush1.bf16.msra.mxu0 %v2573_v20  ;;  %v407_v38 = vld [vmem:[%s3239_s2 + $0x70] sm:$0xff]  ;;  %v409_v39 = vld [vmem:[%s3239_s2 + $0x80] sm:$0xff]  ;;  %v2639_v41 = vpack.c.bf16 %v408_v34, %v404_v32  ;;  %v2641_v42 = vpack.c.bf16 %v414_v36, %v410_v35  ;;  %v412_v45 = vld [vmem:[%s3239_s2 + $0x98] sm:$0xff] }
   0xb   :  { %203 = vmatprep.mubr.f32.mxu0 %v2481_v3  ;;  %316 = vmatprep.mubr.f32.mxu1 %v2481_v3  ;;  %v72_v40 = vld [vmem:[%s3240_s0 + $0x10] sm:$0xff]  ;;  %v413_v43 = vld [vmem:[%s3239_s2 + $0xa0] sm:$0xff]  ;;  %v2648_v44 = vpack.c.bf16 %v407_v38, %v403_v37  ;;  %v416_v46 = vld [vmem:[%s3239_s2 + $0xb8] sm:$0xff] }
   0xc   :  { %1909 = vmatprep.subr.bf16.mxu0 %v2587_v25  ;;  %1939 = vmatpush1.bf16.msra.mxu1 %v2602_v30  ;;  %v411_v47 = vld [vmem:[%s3239_s2 + $0x90] sm:$0xff]  ;;  %v2661_v48 = vpack.c.bf16 %v413_v43, %v409_v39  ;;  %v418_v50 = vld [vmem:[%s3239_s2 + $0xc8] sm:$0xff]  ;;  %v2676_v52 = vpack.c.bf16 %v416_v46, %v412_v45  ;;  %v417_v54 = vld [vmem:[%s3239_s2 + $0xc0] sm:$0xff] }
   0xd   :  { %1881 = vmatmul.mubr.msk.f32.gmra.mrb[2].mxu0 %vm108_vm0, %v71_v29  ;;  %v415_v49 = vld [vmem:[%s3239_s2 + $0xb0] sm:$0xff]  ;;  %v422_v51 = vld [vmem:[%s3239_s2 + $0xe8] sm:$0xff]  ;;  %1941 = vmatprep.subr.bf16.mxu1 %v2639_v41  ;;  %v421_v55 = vld [vmem:[%s3239_s2 + $0xe0] sm:$0xff] }
   0xe   :  { %1889 = vmatmul.mubr.msk.f32.gmra.mrb[2].mxu1 %vm108_vm0, %v71_v29  ;;  %1911 = vmatpush1.bf16.msra.mxu0 %v2612_v33  ;;  %v2678_v53 = vpack.c.bf16 %v422_v51, %v418_v50  ;;  %v420_v56 = vld [vmem:[%s3239_s2 + $0xd8] sm:$0xff]  ;;  %v2691_v57 = vpack.c.bf16 %v415_v49, %v411_v47  ;;  %v426_v59 = vld [vmem:[%s3239_s2 + $0x108] sm:$0xff]  ;;  %v419_v62 = vld [vmem:[%s3239_s2 + $0xd0] sm:$0xff]  ;;  %v2715_v0 = vpack.c.bf16 %v421_v55, %v417_v54 }
   0xf   :  { %209 = vmatprep.mubr.f32.mxu0 %v2481_v3  ;;  %322 = vmatprep.mubr.f32.mxu1 %v2481_v3  ;;  %v424_v58 = vld [vmem:[%s3239_s2 + $0xf8] sm:$0xff]  ;;  %v430_v60 = vld [vmem:[%s3239_s2 + $0x128] sm:$0xff]  ;;  %v423_v63 = vld [vmem:[%s3239_s2 + $0xf0] sm:$0xff] }
  0x10   :  { %1913 = vmatprep.subr.bf16.mxu0 %v2641_v42  ;;  %1943 = vmatpush1.bf16.msra.mxu1 %v2648_v44  ;;  %v73_v61 = vld [vmem:[%s3240_s0 + $0x18] sm:$0xff]  ;;  %v2719_v1 = vpack.c.bf16 %v424_v58, %v420_v56  ;;  %v2721_v2 = vpack.c.bf16 %v430_v60, %v426_v59  ;;  %v425_v4 = vld [vmem:[%s3239_s2 + $0x100] sm:$0xff]  ;;  %v2734_v7 = vpack.c.bf16 %v423_v63, %v419_v62  ;;  %v434_v9 = vld [vmem:[%s3239_s2 + $0x148] sm:$0xff] }
  0x11   :  { %1882 = vmatmul.mubr.msk.f32.gmra.mrb[4].mxu0 %vm108_vm0, %v72_v40  ;;  %1945 = vmatprep.subr.bf16.mxu1 %v2676_v52  ;;  %v429_v5 = vld [vmem:[%s3239_s2 + $0x120] sm:$0xff]  ;;  %v428_v6 = vld [vmem:[%s3239_s2 + $0x118] sm:$0xff]  ;;  %v438_v10 = vld [vmem:[%s3239_s2 + $0x168] sm:$0xff] }
  0x12   :  { %1890 = vmatmul.mubr.msk.f32.gmra.mrb[4].mxu1 %vm108_vm0, %v72_v40  ;;  %1915 = vmatpush1.bf16.msra.mxu0 %v2661_v48  ;;  %v432_v8 = vld [vmem:[%s3239_s2 + $0x138] sm:$0xff]  ;;  %v74_v11 = vld [vmem:[%s3240_s0 + $0x20] sm:$0xff]  ;;  %v427_v12 = vld [vmem:[%s3239_s2 + $0x110] sm:$0xff]  ;;  %v2758_v14 = vpack.c.bf16 %v429_v5, %v425_v4  ;;  %v2764_v16 = vpack.c.bf16 %v438_v10, %v434_v9  ;;  %v88_v9 = vlaneseq }
  0x13   :  { %215 = vmatprep.mubr.f32.mxu0 %v2481_v3  ;;  %328 = vmatprep.mubr.f32.mxu1 %v2481_v3  ;;  %v431_v13 = vld [vmem:[%s3239_s2 + $0x130] sm:$0xff]  ;;  %v2762_v15 = vpack.c.bf16 %v432_v8, %v428_v6  ;;  %v433_v18 = vld [vmem:[%s3239_s2 + $0x140] sm:$0xff]  ;;  %v436_v21 = vld [vmem:[%s3239_s2 + $0x158] sm:$0xff] }
  0x14   :  { %1917 = vmatprep.subr.bf16.mxu0 %v2678_v53  ;;  %1947 = vmatpush1.bf16.msra.mxu1 %v2691_v57  ;;  %v437_v19 = vld [vmem:[%s3239_s2 + $0x160] sm:$0xff]  ;;  %v2777_v22 = vpack.c.bf16 %v431_v13, %v427_v12  ;;  %v440_v23 = vld [vmem:[%s3239_s2 + $0x178] sm:$0xff]  ;;  %v442_v26 = vld [vmem:[%s3239_s2 + $0x188] sm:$0xff]  ;;  %v89_v10 = vshrl.u32 %v88_v9, 7 }
  0x15   :  { %1883 = vmatmul.mubr.msk.f32.gmra.mrb[6].mxu0 %vm108_vm0, %v73_v61  ;;  %1949 = vmatprep.subr.bf16.mxu1 %v2719_v1  ;;  %v446_v27 = vld [vmem:[%s3239_s2 + $0x1a8] sm:$0xff]  ;;  %v435_v29 = vld [vmem:[%s3239_s2 + $0x150] sm:$0xff]  ;;  %v2801_v32 = vpack.c.bf16 %v437_v19, %v433_v18  ;;  %v2805_v34 = vpack.c.bf16 %v440_v23, %v436_v21  ;;  %v441_v36 = vld [vmem:[%s3239_s2 + $0x180] sm:$0xff] }
  0x16   :  { %1891 = vmatmul.mubr.msk.f32.gmra.mrb[6].mxu1 %vm108_vm0, %v73_v61  ;;  %221 = vmatprep.mubr.f32.mxu0 %v2481_v3  ;;  %v75_v28 = vld [vmem:[%s3240_s0 + $0x28] sm:$0xff]  ;;  %v439_v31 = vld [vmem:[%s3239_s2 + $0x170] sm:$0xff]  ;;  %v2807_v35 = vpack.c.bf16 %v446_v27, %v442_v26  ;;  %v445_v37 = vld [vmem:[%s3239_s2 + $0x1a0] sm:$0xff]  ;;  %v94_v13 = vsub.s32 1, %v89_v10  ;;  %v98_v19 = vsub.s32 2, %v89_v10  ;;  %v102_v23 = vsub.s32 3, %v89_v10 }
  0x17   :  { %334 = vmatprep.mubr.f32.mxu1 %v2481_v3  ;;  %1919 = vmatpush1.bf16.msra.mxu0 %v2715_v0  ;;  %v444_v38 = vld [vmem:[%s3239_s2 + $0x198] sm:$0xff]  ;;  %v2820_v39 = vpack.c.bf16 %v439_v31, %v435_v29  ;;  %v450_v43 = vld [vmem:[%s3239_s2 + $0x1c8] sm:$0xff]  ;;  %v76_v46 = vld [vmem:[%s3240_s0 + $0x30] sm:$0xff]  ;;  %v2844_v50 = vpack.c.bf16 %v445_v37, %v441_v36 }
  0x18   :  { %1921 = vmatprep.subr.bf16.mxu0 %v2721_v2  ;;  %1951 = vmatpush1.bf16.msra.mxu1 %v2734_v7  ;;  %v448_v40 = vld [vmem:[%s3239_s2 + $0x1b8] sm:$0xff]  ;;  %v454_v45 = vld [vmem:[%s3239_s2 + $0x1e8] sm:$0xff]  ;;  %v443_v47 = vld [vmem:[%s3239_s2 + $0x190] sm:$0xff] }
  0x19   :  { %1884 = vmatmul.mubr.msk.f32.gmra.mrb[8].mxu0 %vm108_vm0, %v74_v11  ;;  %1953 = vmatprep.subr.bf16.mxu1 %v2762_v15  ;;  %v447_v49 = vld [vmem:[%s3239_s2 + $0x1b0] sm:$0xff]  ;;  %v452_v51 = vld [vmem:[%s3239_s2 + $0x1d8] sm:$0xff]  ;;  %v2854_v55 = vpack.c.bf16 %v448_v40, %v444_v38  ;;  %v2856_v56 = vpack.c.bf16 %v454_v45, %v450_v43  ;;  %v449_v58 = vld [vmem:[%s3239_s2 + $0x1c0] sm:$0xff] }
  0x1a   :  { %1892 = vmatmul.mubr.msk.f32.gmra.mrb[8].mxu1 %vm108_vm0, %v74_v11  ;;  %227 = vmatprep.mubr.f32.mxu0 %v2481_v3  ;;  %v456_v54 = vld [vmem:[%s3239_s2 + $0x1f8] sm:$0xff]  ;;  %v453_v59 = vld [vmem:[%s3239_s2 + $0x1e0] sm:$0xff]  ;;  %v2866_v60 = vpack.c.bf16 %v447_v49, %v443_v47  ;;  %v451_v63 = vld [vmem:[%s3239_s2 + $0x1d0] sm:$0xff]  ;;  %v90_v11 = vsub.s32 0, %v89_v10 }
  0x1b   :  { %340 = vmatprep.mubr.f32.mxu1 %v2481_v3  ;;  %1923 = vmatpush1.bf16.msra.mxu0 %v2758_v14  ;;  %v77_v61 = vld [vmem:[%s3240_s0 + $0x38] sm:$0xff]  ;;  %v2873_v62 = vpack.c.bf16 %v456_v54, %v452_v51  ;;  %v455_v4 = vld [vmem:[%s3239_s2 + $0x1f0] sm:$0xff]  ;;  %v2883_v5 = vpack.c.bf16 %v453_v59, %v449_v58  ;;  %v66_v8 = vld [vmem:[%s3241_s4] sm:$0xff] }
  0x1c   :  { %1925 = vmatprep.subr.bf16.mxu0 %v2764_v16  ;;  %1955 = vmatpush1.bf16.msra.mxu1 %v2777_v22  ;;  %v2889_v6 = vpack.c.bf16 %v455_v4, %v451_v63  ;;  %v86_v12 = vld [vmem:[%s3242_s3] sm:$0xf] }
  0x1d   :  { %1885 = vmatmul.mubr.msk.f32.gmra.mrb[10].mxu0 %vm108_vm0, %v75_v28  ;;  %1957 = vmatprep.subr.bf16.mxu1 %v2805_v34  ;;  %v2939_v18 = vrot.slane %v86_v12, %v90_v11  ;;  %v2941_v21 = vrot.slane %v86_v12, %v94_v13  ;;  %v2947_v37 = vrot.slane %v86_v12, %v102_v23 }
  0x1e   :  { %1893 = vmatmul.mubr.msk.f32.gmra.mrb[10].mxu1 %vm108_vm0, %v75_v28  ;;  %233 = vmatprep.mubr.f32.mxu0 %v2481_v3  ;;  %v2944_v28 = vrot.slane %v86_v12, %v98_v19 }
  0x1f   :  { %346 = vmatprep.mubr.f32.mxu1 %v2481_v3  ;;  %1927 = vmatpush1.bf16.msra.mxu0 %v2801_v32 }
  0x20   :  { %1929 = vmatprep.subr.bf16.mxu0 %v2807_v35  ;;  %1959 = vmatpush1.bf16.msra.mxu1 %v2820_v39 }
  0x21   :  { %1886 = vmatmul.mubr.msk.f32.gmra.mrb[12].mxu0 %vm108_vm0, %v76_v46  ;;  %1961 = vmatprep.subr.bf16.mxu1 %v2854_v55 }
  0x22   :  { %1894 = vmatmul.mubr.msk.f32.gmra.mrb[12].mxu1 %vm108_vm0, %v76_v46  ;;  %239 = vmatprep.mubr.f32.mxu0 %v2481_v3 }
  0x23   :  { %352 = vmatprep.mubr.f32.mxu1 %v2481_v3  ;;  %1931 = vmatpush1.bf16.msra.mxu0 %v2844_v50 }
  0x24   :  { %1933 = vmatprep.subr.bf16.mxu0 %v2856_v56  ;;  %1963 = vmatpush1.bf16.msra.mxu1 %v2866_v60 }
  0x25   :  { %1887 = vmatmul.mubr.msk.f32.gmra.mrb[14].mxu0 %vm108_vm0, %v77_v61  ;;  %1965 = vmatprep.subr.bf16.mxu1 %v2873_v62 }
  0x26   :  { %1895 = vmatmul.mubr.msk.f32.gmra.mrb[14].mxu1 %vm108_vm0, %v77_v61  ;;  %525 = vmatprep.mubr.f32.mxu0 %v2481_v3  ;;  %v68_v61 = vld [vmem:[%s3243_s5] sm:$0xff] }
  0x27   :  { %1935 = vmatpush1.bf16.msra.mxu0 %v2883_v5  ;;  %596 = vmatprep.mubr.f32.mxu1 %v2481_v3 }
  0x28   :  { %1969 = vmatprep.subr.bf16.mxu0 %v2565_v17  ;;  %1967 = vmatpush1.bf16.msra.mxu1 %v2889_v6 }
  0x29   :  { %2001 = vmatprep.subr.bf16.mxu1 %v2585_v24 }
  0x2d   :  { %526 = vmatmul.mubr.f32.vlgmr.msra.gmra.mrb[14].mxu0 %v66_v8 }
  0x2e   :  { %597 = vmatmul.mubr.f32.vlgmr.msra.gmra.mrb[14].mxu1 %v66_v8  ;;  %1971 = vmatpush1.bf16.msra.mxu0 %v2573_v20 }
  0x2f   :  { %2003 = vmatpush1.bf16.msra.mxu1 %v2602_v30  ;;  %1973 = vmatprep.subr.bf16.mxu0 %v2587_v25 }
  0x30   :  { %2005 = vmatprep.subr.bf16.mxu1 %v2639_v41  ;;  %697 = vmatprep.mubr.f32.mxu0 %v2481_v3 }
  0x31   :  { %768 = vmatprep.mubr.f32.mxu1 %v2481_v3 }
  0x32   :  { %1975 = vmatpush1.bf16.msra.mxu0 %v2612_v33 }
  0x33   :  { %2007 = vmatpush1.bf16.msra.mxu1 %v2648_v44  ;;  %1977 = vmatprep.subr.bf16.mxu0 %v2641_v42 }
  0x34   :  { %2009 = vmatprep.subr.bf16.mxu1 %v2676_v52 }
  0x36   :  { %1979 = vmatpush1.bf16.msra.mxu0 %v2661_v48 }
  0x37   :  { %2011 = vmatpush1.bf16.msra.mxu1 %v2691_v57  ;;  %1981 = vmatprep.subr.bf16.mxu0 %v2678_v53 }
  0x38   :  { %2013 = vmatprep.subr.bf16.mxu1 %v2719_v1 }
  0x3a   :  { %1983 = vmatpush1.bf16.msra.mxu0 %v2715_v0 }
  0x3b   :  { %2015 = vmatpush1.bf16.msra.mxu1 %v2734_v7  ;;  %1985 = vmatprep.subr.bf16.mxu0 %v2721_v2 }
  0x3c   :  { %2017 = vmatprep.subr.bf16.mxu1 %v2762_v15 }
  0x3e   :  { %1987 = vmatpush1.bf16.msra.mxu0 %v2758_v14 }
  0x3f   :  { %2019 = vmatpush1.bf16.msra.mxu1 %v2777_v22  ;;  %1989 = vmatprep.subr.bf16.mxu0 %v2764_v16 }
  0x40   :  { %2021 = vmatprep.subr.bf16.mxu1 %v2805_v34 }
  0x42   :  { %1991 = vmatpush1.bf16.msra.mxu0 %v2801_v32 }
  0x43   :  { %2023 = vmatpush1.bf16.msra.mxu1 %v2820_v39  ;;  %1993 = vmatprep.subr.bf16.mxu0 %v2807_v35 }
  0x44   :  { %2025 = vmatprep.subr.bf16.mxu1 %v2854_v55 }
  0x46   :  { %1995 = vmatpush1.bf16.msra.mxu0 %v2844_v50 }
  0x47   :  { %2027 = vmatpush1.bf16.msra.mxu1 %v2866_v60  ;;  %1997 = vmatprep.subr.bf16.mxu0 %v2856_v56 }
  0x48   :  { %2029 = vmatprep.subr.bf16.mxu1 %v2873_v62 }
  0x4a   :  { %1999 = vmatpush1.bf16.msra.mxu0 %v2883_v5 }
  0x4b   :  { %2031 = vmatpush1.bf16.msra.mxu1 %v2889_v6  ;;  %2033 = vmatprep.subr.bf16.mxu0 %v2565_v17 }
  0x4c   :  { %2065 = vmatprep.subr.bf16.mxu1 %v2585_v24 }
 0x100   :  { %v527_v26 = vpop.f32.mrb[14].mxu0 }
 0x101   :  { %v2430_v27 = vadd.f32 %v527_v26, %v2939_v18  ;;  %v598_v29 = vpop.f32.mrb[14].mxu1  ;;  %v529_v31 = vpop.f32.mrb[15].mxu0 }
 0x102   :  { %v2431_v36 = vadd.f32 %v529_v31, %v2941_v21  ;;  %v600_v38 = vpop.f32.mrb[15].mxu1  ;;  %v2446_v46 = vadd.f32 %v598_v29, %v2944_v28 }
 0x103   :  { %v607_v40 = vmul.f32 0.25, %v2430_v27  ;;  %v2447_v49 = vadd.f32 %v600_v38, %v2947_v37 }
 0x104   :  { %v611_v43 = vmul.f32 0.25, %v2431_v36  ;;  %v615_v59 = vmax.f32 %v2446_v46, 0.0 }
 0x105   :  { %v608_v45 = vadd.f32 0.5, %v607_v40  ;;  %v616_v4 = vmul.f32 0.25, %v2447_v49 }
 0x106   :  { %v612_v47 = vadd.f32 0.5, %v611_v43 }
 0x107   :  { %v609_v51 = vmax.f32 %v608_v45, 0.0  ;;  %v617_v11 = vadd.f32 0.5, %v616_v4 }
 0x108   :  { %v613_v54 = vmax.f32 %v612_v47, 0.0 }
 0x109   :  { %v610_v58 = vmin.f32 %v609_v51, 1.0  ;;  %v618_v13 = vmax.f32 %v617_v11, 0.0 }
 0x10a   :  { %v614_v63 = vmin.f32 %v613_v54, 1.0 }
 0x10b   :  { %v621_v8 = vmul.f32 %v615_v59, %v610_v58  ;;  %v619_v26 = vmin.f32 %v618_v13, 1.0 }
 0x10c   :  { %v620_v9 = vmul.f32 %v614_v63, %v68_v61 }
 0x10e   :  { %v2954_v10 = vadd.f32 %v621_v8, %v620_v9 }
 0x110   :  { %v623_v12 = vmul.f32 0.25, %v2954_v10 }
 0x112   :  { %v624_v19 = vadd.f32 0.5, %v623_v12 }
 0x114   :  { %v625_v23 = vmax.f32 %v624_v19, 0.0 }
 0x116   :  { %v626_v27 = vmin.f32 %v625_v23, 1.0 }
 0x118   :  { %v627_v29 = vmul.f32 %v626_v27, %v619_v26 }
 0x11a   :  { %628 = vst [vmem:[%s3244_s6 + $0x38] sm:$0xff] %v627_v29  ;;  %698 = vmatmul.mubr.f32.vlgmr.msra.gmra.mrb[12].mxu0 %v627_v29  ;;  %769 = vmatmul.mubr.f32.vlgmr.msra.gmra.mrb[12].mxu1 %v627_v29 }
 0x11b   :  { %2035 = vmatpush1.bf16.msra.mxu0 %v2573_v20  ;;  %2067 = vmatpush1.bf16.msra.mxu1 %v2602_v30 }
 0x11c   :  { %2037 = vmatprep.subr.bf16.mxu0 %v2587_v25  ;;  %2069 = vmatprep.subr.bf16.mxu1 %v2639_v41 }
 0x11d   :  { %869 = vmatprep.mubr.f32.mxu0 %v2481_v3  ;;  %940 = vmatprep.mubr.f32.mxu1 %v2481_v3 }
 0x11f   :  { %2039 = vmatpush1.bf16.msra.mxu0 %v2612_v33  ;;  %2071 = vmatpush1.bf16.msra.mxu1 %v2648_v44 }
 0x120   :  { %2041 = vmatprep.subr.bf16.mxu0 %v2641_v42  ;;  %2073 = vmatprep.subr.bf16.mxu1 %v2676_v52 }
 0x123   :  { %2043 = vmatpush1.bf16.msra.mxu0 %v2661_v48  ;;  %2075 = vmatpush1.bf16.msra.mxu1 %v2691_v57 }
 0x124   :  { %2045 = vmatprep.subr.bf16.mxu0 %v2678_v53  ;;  %2077 = vmatprep.subr.bf16.mxu1 %v2719_v1 }
 0x127   :  { %2047 = vmatpush1.bf16.msra.mxu0 %v2715_v0  ;;  %2079 = vmatpush1.bf16.msra.mxu1 %v2734_v7 }
 0x128   :  { %2049 = vmatprep.subr.bf16.mxu0 %v2721_v2  ;;  %2081 = vmatprep.subr.bf16.mxu1 %v2762_v15 }
 0x12b   :  { %2051 = vmatpush1.bf16.msra.mxu0 %v2758_v14  ;;  %2083 = vmatpush1.bf16.msra.mxu1 %v2777_v22 }
 0x12c   :  { %2053 = vmatprep.subr.bf16.mxu0 %v2764_v16  ;;  %2085 = vmatprep.subr.bf16.mxu1 %v2805_v34 }
 0x12f   :  { %2055 = vmatpush1.bf16.msra.mxu0 %v2801_v32  ;;  %2087 = vmatpush1.bf16.msra.mxu1 %v2820_v39 }
 0x130   :  { %2057 = vmatprep.subr.bf16.mxu0 %v2807_v35  ;;  %2089 = vmatprep.subr.bf16.mxu1 %v2854_v55 }
 0x133   :  { %2059 = vmatpush1.bf16.msra.mxu0 %v2844_v50  ;;  %2091 = vmatpush1.bf16.msra.mxu1 %v2866_v60 }
 0x134   :  { %2061 = vmatprep.subr.bf16.mxu0 %v2856_v56  ;;  %2093 = vmatprep.subr.bf16.mxu1 %v2873_v62 }
 0x137   :  { %2063 = vmatpush1.bf16.msra.mxu0 %v2883_v5  ;;  %2095 = vmatpush1.bf16.msra.mxu1 %v2889_v6 }
 0x138   :  { %2097 = vmatprep.subr.bf16.mxu0 %v2565_v17  ;;  %2129 = vmatprep.subr.bf16.mxu1 %v2585_v24 }
 0x1ed   :  { %v699_v31 = vpop.f32.mrb[12].mxu0  ;;  %v770_v36 = vpop.f32.mrb[12].mxu1 }
 0x1ee   :  { %v2428_v38 = vadd.f32 %v699_v31, %v2939_v18  ;;  %v701_v40 = vpop.f32.mrb[13].mxu0  ;;  %v772_v43 = vpop.f32.mrb[13].mxu1  ;;  %v2444_v51 = vadd.f32 %v770_v36, %v2944_v28 }
 0x1ef   :  { %v2429_v45 = vadd.f32 %v701_v40, %v2941_v21  ;;  %v2445_v58 = vadd.f32 %v772_v43, %v2947_v37 }
 0x1f0   :  { %v779_v46 = vmul.f32 0.25, %v2428_v38  ;;  %v787_v4 = vmax.f32 %v2444_v51, 0.0 }
 0x1f1   :  { %v783_v47 = vmul.f32 0.25, %v2429_v45  ;;  %v788_v9 = vmul.f32 0.25, %v2445_v58 }
 0x1f2   :  { %v780_v49 = vadd.f32 0.5, %v779_v46 }
 0x1f3   :  { %v784_v54 = vadd.f32 0.5, %v783_v47  ;;  %v789_v19 = vadd.f32 0.5, %v788_v9 }
 0x1f4   :  { %v781_v59 = vmax.f32 %v780_v49, 0.0 }
 0x1f5   :  { %v785_v61 = vmax.f32 %v784_v54, 0.0  ;;  %v790_v26 = vmax.f32 %v789_v19, 0.0 }
 0x1f6   :  { %v782_v63 = vmin.f32 %v781_v59, 1.0 }
 0x1f7   :  { %v786_v8 = vmin.f32 %v785_v61, 1.0  ;;  %v791_v31 = vmin.f32 %v790_v26, 1.0 }
 0x1f8   :  { %v793_v11 = vmul.f32 %v787_v4, %v782_v63 }
 0x1f9   :  { %v792_v12 = vmul.f32 %v786_v8, %v2954_v10 }
 0x1fb   :  { %v2999_v13 = vadd.f32 %v793_v11, %v792_v12 }
 0x1fd   :  { %v795_v23 = vmul.f32 0.25, %v2999_v13 }
 0x1ff   :  { %v796_v27 = vadd.f32 0.5, %v795_v23 }
 0x201   :  { %v797_v29 = vmax.f32 %v796_v27, 0.0 }
 0x203   :  { %v798_v36 = vmin.f32 %v797_v29, 1.0 }
 0x205   :  { %v799_v38 = vmul.f32 %v798_v36, %v791_v31 }
 0x207   :  { %800 = vst [vmem:[%s3244_s6 + $0x30] sm:$0xff] %v799_v38  ;;  %870 = vmatmul.mubr.f32.vlgmr.msra.gmra.mrb[10].mxu0 %v799_v38  ;;  %941 = vmatmul.mubr.f32.vlgmr.msra.gmra.mrb[10].mxu1 %v799_v38 }
 0x208   :  { %2099 = vmatpush1.bf16.msra.mxu0 %v2573_v20  ;;  %2131 = vmatpush1.bf16.msra.mxu1 %v2602_v30 }
 0x209   :  { %2101 = vmatprep.subr.bf16.mxu0 %v2587_v25  ;;  %2133 = vmatprep.subr.bf16.mxu1 %v2639_v41 }
 0x20a   :  { %1041 = vmatprep.mubr.f32.mxu0 %v2481_v3  ;;  %1112 = vmatprep.mubr.f32.mxu1 %v2481_v3 }
 0x20c   :  { %2103 = vmatpush1.bf16.msra.mxu0 %v2612_v33  ;;  %2135 = vmatpush1.bf16.msra.mxu1 %v2648_v44 }
 0x20d   :  { %2105 = vmatprep.subr.bf16.mxu0 %v2641_v42  ;;  %2137 = vmatprep.subr.bf16.mxu1 %v2676_v52 }
 0x210   :  { %2107 = vmatpush1.bf16.msra.mxu0 %v2661_v48  ;;  %2139 = vmatpush1.bf16.msra.mxu1 %v2691_v57 }
 0x211   :  { %2109 = vmatprep.subr.bf16.mxu0 %v2678_v53  ;;  %2141 = vmatprep.subr.bf16.mxu1 %v2719_v1 }
 0x214   :  { %2111 = vmatpush1.bf16.msra.mxu0 %v2715_v0  ;;  %2143 = vmatpush1.bf16.msra.mxu1 %v2734_v7 }
 0x215   :  { %2113 = vmatprep.subr.bf16.mxu0 %v2721_v2  ;;  %2145 = vmatprep.subr.bf16.mxu1 %v2762_v15 }
 0x218   :  { %2115 = vmatpush1.bf16.msra.mxu0 %v2758_v14  ;;  %2147 = vmatpush1.bf16.msra.mxu1 %v2777_v22 }
 0x219   :  { %2117 = vmatprep.subr.bf16.mxu0 %v2764_v16  ;;  %2149 = vmatprep.subr.bf16.mxu1 %v2805_v34 }
 0x21c   :  { %2119 = vmatpush1.bf16.msra.mxu0 %v2801_v32  ;;  %2151 = vmatpush1.bf16.msra.mxu1 %v2820_v39 }
 0x21d   :  { %2121 = vmatprep.subr.bf16.mxu0 %v2807_v35  ;;  %2153 = vmatprep.subr.bf16.mxu1 %v2854_v55 }
 0x220   :  { %2123 = vmatpush1.bf16.msra.mxu0 %v2844_v50  ;;  %2155 = vmatpush1.bf16.msra.mxu1 %v2866_v60 }
 0x221   :  { %2125 = vmatprep.subr.bf16.mxu0 %v2856_v56  ;;  %2157 = vmatprep.subr.bf16.mxu1 %v2873_v62 }
 0x224   :  { %2127 = vmatpush1.bf16.msra.mxu0 %v2883_v5  ;;  %2159 = vmatpush1.bf16.msra.mxu1 %v2889_v6 }
 0x225   :  { %2161 = vmatprep.subr.bf16.mxu0 %v2565_v17  ;;  %2193 = vmatprep.subr.bf16.mxu1 %v2585_v24 }
 0x2da   :  { %v871_v10 = vpop.f32.mrb[10].mxu0  ;;  %v942_v40 = vpop.f32.mrb[10].mxu1 }
 0x2db   :  { %v2426_v43 = vadd.f32 %v871_v10, %v2939_v18  ;;  %v873_v45 = vpop.f32.mrb[11].mxu0  ;;  %v944_v46 = vpop.f32.mrb[11].mxu1  ;;  %v2442_v58 = vadd.f32 %v942_v40, %v2944_v28 }
 0x2dc   :  { %v2427_v47 = vadd.f32 %v873_v45, %v2941_v21  ;;  %v2443_v61 = vadd.f32 %v944_v46, %v2947_v37 }
 0x2dd   :  { %v951_v49 = vmul.f32 0.25, %v2426_v43  ;;  %v959_v9 = vmax.f32 %v2442_v58, 0.0 }
 0x2de   :  { %v955_v51 = vmul.f32 0.25, %v2427_v47  ;;  %v960_v12 = vmul.f32 0.25, %v2443_v61 }
 0x2df   :  { %v952_v54 = vadd.f32 0.5, %v951_v49 }
 0x2e0   :  { %v956_v59 = vadd.f32 0.5, %v955_v51  ;;  %v961_v27 = vadd.f32 0.5, %v960_v12 }
 0x2e1   :  { %v953_v63 = vmax.f32 %v952_v54, 0.0 }
 0x2e2   :  { %v957_v4 = vmax.f32 %v956_v59, 0.0  ;;  %v962_v31 = vmax.f32 %v961_v27, 0.0 }
 0x2e3   :  { %v954_v8 = vmin.f32 %v953_v63, 1.0 }
 0x2e4   :  { %v958_v11 = vmin.f32 %v957_v4, 1.0  ;;  %v963_v10 = vmin.f32 %v962_v31, 1.0 }
 0x2e5   :  { %v965_v19 = vmul.f32 %v959_v9, %v954_v8 }
 0x2e6   :  { %v964_v23 = vmul.f32 %v958_v11, %v2999_v13 }
 0x2e8   :  { %v3044_v26 = vadd.f32 %v965_v19, %v964_v23 }
 0x2ea   :  { %v967_v29 = vmul.f32 0.25, %v3044_v26 }
 0x2ec   :  { %v968_v36 = vadd.f32 0.5, %v967_v29 }
 0x2ee   :  { %v969_v38 = vmax.f32 %v968_v36, 0.0 }
 0x2f0   :  { %v970_v40 = vmin.f32 %v969_v38, 1.0 }
 0x2f2   :  { %v971_v43 = vmul.f32 %v970_v40, %v963_v10 }
 0x2f4   :  { %972 = vst [vmem:[%s3244_s6 + $0x28] sm:$0xff] %v971_v43  ;;  %1042 = vmatmul.mubr.f32.vlgmr.msra.gmra.mrb[8].mxu0 %v971_v43  ;;  %1113 = vmatmul.mubr.f32.vlgmr.msra.gmra.mrb[8].mxu1 %v971_v43 }
 0x2f5   :  { %2163 = vmatpush1.bf16.msra.mxu0 %v2573_v20  ;;  %2195 = vmatpush1.bf16.msra.mxu1 %v2602_v30 }
 0x2f6   :  { %2165 = vmatprep.subr.bf16.mxu0 %v2587_v25  ;;  %2197 = vmatprep.subr.bf16.mxu1 %v2639_v41 }
 0x2f7   :  { %1213 = vmatprep.mubr.f32.mxu0 %v2481_v3  ;;  %1284 = vmatprep.mubr.f32.mxu1 %v2481_v3 }
 0x2f9   :  { %2167 = vmatpush1.bf16.msra.mxu0 %v2612_v33  ;;  %2199 = vmatpush1.bf16.msra.mxu1 %v2648_v44 }
 0x2fa   :  { %2169 = vmatprep.subr.bf16.mxu0 %v2641_v42  ;;  %2201 = vmatprep.subr.bf16.mxu1 %v2676_v52 }
 0x2fd   :  { %2171 = vmatpush1.bf16.msra.mxu0 %v2661_v48  ;;  %2203 = vmatpush1.bf16.msra.mxu1 %v2691_v57 }
 0x2fe   :  { %2173 = vmatprep.subr.bf16.mxu0 %v2678_v53  ;;  %2205 = vmatprep.subr.bf16.mxu1 %v2719_v1 }
 0x301   :  { %2175 = vmatpush1.bf16.msra.mxu0 %v2715_v0  ;;  %2207 = vmatpush1.bf16.msra.mxu1 %v2734_v7 }
 0x302   :  { %2177 = vmatprep.subr.bf16.mxu0 %v2721_v2  ;;  %2209 = vmatprep.subr.bf16.mxu1 %v2762_v15 }
 0x305   :  { %2179 = vmatpush1.bf16.msra.mxu0 %v2758_v14  ;;  %2211 = vmatpush1.bf16.msra.mxu1 %v2777_v22 }
 0x306   :  { %2181 = vmatprep.subr.bf16.mxu0 %v2764_v16  ;;  %2213 = vmatprep.subr.bf16.mxu1 %v2805_v34 }
 0x309   :  { %2183 = vmatpush1.bf16.msra.mxu0 %v2801_v32  ;;  %2215 = vmatpush1.bf16.msra.mxu1 %v2820_v39 }
 0x30a   :  { %2185 = vmatprep.subr.bf16.mxu0 %v2807_v35  ;;  %2217 = vmatprep.subr.bf16.mxu1 %v2854_v55 }
 0x30d   :  { %2187 = vmatpush1.bf16.msra.mxu0 %v2844_v50  ;;  %2219 = vmatpush1.bf16.msra.mxu1 %v2866_v60 }
 0x30e   :  { %2189 = vmatprep.subr.bf16.mxu0 %v2856_v56  ;;  %2221 = vmatprep.subr.bf16.mxu1 %v2873_v62 }
 0x311   :  { %2191 = vmatpush1.bf16.msra.mxu0 %v2883_v5  ;;  %2223 = vmatpush1.bf16.msra.mxu1 %v2889_v6 }
 0x312   :  { %2225 = vmatprep.subr.bf16.mxu0 %v2565_v17  ;;  %2257 = vmatprep.subr.bf16.mxu1 %v2585_v24 }
 0x3c7   :  { %v1043_v13 = vpop.f32.mrb[8].mxu0  ;;  %v1114_v45 = vpop.f32.mrb[8].mxu1 }
 0x3c8   :  { %v2424_v46 = vadd.f32 %v1043_v13, %v2939_v18  ;;  %v1045_v47 = vpop.f32.mrb[9].mxu0  ;;  %v1116_v49 = vpop.f32.mrb[9].mxu1  ;;  %v2440_v61 = vadd.f32 %v1114_v45, %v2944_v28 }
 0x3c9   :  { %v2425_v51 = vadd.f32 %v1045_v47, %v2941_v21  ;;  %v2441_v4 = vadd.f32 %v1116_v49, %v2947_v37 }
 0x3ca   :  { %v1123_v54 = vmul.f32 0.25, %v2424_v46  ;;  %v1131_v12 = vmax.f32 %v2440_v61, 0.0 }
 0x3cb   :  { %v1127_v58 = vmul.f32 0.25, %v2425_v51  ;;  %v1132_v23 = vmul.f32 0.25, %v2441_v4 }
 0x3cc   :  { %v1124_v59 = vadd.f32 0.5, %v1123_v54 }
 0x3cd   :  { %v1128_v63 = vadd.f32 0.5, %v1127_v58  ;;  %v1133_v36 = vadd.f32 0.5, %v1132_v23 }
 0x3ce   :  { %v1125_v8 = vmax.f32 %v1124_v59, 0.0 }
 0x3cf   :  { %v1129_v9 = vmax.f32 %v1128_v63, 0.0  ;;  %v1134_v10 = vmax.f32 %v1133_v36, 0.0 }
 0x3d0   :  { %v1126_v11 = vmin.f32 %v1125_v8, 1.0 }
 0x3d1   :  { %v1130_v19 = vmin.f32 %v1129_v9, 1.0  ;;  %v1135_v13 = vmin.f32 %v1134_v10, 1.0 }
 0x3d2   :  { %v1137_v27 = vmul.f32 %v1131_v12, %v1126_v11 }
 0x3d3   :  { %v1136_v29 = vmul.f32 %v1130_v19, %v3044_v26 }
 0x3d5   :  { %v3089_v31 = vadd.f32 %v1137_v27, %v1136_v29 }
 0x3d7   :  { %v1139_v38 = vmul.f32 0.25, %v3089_v31 }
 0x3d9   :  { %v1140_v40 = vadd.f32 0.5, %v1139_v38 }
 0x3db   :  { %v1141_v43 = vmax.f32 %v1140_v40, 0.0 }
 0x3dd   :  { %v1142_v45 = vmin.f32 %v1141_v43, 1.0 }
 0x3df   :  { %v1143_v46 = vmul.f32 %v1142_v45, %v1135_v13 }
 0x3e1   :  { %1144 = vst [vmem:[%s3244_s6 + $0x20] sm:$0xff] %v1143_v46  ;;  %1214 = vmatmul.mubr.f32.vlgmr.msra.gmra.mrb[6].mxu0 %v1143_v46  ;;  %1285 = vmatmul.mubr.f32.vlgmr.msra.gmra.mrb[6].mxu1 %v1143_v46 }
 0x3e2   :  { %2227 = vmatpush1.bf16.msra.mxu0 %v2573_v20  ;;  %2259 = vmatpush1.bf16.msra.mxu1 %v2602_v30 }
 0x3e3   :  { %2229 = vmatprep.subr.bf16.mxu0 %v2587_v25  ;;  %2261 = vmatprep.subr.bf16.mxu1 %v2639_v41 }
 0x3e4   :  { %1385 = vmatprep.mubr.f32.mxu0 %v2481_v3  ;;  %1456 = vmatprep.mubr.f32.mxu1 %v2481_v3 }
 0x3e6   :  { %2231 = vmatpush1.bf16.msra.mxu0 %v2612_v33  ;;  %2263 = vmatpush1.bf16.msra.mxu1 %v2648_v44 }
 0x3e7   :  { %2233 = vmatprep.subr.bf16.mxu0 %v2641_v42  ;;  %2265 = vmatprep.subr.bf16.mxu1 %v2676_v52 }
 0x3ea   :  { %2235 = vmatpush1.bf16.msra.mxu0 %v2661_v48  ;;  %2267 = vmatpush1.bf16.msra.mxu1 %v2691_v57 }
 0x3eb   :  { %2237 = vmatprep.subr.bf16.mxu0 %v2678_v53  ;;  %2269 = vmatprep.subr.bf16.mxu1 %v2719_v1 }
 0x3ee   :  { %2239 = vmatpush1.bf16.msra.mxu0 %v2715_v0  ;;  %2271 = vmatpush1.bf16.msra.mxu1 %v2734_v7 }
 0x3ef   :  { %2241 = vmatprep.subr.bf16.mxu0 %v2721_v2  ;;  %2273 = vmatprep.subr.bf16.mxu1 %v2762_v15 }
 0x3f2   :  { %2243 = vmatpush1.bf16.msra.mxu0 %v2758_v14  ;;  %2275 = vmatpush1.bf16.msra.mxu1 %v2777_v22 }
 0x3f3   :  { %2245 = vmatprep.subr.bf16.mxu0 %v2764_v16  ;;  %2277 = vmatprep.subr.bf16.mxu1 %v2805_v34 }
 0x3f6   :  { %2247 = vmatpush1.bf16.msra.mxu0 %v2801_v32  ;;  %2279 = vmatpush1.bf16.msra.mxu1 %v2820_v39 }
 0x3f7   :  { %2249 = vmatprep.subr.bf16.mxu0 %v2807_v35  ;;  %2281 = vmatprep.subr.bf16.mxu1 %v2854_v55 }
 0x3fa   :  { %2251 = vmatpush1.bf16.msra.mxu0 %v2844_v50  ;;  %2283 = vmatpush1.bf16.msra.mxu1 %v2866_v60 }
 0x3fb   :  { %2253 = vmatprep.subr.bf16.mxu0 %v2856_v56  ;;  %2285 = vmatprep.subr.bf16.mxu1 %v2873_v62 }
 0x3fe   :  { %2255 = vmatpush1.bf16.msra.mxu0 %v2883_v5  ;;  %2287 = vmatpush1.bf16.msra.mxu1 %v2889_v6 }
 0x3ff   :  { %2289 = vmatprep.subr.bf16.mxu0 %v2565_v17  ;;  %2321 = vmatprep.subr.bf16.mxu1 %v2585_v24 }
 0x4b4   :  { %v1215_v26 = vpop.f32.mrb[6].mxu0  ;;  %v1286_v47 = vpop.f32.mrb[6].mxu1 }
 0x4b5   :  { %v2422_v49 = vadd.f32 %v1215_v26, %v2939_v18  ;;  %v1217_v51 = vpop.f32.mrb[7].mxu0  ;;  %v1288_v54 = vpop.f32.mrb[7].mxu1  ;;  %v2438_v4 = vadd.f32 %v1286_v47, %v2944_v28 }
 0x4b6   :  { %v2423_v58 = vadd.f32 %v1217_v51, %v2941_v21  ;;  %v2439_v9 = vadd.f32 %v1288_v54, %v2947_v37 }
 0x4b7   :  { %v1295_v59 = vmul.f32 0.25, %v2422_v49  ;;  %v1303_v23 = vmax.f32 %v2438_v4, 0.0 }
 0x4b8   :  { %v1299_v61 = vmul.f32 0.25, %v2423_v58  ;;  %v1304_v29 = vmul.f32 0.25, %v2439_v9 }
 0x4b9   :  { %v1296_v63 = vadd.f32 0.5, %v1295_v59 }
 0x4ba   :  { %v1300_v8 = vadd.f32 0.5, %v1299_v61  ;;  %v1305_v40 = vadd.f32 0.5, %v1304_v29 }
 0x4bb   :  { %v1297_v11 = vmax.f32 %v1296_v63, 0.0 }
 0x4bc   :  { %v1301_v12 = vmax.f32 %v1300_v8, 0.0  ;;  %v1306_v13 = vmax.f32 %v1305_v40, 0.0 }
 0x4bd   :  { %v1298_v19 = vmin.f32 %v1297_v11, 1.0 }
 0x4be   :  { %v1302_v27 = vmin.f32 %v1301_v12, 1.0  ;;  %v1307_v26 = vmin.f32 %v1306_v13, 1.0 }
 0x4bf   :  { %v1309_v36 = vmul.f32 %v1303_v23, %v1298_v19 }
 0x4c0   :  { %v1308_v38 = vmul.f32 %v1302_v27, %v3089_v31 }
 0x4c2   :  { %v3134_v10 = vadd.f32 %v1309_v36, %v1308_v38 }
 0x4c4   :  { %v1311_v43 = vmul.f32 0.25, %v3134_v10 }
 0x4c6   :  { %v1312_v45 = vadd.f32 0.5, %v1311_v43 }
 0x4c8   :  { %v1313_v46 = vmax.f32 %v1312_v45, 0.0 }
 0x4ca   :  { %v1314_v47 = vmin.f32 %v1313_v46, 1.0 }
 0x4cc   :  { %v1315_v49 = vmul.f32 %v1314_v47, %v1307_v26 }
 0x4ce   :  { %1316 = vst [vmem:[%s3244_s6 + $0x18] sm:$0xff] %v1315_v49  ;;  %1386 = vmatmul.mubr.f32.vlgmr.msra.gmra.mrb[4].mxu0 %v1315_v49  ;;  %1457 = vmatmul.mubr.f32.vlgmr.msra.gmra.mrb[4].mxu1 %v1315_v49 }
 0x4cf   :  { %2291 = vmatpush1.bf16.msra.mxu0 %v2573_v20  ;;  %2323 = vmatpush1.bf16.msra.mxu1 %v2602_v30 }
 0x4d0   :  { %2293 = vmatprep.subr.bf16.mxu0 %v2587_v25  ;;  %2325 = vmatprep.subr.bf16.mxu1 %v2639_v41 }
 0x4d1   :  { %1557 = vmatprep.mubr.f32.mxu0 %v2481_v3  ;;  %1628 = vmatprep.mubr.f32.mxu1 %v2481_v3 }
 0x4d3   :  { %2295 = vmatpush1.bf16.msra.mxu0 %v2612_v33  ;;  %2327 = vmatpush1.bf16.msra.mxu1 %v2648_v44 }
 0x4d4   :  { %2297 = vmatprep.subr.bf16.mxu0 %v2641_v42  ;;  %2329 = vmatprep.subr.bf16.mxu1 %v2676_v52 }
 0x4d7   :  { %2299 = vmatpush1.bf16.msra.mxu0 %v2661_v48  ;;  %2331 = vmatpush1.bf16.msra.mxu1 %v2691_v57 }
 0x4d8   :  { %2301 = vmatprep.subr.bf16.mxu0 %v2678_v53  ;;  %2333 = vmatprep.subr.bf16.mxu1 %v2719_v1 }
 0x4db   :  { %2303 = vmatpush1.bf16.msra.mxu0 %v2715_v0  ;;  %2335 = vmatpush1.bf16.msra.mxu1 %v2734_v7 }
 0x4dc   :  { %2305 = vmatprep.subr.bf16.mxu0 %v2721_v2  ;;  %2337 = vmatprep.subr.bf16.mxu1 %v2762_v15 }
 0x4df   :  { %2307 = vmatpush1.bf16.msra.mxu0 %v2758_v14  ;;  %2339 = vmatpush1.bf16.msra.mxu1 %v2777_v22 }
 0x4e0   :  { %2309 = vmatprep.subr.bf16.mxu0 %v2764_v16  ;;  %2341 = vmatprep.subr.bf16.mxu1 %v2805_v34 }
 0x4e3   :  { %2311 = vmatpush1.bf16.msra.mxu0 %v2801_v32  ;;  %2343 = vmatpush1.bf16.msra.mxu1 %v2820_v39 }
 0x4e4   :  { %2313 = vmatprep.subr.bf16.mxu0 %v2807_v35  ;;  %2345 = vmatprep.subr.bf16.mxu1 %v2854_v55 }
 0x4e7   :  { %2315 = vmatpush1.bf16.msra.mxu0 %v2844_v50  ;;  %2347 = vmatpush1.bf16.msra.mxu1 %v2866_v60 }
 0x4e8   :  { %2317 = vmatprep.subr.bf16.mxu0 %v2856_v56  ;;  %2349 = vmatprep.subr.bf16.mxu1 %v2873_v62 }
 0x4eb   :  { %2319 = vmatpush1.bf16.msra.mxu0 %v2883_v5  ;;  %2351 = vmatpush1.bf16.msra.mxu1 %v2889_v6 }
 0x4ec   :  { %2353 = vmatprep.subr.bf16.mxu0 %v2565_v17  ;;  %2385 = vmatprep.subr.bf16.mxu1 %v2585_v24 }
 0x5a1   :  { %v1387_v31 = vpop.f32.mrb[4].mxu0  ;;  %v1458_v51 = vpop.f32.mrb[4].mxu1 }
 0x5a2   :  { %v2420_v54 = vadd.f32 %v1387_v31, %v2939_v18  ;;  %v1389_v58 = vpop.f32.mrb[5].mxu0  ;;  %v1460_v59 = vpop.f32.mrb[5].mxu1  ;;  %v2436_v9 = vadd.f32 %v1458_v51, %v2944_v28 }
 0x5a3   :  { %v2421_v61 = vadd.f32 %v1389_v58, %v2941_v21  ;;  %v2437_v12 = vadd.f32 %v1460_v59, %v2947_v37 }
 0x5a4   :  { %v1467_v63 = vmul.f32 0.25, %v2420_v54  ;;  %v1475_v24 = vmax.f32 %v2436_v9, 0.0 }
 0x5a5   :  { %v1471_v4 = vmul.f32 0.25, %v2421_v61  ;;  %v1476_v29 = vmul.f32 0.25, %v2437_v12 }
 0x5a6   :  { %v1468_v8 = vadd.f32 0.5, %v1467_v63 }
 0x5a7   :  { %v1472_v11 = vadd.f32 0.5, %v1471_v4  ;;  %v1477_v43 = vadd.f32 0.5, %v1476_v29 }
 0x5a8   :  { %v1469_v19 = vmax.f32 %v1468_v8, 0.0 }
 0x5a9   :  { %v1473_v17 = vmax.f32 %v1472_v11, 0.0  ;;  %v1478_v45 = vmax.f32 %v1477_v43, 0.0 }
 0x5aa   :  { %v1470_v23 = vmin.f32 %v1469_v19, 1.0 }
 0x5ab   :  { %v1474_v27 = vmin.f32 %v1473_v17, 1.0  ;;  %v1479_v47 = vmin.f32 %v1478_v45, 1.0 }
 0x5ac   :  { %v1481_v36 = vmul.f32 %v1475_v24, %v1470_v23 }
 0x5ad   :  { %v1480_v38 = vmul.f32 %v1474_v27, %v3134_v10 }
 0x5af   :  { %v3179_v40 = vadd.f32 %v1481_v36, %v1480_v38 }
 0x5b1   :  { %v1483_v13 = vmul.f32 0.25, %v3179_v40 }
 0x5b3   :  { %v1484_v46 = vadd.f32 0.5, %v1483_v13 }
 0x5b5   :  { %v1485_v26 = vmax.f32 %v1484_v46, 0.0 }
 0x5b7   :  { %v1486_v49 = vmin.f32 %v1485_v26, 1.0 }
 0x5b9   :  { %v1487_v31 = vmul.f32 %v1486_v49, %v1479_v47 }
 0x5bb   :  { %1488 = vst [vmem:[%s3244_s6 + $0x10] sm:$0xff] %v1487_v31  ;;  %1558 = vmatmul.mubr.f32.vlgmr.msra.gmra.mrb[2].mxu0 %v1487_v31  ;;  %1629 = vmatmul.mubr.f32.vlgmr.msra.gmra.mrb[2].mxu1 %v1487_v31 }
 0x5bc   :  { %2355 = vmatpush1.bf16.msra.mxu0 %v2573_v20  ;;  %2387 = vmatpush1.bf16.msra.mxu1 %v2602_v30 }
 0x5bd   :  { %2357 = vmatprep.subr.bf16.mxu0 %v2587_v25  ;;  %2389 = vmatprep.subr.bf16.mxu1 %v2639_v41 }
 0x5be   :  { %1729 = vmatprep.mubr.f32.mxu0 %v2481_v3  ;;  %1800 = vmatprep.mubr.f32.mxu1 %v2481_v3 }
 0x5c0   :  { %2359 = vmatpush1.bf16.msra.mxu0 %v2612_v33  ;;  %2391 = vmatpush1.bf16.msra.mxu1 %v2648_v44 }
 0x5c1   :  { %2361 = vmatprep.subr.bf16.mxu0 %v2641_v42  ;;  %2393 = vmatprep.subr.bf16.mxu1 %v2676_v52 }
 0x5c4   :  { %2363 = vmatpush1.bf16.msra.mxu0 %v2661_v48  ;;  %2395 = vmatpush1.bf16.msra.mxu1 %v2691_v57 }
 0x5c5   :  { %2365 = vmatprep.subr.bf16.mxu0 %v2678_v53  ;;  %2397 = vmatprep.subr.bf16.mxu1 %v2719_v1 }
 0x5c8   :  { %2367 = vmatpush1.bf16.msra.mxu0 %v2715_v0  ;;  %2399 = vmatpush1.bf16.msra.mxu1 %v2734_v7 }
 0x5c9   :  { %2369 = vmatprep.subr.bf16.mxu0 %v2721_v2  ;;  %2401 = vmatprep.subr.bf16.mxu1 %v2762_v15 }
 0x5cc   :  { %2371 = vmatpush1.bf16.msra.mxu0 %v2758_v14  ;;  %2403 = vmatpush1.bf16.msra.mxu1 %v2777_v22 }
 0x5cd   :  { %2373 = vmatprep.subr.bf16.mxu0 %v2764_v16  ;;  %2405 = vmatprep.subr.bf16.mxu1 %v2805_v34 }
 0x5d0   :  { %2375 = vmatpush1.bf16.msra.mxu0 %v2801_v32  ;;  %2407 = vmatpush1.bf16.msra.mxu1 %v2820_v39 }
 0x5d1   :  { %2377 = vmatprep.subr.bf16.mxu0 %v2807_v35  ;;  %2409 = vmatprep.subr.bf16.mxu1 %v2854_v55 }
 0x5d4   :  { %2379 = vmatpush1.bf16.msra.mxu0 %v2844_v50  ;;  %2411 = vmatpush1.bf16.msra.mxu1 %v2866_v60 }
 0x5d5   :  { %2381 = vmatprep.subr.bf16.mxu0 %v2856_v56  ;;  %2413 = vmatprep.subr.bf16.mxu1 %v2873_v62 }
 0x5d8   :  { %2383 = vmatpush1.bf16.msra.mxu0 %v2883_v5  ;;  %2415 = vmatpush1.bf16.msra.mxu1 %v2889_v6 }
 0x68e   :  { %v1559_v3 = vpop.f32.mrb[2].mxu0  ;;  %v1630_v20 = vpop.f32.mrb[2].mxu1 }
 0x68f   :  { %v2418_v25 = vadd.f32 %v1559_v3, %v2939_v18  ;;  %v1561_v30 = vpop.f32.mrb[3].mxu0  ;;  %v1632_v33 = vpop.f32.mrb[3].mxu1  ;;  %v2434_v52 = vadd.f32 %v1630_v20, %v2944_v28 }
 0x690   :  { %v2419_v41 = vadd.f32 %v1561_v30, %v2941_v21  ;;  %v2435_v57 = vadd.f32 %v1632_v33, %v2947_v37 }
 0x691   :  { %v1639_v42 = vmul.f32 0.25, %v2418_v25  ;;  %v1647_v7 = vmax.f32 %v2434_v52, 0.0 }
 0x692   :  { %v1643_v44 = vmul.f32 0.25, %v2419_v41  ;;  %v1648_v15 = vmul.f32 0.25, %v2435_v57 }
 0x693   :  { %v1640_v48 = vadd.f32 0.5, %v1639_v42 }
 0x694   :  { %v1644_v53 = vadd.f32 0.5, %v1643_v44  ;;  %v1649_v34 = vadd.f32 0.5, %v1648_v15 }
 0x695   :  { %v1641_v0 = vmax.f32 %v1640_v48, 0.0 }
 0x696   :  { %v1645_v1 = vmax.f32 %v1644_v53, 0.0  ;;  %v1650_v39 = vmax.f32 %v1649_v34, 0.0 }
 0x697   :  { %v1642_v2 = vmin.f32 %v1641_v0, 1.0 }
 0x698   :  { %v1646_v14 = vmin.f32 %v1645_v1, 1.0  ;;  %v1651_v56 = vmin.f32 %v1650_v39, 1.0 }
 0x699   :  { %v1653_v16 = vmul.f32 %v1647_v7, %v1642_v2 }
 0x69a   :  { %v1652_v22 = vmul.f32 %v1646_v14, %v3179_v40 }
 0x69c   :  { %v1654_v32 = vadd.f32 %v1653_v16, %v1652_v22 }
 0x69e   :  { %v1655_v35 = vmul.f32 0.25, %v1654_v32 }
 0x6a0   :  { %v1656_v50 = vadd.f32 0.5, %v1655_v35 }
 0x6a2   :  { %v1657_v55 = vmax.f32 %v1656_v50, 0.0 }
 0x6a4   :  { %v1658_v60 = vmin.f32 %v1657_v55, 1.0 }
 0x6a6   :  { %v1659_v62 = vmul.f32 %v1658_v60, %v1651_v56 }
 0x6a8   :  { %1660 = vst [vmem:[%s3244_s6 + $0x8] sm:$0xff] %v1659_v62  ;;  %1730 = vmatmul.mubr.f32.vlgmr.msra.gmra.mrb[0].mxu0 %v1659_v62  ;;  %1801 = vmatmul.mubr.f32.vlgmr.msra.gmra.mrb[0].mxu1 %v1659_v62 }
 0x77b   :  { %v1731_v5 = vpop.f32.mrb[0].mxu0  ;;  %v1802_v6 = vpop.f32.mrb[0].mxu1 }
 0x77c   :  { %v2416_v10 = vadd.f32 %v1731_v5, %v2939_v18  ;;  %v1733_v51 = vpop.f32.mrb[1].mxu0  ;;  %v1804_v54 = vpop.f32.mrb[1].mxu1  ;;  %v2432_v4 = vadd.f32 %v1802_v6, %v2944_v28 }
 0x77d   :  { %v2417_v58 = vadd.f32 %v1733_v51, %v2941_v21  ;;  %v2433_v9 = vadd.f32 %v1804_v54, %v2947_v37 }
 0x77e   :  { %v1811_v59 = vmul.f32 0.25, %v2416_v10  ;;  %v1819_v17 = vmax.f32 %v2432_v4, 0.0 }
 0x77f   :  { %v1815_v61 = vmul.f32 0.25, %v2417_v58  ;;  %v1820_v24 = vmul.f32 0.25, %v2433_v9 }
 0x780   :  { %v1812_v63 = vadd.f32 0.5, %v1811_v59 }
 0x781   :  { %v1816_v8 = vadd.f32 0.5, %v1815_v61  ;;  %v1821_v36 = vadd.f32 0.5, %v1820_v24 }
 0x782   :  { %v1813_v11 = vmax.f32 %v1812_v63, 0.0 }
 0x783   :  { %v1817_v12 = vmax.f32 %v1816_v8, 0.0  ;;  %v1822_v38 = vmax.f32 %v1821_v36, 0.0 }
 0x784   :  { %v1814_v19 = vmin.f32 %v1813_v11, 1.0 }
 0x785   :  { %v1818_v23 = vmin.f32 %v1817_v12, 1.0  ;;  %v1823_v43 = vmin.f32 %v1822_v38, 1.0 }
 0x786   :  { %v1825_v27 = vmul.f32 %v1819_v17, %v1814_v19 }
 0x787   :  { %v1824_v18 = vmul.f32 %v1818_v23, %v1654_v32 }
 0x789   :  { %v1826_v29 = vadd.f32 %v1825_v27, %v1824_v18 }
 0x78b   :  { %1839 = vst [vmem:[%s3245_s8] sm:$0xff] %v1826_v29  ;;  %v1827_v21 = vmul.f32 0.25, %v1826_v29 }
 0x78d   :  { %v1828_v28 = vadd.f32 0.5, %v1827_v21 }
 0x78f   :  { %v1829_v40 = vmax.f32 %v1828_v28, 0.0 }
 0x791   :  { %v1830_v37 = vmin.f32 %v1829_v40, 1.0 }
 0x793   :  { %v1831_v13 = vmul.f32 %v1830_v37, %v1823_v43 }
 0x795   :  { %1832 = vst [vmem:[%s3244_s6] sm:$0xff] %v1831_v13  ;;  %1838 = vst [vmem:[%s3246_s7] sm:$0xff] %v1831_v13 }

// kernel: quantized_lstm_forward.4
= control target key start
LH: loop header
LB: loop body
LE: loop exit
PB: predicated region body
PF: predicated region fallthrough
CT: control target
= control target key end

     0   :  { %v2417_v3 = vmov 0.0   ;;  %vm72_vm0 = vcmask 130048   ;;  %s3174_s1 = inlined_call_operand.vmem [shape: f32[16,512], index: 1, kind: input, shape index: {}]   ;;  %s3175_s0 = inlined_call_operand.vmem [shape: f32[64,16], index: 0, kind: input, shape index: {}]   ;;  %s3176_s2 = inlined_call_operand.vmem [shape: f32[128,512], index: 2, kind: input, shape index: {}]   ;;  %s3177_s4 = inlined_call_operand.vmem [shape: f32[8,128], index: 4, kind: input, shape index: {}, may-alias: {4,5}]   ;;  %s3178_s3 = inlined_call_operand.vmem [shape: f32[1,512], index: 3, kind: input, shape index: {}]   ;;  %s3179_s5 = inlined_call_operand.vmem [shape: f32[8,128], index: 5, kind: input, shape index: {}, may-alias: {4,5}]   ;;  %s3180_s6 = inlined_call_operand.vmem [shape: f32[64,128], index: 6, kind: output, shape index: {0}]   ;;  %s3181_s8 = inlined_call_operand.vmem [shape: f32[8,128], index: 8, kind: output, shape index: {2}]   ;;  %s3182_s7 = inlined_call_operand.vmem [shape: f32[8,128], index: 7, kind: output, shape index: {1}]  }
   0x1   :  { %v43_v0 = vld [vmem:[%s3174_s1 + $0x8] sm:$0xff]  ;;  %v45_v2 = vld [vmem:[%s3174_s1 + $0x18] sm:$0xff]  ;;  %161 = vmatprep.mubr.f32.mxu0 %v2417_v3  ;;  %274 = vmatprep.mubr.f32.mxu1 %v2417_v3  ;;  %v42_v6 = vld [vmem:[%s3174_s1] sm:$0xff] }
   0x2   :  { %v47_v1 = vld [vmem:[%s3174_s1 + $0x28] sm:$0xff]  ;;  %v49_v5 = vld [vmem:[%s3174_s1 + $0x38] sm:$0xff]  ;;  %v46_v7 = vld [vmem:[%s3174_s1 + $0x20] sm:$0xff] }
   0x3   :  { %v1832_v4 = vpack.c.bf16 %v47_v1, %v43_v0  ;;  %v1836_v8 = vpack.c.bf16 %v49_v5, %v45_v2  ;;  %v1834_v9 = vpack.c.bf16 %v46_v7, %v42_v6  ;;  %v44_v10 = vld [vmem:[%s3174_s1 + $0x10] sm:$0xff]  ;;  %v34_v12 = vld [vmem:[%s3175_s0] sm:$0xff]  ;;  %v358_v14 = vld [vmem:[%s3176_s2 + $0x8] sm:$0xff] }
   0x4   :  { %v48_v11 = vld [vmem:[%s3174_s1 + $0x30] sm:$0xff]  ;;  %v362_v15 = vld [vmem:[%s3176_s2 + $0x28] sm:$0xff]  ;;  %v360_v16 = vld [vmem:[%s3176_s2 + $0x18] sm:$0xff] }
   0x5   :  { %1833 = vmatprep.subr.bf16.mxu0 %v1832_v4  ;;  %v1838_v13 = vpack.c.bf16 %v48_v11, %v44_v10  ;;  %1837 = vmatprep.subr.bf16.mxu1 %v1836_v8  ;;  %v2501_v17 = vpack.c.bf16 %v362_v15, %v358_v14  ;;  %v364_v18 = vld [vmem:[%s3176_s2 + $0x38] sm:$0xff]  ;;  %v357_v19 = vld [vmem:[%s3176_s2] sm:$0xff]  ;;  %v359_v23 = vld [vmem:[%s3176_s2 + $0x10] sm:$0xff] }
   0x6   :  { %1835 = vmatpush1.bf16.msra.mxu0 %v1834_v9  ;;  %v361_v20 = vld [vmem:[%s3176_s2 + $0x20] sm:$0xff]  ;;  %v2512_v21 = vpack.c.bf16 %v364_v18, %v360_v16  ;;  %v363_v24 = vld [vmem:[%s3176_s2 + $0x30] sm:$0xff]  ;;  %v366_v26 = vld [vmem:[%s3176_s2 + $0x48] sm:$0xff] }
   0x7   :  { %1839 = vmatpush1.bf16.msra.mxu1 %v1838_v13  ;;  %v2514_v22 = vpack.c.bf16 %v361_v20, %v357_v19  ;;  %1841 = vmatprep.subr.bf16.mxu0 %v2501_v17  ;;  %v2523_v25 = vpack.c.bf16 %v363_v24, %v359_v23  ;;  %v370_v27 = vld [vmem:[%s3176_s2 + $0x68] sm:$0xff]  ;;  %v368_v28 = vld [vmem:[%s3176_s2 + $0x58] sm:$0xff]  ;;  %v365_v31 = vld [vmem:[%s3176_s2 + $0x40] sm:$0xff] }
   0x8   :  { %1873 = vmatprep.subr.bf16.mxu1 %v2512_v21  ;;  %v2536_v29 = vpack.c.bf16 %v370_v27, %v366_v26  ;;  %v372_v30 = vld [vmem:[%s3176_s2 + $0x78] sm:$0xff]  ;;  %v369_v32 = vld [vmem:[%s3176_s2 + $0x60] sm:$0xff]  ;;  %v35_v33 = vld [vmem:[%s3175_s0 + $0x8] sm:$0xff] }
   0x9   :  { %1816 = vmatmul.mubr.msk.f32.vlgmr.msra.gmra.mrb[0].mxu0 %vm72_vm0, %v34_v12  ;;  %v2552_v34 = vpack.c.bf16 %v372_v30, %v368_v28  ;;  %v2554_v35 = vpack.c.bf16 %v369_v32, %v365_v31  ;;  %v367_v36 = vld [vmem:[%s3176_s2 + $0x50] sm:$0xff]  ;;  %v374_v39 = vld [vmem:[%s3176_s2 + $0x88] sm:$0xff]  ;;  %v376_v41 = vld [vmem:[%s3176_s2 + $0x98] sm:$0xff] }
   0xa   :  { %1824 = vmatmul.mubr.msk.f32.vlgmr.msra.gmra.mrb[0].mxu1 %vm72_vm0, %v34_v12  ;;  %1843 = vmatpush1.bf16.msra.mxu0 %v2514_v22  ;;  %v371_v37 = vld [vmem:[%s3176_s2 + $0x70] sm:$0xff]  ;;  %v378_v40 = vld [vmem:[%s3176_s2 + $0xa8] sm:$0xff]  ;;  %v380_v43 = vld [vmem:[%s3176_s2 + $0xb8] sm:$0xff] }
   0xb   :  { %1875 = vmatpush1.bf16.msra.mxu1 %v2523_v25  ;;  %167 = vmatprep.mubr.f32.mxu0 %v2417_v3  ;;  %v2564_v38 = vpack.c.bf16 %v371_v37, %v367_v36  ;;  %v2577_v42 = vpack.c.bf16 %v378_v40, %v374_v39  ;;  %v373_v44 = vld [vmem:[%s3176_s2 + $0x80] sm:$0xff]  ;;  %v36_v46 = vld [vmem:[%s3175_s0 + $0x10] sm:$0xff]  ;;  %v2593_v47 = vpack.c.bf16 %v380_v43, %v376_v41  ;;  %v382_v51 = vld [vmem:[%s3176_s2 + $0xc8] sm:$0xff] }
   0xc   :  { %280 = vmatprep.mubr.f32.mxu1 %v2417_v3  ;;  %1845 = vmatprep.subr.bf16.mxu0 %v2536_v29  ;;  %v377_v45 = vld [vmem:[%s3176_s2 + $0xa0] sm:$0xff]  ;;  %v375_v48 = vld [vmem:[%s3176_s2 + $0x90] sm:$0xff]  ;;  %v386_v52 = vld [vmem:[%s3176_s2 + $0xe8] sm:$0xff] }
   0xd   :  { %1817 = vmatmul.mubr.msk.f32.gmra.mrb[2].mxu0 %vm72_vm0, %v35_v33  ;;  %1877 = vmatprep.subr.bf16.mxu1 %v2552_v34  ;;  %v379_v49 = vld [vmem:[%s3176_s2 + $0xb0] sm:$0xff]  ;;  %v2603_v50 = vpack.c.bf16 %v377_v45, %v373_v44  ;;  %v384_v53 = vld [vmem:[%s3176_s2 + $0xd8] sm:$0xff]  ;;  %v381_v56 = vld [vmem:[%s3176_s2 + $0xc0] sm:$0xff]  ;;  %v2629_v58 = vpack.c.bf16 %v386_v52, %v382_v51 }
   0xe   :  { %1825 = vmatmul.mubr.msk.f32.gmra.mrb[2].mxu1 %vm72_vm0, %v35_v33  ;;  %1847 = vmatpush1.bf16.msra.mxu0 %v2554_v35  ;;  %v2616_v54 = vpack.c.bf16 %v379_v49, %v375_v48  ;;  %v388_v55 = vld [vmem:[%s3176_s2 + $0xf8] sm:$0xff]  ;;  %v385_v57 = vld [vmem:[%s3176_s2 + $0xe0] sm:$0xff]  ;;  %v383_v59 = vld [vmem:[%s3176_s2 + $0xd0] sm:$0xff] }
   0xf   :  { %1879 = vmatpush1.bf16.msra.mxu1 %v2564_v38  ;;  %173 = vmatprep.mubr.f32.mxu0 %v2417_v3  ;;  %v387_v60 = vld [vmem:[%s3176_s2 + $0xf0] sm:$0xff]  ;;  %v2639_v61 = vpack.c.bf16 %v388_v55, %v384_v53  ;;  %v390_v62 = vld [vmem:[%s3176_s2 + $0x108] sm:$0xff]  ;;  %v37_v0 = vld [vmem:[%s3175_s0 + $0x18] sm:$0xff]  ;;  %v2652_v1 = vpack.c.bf16 %v385_v57, %v381_v56 }
  0x10   :  { %286 = vmatprep.mubr.f32.mxu1 %v2417_v3  ;;  %1849 = vmatprep.subr.bf16.mxu0 %v2577_v42  ;;  %v394_v63 = vld [vmem:[%s3176_s2 + $0x128] sm:$0xff]  ;;  %v392_v2 = vld [vmem:[%s3176_s2 + $0x118] sm:$0xff]  ;;  %v2662_v5 = vpack.c.bf16 %v387_v60, %v383_v59  ;;  %v389_v6 = vld [vmem:[%s3176_s2 + $0x100] sm:$0xff] }
  0x11   :  { %1818 = vmatmul.mubr.msk.f32.gmra.mrb[4].mxu0 %vm72_vm0, %v36_v46  ;;  %1881 = vmatprep.subr.bf16.mxu1 %v2593_v47  ;;  %v396_v4 = vld [vmem:[%s3176_s2 + $0x138] sm:$0xff]  ;;  %v393_v7 = vld [vmem:[%s3176_s2 + $0x120] sm:$0xff]  ;;  %v2672_v8 = vpack.c.bf16 %v394_v63, %v390_v62  ;;  %v391_v9 = vld [vmem:[%s3176_s2 + $0x110] sm:$0xff] }
  0x12   :  { %1826 = vmatmul.mubr.msk.f32.gmra.mrb[4].mxu1 %vm72_vm0, %v36_v46  ;;  %1851 = vmatpush1.bf16.msra.mxu0 %v2603_v50  ;;  %v395_v10 = vld [vmem:[%s3176_s2 + $0x130] sm:$0xff]  ;;  %v2682_v11 = vpack.c.bf16 %v396_v4, %v392_v2  ;;  %v398_v12 = vld [vmem:[%s3176_s2 + $0x148] sm:$0xff]  ;;  %v38_v14 = vld [vmem:[%s3175_s0 + $0x20] sm:$0xff]  ;;  %v2695_v15 = vpack.c.bf16 %v393_v7, %v389_v6 }
  0x13   :  { %1883 = vmatpush1.bf16.msra.mxu1 %v2616_v54  ;;  %179 = vmatprep.mubr.f32.mxu0 %v2417_v3  ;;  %v402_v13 = vld [vmem:[%s3176_s2 + $0x168] sm:$0xff]  ;;  %v400_v16 = vld [vmem:[%s3176_s2 + $0x158] sm:$0xff]  ;;  %v2705_v19 = vpack.c.bf16 %v395_v10, %v391_v9  ;;  %v397_v20 = vld [vmem:[%s3176_s2 + $0x140] sm:$0xff]  ;;  %v52_v9 = vlaneseq }
  0x14   :  { %292 = vmatprep.mubr.f32.mxu1 %v2417_v3  ;;  %1853 = vmatprep.subr.bf16.mxu0 %v2629_v58  ;;  %v404_v18 = vld [vmem:[%s3176_s2 + $0x178] sm:$0xff]  ;;  %v401_v23 = vld [vmem:[%s3176_s2 + $0x160] sm:$0xff]  ;;  %v2715_v24 = vpack.c.bf16 %v402_v13, %v398_v12  ;;  %v399_v26 = vld [vmem:[%s3176_s2 + $0x150] sm:$0xff] }
  0x15   :  { %1819 = vmatmul.mubr.msk.f32.gmra.mrb[6].mxu0 %vm72_vm0, %v37_v0  ;;  %1885 = vmatprep.subr.bf16.mxu1 %v2639_v61  ;;  %v403_v27 = vld [vmem:[%s3176_s2 + $0x170] sm:$0xff]  ;;  %v2725_v28 = vpack.c.bf16 %v404_v18, %v400_v16  ;;  %v406_v30 = vld [vmem:[%s3176_s2 + $0x188] sm:$0xff]  ;;  %v2738_v33 = vpack.c.bf16 %v401_v23, %v397_v20  ;;  %v408_v36 = vld [vmem:[%s3176_s2 + $0x198] sm:$0xff]  ;;  %v53_v10 = vshrl.u32 %v52_v9, 7 }
  0x16   :  { %1827 = vmatmul.mubr.msk.f32.gmra.mrb[6].mxu1 %vm72_vm0, %v37_v0  ;;  %1855 = vmatpush1.bf16.msra.mxu0 %v2652_v1  ;;  %v410_v31 = vld [vmem:[%s3176_s2 + $0x1a8] sm:$0xff]  ;;  %v412_v37 = vld [vmem:[%s3176_s2 + $0x1b8] sm:$0xff]  ;;  %v2748_v39 = vpack.c.bf16 %v403_v27, %v399_v26  ;;  %v405_v40 = vld [vmem:[%s3176_s2 + $0x180] sm:$0xff] }
  0x17   :  { %1887 = vmatpush1.bf16.msra.mxu1 %v2662_v5  ;;  %185 = vmatprep.mubr.f32.mxu0 %v2417_v3  ;;  %v39_v32 = vld [vmem:[%s3175_s0 + $0x28] sm:$0xff]  ;;  %v409_v41 = vld [vmem:[%s3176_s2 + $0x1a0] sm:$0xff]  ;;  %v2758_v43 = vpack.c.bf16 %v410_v31, %v406_v30  ;;  %v407_v44 = vld [vmem:[%s3176_s2 + $0x190] sm:$0xff]  ;;  %v2768_v46 = vpack.c.bf16 %v412_v37, %v408_v36  ;;  %v54_v12 = vsub.s32 0, %v53_v10  ;;  %v62_v18 = vsub.s32 2, %v53_v10 }
  0x18   :  { %298 = vmatprep.mubr.f32.mxu1 %v2417_v3  ;;  %1857 = vmatprep.subr.bf16.mxu0 %v2672_v8  ;;  %v411_v45 = vld [vmem:[%s3176_s2 + $0x1b0] sm:$0xff]  ;;  %v414_v48 = vld [vmem:[%s3176_s2 + $0x1c8] sm:$0xff]  ;;  %v2781_v52 = vpack.c.bf16 %v409_v41, %v405_v40  ;;  %v416_v53 = vld [vmem:[%s3176_s2 + $0x1d8] sm:$0xff]  ;;  %v66_v23 = vsub.s32 3, %v53_v10 }
  0x19   :  { %1820 = vmatmul.mubr.msk.f32.gmra.mrb[8].mxu0 %vm72_vm0, %v38_v14  ;;  %1889 = vmatprep.subr.bf16.mxu1 %v2682_v11  ;;  %v418_v49 = vld [vmem:[%s3176_s2 + $0x1e8] sm:$0xff]  ;;  %v40_v51 = vld [vmem:[%s3175_s0 + $0x30] sm:$0xff]  ;;  %v420_v55 = vld [vmem:[%s3176_s2 + $0x1f8] sm:$0xff]  ;;  %v2791_v56 = vpack.c.bf16 %v411_v45, %v407_v44 }
  0x1a   :  { %1828 = vmatmul.mubr.msk.f32.gmra.mrb[8].mxu1 %vm72_vm0, %v38_v14  ;;  %1859 = vmatpush1.bf16.msra.mxu0 %v2695_v15  ;;  %v413_v57 = vld [vmem:[%s3176_s2 + $0x1c0] sm:$0xff]  ;;  %v2801_v60 = vpack.c.bf16 %v418_v49, %v414_v48  ;;  %v415_v62 = vld [vmem:[%s3176_s2 + $0x1d0] sm:$0xff]  ;;  %v2811_v0 = vpack.c.bf16 %v420_v55, %v416_v53  ;;  %v41_v2 = vld [vmem:[%s3175_s0 + $0x38] sm:$0xff]  ;;  %v58_v14 = vsub.s32 1, %v53_v10 }
  0x1b   :  { %1891 = vmatpush1.bf16.msra.mxu1 %v2705_v19  ;;  %191 = vmatprep.mubr.f32.mxu0 %v2417_v3  ;;  %v417_v59 = vld [vmem:[%s3176_s2 + $0x1e0] sm:$0xff]  ;;  %v419_v63 = vld [vmem:[%s3176_s2 + $0x1f0] sm:$0xff] }
  0x1c   :  { %304 = vmatprep.mubr.f32.mxu1 %v2417_v3  ;;  %1861 = vmatprep.subr.bf16.mxu0 %v2715_v24  ;;  %v2818_v4 = vpack.c.bf16 %v417_v59, %v413_v57  ;;  %v2822_v6 = vpack.c.bf16 %v419_v63, %v415_v62  ;;  %v30_v7 = vld [vmem:[%s3177_s4] sm:$0xff] }
  0x1d   :  { %1821 = vmatmul.mubr.msk.f32.gmra.mrb[10].mxu0 %vm72_vm0, %v39_v32  ;;  %1893 = vmatprep.subr.bf16.mxu1 %v2725_v28  ;;  %v50_v13 = vld [vmem:[%s3178_s3] sm:$0xf] }
  0x1e   :  { %1829 = vmatmul.mubr.msk.f32.gmra.mrb[10].mxu1 %vm72_vm0, %v39_v32  ;;  %1863 = vmatpush1.bf16.msra.mxu0 %v2738_v33  ;;  %v2875_v16 = vrot.slane %v50_v13, %v54_v12  ;;  %v2877_v20 = vrot.slane %v50_v13, %v58_v14  ;;  %v2880_v30 = vrot.slane %v50_v13, %v62_v18  ;;  %v32_v62 = vld [vmem:[%s3179_s5] sm:$0xff] }
  0x1f   :  { %1895 = vmatpush1.bf16.msra.mxu1 %v2748_v39  ;;  %197 = vmatprep.mubr.f32.mxu0 %v2417_v3  ;;  %v2883_v37 = vrot.slane %v50_v13, %v66_v23 }
  0x20   :  { %310 = vmatprep.mubr.f32.mxu1 %v2417_v3  ;;  %1865 = vmatprep.subr.bf16.mxu0 %v2758_v43 }
  0x21   :  { %1822 = vmatmul.mubr.msk.f32.gmra.mrb[12].mxu0 %vm72_vm0, %v40_v51  ;;  %1897 = vmatprep.subr.bf16.mxu1 %v2768_v46 }
  0x22   :  { %1830 = vmatmul.mubr.msk.f32.gmra.mrb[12].mxu1 %vm72_vm0, %v40_v51  ;;  %1867 = vmatpush1.bf16.msra.mxu0 %v2781_v52 }
  0x23   :  { %1899 = vmatpush1.bf16.msra.mxu1 %v2791_v56  ;;  %203 = vmatprep.mubr.f32.mxu0 %v2417_v3 }
  0x24   :  { %316 = vmatprep.mubr.f32.mxu1 %v2417_v3  ;;  %1869 = vmatprep.subr.bf16.mxu0 %v2801_v60 }
  0x25   :  { %1823 = vmatmul.mubr.msk.f32.gmra.mrb[14].mxu0 %vm72_vm0, %v41_v2  ;;  %1901 = vmatprep.subr.bf16.mxu1 %v2811_v0 }
  0x26   :  { %1831 = vmatmul.mubr.msk.f32.gmra.mrb[14].mxu1 %vm72_vm0, %v41_v2  ;;  %1871 = vmatpush1.bf16.msra.mxu0 %v2818_v4 }
  0x27   :  { %1903 = vmatpush1.bf16.msra.mxu1 %v2822_v6  ;;  %489 = vmatprep.mubr.f32.mxu0 %v2417_v3 }
  0x28   :  { %560 = vmatprep.mubr.f32.mxu1 %v2417_v3  ;;  %1905 = vmatprep.subr.bf16.mxu0 %v2501_v17 }
  0x29   :  { %490 = vmatmul.mubr.f32.vlgmr.msra.gmra.mrb[0].mxu0 %v30_v7  ;;  %1937 = vmatprep.subr.bf16.mxu1 %v2512_v21 }
  0x2a   :  { %561 = vmatmul.mubr.f32.vlgmr.msra.gmra.mrb[0].mxu1 %v30_v7  ;;  %1907 = vmatpush1.bf16.msra.mxu0 %v2514_v22 }
  0x2b   :  { %1939 = vmatpush1.bf16.msra.mxu1 %v2523_v25  ;;  %1909 = vmatprep.subr.bf16.mxu0 %v2536_v29 }
  0x2c   :  { %1941 = vmatprep.subr.bf16.mxu1 %v2552_v34  ;;  %661 = vmatprep.mubr.f32.mxu0 %v2417_v3 }
  0x2d   :  { %732 = vmatprep.mubr.f32.mxu1 %v2417_v3 }
  0x2e   :  { %1911 = vmatpush1.bf16.msra.mxu0 %v2554_v35 }
  0x2f   :  { %1943 = vmatpush1.bf16.msra.mxu1 %v2564_v38  ;;  %1913 = vmatprep.subr.bf16.mxu0 %v2577_v42 }
  0x30   :  { %1945 = vmatprep.subr.bf16.mxu1 %v2593_v47 }
  0x32   :  { %1915 = vmatpush1.bf16.msra.mxu0 %v2603_v50 }
  0x33   :  { %1947 = vmatpush1.bf16.msra.mxu1 %v2616_v54  ;;  %1917 = vmatprep.subr.bf16.mxu0 %v2629_v58 }
  0x34   :  { %1949 = vmatprep.subr.bf16.mxu1 %v2639_v61 }
  0x36   :  { %1919 = vmatpush1.bf16.msra.mxu0 %v2652_v1 }
  0x37   :  { %1951 = vmatpush1.bf16.msra.mxu1 %v2662_v5  ;;  %1921 = vmatprep.subr.bf16.mxu0 %v2672_v8 }
  0x38   :  { %1953 = vmatprep.subr.bf16.mxu1 %v2682_v11 }
  0x3a   :  { %1923 = vmatpush1.bf16.msra.mxu0 %v2695_v15 }
  0x3b   :  { %1955 = vmatpush1.bf16.msra.mxu1 %v2705_v19  ;;  %1925 = vmatprep.subr.bf16.mxu0 %v2715_v24 }
  0x3c   :  { %1957 = vmatprep.subr.bf16.mxu1 %v2725_v28 }
  0x3e   :  { %1927 = vmatpush1.bf16.msra.mxu0 %v2738_v33 }
  0x3f   :  { %1959 = vmatpush1.bf16.msra.mxu1 %v2748_v39  ;;  %1929 = vmatprep.subr.bf16.mxu0 %v2758_v43 }
  0x40   :  { %1961 = vmatprep.subr.bf16.mxu1 %v2768_v46 }
  0x42   :  { %1931 = vmatpush1.bf16.msra.mxu0 %v2781_v52 }
  0x43   :  { %1963 = vmatpush1.bf16.msra.mxu1 %v2791_v56  ;;  %1933 = vmatprep.subr.bf16.mxu0 %v2801_v60 }
  0x44   :  { %1965 = vmatprep.subr.bf16.mxu1 %v2811_v0 }
  0x46   :  { %1935 = vmatpush1.bf16.msra.mxu0 %v2818_v4 }
  0x47   :  { %1967 = vmatpush1.bf16.msra.mxu1 %v2822_v6  ;;  %1969 = vmatprep.subr.bf16.mxu0 %v2501_v17 }
  0x48   :  { %2001 = vmatprep.subr.bf16.mxu1 %v2512_v21 }
  0xfc   :  { %v491_v26 = vpop.f32.mrb[0].mxu0 }
  0xfd   :  { %v2352_v27 = vadd.f32 %v491_v26, %v2875_v16  ;;  %v562_v31 = vpop.f32.mrb[0].mxu1  ;;  %v493_v32 = vpop.f32.mrb[1].mxu0 }
  0xfe   :  { %v2353_v36 = vadd.f32 %v493_v32, %v2877_v20  ;;  %v564_v40 = vpop.f32.mrb[1].mxu1  ;;  %v2368_v48 = vadd.f32 %v562_v31, %v2880_v30 }
  0xff   :  { %v571_v41 = vmul.f32 0.25, %v2352_v27  ;;  %v2369_v51 = vadd.f32 %v564_v40, %v2883_v37 }
 0x100   :  { %v575_v44 = vmul.f32 0.25, %v2353_v36  ;;  %v579_v59 = vmax.f32 %v2368_v48, 0.0 }
 0x101   :  { %v572_v45 = vadd.f32 0.5, %v571_v41  ;;  %v580_v2 = vmul.f32 0.25, %v2369_v51 }
 0x102   :  { %v576_v49 = vadd.f32 0.5, %v575_v44 }
 0x103   :  { %v573_v53 = vmax.f32 %v572_v45, 0.0  ;;  %v581_v12 = vadd.f32 0.5, %v580_v2 }
 0x104   :  { %v577_v55 = vmax.f32 %v576_v49, 0.0 }
 0x105   :  { %v574_v57 = vmin.f32 %v573_v53, 1.0  ;;  %v582_v14 = vmax.f32 %v581_v12, 0.0 }
 0x106   :  { %v578_v63 = vmin.f32 %v577_v55, 1.0 }
 0x107   :  { %v585_v7 = vmul.f32 %v579_v59, %v574_v57  ;;  %v583_v26 = vmin.f32 %v582_v14, 1.0 }
 0x108   :  { %v584_v9 = vmul.f32 %v578_v63, %v32_v62 }
 0x10a   :  { %v2890_v10 = vadd.f32 %v585_v7, %v584_v9 }
 0x10c   :  { %v587_v13 = vmul.f32 0.25, %v2890_v10 }
 0x10e   :  { %v588_v18 = vadd.f32 0.5, %v587_v13 }
 0x110   :  { %v589_v23 = vmax.f32 %v588_v18, 0.0 }
 0x112   :  { %v590_v27 = vmin.f32 %v589_v23, 1.0 }
 0x114   :  { %v591_v31 = vmul.f32 %v590_v27, %v583_v26 }
 0x116   :  { %592 = vst [vmem:[%s3180_s6] sm:$0xff] %v591_v31  ;;  %662 = vmatmul.mubr.f32.vlgmr.msra.gmra.mrb[2].mxu0 %v591_v31  ;;  %733 = vmatmul.mubr.f32.vlgmr.msra.gmra.mrb[2].mxu1 %v591_v31 }
 0x117   :  { %1971 = vmatpush1.bf16.msra.mxu0 %v2514_v22  ;;  %2003 = vmatpush1.bf16.msra.mxu1 %v2523_v25 }
 0x118   :  { %1973 = vmatprep.subr.bf16.mxu0 %v2536_v29  ;;  %2005 = vmatprep.subr.bf16.mxu1 %v2552_v34 }
 0x119   :  { %833 = vmatprep.mubr.f32.mxu0 %v2417_v3  ;;  %904 = vmatprep.mubr.f32.mxu1 %v2417_v3 }
 0x11b   :  { %1975 = vmatpush1.bf16.msra.mxu0 %v2554_v35  ;;  %2007 = vmatpush1.bf16.msra.mxu1 %v2564_v38 }
 0x11c   :  { %1977 = vmatprep.subr.bf16.mxu0 %v2577_v42  ;;  %2009 = vmatprep.subr.bf16.mxu1 %v2593_v47 }
 0x11f   :  { %1979 = vmatpush1.bf16.msra.mxu0 %v2603_v50  ;;  %2011 = vmatpush1.bf16.msra.mxu1 %v2616_v54 }
 0x120   :  { %1981 = vmatprep.subr.bf16.mxu0 %v2629_v58  ;;  %2013 = vmatprep.subr.bf16.mxu1 %v2639_v61 }
 0x123   :  { %1983 = vmatpush1.bf16.msra.mxu0 %v2652_v1  ;;  %2015 = vmatpush1.bf16.msra.mxu1 %v2662_v5 }
 0x124   :  { %1985 = vmatprep.subr.bf16.mxu0 %v2672_v8  ;;  %2017 = vmatprep.subr.bf16.mxu1 %v2682_v11 }
 0x127   :  { %1987 = vmatpush1.bf16.msra.mxu0 %v2695_v15  ;;  %2019 = vmatpush1.bf16.msra.mxu1 %v2705_v19 }
 0x128   :  { %1989 = vmatprep.subr.bf16.mxu0 %v2715_v24  ;;  %2021 = vmatprep.subr.bf16.mxu1 %v2725_v28 }
 0x12b   :  { %1991 = vmatpush1.bf16.msra.mxu0 %v2738_v33  ;;  %2023 = vmatpush1.bf16.msra.mxu1 %v2748_v39 }
 0x12c   :  { %1993 = vmatprep.subr.bf16.mxu0 %v2758_v43  ;;  %2025 = vmatprep.subr.bf16.mxu1 %v2768_v46 }
 0x12f   :  { %1995 = vmatpush1.bf16.msra.mxu0 %v2781_v52  ;;  %2027 = vmatpush1.bf16.msra.mxu1 %v2791_v56 }
 0x130   :  { %1997 = vmatprep.subr.bf16.mxu0 %v2801_v60  ;;  %2029 = vmatprep.subr.bf16.mxu1 %v2811_v0 }
 0x133   :  { %1999 = vmatpush1.bf16.msra.mxu0 %v2818_v4  ;;  %2031 = vmatpush1.bf16.msra.mxu1 %v2822_v6 }
 0x134   :  { %2033 = vmatprep.subr.bf16.mxu0 %v2501_v17  ;;  %2065 = vmatprep.subr.bf16.mxu1 %v2512_v21 }
 0x1e9   :  { %v663_v32 = vpop.f32.mrb[2].mxu0  ;;  %v734_v36 = vpop.f32.mrb[2].mxu1 }
 0x1ea   :  { %v2354_v40 = vadd.f32 %v663_v32, %v2875_v16  ;;  %v665_v41 = vpop.f32.mrb[3].mxu0  ;;  %v736_v44 = vpop.f32.mrb[3].mxu1  ;;  %v2370_v53 = vadd.f32 %v734_v36, %v2880_v30 }
 0x1eb   :  { %v2355_v45 = vadd.f32 %v665_v41, %v2877_v20  ;;  %v2371_v57 = vadd.f32 %v736_v44, %v2883_v37 }
 0x1ec   :  { %v743_v48 = vmul.f32 0.25, %v2354_v40  ;;  %v751_v2 = vmax.f32 %v2370_v53, 0.0 }
 0x1ed   :  { %v747_v49 = vmul.f32 0.25, %v2355_v45  ;;  %v752_v9 = vmul.f32 0.25, %v2371_v57 }
 0x1ee   :  { %v744_v51 = vadd.f32 0.5, %v743_v48 }
 0x1ef   :  { %v748_v55 = vadd.f32 0.5, %v747_v49  ;;  %v753_v18 = vadd.f32 0.5, %v752_v9 }
 0x1f0   :  { %v745_v59 = vmax.f32 %v744_v51, 0.0 }
 0x1f1   :  { %v749_v62 = vmax.f32 %v748_v55, 0.0  ;;  %v754_v26 = vmax.f32 %v753_v18, 0.0 }
 0x1f2   :  { %v746_v63 = vmin.f32 %v745_v59, 1.0 }
 0x1f3   :  { %v750_v7 = vmin.f32 %v749_v62, 1.0  ;;  %v755_v32 = vmin.f32 %v754_v26, 1.0 }
 0x1f4   :  { %v757_v12 = vmul.f32 %v751_v2, %v746_v63 }
 0x1f5   :  { %v756_v13 = vmul.f32 %v750_v7, %v2890_v10 }
 0x1f7   :  { %v2935_v14 = vadd.f32 %v757_v12, %v756_v13 }
 0x1f9   :  { %v759_v23 = vmul.f32 0.25, %v2935_v14 }
 0x1fb   :  { %v760_v27 = vadd.f32 0.5, %v759_v23 }
 0x1fd   :  { %v761_v31 = vmax.f32 %v760_v27, 0.0 }
 0x1ff   :  { %v762_v36 = vmin.f32 %v761_v31, 1.0 }
 0x201   :  { %v763_v40 = vmul.f32 %v762_v36, %v755_v32 }
 0x203   :  { %764 = vst [vmem:[%s3180_s6 + $0x8] sm:$0xff] %v763_v40  ;;  %834 = vmatmul.mubr.f32.vlgmr.msra.gmra.mrb[4].mxu0 %v763_v40  ;;  %905 = vmatmul.mubr.f32.vlgmr.msra.gmra.mrb[4].mxu1 %v763_v40 }
 0x204   :  { %2035 = vmatpush1.bf16.msra.mxu0 %v2514_v22  ;;  %2067 = vmatpush1.bf16.msra.mxu1 %v2523_v25 }
 0x205   :  { %2037 = vmatprep.subr.bf16.mxu0 %v2536_v29  ;;  %2069 = vmatprep.subr.bf16.mxu1 %v2552_v34 }
 0x206   :  { %1005 = vmatprep.mubr.f32.mxu0 %v2417_v3  ;;  %1076 = vmatprep.mubr.f32.mxu1 %v2417_v3 }
 0x208   :  { %2039 = vmatpush1.bf16.msra.mxu0 %v2554_v35  ;;  %2071 = vmatpush1.bf16.msra.mxu1 %v2564_v38 }
 0x209   :  { %2041 = vmatprep.subr.bf16.mxu0 %v2577_v42  ;;  %2073 = vmatprep.subr.bf16.mxu1 %v2593_v47 }
 0x20c   :  { %2043 = vmatpush1.bf16.msra.mxu0 %v2603_v50  ;;  %2075 = vmatpush1.bf16.msra.mxu1 %v2616_v54 }
 0x20d   :  { %2045 = vmatprep.subr.bf16.mxu0 %v2629_v58  ;;  %2077 = vmatprep.subr.bf16.mxu1 %v2639_v61 }
 0x210   :  { %2047 = vmatpush1.bf16.msra.mxu0 %v2652_v1  ;;  %2079 = vmatpush1.bf16.msra.mxu1 %v2662_v5 }
 0x211   :  { %2049 = vmatprep.subr.bf16.mxu0 %v2672_v8  ;;  %2081 = vmatprep.subr.bf16.mxu1 %v2682_v11 }
 0x214   :  { %2051 = vmatpush1.bf16.msra.mxu0 %v2695_v15  ;;  %2083 = vmatpush1.bf16.msra.mxu1 %v2705_v19 }
 0x215   :  { %2053 = vmatprep.subr.bf16.mxu0 %v2715_v24  ;;  %2085 = vmatprep.subr.bf16.mxu1 %v2725_v28 }
 0x218   :  { %2055 = vmatpush1.bf16.msra.mxu0 %v2738_v33  ;;  %2087 = vmatpush1.bf16.msra.mxu1 %v2748_v39 }
 0x219   :  { %2057 = vmatprep.subr.bf16.mxu0 %v2758_v43  ;;  %2089 = vmatprep.subr.bf16.mxu1 %v2768_v46 }
 0x21c   :  { %2059 = vmatpush1.bf16.msra.mxu0 %v2781_v52  ;;  %2091 = vmatpush1.bf16.msra.mxu1 %v2791_v56 }
 0x21d   :  { %2061 = vmatprep.subr.bf16.mxu0 %v2801_v60  ;;  %2093 = vmatprep.subr.bf16.mxu1 %v2811_v0 }
 0x220   :  { %2063 = vmatpush1.bf16.msra.mxu0 %v2818_v4  ;;  %2095 = vmatpush1.bf16.msra.mxu1 %v2822_v6 }
 0x221   :  { %2097 = vmatprep.subr.bf16.mxu0 %v2501_v17  ;;  %2129 = vmatprep.subr.bf16.mxu1 %v2512_v21 }
 0x2d6   :  { %v835_v10 = vpop.f32.mrb[4].mxu0  ;;  %v906_v41 = vpop.f32.mrb[4].mxu1 }
 0x2d7   :  { %v2356_v44 = vadd.f32 %v835_v10, %v2875_v16  ;;  %v837_v45 = vpop.f32.mrb[5].mxu0  ;;  %v908_v48 = vpop.f32.mrb[5].mxu1  ;;  %v2372_v57 = vadd.f32 %v906_v41, %v2880_v30 }
 0x2d8   :  { %v2357_v49 = vadd.f32 %v837_v45, %v2877_v20  ;;  %v2373_v62 = vadd.f32 %v908_v48, %v2883_v37 }
 0x2d9   :  { %v915_v51 = vmul.f32 0.25, %v2356_v44  ;;  %v923_v9 = vmax.f32 %v2372_v57, 0.0 }
 0x2da   :  { %v919_v53 = vmul.f32 0.25, %v2357_v49  ;;  %v924_v13 = vmul.f32 0.25, %v2373_v62 }
 0x2db   :  { %v916_v55 = vadd.f32 0.5, %v915_v51 }
 0x2dc   :  { %v920_v59 = vadd.f32 0.5, %v919_v53  ;;  %v925_v27 = vadd.f32 0.5, %v924_v13 }
 0x2dd   :  { %v917_v63 = vmax.f32 %v916_v55, 0.0 }
 0x2de   :  { %v921_v2 = vmax.f32 %v920_v59, 0.0  ;;  %v926_v32 = vmax.f32 %v925_v27, 0.0 }
 0x2df   :  { %v918_v7 = vmin.f32 %v917_v63, 1.0 }
 0x2e0   :  { %v922_v12 = vmin.f32 %v921_v2, 1.0  ;;  %v927_v10 = vmin.f32 %v926_v32, 1.0 }
 0x2e1   :  { %v929_v18 = vmul.f32 %v923_v9, %v918_v7 }
 0x2e2   :  { %v928_v23 = vmul.f32 %v922_v12, %v2935_v14 }
 0x2e4   :  { %v2980_v26 = vadd.f32 %v929_v18, %v928_v23 }
 0x2e6   :  { %v931_v31 = vmul.f32 0.25, %v2980_v26 }
 0x2e8   :  { %v932_v36 = vadd.f32 0.5, %v931_v31 }
 0x2ea   :  { %v933_v40 = vmax.f32 %v932_v36, 0.0 }
 0x2ec   :  { %v934_v41 = vmin.f32 %v933_v40, 1.0 }
 0x2ee   :  { %v935_v44 = vmul.f32 %v934_v41, %v927_v10 }
 0x2f0   :  { %936 = vst [vmem:[%s3180_s6 + $0x10] sm:$0xff] %v935_v44  ;;  %1006 = vmatmul.mubr.f32.vlgmr.msra.gmra.mrb[6].mxu0 %v935_v44  ;;  %1077 = vmatmul.mubr.f32.vlgmr.msra.gmra.mrb[6].mxu1 %v935_v44 }
 0x2f1   :  { %2099 = vmatpush1.bf16.msra.mxu0 %v2514_v22  ;;  %2131 = vmatpush1.bf16.msra.mxu1 %v2523_v25 }
 0x2f2   :  { %2101 = vmatprep.subr.bf16.mxu0 %v2536_v29  ;;  %2133 = vmatprep.subr.bf16.mxu1 %v2552_v34 }
 0x2f3   :  { %1177 = vmatprep.mubr.f32.mxu0 %v2417_v3  ;;  %1248 = vmatprep.mubr.f32.mxu1 %v2417_v3 }
 0x2f5   :  { %2103 = vmatpush1.bf16.msra.mxu0 %v2554_v35  ;;  %2135 = vmatpush1.bf16.msra.mxu1 %v2564_v38 }
 0x2f6   :  { %2105 = vmatprep.subr.bf16.mxu0 %v2577_v42  ;;  %2137 = vmatprep.subr.bf16.mxu1 %v2593_v47 }
 0x2f9   :  { %2107 = vmatpush1.bf16.msra.mxu0 %v2603_v50  ;;  %2139 = vmatpush1.bf16.msra.mxu1 %v2616_v54 }
 0x2fa   :  { %2109 = vmatprep.subr.bf16.mxu0 %v2629_v58  ;;  %2141 = vmatprep.subr.bf16.mxu1 %v2639_v61 }
 0x2fd   :  { %2111 = vmatpush1.bf16.msra.mxu0 %v2652_v1  ;;  %2143 = vmatpush1.bf16.msra.mxu1 %v2662_v5 }
 0x2fe   :  { %2113 = vmatprep.subr.bf16.mxu0 %v2672_v8  ;;  %2145 = vmatprep.subr.bf16.mxu1 %v2682_v11 }
 0x301   :  { %2115 = vmatpush1.bf16.msra.mxu0 %v2695_v15  ;;  %2147 = vmatpush1.bf16.msra.mxu1 %v2705_v19 }
 0x302   :  { %2117 = vmatprep.subr.bf16.mxu0 %v2715_v24  ;;  %2149 = vmatprep.subr.bf16.mxu1 %v2725_v28 }
 0x305   :  { %2119 = vmatpush1.bf16.msra.mxu0 %v2738_v33  ;;  %2151 = vmatpush1.bf16.msra.mxu1 %v2748_v39 }
 0x306   :  { %2121 = vmatprep.subr.bf16.mxu0 %v2758_v43  ;;  %2153 = vmatprep.subr.bf16.mxu1 %v2768_v46 }
 0x309   :  { %2123 = vmatpush1.bf16.msra.mxu0 %v2781_v52  ;;  %2155 = vmatpush1.bf16.msra.mxu1 %v2791_v56 }
 0x30a   :  { %2125 = vmatprep.subr.bf16.mxu0 %v2801_v60  ;;  %2157 = vmatprep.subr.bf16.mxu1 %v2811_v0 }
 0x30d   :  { %2127 = vmatpush1.bf16.msra.mxu0 %v2818_v4  ;;  %2159 = vmatpush1.bf16.msra.mxu1 %v2822_v6 }
 0x30e   :  { %2161 = vmatprep.subr.bf16.mxu0 %v2501_v17  ;;  %2193 = vmatprep.subr.bf16.mxu1 %v2512_v21 }
 0x3c3   :  { %v1007_v14 = vpop.f32.mrb[6].mxu0  ;;  %v1078_v45 = vpop.f32.mrb[6].mxu1 }
 0x3c4   :  { %v2358_v48 = vadd.f32 %v1007_v14, %v2875_v16  ;;  %v1009_v49 = vpop.f32.mrb[7].mxu0  ;;  %v1080_v51 = vpop.f32.mrb[7].mxu1  ;;  %v2374_v62 = vadd.f32 %v1078_v45, %v2880_v30 }
 0x3c5   :  { %v2359_v53 = vadd.f32 %v1009_v49, %v2877_v20  ;;  %v2375_v2 = vadd.f32 %v1080_v51, %v2883_v37 }
 0x3c6   :  { %v1087_v55 = vmul.f32 0.25, %v2358_v48  ;;  %v1095_v13 = vmax.f32 %v2374_v62, 0.0 }
 0x3c7   :  { %v1091_v57 = vmul.f32 0.25, %v2359_v53  ;;  %v1096_v23 = vmul.f32 0.25, %v2375_v2 }
 0x3c8   :  { %v1088_v59 = vadd.f32 0.5, %v1087_v55 }
 0x3c9   :  { %v1092_v63 = vadd.f32 0.5, %v1091_v57  ;;  %v1097_v36 = vadd.f32 0.5, %v1096_v23 }
 0x3ca   :  { %v1089_v7 = vmax.f32 %v1088_v59, 0.0 }
 0x3cb   :  { %v1093_v9 = vmax.f32 %v1092_v63, 0.0  ;;  %v1098_v10 = vmax.f32 %v1097_v36, 0.0 }
 0x3cc   :  { %v1090_v12 = vmin.f32 %v1089_v7, 1.0 }
 0x3cd   :  { %v1094_v18 = vmin.f32 %v1093_v9, 1.0  ;;  %v1099_v14 = vmin.f32 %v1098_v10, 1.0 }
 0x3ce   :  { %v1101_v27 = vmul.f32 %v1095_v13, %v1090_v12 }
 0x3cf   :  { %v1100_v31 = vmul.f32 %v1094_v18, %v2980_v26 }
 0x3d1   :  { %v3025_v32 = vadd.f32 %v1101_v27, %v1100_v31 }
 0x3d3   :  { %v1103_v40 = vmul.f32 0.25, %v3025_v32 }
 0x3d5   :  { %v1104_v41 = vadd.f32 0.5, %v1103_v40 }
 0x3d7   :  { %v1105_v44 = vmax.f32 %v1104_v41, 0.0 }
 0x3d9   :  { %v1106_v45 = vmin.f32 %v1105_v44, 1.0 }
 0x3db   :  { %v1107_v48 = vmul.f32 %v1106_v45, %v1099_v14 }
 0x3dd   :  { %1108 = vst [vmem:[%s3180_s6 + $0x18] sm:$0xff] %v1107_v48  ;;  %1178 = vmatmul.mubr.f32.vlgmr.msra.gmra.mrb[8].mxu0 %v1107_v48  ;;  %1249 = vmatmul.mubr.f32.vlgmr.msra.gmra.mrb[8].mxu1 %v1107_v48 }
 0x3de   :  { %2163 = vmatpush1.bf16.msra.mxu0 %v2514_v22  ;;  %2195 = vmatpush1.bf16.msra.mxu1 %v2523_v25 }
 0x3df   :  { %2165 = vmatprep.subr.bf16.mxu0 %v2536_v29  ;;  %2197 = vmatprep.subr.bf16.mxu1 %v2552_v34 }
 0x3e0   :  { %1349 = vmatprep.mubr.f32.mxu0 %v2417_v3  ;;  %1420 = vmatprep.mubr.f32.mxu1 %v2417_v3 }
 0x3e2   :  { %2167 = vmatpush1.bf16.msra.mxu0 %v2554_v35  ;;  %2199 = vmatpush1.bf16.msra.mxu1 %v2564_v38 }
 0x3e3   :  { %2169 = vmatprep.subr.bf16.mxu0 %v2577_v42  ;;  %2201 = vmatprep.subr.bf16.mxu1 %v2593_v47 }
 0x3e6   :  { %2171 = vmatpush1.bf16.msra.mxu0 %v2603_v50  ;;  %2203 = vmatpush1.bf16.msra.mxu1 %v2616_v54 }
 0x3e7   :  { %2173 = vmatprep.subr.bf16.mxu0 %v2629_v58  ;;  %2205 = vmatprep.subr.bf16.mxu1 %v2639_v61 }
 0x3ea   :  { %2175 = vmatpush1.bf16.msra.mxu0 %v2652_v1  ;;  %2207 = vmatpush1.bf16.msra.mxu1 %v2662_v5 }
 0x3eb   :  { %2177 = vmatprep.subr.bf16.mxu0 %v2672_v8  ;;  %2209 = vmatprep.subr.bf16.mxu1 %v2682_v11 }
 0x3ee   :  { %2179 = vmatpush1.bf16.msra.mxu0 %v2695_v15  ;;  %2211 = vmatpush1.bf16.msra.mxu1 %v2705_v19 }
 0x3ef   :  { %2181 = vmatprep.subr.bf16.mxu0 %v2715_v24  ;;  %2213 = vmatprep.subr.bf16.mxu1 %v2725_v28 }
 0x3f2   :  { %2183 = vmatpush1.bf16.msra.mxu0 %v2738_v33  ;;  %2215 = vmatpush1.bf16.msra.mxu1 %v2748_v39 }
 0x3f3   :  { %2185 = vmatprep.subr.bf16.mxu0 %v2758_v43  ;;  %2217 = vmatprep.subr.bf16.mxu1 %v2768_v46 }
 0x3f6   :  { %2187 = vmatpush1.bf16.msra.mxu0 %v2781_v52  ;;  %2219 = vmatpush1.bf16.msra.mxu1 %v2791_v56 }
 0x3f7   :  { %2189 = vmatprep.subr.bf16.mxu0 %v2801_v60  ;;  %2221 = vmatprep.subr.bf16.mxu1 %v2811_v0 }
 0x3fa   :  { %2191 = vmatpush1.bf16.msra.mxu0 %v2818_v4  ;;  %2223 = vmatpush1.bf16.msra.mxu1 %v2822_v6 }
 0x3fb   :  { %2225 = vmatprep.subr.bf16.mxu0 %v2501_v17  ;;  %2257 = vmatprep.subr.bf16.mxu1 %v2512_v21 }
 0x4b0   :  { %v1179_v26 = vpop.f32.mrb[8].mxu0  ;;  %v1250_v49 = vpop.f32.mrb[8].mxu1 }
 0x4b1   :  { %v2360_v51 = vadd.f32 %v1179_v26, %v2875_v16  ;;  %v1181_v53 = vpop.f32.mrb[9].mxu0  ;;  %v1252_v55 = vpop.f32.mrb[9].mxu1  ;;  %v2376_v2 = vadd.f32 %v1250_v49, %v2880_v30 }
 0x4b2   :  { %v2361_v57 = vadd.f32 %v1181_v53, %v2877_v20  ;;  %v2377_v9 = vadd.f32 %v1252_v55, %v2883_v37 }
 0x4b3   :  { %v1259_v59 = vmul.f32 0.25, %v2360_v51  ;;  %v1267_v23 = vmax.f32 %v2376_v2, 0.0 }
 0x4b4   :  { %v1263_v62 = vmul.f32 0.25, %v2361_v57  ;;  %v1268_v31 = vmul.f32 0.25, %v2377_v9 }
 0x4b5   :  { %v1260_v63 = vadd.f32 0.5, %v1259_v59 }
 0x4b6   :  { %v1264_v7 = vadd.f32 0.5, %v1263_v62  ;;  %v1269_v41 = vadd.f32 0.5, %v1268_v31 }
 0x4b7   :  { %v1261_v12 = vmax.f32 %v1260_v63, 0.0 }
 0x4b8   :  { %v1265_v13 = vmax.f32 %v1264_v7, 0.0  ;;  %v1270_v14 = vmax.f32 %v1269_v41, 0.0 }
 0x4b9   :  { %v1262_v18 = vmin.f32 %v1261_v12, 1.0 }
 0x4ba   :  { %v1266_v27 = vmin.f32 %v1265_v13, 1.0  ;;  %v1271_v26 = vmin.f32 %v1270_v14, 1.0 }
 0x4bb   :  { %v1273_v36 = vmul.f32 %v1267_v23, %v1262_v18 }
 0x4bc   :  { %v1272_v40 = vmul.f32 %v1266_v27, %v3025_v32 }
 0x4be   :  { %v3070_v10 = vadd.f32 %v1273_v36, %v1272_v40 }
 0x4c0   :  { %v1275_v44 = vmul.f32 0.25, %v3070_v10 }
 0x4c2   :  { %v1276_v45 = vadd.f32 0.5, %v1275_v44 }
 0x4c4   :  { %v1277_v48 = vmax.f32 %v1276_v45, 0.0 }
 0x4c6   :  { %v1278_v49 = vmin.f32 %v1277_v48, 1.0 }
 0x4c8   :  { %v1279_v51 = vmul.f32 %v1278_v49, %v1271_v26 }
 0x4ca   :  { %1280 = vst [vmem:[%s3180_s6 + $0x20] sm:$0xff] %v1279_v51  ;;  %1350 = vmatmul.mubr.f32.vlgmr.msra.gmra.mrb[10].mxu0 %v1279_v51  ;;  %1421 = vmatmul.mubr.f32.vlgmr.msra.gmra.mrb[10].mxu1 %v1279_v51 }
 0x4cb   :  { %2227 = vmatpush1.bf16.msra.mxu0 %v2514_v22  ;;  %2259 = vmatpush1.bf16.msra.mxu1 %v2523_v25 }
 0x4cc   :  { %2229 = vmatprep.subr.bf16.mxu0 %v2536_v29  ;;  %2261 = vmatprep.subr.bf16.mxu1 %v2552_v34 }
 0x4cd   :  { %1521 = vmatprep.mubr.f32.mxu0 %v2417_v3  ;;  %1592 = vmatprep.mubr.f32.mxu1 %v2417_v3 }
 0x4cf   :  { %2231 = vmatpush1.bf16.msra.mxu0 %v2554_v35  ;;  %2263 = vmatpush1.bf16.msra.mxu1 %v2564_v38 }
 0x4d0   :  { %2233 = vmatprep.subr.bf16.mxu0 %v2577_v42  ;;  %2265 = vmatprep.subr.bf16.mxu1 %v2593_v47 }
 0x4d3   :  { %2235 = vmatpush1.bf16.msra.mxu0 %v2603_v50  ;;  %2267 = vmatpush1.bf16.msra.mxu1 %v2616_v54 }
 0x4d4   :  { %2237 = vmatprep.subr.bf16.mxu0 %v2629_v58  ;;  %2269 = vmatprep.subr.bf16.mxu1 %v2639_v61 }
 0x4d7   :  { %2239 = vmatpush1.bf16.msra.mxu0 %v2652_v1  ;;  %2271 = vmatpush1.bf16.msra.mxu1 %v2662_v5 }
 0x4d8   :  { %2241 = vmatprep.subr.bf16.mxu0 %v2672_v8  ;;  %2273 = vmatprep.subr.bf16.mxu1 %v2682_v11 }
 0x4db   :  { %2243 = vmatpush1.bf16.msra.mxu0 %v2695_v15  ;;  %2275 = vmatpush1.bf16.msra.mxu1 %v2705_v19 }
 0x4dc   :  { %2245 = vmatprep.subr.bf16.mxu0 %v2715_v24  ;;  %2277 = vmatprep.subr.bf16.mxu1 %v2725_v28 }
 0x4df   :  { %2247 = vmatpush1.bf16.msra.mxu0 %v2738_v33  ;;  %2279 = vmatpush1.bf16.msra.mxu1 %v2748_v39 }
 0x4e0   :  { %2249 = vmatprep.subr.bf16.mxu0 %v2758_v43  ;;  %2281 = vmatprep.subr.bf16.mxu1 %v2768_v46 }
 0x4e3   :  { %2251 = vmatpush1.bf16.msra.mxu0 %v2781_v52  ;;  %2283 = vmatpush1.bf16.msra.mxu1 %v2791_v56 }
 0x4e4   :  { %2253 = vmatprep.subr.bf16.mxu0 %v2801_v60  ;;  %2285 = vmatprep.subr.bf16.mxu1 %v2811_v0 }
 0x4e7   :  { %2255 = vmatpush1.bf16.msra.mxu0 %v2818_v4  ;;  %2287 = vmatpush1.bf16.msra.mxu1 %v2822_v6 }
 0x4e8   :  { %2289 = vmatprep.subr.bf16.mxu0 %v2501_v17  ;;  %2321 = vmatprep.subr.bf16.mxu1 %v2512_v21 }
 0x59d   :  { %v1351_v32 = vpop.f32.mrb[10].mxu0  ;;  %v1422_v53 = vpop.f32.mrb[10].mxu1 }
 0x59e   :  { %v2362_v55 = vadd.f32 %v1351_v32, %v2875_v16  ;;  %v1353_v57 = vpop.f32.mrb[11].mxu0  ;;  %v1424_v59 = vpop.f32.mrb[11].mxu1  ;;  %v2378_v9 = vadd.f32 %v1422_v53, %v2880_v30 }
 0x59f   :  { %v2363_v62 = vadd.f32 %v1353_v57, %v2877_v20  ;;  %v2379_v13 = vadd.f32 %v1424_v59, %v2883_v37 }
 0x5a0   :  { %v1431_v63 = vmul.f32 0.25, %v2362_v55  ;;  %v1439_v21 = vmax.f32 %v2378_v9, 0.0 }
 0x5a1   :  { %v1435_v2 = vmul.f32 0.25, %v2363_v62  ;;  %v1440_v31 = vmul.f32 0.25, %v2379_v13 }
 0x5a2   :  { %v1432_v7 = vadd.f32 0.5, %v1431_v63 }
 0x5a3   :  { %v1436_v12 = vadd.f32 0.5, %v1435_v2  ;;  %v1441_v44 = vadd.f32 0.5, %v1440_v31 }
 0x5a4   :  { %v1433_v18 = vmax.f32 %v1432_v7, 0.0 }
 0x5a5   :  { %v1437_v17 = vmax.f32 %v1436_v12, 0.0  ;;  %v1442_v45 = vmax.f32 %v1441_v44, 0.0 }
 0x5a6   :  { %v1434_v23 = vmin.f32 %v1433_v18, 1.0 }
 0x5a7   :  { %v1438_v27 = vmin.f32 %v1437_v17, 1.0  ;;  %v1443_v49 = vmin.f32 %v1442_v45, 1.0 }
 0x5a8   :  { %v1445_v36 = vmul.f32 %v1439_v21, %v1434_v23 }
 0x5a9   :  { %v1444_v40 = vmul.f32 %v1438_v27, %v3070_v10 }
 0x5ab   :  { %v3115_v41 = vadd.f32 %v1445_v36, %v1444_v40 }
 0x5ad   :  { %v1447_v14 = vmul.f32 0.25, %v3115_v41 }
 0x5af   :  { %v1448_v48 = vadd.f32 0.5, %v1447_v14 }
 0x5b1   :  { %v1449_v26 = vmax.f32 %v1448_v48, 0.0 }
 0x5b3   :  { %v1450_v51 = vmin.f32 %v1449_v26, 1.0 }
 0x5b5   :  { %v1451_v32 = vmul.f32 %v1450_v51, %v1443_v49 }
 0x5b7   :  { %1452 = vst [vmem:[%s3180_s6 + $0x28] sm:$0xff] %v1451_v32  ;;  %1522 = vmatmul.mubr.f32.vlgmr.msra.gmra.mrb[12].mxu0 %v1451_v32  ;;  %1593 = vmatmul.mubr.f32.vlgmr.msra.gmra.mrb[12].mxu1 %v1451_v32 }
 0x5b8   :  { %2291 = vmatpush1.bf16.msra.mxu0 %v2514_v22  ;;  %2323 = vmatpush1.bf16.msra.mxu1 %v2523_v25 }
 0x5b9   :  { %2293 = vmatprep.subr.bf16.mxu0 %v2536_v29  ;;  %2325 = vmatprep.subr.bf16.mxu1 %v2552_v34 }
 0x5ba   :  { %1693 = vmatprep.mubr.f32.mxu0 %v2417_v3  ;;  %1764 = vmatprep.mubr.f32.mxu1 %v2417_v3 }
 0x5bc   :  { %2295 = vmatpush1.bf16.msra.mxu0 %v2554_v35  ;;  %2327 = vmatpush1.bf16.msra.mxu1 %v2564_v38 }
 0x5bd   :  { %2297 = vmatprep.subr.bf16.mxu0 %v2577_v42  ;;  %2329 = vmatprep.subr.bf16.mxu1 %v2593_v47 }
 0x5c0   :  { %2299 = vmatpush1.bf16.msra.mxu0 %v2603_v50  ;;  %2331 = vmatpush1.bf16.msra.mxu1 %v2616_v54 }
 0x5c1   :  { %2301 = vmatprep.subr.bf16.mxu0 %v2629_v58  ;;  %2333 = vmatprep.subr.bf16.mxu1 %v2639_v61 }
 0x5c4   :  { %2303 = vmatpush1.bf16.msra.mxu0 %v2652_v1  ;;  %2335 = vmatpush1.bf16.msra.mxu1 %v2662_v5 }
 0x5c5   :  { %2305 = vmatprep.subr.bf16.mxu0 %v2672_v8  ;;  %2337 = vmatprep.subr.bf16.mxu1 %v2682_v11 }
 0x5c8   :  { %2307 = vmatpush1.bf16.msra.mxu0 %v2695_v15  ;;  %2339 = vmatpush1.bf16.msra.mxu1 %v2705_v19 }
 0x5c9   :  { %2309 = vmatprep.subr.bf16.mxu0 %v2715_v24  ;;  %2341 = vmatprep.subr.bf16.mxu1 %v2725_v28 }
 0x5cc   :  { %2311 = vmatpush1.bf16.msra.mxu0 %v2738_v33  ;;  %2343 = vmatpush1.bf16.msra.mxu1 %v2748_v39 }
 0x5cd   :  { %2313 = vmatprep.subr.bf16.mxu0 %v2758_v43  ;;  %2345 = vmatprep.subr.bf16.mxu1 %v2768_v46 }
 0x5d0   :  { %2315 = vmatpush1.bf16.msra.mxu0 %v2781_v52  ;;  %2347 = vmatpush1.bf16.msra.mxu1 %v2791_v56 }
 0x5d1   :  { %2317 = vmatprep.subr.bf16.mxu0 %v2801_v60  ;;  %2349 = vmatprep.subr.bf16.mxu1 %v2811_v0 }
 0x5d4   :  { %2319 = vmatpush1.bf16.msra.mxu0 %v2818_v4  ;;  %2351 = vmatpush1.bf16.msra.mxu1 %v2822_v6 }
 0x68a   :  { %v1523_v3 = vpop.f32.mrb[12].mxu0  ;;  %v1594_v22 = vpop.f32.mrb[12].mxu1 }
 0x68b   :  { %v2364_v25 = vadd.f32 %v1523_v3, %v2875_v16  ;;  %v1525_v29 = vpop.f32.mrb[13].mxu0  ;;  %v1596_v34 = vpop.f32.mrb[13].mxu1  ;;  %v2380_v50 = vadd.f32 %v1594_v22, %v2880_v30 }
 0x68c   :  { %v2365_v35 = vadd.f32 %v1525_v29, %v2877_v20  ;;  %v2381_v58 = vadd.f32 %v1596_v34, %v2883_v37 }
 0x68d   :  { %v1603_v38 = vmul.f32 0.25, %v2364_v25  ;;  %v1611_v8 = vmax.f32 %v2380_v50, 0.0 }
 0x68e   :  { %v1607_v42 = vmul.f32 0.25, %v2365_v35  ;;  %v1612_v15 = vmul.f32 0.25, %v2381_v58 }
 0x68f   :  { %v1604_v47 = vadd.f32 0.5, %v1603_v38 }
 0x690   :  { %v1608_v54 = vadd.f32 0.5, %v1607_v42  ;;  %v1613_v33 = vadd.f32 0.5, %v1612_v15 }
 0x691   :  { %v1605_v61 = vmax.f32 %v1604_v47, 0.0 }
 0x692   :  { %v1609_v1 = vmax.f32 %v1608_v54, 0.0  ;;  %v1614_v43 = vmax.f32 %v1613_v33, 0.0 }
 0x693   :  { %v1606_v5 = vmin.f32 %v1605_v61, 1.0 }
 0x694   :  { %v1610_v11 = vmin.f32 %v1609_v1, 1.0  ;;  %v1615_v56 = vmin.f32 %v1614_v43, 1.0 }
 0x695   :  { %v1617_v19 = vmul.f32 %v1611_v8, %v1606_v5 }
 0x696   :  { %v1616_v24 = vmul.f32 %v1610_v11, %v3115_v41 }
 0x698   :  { %v1618_v28 = vadd.f32 %v1617_v19, %v1616_v24 }
 0x69a   :  { %v1619_v39 = vmul.f32 0.25, %v1618_v28 }
 0x69c   :  { %v1620_v46 = vadd.f32 0.5, %v1619_v39 }
 0x69e   :  { %v1621_v52 = vmax.f32 %v1620_v46, 0.0 }
 0x6a0   :  { %v1622_v60 = vmin.f32 %v1621_v52, 1.0 }
 0x6a2   :  { %v1623_v0 = vmul.f32 %v1622_v60, %v1615_v56 }
 0x6a4   :  { %1624 = vst [vmem:[%s3180_s6 + $0x30] sm:$0xff] %v1623_v0  ;;  %1694 = vmatmul.mubr.f32.vlgmr.msra.gmra.mrb[14].mxu0 %v1623_v0  ;;  %1765 = vmatmul.mubr.f32.vlgmr.msra.gmra.mrb[14].mxu1 %v1623_v0 }
 0x777   :  { %v1695_v4 = vpop.f32.mrb[14].mxu0  ;;  %v1766_v6 = vpop.f32.mrb[14].mxu1 }
 0x778   :  { %v2366_v10 = vadd.f32 %v1695_v4, %v2875_v16  ;;  %v1697_v53 = vpop.f32.mrb[15].mxu0  ;;  %v1768_v55 = vpop.f32.mrb[15].mxu1  ;;  %v2382_v2 = vadd.f32 %v1766_v6, %v2880_v30 }
 0x779   :  { %v2367_v57 = vadd.f32 %v1697_v53, %v2877_v20  ;;  %v2383_v9 = vadd.f32 %v1768_v55, %v2883_v37 }
 0x77a   :  { %v1775_v59 = vmul.f32 0.25, %v2366_v10  ;;  %v1783_v17 = vmax.f32 %v2382_v2, 0.0 }
 0x77b   :  { %v1779_v62 = vmul.f32 0.25, %v2367_v57  ;;  %v1784_v21 = vmul.f32 0.25, %v2383_v9 }
 0x77c   :  { %v1776_v63 = vadd.f32 0.5, %v1775_v59 }
 0x77d   :  { %v1780_v7 = vadd.f32 0.5, %v1779_v62  ;;  %v1785_v36 = vadd.f32 0.5, %v1784_v21 }
 0x77e   :  { %v1777_v12 = vmax.f32 %v1776_v63, 0.0 }
 0x77f   :  { %v1781_v13 = vmax.f32 %v1780_v7, 0.0  ;;  %v1786_v40 = vmax.f32 %v1785_v36, 0.0 }
 0x780   :  { %v1778_v18 = vmin.f32 %v1777_v12, 1.0 }
 0x781   :  { %v1782_v23 = vmin.f32 %v1781_v13, 1.0  ;;  %v1787_v44 = vmin.f32 %v1786_v40, 1.0 }
 0x782   :  { %v1789_v27 = vmul.f32 %v1783_v17, %v1778_v18 }
 0x783   :  { %v1788_v16 = vmul.f32 %v1782_v23, %v1618_v28 }
 0x785   :  { %v1790_v31 = vadd.f32 %v1789_v27, %v1788_v16 }
 0x787   :  { %1803 = vst [vmem:[%s3181_s8] sm:$0xff] %v1790_v31  ;;  %v1791_v20 = vmul.f32 0.25, %v1790_v31 }
 0x789   :  { %v1792_v30 = vadd.f32 0.5, %v1791_v20 }
 0x78b   :  { %v1793_v41 = vmax.f32 %v1792_v30, 0.0 }
 0x78d   :  { %v1794_v37 = vmin.f32 %v1793_v41, 1.0 }
 0x78f   :  { %v1795_v14 = vmul.f32 %v1794_v37, %v1787_v44 }
 0x791   :  { %1796 = vst [vmem:[%s3180_s6 + $0x38] sm:$0xff] %v1795_v14  ;;  %1802 = vst [vmem:[%s3182_s7] sm:$0xff] %v1795_v14 }

// kernel: quantized_lstm_forward.6
= control target key start
LH: loop header
LB: loop body
LE: loop exit
PB: predicated region body
PF: predicated region fallthrough
CT: control target
= control target key end

     0   :  { %s3733_s1 = inlined_call_operand.vmem [shape: f32[256,512], index: 1, kind: input, shape index: {}]   ;;  %s3734_s0 = inlined_call_operand.vmem [shape: f32[64,256], index: 0, kind: input, shape index: {}]   ;;  %s3735_s2 = inlined_call_operand.vmem [shape: f32[128,512], index: 2, kind: input, shape index: {}]   ;;  %s3736_s4 = inlined_call_operand.vmem [shape: f32[8,128], index: 4, kind: input, shape index: {}]   ;;  %s3737_s3 = inlined_call_operand.vmem [shape: f32[1,512], index: 3, kind: input, shape index: {}]   ;;  %s3738_s5 = inlined_call_operand.vmem [shape: f32[8,128], index: 5, kind: input, shape index: {}]   ;;  %s3739_s6 = inlined_call_operand.vmem [shape: f32[64,128], index: 6, kind: output, shape index: {0}]   ;;  %s3740_s8 = inlined_call_operand.vmem [shape: f32[8,128], index: 8, kind: output, shape index: {2}]   ;;  %s3741_s7 = inlined_call_operand.vmem [shape: f32[8,128], index: 7, kind: output, shape index: {1}]  }
   0x1   :  { %v51_v0 = vld [vmem:[%s3733_s1 + $0x8] sm:$0xff]  ;;  %v53_v2 = vld [vmem:[%s3733_s1 + $0x18] sm:$0xff]  ;;  %v50_v5 = vld [vmem:[%s3733_s1] sm:$0xff] }
   0x2   :  { %v55_v1 = vld [vmem:[%s3733_s1 + $0x28] sm:$0xff]  ;;  %v57_v4 = vld [vmem:[%s3733_s1 + $0x38] sm:$0xff]  ;;  %v54_v6 = vld [vmem:[%s3733_s1 + $0x20] sm:$0xff] }
   0x3   :  { %v1919_v3 = vpack.c.bf16 %v55_v1, %v51_v0  ;;  %v1983_v7 = vpack.c.bf16 %v57_v4, %v53_v2  ;;  %v1921_v8 = vpack.c.bf16 %v54_v6, %v50_v5  ;;  %v52_v9 = vld [vmem:[%s3733_s1 + $0x10] sm:$0xff]  ;;  %v59_v11 = vld [vmem:[%s3733_s1 + $0x48] sm:$0xff]  ;;  %v61_v14 = vld [vmem:[%s3733_s1 + $0x58] sm:$0xff] }
   0x4   :  { %v56_v10 = vld [vmem:[%s3733_s1 + $0x30] sm:$0xff]  ;;  %v63_v13 = vld [vmem:[%s3733_s1 + $0x68] sm:$0xff]  ;;  %v65_v15 = vld [vmem:[%s3733_s1 + $0x78] sm:$0xff] }
   0x5   :  { %1920 = vmatprep.subr.bf16.mxu0 %v1919_v3  ;;  %v1985_v12 = vpack.c.bf16 %v56_v10, %v52_v9  ;;  %1984 = vmatprep.subr.bf16.mxu1 %v1983_v7  ;;  %v1923_v16 = vpack.c.bf16 %v63_v13, %v59_v11  ;;  %v1987_v17 = vpack.c.bf16 %v65_v15, %v61_v14  ;;  %v58_v18 = vld [vmem:[%s3733_s1 + $0x40] sm:$0xff]  ;;  %v60_v20 = vld [vmem:[%s3733_s1 + $0x50] sm:$0xff]  ;;  %v67_v23 = vld [vmem:[%s3733_s1 + $0x88] sm:$0xff] }
   0x6   :  { %1922 = vmatpush1.bf16.msra.mxu0 %v1921_v8  ;;  %v62_v19 = vld [vmem:[%s3733_s1 + $0x60] sm:$0xff]  ;;  %v64_v22 = vld [vmem:[%s3733_s1 + $0x70] sm:$0xff]  ;;  %v71_v24 = vld [vmem:[%s3733_s1 + $0xa8] sm:$0xff] }
   0x7   :  { %1986 = vmatpush1.bf16.msra.mxu1 %v1985_v12  ;;  %v1925_v21 = vpack.c.bf16 %v62_v19, %v58_v18  ;;  %1924 = vmatprep.subr.bf16.mxu0 %v1923_v16  ;;  %v1989_v25 = vpack.c.bf16 %v64_v22, %v60_v20  ;;  %v1927_v26 = vpack.c.bf16 %v71_v24, %v67_v23  ;;  %v69_v27 = vld [vmem:[%s3733_s1 + $0x98] sm:$0xff]  ;;  %v66_v29 = vld [vmem:[%s3733_s1 + $0x80] sm:$0xff]  ;;  %v68_v32 = vld [vmem:[%s3733_s1 + $0x90] sm:$0xff] }
   0x8   :  { %1988 = vmatprep.subr.bf16.mxu1 %v1987_v17  ;;  %v73_v28 = vld [vmem:[%s3733_s1 + $0xb8] sm:$0xff]  ;;  %v70_v31 = vld [vmem:[%s3733_s1 + $0xa0] sm:$0xff]  ;;  %v72_v33 = vld [vmem:[%s3733_s1 + $0xb0] sm:$0xff] }
   0x9   :  { %v1991_v30 = vpack.c.bf16 %v73_v28, %v69_v27  ;;  %v1929_v34 = vpack.c.bf16 %v70_v31, %v66_v29  ;;  %v75_v35 = vld [vmem:[%s3733_s1 + $0xc8] sm:$0xff]  ;;  %v77_v37 = vld [vmem:[%s3733_s1 + $0xd8] sm:$0xff]  ;;  %v1993_v38 = vpack.c.bf16 %v72_v33, %v68_v32  ;;  %v74_v41 = vld [vmem:[%s3733_s1 + $0xc0] sm:$0xff] }
   0xa   :  { %1926 = vmatpush1.bf16.msra.mxu0 %v1925_v21  ;;  %v79_v36 = vld [vmem:[%s3733_s1 + $0xe8] sm:$0xff]  ;;  %v81_v40 = vld [vmem:[%s3733_s1 + $0xf8] sm:$0xff]  ;;  %v78_v42 = vld [vmem:[%s3733_s1 + $0xe0] sm:$0xff] }
   0xb   :  { %1990 = vmatpush1.bf16.msra.mxu1 %v1989_v25  ;;  %1928 = vmatprep.subr.bf16.mxu0 %v1927_v26  ;;  %v1931_v39 = vpack.c.bf16 %v79_v36, %v75_v35  ;;  %v1995_v43 = vpack.c.bf16 %v81_v40, %v77_v37  ;;  %v76_v44 = vld [vmem:[%s3733_s1 + $0xd0] sm:$0xff]  ;;  %v83_v46 = vld [vmem:[%s3733_s1 + $0x108] sm:$0xff]  ;;  %v85_v48 = vld [vmem:[%s3733_s1 + $0x118] sm:$0xff]  ;;  %v1933_v50 = vpack.c.bf16 %v78_v42, %v74_v41 }
   0xc   :  { %1992 = vmatprep.subr.bf16.mxu1 %v1991_v30  ;;  %v80_v45 = vld [vmem:[%s3733_s1 + $0xf0] sm:$0xff]  ;;  %v87_v47 = vld [vmem:[%s3733_s1 + $0x128] sm:$0xff]  ;;  %v89_v49 = vld [vmem:[%s3733_s1 + $0x138] sm:$0xff] }
   0xd   :  { %v1997_v51 = vpack.c.bf16 %v80_v45, %v76_v44  ;;  %v1935_v52 = vpack.c.bf16 %v87_v47, %v83_v46  ;;  %v82_v53 = vld [vmem:[%s3733_s1 + $0x100] sm:$0xff]  ;;  %v84_v55 = vld [vmem:[%s3733_s1 + $0x110] sm:$0xff]  ;;  %v1999_v56 = vpack.c.bf16 %v89_v49, %v85_v48  ;;  %v91_v58 = vld [vmem:[%s3733_s1 + $0x148] sm:$0xff] }
   0xe   :  { %1930 = vmatpush1.bf16.msra.mxu0 %v1929_v34  ;;  %v86_v54 = vld [vmem:[%s3733_s1 + $0x120] sm:$0xff]  ;;  %v88_v57 = vld [vmem:[%s3733_s1 + $0x130] sm:$0xff]  ;;  %v95_v59 = vld [vmem:[%s3733_s1 + $0x168] sm:$0xff] }
   0xf   :  { %1994 = vmatpush1.bf16.msra.mxu1 %v1993_v38  ;;  %1932 = vmatprep.subr.bf16.mxu0 %v1931_v39  ;;  %v93_v60 = vld [vmem:[%s3733_s1 + $0x158] sm:$0xff]  ;;  %v1937_v62 = vpack.c.bf16 %v86_v54, %v82_v53  ;;  %v2001_v63 = vpack.c.bf16 %v88_v57, %v84_v55  ;;  %v1939_v0 = vpack.c.bf16 %v95_v59, %v91_v58  ;;  %v90_v1 = vld [vmem:[%s3733_s1 + $0x140] sm:$0xff]  ;;  %v92_v3 = vld [vmem:[%s3733_s1 + $0x150] sm:$0xff] }
  0x10   :  { %1996 = vmatprep.subr.bf16.mxu1 %v1995_v43  ;;  %v97_v61 = vld [vmem:[%s3733_s1 + $0x178] sm:$0xff]  ;;  %v94_v2 = vld [vmem:[%s3733_s1 + $0x160] sm:$0xff]  ;;  %v96_v5 = vld [vmem:[%s3733_s1 + $0x170] sm:$0xff] }
  0x11   :  { %v2003_v4 = vpack.c.bf16 %v97_v61, %v93_v60  ;;  %v99_v6 = vld [vmem:[%s3733_s1 + $0x188] sm:$0xff]  ;;  %v101_v8 = vld [vmem:[%s3733_s1 + $0x198] sm:$0xff]  ;;  %v1941_v10 = vpack.c.bf16 %v94_v2, %v90_v1  ;;  %v2005_v11 = vpack.c.bf16 %v96_v5, %v92_v3  ;;  %v98_v13 = vld [vmem:[%s3733_s1 + $0x180] sm:$0xff] }
  0x12   :  { %1934 = vmatpush1.bf16.msra.mxu0 %v1933_v50  ;;  %v103_v7 = vld [vmem:[%s3733_s1 + $0x1a8] sm:$0xff]  ;;  %v105_v9 = vld [vmem:[%s3733_s1 + $0x1b8] sm:$0xff]  ;;  %v102_v14 = vld [vmem:[%s3733_s1 + $0x1a0] sm:$0xff] }
  0x13   :  { %1998 = vmatpush1.bf16.msra.mxu1 %v1997_v51  ;;  %1936 = vmatprep.subr.bf16.mxu0 %v1935_v52  ;;  %v1943_v12 = vpack.c.bf16 %v103_v7, %v99_v6  ;;  %v100_v15 = vld [vmem:[%s3733_s1 + $0x190] sm:$0xff]  ;;  %v2007_v16 = vpack.c.bf16 %v105_v9, %v101_v8  ;;  %v107_v18 = vld [vmem:[%s3733_s1 + $0x1c8] sm:$0xff]  ;;  %v109_v20 = vld [vmem:[%s3733_s1 + $0x1d8] sm:$0xff]  ;;  %v1945_v22 = vpack.c.bf16 %v102_v14, %v98_v13 }
  0x14   :  { %2000 = vmatprep.subr.bf16.mxu1 %v1999_v56  ;;  %v104_v17 = vld [vmem:[%s3733_s1 + $0x1b0] sm:$0xff]  ;;  %v111_v19 = vld [vmem:[%s3733_s1 + $0x1e8] sm:$0xff]  ;;  %v113_v21 = vld [vmem:[%s3733_s1 + $0x1f8] sm:$0xff] }
  0x15   :  { %v2009_v23 = vpack.c.bf16 %v104_v17, %v100_v15  ;;  %v1947_v24 = vpack.c.bf16 %v111_v19, %v107_v18  ;;  %v106_v25 = vld [vmem:[%s3733_s1 + $0x1c0] sm:$0xff]  ;;  %v108_v27 = vld [vmem:[%s3733_s1 + $0x1d0] sm:$0xff]  ;;  %v2011_v28 = vpack.c.bf16 %v113_v21, %v109_v20  ;;  %v115_v30 = vld [vmem:[%s3733_s1 + $0x208] sm:$0xff] }
  0x16   :  { %1938 = vmatpush1.bf16.msra.mxu0 %v1937_v62  ;;  %v110_v26 = vld [vmem:[%s3733_s1 + $0x1e0] sm:$0xff]  ;;  %v112_v29 = vld [vmem:[%s3733_s1 + $0x1f0] sm:$0xff]  ;;  %v119_v31 = vld [vmem:[%s3733_s1 + $0x228] sm:$0xff] }
  0x17   :  { %2002 = vmatpush1.bf16.msra.mxu1 %v2001_v63  ;;  %1940 = vmatprep.subr.bf16.mxu0 %v1939_v0  ;;  %v117_v32 = vld [vmem:[%s3733_s1 + $0x218] sm:$0xff]  ;;  %v1949_v34 = vpack.c.bf16 %v110_v26, %v106_v25  ;;  %v2013_v35 = vpack.c.bf16 %v112_v29, %v108_v27  ;;  %v1951_v36 = vpack.c.bf16 %v119_v31, %v115_v30  ;;  %v114_v37 = vld [vmem:[%s3733_s1 + $0x200] sm:$0xff]  ;;  %v116_v39 = vld [vmem:[%s3733_s1 + $0x210] sm:$0xff] }
  0x18   :  { %2004 = vmatprep.subr.bf16.mxu1 %v2003_v4  ;;  %v121_v33 = vld [vmem:[%s3733_s1 + $0x238] sm:$0xff]  ;;  %v118_v38 = vld [vmem:[%s3733_s1 + $0x220] sm:$0xff]  ;;  %v120_v41 = vld [vmem:[%s3733_s1 + $0x230] sm:$0xff] }
  0x19   :  { %v2015_v40 = vpack.c.bf16 %v121_v33, %v117_v32  ;;  %v123_v42 = vld [vmem:[%s3733_s1 + $0x248] sm:$0xff]  ;;  %v125_v44 = vld [vmem:[%s3733_s1 + $0x258] sm:$0xff]  ;;  %v1953_v46 = vpack.c.bf16 %v118_v38, %v114_v37  ;;  %v2017_v47 = vpack.c.bf16 %v120_v41, %v116_v39  ;;  %v122_v49 = vld [vmem:[%s3733_s1 + $0x240] sm:$0xff] }
  0x1a   :  { %1942 = vmatpush1.bf16.msra.mxu0 %v1941_v10  ;;  %v127_v43 = vld [vmem:[%s3733_s1 + $0x268] sm:$0xff]  ;;  %v129_v45 = vld [vmem:[%s3733_s1 + $0x278] sm:$0xff]  ;;  %v126_v50 = vld [vmem:[%s3733_s1 + $0x260] sm:$0xff] }
  0x1b   :  { %2006 = vmatpush1.bf16.msra.mxu1 %v2005_v11  ;;  %1944 = vmatprep.subr.bf16.mxu0 %v1943_v12  ;;  %v1955_v48 = vpack.c.bf16 %v127_v43, %v123_v42  ;;  %v124_v51 = vld [vmem:[%s3733_s1 + $0x250] sm:$0xff]  ;;  %v2019_v52 = vpack.c.bf16 %v129_v45, %v125_v44  ;;  %v131_v54 = vld [vmem:[%s3733_s1 + $0x288] sm:$0xff]  ;;  %v133_v56 = vld [vmem:[%s3733_s1 + $0x298] sm:$0xff]  ;;  %v1957_v58 = vpack.c.bf16 %v126_v50, %v122_v49 }
  0x1c   :  { %2008 = vmatprep.subr.bf16.mxu1 %v2007_v16  ;;  %v128_v53 = vld [vmem:[%s3733_s1 + $0x270] sm:$0xff]  ;;  %v135_v55 = vld [vmem:[%s3733_s1 + $0x2a8] sm:$0xff]  ;;  %v137_v57 = vld [vmem:[%s3733_s1 + $0x2b8] sm:$0xff] }
  0x1d   :  { %v2021_v59 = vpack.c.bf16 %v128_v53, %v124_v51  ;;  %v1959_v60 = vpack.c.bf16 %v135_v55, %v131_v54  ;;  %v130_v61 = vld [vmem:[%s3733_s1 + $0x280] sm:$0xff]  ;;  %v132_v63 = vld [vmem:[%s3733_s1 + $0x290] sm:$0xff]  ;;  %v2023_v0 = vpack.c.bf16 %v137_v57, %v133_v56  ;;  %v139_v2 = vld [vmem:[%s3733_s1 + $0x2c8] sm:$0xff] }
  0x1e   :  { %1946 = vmatpush1.bf16.msra.mxu0 %v1945_v22  ;;  %v134_v62 = vld [vmem:[%s3733_s1 + $0x2a0] sm:$0xff]  ;;  %v136_v1 = vld [vmem:[%s3733_s1 + $0x2b0] sm:$0xff]  ;;  %v143_v3 = vld [vmem:[%s3733_s1 + $0x2e8] sm:$0xff] }
  0x1f   :  { %2010 = vmatpush1.bf16.msra.mxu1 %v2009_v23  ;;  %1948 = vmatprep.subr.bf16.mxu0 %v1947_v24  ;;  %v141_v4 = vld [vmem:[%s3733_s1 + $0x2d8] sm:$0xff]  ;;  %v1961_v6 = vpack.c.bf16 %v134_v62, %v130_v61  ;;  %v138_v7 = vld [vmem:[%s3733_s1 + $0x2c0] sm:$0xff]  ;;  %v2025_v8 = vpack.c.bf16 %v136_v1, %v132_v63  ;;  %v1963_v9 = vpack.c.bf16 %v143_v3, %v139_v2  ;;  %v140_v11 = vld [vmem:[%s3733_s1 + $0x2d0] sm:$0xff] }
  0x20   :  { %2012 = vmatprep.subr.bf16.mxu1 %v2011_v28  ;;  %v145_v5 = vld [vmem:[%s3733_s1 + $0x2f8] sm:$0xff]  ;;  %v142_v10 = vld [vmem:[%s3733_s1 + $0x2e0] sm:$0xff]  ;;  %v144_v12 = vld [vmem:[%s3733_s1 + $0x2f0] sm:$0xff] }
  0x21   :  { %v2027_v13 = vpack.c.bf16 %v145_v5, %v141_v4  ;;  %v147_v14 = vld [vmem:[%s3733_s1 + $0x308] sm:$0xff]  ;;  %v149_v17 = vld [vmem:[%s3733_s1 + $0x318] sm:$0xff]  ;;  %v1965_v19 = vpack.c.bf16 %v142_v10, %v138_v7  ;;  %v2029_v20 = vpack.c.bf16 %v144_v12, %v140_v11  ;;  %v146_v22 = vld [vmem:[%s3733_s1 + $0x300] sm:$0xff] }
  0x22   :  { %1950 = vmatpush1.bf16.msra.mxu0 %v1949_v34  ;;  %v151_v15 = vld [vmem:[%s3733_s1 + $0x328] sm:$0xff]  ;;  %v153_v18 = vld [vmem:[%s3733_s1 + $0x338] sm:$0xff]  ;;  %v150_v23 = vld [vmem:[%s3733_s1 + $0x320] sm:$0xff] }
  0x23   :  { %2014 = vmatpush1.bf16.msra.mxu1 %v2013_v35  ;;  %1952 = vmatprep.subr.bf16.mxu0 %v1951_v36  ;;  %v35_v16 = vld [vmem:[%s3734_s0 + $0x8] sm:$0xff]  ;;  %v1967_v21 = vpack.c.bf16 %v151_v15, %v147_v14  ;;  %v148_v24 = vld [vmem:[%s3733_s1 + $0x310] sm:$0xff]  ;;  %v2031_v25 = vpack.c.bf16 %v153_v18, %v149_v17  ;;  %v157_v29 = vld [vmem:[%s3733_s1 + $0x358] sm:$0xff]  ;;  %v1969_v31 = vpack.c.bf16 %v150_v23, %v146_v22 }
  0x24   :  { %2016 = vmatprep.subr.bf16.mxu1 %v2015_v40  ;;  %264 = vmatprep.mubr.f32.mxu0 %v35_v16  ;;  %v152_v26 = vld [vmem:[%s3733_s1 + $0x330] sm:$0xff]  ;;  %v155_v27 = vld [vmem:[%s3733_s1 + $0x348] sm:$0xff]  ;;  %v161_v30 = vld [vmem:[%s3733_s1 + $0x378] sm:$0xff] }
  0x25   :  { %377 = vmatprep.mubr.f32.mxu1 %v35_v16  ;;  %v159_v28 = vld [vmem:[%s3733_s1 + $0x368] sm:$0xff]  ;;  %v2033_v32 = vpack.c.bf16 %v152_v26, %v148_v24  ;;  %v154_v34 = vld [vmem:[%s3733_s1 + $0x340] sm:$0xff]  ;;  %v156_v36 = vld [vmem:[%s3733_s1 + $0x350] sm:$0xff]  ;;  %v2035_v37 = vpack.c.bf16 %v161_v30, %v157_v29 }
  0x26   :  { %1954 = vmatpush1.bf16.msra.mxu0 %v1953_v46  ;;  %v1971_v33 = vpack.c.bf16 %v159_v28, %v155_v27  ;;  %v158_v35 = vld [vmem:[%s3733_s1 + $0x360] sm:$0xff]  ;;  %v160_v38 = vld [vmem:[%s3733_s1 + $0x370] sm:$0xff]  ;;  %v163_v39 = vld [vmem:[%s3733_s1 + $0x388] sm:$0xff] }
  0x27   :  { %2018 = vmatpush1.bf16.msra.mxu1 %v2017_v47  ;;  %1956 = vmatprep.subr.bf16.mxu0 %v1955_v48  ;;  %v167_v40 = vld [vmem:[%s3733_s1 + $0x3a8] sm:$0xff]  ;;  %v165_v41 = vld [vmem:[%s3733_s1 + $0x398] sm:$0xff]  ;;  %v1973_v43 = vpack.c.bf16 %v158_v35, %v154_v34  ;;  %v2037_v44 = vpack.c.bf16 %v160_v38, %v156_v36  ;;  %v162_v46 = vld [vmem:[%s3733_s1 + $0x380] sm:$0xff] }
  0x28   :  { %2020 = vmatprep.subr.bf16.mxu1 %v2019_v52  ;;  %v169_v42 = vld [vmem:[%s3733_s1 + $0x3b8] sm:$0xff]  ;;  %v1975_v45 = vpack.c.bf16 %v167_v40, %v163_v39  ;;  %v166_v47 = vld [vmem:[%s3733_s1 + $0x3a0] sm:$0xff]  ;;  %v164_v48 = vld [vmem:[%s3733_s1 + $0x390] sm:$0xff] }
  0x29   :  { %v2039_v49 = vpack.c.bf16 %v169_v42, %v165_v41  ;;  %v168_v50 = vld [vmem:[%s3733_s1 + $0x3b0] sm:$0xff]  ;;  %v171_v51 = vld [vmem:[%s3733_s1 + $0x3c8] sm:$0xff]  ;;  %v173_v53 = vld [vmem:[%s3733_s1 + $0x3d8] sm:$0xff]  ;;  %v1977_v55 = vpack.c.bf16 %v166_v47, %v162_v46 }
  0x2a   :  { %1958 = vmatpush1.bf16.msra.mxu0 %v1957_v58  ;;  %v175_v52 = vld [vmem:[%s3733_s1 + $0x3e8] sm:$0xff]  ;;  %v177_v54 = vld [vmem:[%s3733_s1 + $0x3f8] sm:$0xff]  ;;  %v2041_v56 = vpack.c.bf16 %v168_v50, %v164_v48  ;;  %v170_v58 = vld [vmem:[%s3733_s1 + $0x3c0] sm:$0xff] }
  0x2b   :  { %2022 = vmatpush1.bf16.msra.mxu1 %v2021_v59  ;;  %1960 = vmatprep.subr.bf16.mxu0 %v1959_v60  ;;  %v1979_v57 = vpack.c.bf16 %v175_v52, %v171_v51  ;;  %v174_v59 = vld [vmem:[%s3733_s1 + $0x3e0] sm:$0xff]  ;;  %v172_v60 = vld [vmem:[%s3733_s1 + $0x3d0] sm:$0xff]  ;;  %v2043_v61 = vpack.c.bf16 %v177_v54, %v173_v53  ;;  %v461_v63 = vld [vmem:[%s3735_s2 + $0x8] sm:$0xff] }
  0x2c   :  { %2024 = vmatprep.subr.bf16.mxu1 %v2023_v0  ;;  %v176_v62 = vld [vmem:[%s3733_s1 + $0x3f0] sm:$0xff]  ;;  %v465_v0 = vld [vmem:[%s3735_s2 + $0x28] sm:$0xff]  ;;  %v463_v1 = vld [vmem:[%s3735_s2 + $0x18] sm:$0xff]  ;;  %v1981_v3 = vpack.c.bf16 %v174_v59, %v170_v58 }
  0x2d   :  { %v467_v2 = vld [vmem:[%s3735_s2 + $0x38] sm:$0xff]  ;;  %v2045_v4 = vpack.c.bf16 %v176_v62, %v172_v60  ;;  %v3069_v5 = vpack.c.bf16 %v465_v0, %v461_v63  ;;  %v464_v7 = vld [vmem:[%s3735_s2 + $0x20] sm:$0xff]  ;;  %v466_v10 = vld [vmem:[%s3735_s2 + $0x30] sm:$0xff] }
  0x2e   :  { %1962 = vmatpush1.bf16.msra.mxu0 %v1961_v6  ;;  %v460_v6 = vld [vmem:[%s3735_s2] sm:$0xff]  ;;  %v469_v11 = vld [vmem:[%s3735_s2 + $0x48] sm:$0xff]  ;;  %v471_v15 = vld [vmem:[%s3735_s2 + $0x58] sm:$0xff] }
  0x2f   :  { %2026 = vmatpush1.bf16.msra.mxu1 %v2025_v8  ;;  %1964 = vmatprep.subr.bf16.mxu0 %v1963_v9  ;;  %v3077_v8 = vpack.c.bf16 %v467_v2, %v463_v1  ;;  %v462_v9 = vld [vmem:[%s3735_s2 + $0x10] sm:$0xff]  ;;  %v473_v12 = vld [vmem:[%s3735_s2 + $0x68] sm:$0xff]  ;;  %v3094_v14 = vpack.c.bf16 %v464_v7, %v460_v6  ;;  %v475_v16 = vld [vmem:[%s3735_s2 + $0x78] sm:$0xff] }
  0x30   :  { %2028 = vmatprep.subr.bf16.mxu1 %v2027_v13  ;;  %v34_v13 = vld [vmem:[%s3734_s0] sm:$0xff]  ;;  %v3103_v17 = vpack.c.bf16 %v466_v10, %v462_v9  ;;  %v470_v22 = vld [vmem:[%s3735_s2 + $0x50] sm:$0xff]  ;;  %v3123_v24 = vpack.c.bf16 %v475_v16, %v471_v15  ;;  %v481_v26 = vld [vmem:[%s3735_s2 + $0xa8] sm:$0xff] }
  0x31   :  { %v468_v18 = vld [vmem:[%s3735_s2 + $0x40] sm:$0xff]  ;;  %v474_v23 = vld [vmem:[%s3735_s2 + $0x70] sm:$0xff]  ;;  %v479_v29 = vld [vmem:[%s3735_s2 + $0x98] sm:$0xff] }
  0x32   :  { %1966 = vmatpush1.bf16.msra.mxu0 %v1965_v19  ;;  %v472_v19 = vld [vmem:[%s3735_s2 + $0x60] sm:$0xff]  ;;  %v36_v27 = vld [vmem:[%s3734_s0 + $0x10] sm:$0xff]  ;;  %v483_v30 = vld [vmem:[%s3735_s2 + $0xb8] sm:$0xff] }
  0x33   :  { %2030 = vmatpush1.bf16.msra.mxu1 %v2029_v20  ;;  %1968 = vmatprep.subr.bf16.mxu0 %v1967_v21  ;;  %v37_v20 = vld [vmem:[%s3734_s0 + $0x18] sm:$0xff]  ;;  %v3115_v21 = vpack.c.bf16 %v473_v12, %v469_v11  ;;  %v3135_v28 = vpack.c.bf16 %v472_v19, %v468_v18  ;;  %v39_v34 = vld [vmem:[%s3734_s0 + $0x28] sm:$0xff]  ;;  %v478_v36 = vld [vmem:[%s3735_s2 + $0x90] sm:$0xff]  ;;  %v3165_v38 = vpack.c.bf16 %v483_v30, %v479_v29 }
  0x34   :  { %2032 = vmatprep.subr.bf16.mxu1 %v2031_v25  ;;  %v477_v25 = vld [vmem:[%s3735_s2 + $0x88] sm:$0xff]  ;;  %v38_v41 = vld [vmem:[%s3734_s0 + $0x20] sm:$0xff]  ;;  %v41_v48 = vld [vmem:[%s3734_s0 + $0x38] sm:$0xff] }
  0x35   :  { %v3156_v35 = vpack.c.bf16 %v481_v26, %v477_v25  ;;  %v485_v39 = vld [vmem:[%s3735_s2 + $0xc8] sm:$0xff]  ;;  %v484_v46 = vld [vmem:[%s3735_s2 + $0xc0] sm:$0xff]  ;;  %v486_v50 = vld [vmem:[%s3735_s2 + $0xd0] sm:$0xff] }
  0x36   :  { %1970 = vmatpush1.bf16.msra.mxu0 %v1969_v31  ;;  %v3144_v31 = vpack.c.bf16 %v474_v23, %v470_v22  ;;  %v489_v40 = vld [vmem:[%s3735_s2 + $0xe8] sm:$0xff]  ;;  %v488_v47 = vld [vmem:[%s3735_s2 + $0xe0] sm:$0xff]  ;;  %v490_v51 = vld [vmem:[%s3735_s2 + $0xf0] sm:$0xff] }
  0x37   :  { %2034 = vmatpush1.bf16.msra.mxu1 %v2033_v32  ;;  %1972 = vmatprep.subr.bf16.mxu0 %v1971_v33  ;;  %v476_v32 = vld [vmem:[%s3735_s2 + $0x80] sm:$0xff]  ;;  %v493_v53 = vld [vmem:[%s3735_s2 + $0x108] sm:$0xff]  ;;  %v499_v58 = vld [vmem:[%s3735_s2 + $0x138] sm:$0xff]  ;;  %v3228_v59 = vpack.c.bf16 %v490_v51, %v486_v50 }
  0x38   :  { %2036 = vmatprep.subr.bf16.mxu1 %v2035_v37  ;;  %v480_v33 = vld [vmem:[%s3735_s2 + $0xa0] sm:$0xff]  ;;  %v482_v37 = vld [vmem:[%s3735_s2 + $0xb0] sm:$0xff]  ;;  %v497_v54 = vld [vmem:[%s3735_s2 + $0x128] sm:$0xff] }
  0x39   :  { %v3177_v42 = vpack.c.bf16 %v480_v33, %v476_v32  ;;  %v492_v60 = vld [vmem:[%s3735_s2 + $0x100] sm:$0xff]  ;;  %v43_v62 = vld [vmem:[%s3734_s0 + $0x48] sm:$0xff]  ;;  %v3240_v63 = vpack.c.bf16 %v497_v54, %v493_v53  ;;  %v494_v0 = vld [vmem:[%s3735_s2 + $0x110] sm:$0xff] }
  0x3a   :  { %1974 = vmatpush1.bf16.msra.mxu0 %v1973_v43  ;;  %v487_v43 = vld [vmem:[%s3735_s2 + $0xd8] sm:$0xff]  ;;  %v498_v1 = vld [vmem:[%s3735_s2 + $0x130] sm:$0xff]  ;;  %v42_v6 = vld [vmem:[%s3734_s0 + $0x40] sm:$0xff] }
  0x3b   :  { %2038 = vmatpush1.bf16.msra.mxu1 %v2037_v44  ;;  %1976 = vmatprep.subr.bf16.mxu0 %v1975_v45  ;;  %v491_v44 = vld [vmem:[%s3735_s2 + $0xf8] sm:$0xff]  ;;  %v3186_v45 = vpack.c.bf16 %v482_v37, %v478_v36  ;;  %v3270_v11 = vpack.c.bf16 %v498_v1, %v494_v0  ;;  %v500_v12 = vld [vmem:[%s3735_s2 + $0x140] sm:$0xff]  ;;  %v502_v18 = vld [vmem:[%s3735_s2 + $0x150] sm:$0xff] }
  0x3c   :  { %2040 = vmatprep.subr.bf16.mxu1 %v2039_v49  ;;  %v3198_v49 = vpack.c.bf16 %v489_v40, %v485_v39  ;;  %v3207_v52 = vpack.c.bf16 %v491_v44, %v487_v43  ;;  %v503_v9 = vld [vmem:[%s3735_s2 + $0x158] sm:$0xff]  ;;  %v506_v19 = vld [vmem:[%s3735_s2 + $0x170] sm:$0xff]  ;;  %v509_v22 = vld [vmem:[%s3735_s2 + $0x188] sm:$0xff] }
  0x3d   :  { %v507_v10 = vld [vmem:[%s3735_s2 + $0x178] sm:$0xff]  ;;  %v513_v23 = vld [vmem:[%s3735_s2 + $0x1a8] sm:$0xff]  ;;  %v44_v25 = vld [vmem:[%s3734_s0 + $0x50] sm:$0xff]  ;;  %v3312_v30 = vpack.c.bf16 %v506_v19, %v502_v18 }
  0x3e   :  { %1978 = vmatpush1.bf16.msra.mxu0 %v1977_v55  ;;  %v40_v55 = vld [vmem:[%s3734_s0 + $0x30] sm:$0xff]  ;;  %v45_v15 = vld [vmem:[%s3734_s0 + $0x58] sm:$0xff]  ;;  %v508_v32 = vld [vmem:[%s3735_s2 + $0x180] sm:$0xff]  ;;  %v3324_v36 = vpack.c.bf16 %v513_v23, %v509_v22 }
  0x3f   :  { %2042 = vmatpush1.bf16.msra.mxu1 %v2041_v56  ;;  %1980 = vmatprep.subr.bf16.mxu0 %v1979_v57  ;;  %v3219_v56 = vpack.c.bf16 %v488_v47, %v484_v46  ;;  %v495_v57 = vld [vmem:[%s3735_s2 + $0x118] sm:$0xff]  ;;  %v512_v33 = vld [vmem:[%s3735_s2 + $0x1a0] sm:$0xff]  ;;  %v510_v37 = vld [vmem:[%s3735_s2 + $0x190] sm:$0xff] }
  0x40   :  { %2044 = vmatprep.subr.bf16.mxu1 %v2043_v61  ;;  %v496_v61 = vld [vmem:[%s3735_s2 + $0x120] sm:$0xff]  ;;  %v3249_v2 = vpack.c.bf16 %v499_v58, %v495_v57  ;;  %v515_v29 = vld [vmem:[%s3735_s2 + $0x1b8] sm:$0xff]  ;;  %v514_v39 = vld [vmem:[%s3735_s2 + $0x1b0] sm:$0xff]  ;;  %v3345_v46 = vpack.c.bf16 %v512_v33, %v508_v32 }
  0x41   :  { %v3261_v7 = vpack.c.bf16 %v496_v61, %v492_v60  ;;  %v521_v43 = vld [vmem:[%s3735_s2 + $0x1e8] sm:$0xff]  ;;  %v46_v44 = vld [vmem:[%s3734_s0 + $0x60] sm:$0xff]  ;;  %v519_v47 = vld [vmem:[%s3735_s2 + $0x1d8] sm:$0xff]  ;;  %v3354_v50 = vpack.c.bf16 %v514_v39, %v510_v37 }
  0x42   :  { %1982 = vmatpush1.bf16.msra.mxu0 %v1981_v3  ;;  %v501_v3 = vld [vmem:[%s3735_s2 + $0x148] sm:$0xff]  ;;  %v516_v51 = vld [vmem:[%s3735_s2 + $0x1c0] sm:$0xff]  ;;  %v49_v54 = vld [vmem:[%s3734_s0 + $0x78] sm:$0xff] }
  0x43   :  { %2046 = vmatpush1.bf16.msra.mxu1 %v2045_v4  ;;  %2048 = vmatprep.subr.bf16.mxu0 %v3069_v5  ;;  %v505_v4 = vld [vmem:[%s3735_s2 + $0x168] sm:$0xff]  ;;  %v520_v53 = vld [vmem:[%s3735_s2 + $0x1e0] sm:$0xff]  ;;  %v518_v57 = vld [vmem:[%s3735_s2 + $0x1d0] sm:$0xff] }
  0x44   :  { %2080 = vmatprep.subr.bf16.mxu1 %v3077_v8  ;;  %v3282_v16 = vpack.c.bf16 %v505_v4, %v501_v3  ;;  %v522_v58 = vld [vmem:[%s3735_s2 + $0x1f0] sm:$0xff]  ;;  %v30_v1 = vld [vmem:[%s3736_s4] sm:$0xff]  ;;  %v2624_v3 = vmov 0.0   ;;  %v180_v4 = vlaneseq }
  0x45   :  { %265 = vmatmul.mubr.f32.vlgmr.msra.gmra.mrb[0].mxu0 %v34_v13  ;;  %v48_v61 = vld [vmem:[%s3734_s0 + $0x70] sm:$0xff]  ;;  %v3384_v0 = vpack.c.bf16 %v522_v58, %v518_v57  ;;  %v32_v57 = vld [vmem:[%s3738_s5] sm:$0xff] }
  0x46   :  { %378 = vmatmul.mubr.f32.vlgmr.msra.gmra.mrb[0].mxu1 %v34_v13  ;;  %2050 = vmatpush1.bf16.msra.mxu0 %v3094_v14  ;;  %v504_v13 = vld [vmem:[%s3735_s2 + $0x160] sm:$0xff] }
  0x47   :  { %2082 = vmatpush1.bf16.msra.mxu1 %v3103_v17  ;;  %270 = vmatprep.mubr.f32.mxu0 %v37_v20  ;;  %v3303_v26 = vpack.c.bf16 %v504_v13, %v500_v12 }
  0x48   :  { %383 = vmatprep.mubr.f32.mxu1 %v37_v20  ;;  %2052 = vmatprep.subr.bf16.mxu0 %v3115_v21  ;;  %v3291_v20 = vpack.c.bf16 %v507_v10, %v503_v9  ;;  %v178_v10 = vld [vmem:[%s3737_s3] sm:$0xf] }
  0x49   :  { %271 = vmatmul.mubr.f32.gmra.mrb[2].mxu0 %v36_v27  ;;  %2084 = vmatprep.subr.bf16.mxu1 %v3123_v24 }
  0x4a   :  { %384 = vmatmul.mubr.f32.gmra.mrb[2].mxu1 %v36_v27  ;;  %2054 = vmatpush1.bf16.msra.mxu0 %v3135_v28  ;;  %v511_v27 = vld [vmem:[%s3735_s2 + $0x198] sm:$0xff] }
  0x4b   :  { %2086 = vmatpush1.bf16.msra.mxu1 %v3144_v31  ;;  %276 = vmatprep.mubr.f32.mxu0 %v39_v34  ;;  %v3333_v40 = vpack.c.bf16 %v515_v29, %v511_v27 }
  0x4c   :  { %389 = vmatprep.mubr.f32.mxu1 %v39_v34  ;;  %2056 = vmatprep.subr.bf16.mxu0 %v3156_v35  ;;  %v47_v34 = vld [vmem:[%s3734_s0 + $0x68] sm:$0xff] }
  0x4d   :  { %277 = vmatmul.mubr.f32.gmra.mrb[4].mxu0 %v38_v41  ;;  %2088 = vmatprep.subr.bf16.mxu1 %v3165_v38 }
  0x4e   :  { %390 = vmatmul.mubr.f32.gmra.mrb[4].mxu1 %v38_v41  ;;  %2058 = vmatpush1.bf16.msra.mxu0 %v3177_v42  ;;  %v517_v41 = vld [vmem:[%s3735_s2 + $0x1c8] sm:$0xff] }
  0x4f   :  { %2090 = vmatpush1.bf16.msra.mxu1 %v3186_v45  ;;  %282 = vmatprep.mubr.f32.mxu0 %v41_v48 }
  0x50   :  { %395 = vmatprep.mubr.f32.mxu1 %v41_v48  ;;  %2060 = vmatprep.subr.bf16.mxu0 %v3198_v49  ;;  %v523_v48 = vld [vmem:[%s3735_s2 + $0x1f8] sm:$0xff] }
  0x51   :  { %283 = vmatmul.mubr.f32.gmra.mrb[6].mxu0 %v40_v55  ;;  %2092 = vmatprep.subr.bf16.mxu1 %v3207_v52  ;;  %v3375_v60 = vpack.c.bf16 %v523_v48, %v519_v47 }
  0x52   :  { %396 = vmatmul.mubr.f32.gmra.mrb[6].mxu1 %v40_v55  ;;  %2062 = vmatpush1.bf16.msra.mxu0 %v3219_v56  ;;  %v3366_v55 = vpack.c.bf16 %v521_v43, %v517_v41 }
  0x53   :  { %2094 = vmatpush1.bf16.msra.mxu1 %v3228_v59  ;;  %288 = vmatprep.mubr.f32.mxu0 %v43_v62 }
  0x54   :  { %401 = vmatprep.mubr.f32.mxu1 %v43_v62  ;;  %2064 = vmatprep.subr.bf16.mxu0 %v3240_v63  ;;  %v3381_v62 = vpack.c.bf16 %v520_v53, %v516_v51 }
  0x55   :  { %289 = vmatmul.mubr.f32.gmra.mrb[8].mxu0 %v42_v6  ;;  %2096 = vmatprep.subr.bf16.mxu1 %v3249_v2 }
  0x56   :  { %402 = vmatmul.mubr.f32.gmra.mrb[8].mxu1 %v42_v6  ;;  %2066 = vmatpush1.bf16.msra.mxu0 %v3261_v7  ;;  %v181_v6 = vshrl.u32 %v180_v4, 7 }
  0x57   :  { %2098 = vmatpush1.bf16.msra.mxu1 %v3270_v11  ;;  %294 = vmatprep.mubr.f32.mxu0 %v45_v15 }
  0x58   :  { %407 = vmatprep.mubr.f32.mxu1 %v45_v15  ;;  %2068 = vmatprep.subr.bf16.mxu0 %v3282_v16  ;;  %v182_v9 = vsub.s32 0, %v181_v6  ;;  %v186_v12 = vsub.s32 1, %v181_v6  ;;  %v190_v15 = vsub.s32 2, %v181_v6  ;;  %v194_v19 = vsub.s32 3, %v181_v6 }
  0x59   :  { %295 = vmatmul.mubr.f32.gmra.mrb[10].mxu0 %v44_v25  ;;  %2100 = vmatprep.subr.bf16.mxu1 %v3291_v20 }
  0x5a   :  { %408 = vmatmul.mubr.f32.gmra.mrb[10].mxu1 %v44_v25  ;;  %2070 = vmatpush1.bf16.msra.mxu0 %v3303_v26  ;;  %v3434_v13 = vrot.slane %v178_v10, %v182_v9  ;;  %v3436_v18 = vrot.slane %v178_v10, %v186_v12  ;;  %v3439_v25 = vrot.slane %v178_v10, %v190_v15 }
  0x5b   :  { %2102 = vmatpush1.bf16.msra.mxu1 %v3312_v30  ;;  %300 = vmatprep.mubr.f32.mxu0 %v47_v34  ;;  %v3442_v33 = vrot.slane %v178_v10, %v194_v19 }
  0x5c   :  { %413 = vmatprep.mubr.f32.mxu1 %v47_v34  ;;  %2072 = vmatprep.subr.bf16.mxu0 %v3324_v36 }
  0x5d   :  { %301 = vmatmul.mubr.f32.gmra.mrb[12].mxu0 %v46_v44  ;;  %2104 = vmatprep.subr.bf16.mxu1 %v3333_v40 }
  0x5e   :  { %414 = vmatmul.mubr.f32.gmra.mrb[12].mxu1 %v46_v44  ;;  %2074 = vmatpush1.bf16.msra.mxu0 %v3345_v46 }
  0x5f   :  { %2106 = vmatpush1.bf16.msra.mxu1 %v3354_v50  ;;  %306 = vmatprep.mubr.f32.mxu0 %v49_v54 }
  0x60   :  { %419 = vmatprep.mubr.f32.mxu1 %v49_v54  ;;  %2076 = vmatprep.subr.bf16.mxu0 %v3366_v55 }
  0x61   :  { %307 = vmatmul.mubr.f32.gmra.mrb[14].mxu0 %v48_v61  ;;  %2108 = vmatprep.subr.bf16.mxu1 %v3375_v60 }
  0x62   :  { %420 = vmatmul.mubr.f32.gmra.mrb[14].mxu1 %v48_v61  ;;  %2078 = vmatpush1.bf16.msra.mxu0 %v3381_v62 }
  0x63   :  { %2110 = vmatpush1.bf16.msra.mxu1 %v3384_v0  ;;  %592 = vmatprep.mubr.f32.mxu0 %v2624_v3 }
  0x64   :  { %663 = vmatprep.mubr.f32.mxu1 %v2624_v3  ;;  %2112 = vmatprep.subr.bf16.mxu0 %v3069_v5 }
  0x65   :  { %593 = vmatmul.mubr.f32.vlgmr.msra.gmra.mrb[0].mxu0 %v30_v1  ;;  %2144 = vmatprep.subr.bf16.mxu1 %v3077_v8 }
  0x66   :  { %664 = vmatmul.mubr.f32.vlgmr.msra.gmra.mrb[0].mxu1 %v30_v1  ;;  %2114 = vmatpush1.bf16.msra.mxu0 %v3094_v14 }
  0x67   :  { %2146 = vmatpush1.bf16.msra.mxu1 %v3103_v17  ;;  %2116 = vmatprep.subr.bf16.mxu0 %v3115_v21 }
  0x68   :  { %2148 = vmatprep.subr.bf16.mxu1 %v3123_v24  ;;  %764 = vmatprep.mubr.f32.mxu0 %v2624_v3 }
  0x69   :  { %835 = vmatprep.mubr.f32.mxu1 %v2624_v3 }
  0x6a   :  { %2118 = vmatpush1.bf16.msra.mxu0 %v3135_v28 }
  0x6b   :  { %2150 = vmatpush1.bf16.msra.mxu1 %v3144_v31  ;;  %2120 = vmatprep.subr.bf16.mxu0 %v3156_v35 }
  0x6c   :  { %2152 = vmatprep.subr.bf16.mxu1 %v3165_v38 }
  0x6e   :  { %2122 = vmatpush1.bf16.msra.mxu0 %v3177_v42 }
  0x6f   :  { %2154 = vmatpush1.bf16.msra.mxu1 %v3186_v45  ;;  %2124 = vmatprep.subr.bf16.mxu0 %v3198_v49 }
  0x70   :  { %2156 = vmatprep.subr.bf16.mxu1 %v3207_v52 }
  0x72   :  { %2126 = vmatpush1.bf16.msra.mxu0 %v3219_v56 }
  0x73   :  { %2158 = vmatpush1.bf16.msra.mxu1 %v3228_v59  ;;  %2128 = vmatprep.subr.bf16.mxu0 %v3240_v63 }
  0x74   :  { %2160 = vmatprep.subr.bf16.mxu1 %v3249_v2 }
  0x76   :  { %2130 = vmatpush1.bf16.msra.mxu0 %v3261_v7 }
  0x77   :  { %2162 = vmatpush1.bf16.msra.mxu1 %v3270_v11  ;;  %2132 = vmatprep.subr.bf16.mxu0 %v3282_v16 }
  0x78   :  { %2164 = vmatprep.subr.bf16.mxu1 %v3291_v20 }
  0x7a   :  { %2134 = vmatpush1.bf16.msra.mxu0 %v3303_v26 }
  0x7b   :  { %2166 = vmatpush1.bf16.msra.mxu1 %v3312_v30  ;;  %2136 = vmatprep.subr.bf16.mxu0 %v3324_v36 }
  0x7c   :  { %2168 = vmatprep.subr.bf16.mxu1 %v3333_v40 }
  0x7e   :  { %2138 = vmatpush1.bf16.msra.mxu0 %v3345_v46 }
  0x7f   :  { %2170 = vmatpush1.bf16.msra.mxu1 %v3354_v50  ;;  %2140 = vmatprep.subr.bf16.mxu0 %v3366_v55 }
  0x80   :  { %2172 = vmatprep.subr.bf16.mxu1 %v3375_v60 }
  0x82   :  { %2142 = vmatpush1.bf16.msra.mxu0 %v3381_v62 }
  0x83   :  { %2174 = vmatpush1.bf16.msra.mxu1 %v3384_v0  ;;  %2176 = vmatprep.subr.bf16.mxu0 %v3069_v5 }
  0x84   :  { %2208 = vmatprep.subr.bf16.mxu1 %v3077_v8 }
 0x138   :  { %v594_v22 = vpop.f32.mrb[0].mxu0 }
 0x139   :  { %v2559_v23 = vadd.f32 %v594_v22, %v3434_v13  ;;  %v665_v27 = vpop.f32.mrb[0].mxu1  ;;  %v596_v29 = vpop.f32.mrb[1].mxu0 }
 0x13a   :  { %v2560_v32 = vadd.f32 %v596_v29, %v3436_v18  ;;  %v667_v34 = vpop.f32.mrb[1].mxu1  ;;  %v2575_v43 = vadd.f32 %v665_v27, %v3439_v25 }
 0x13b   :  { %v674_v37 = vmul.f32 0.25, %v2559_v23  ;;  %v2576_v47 = vadd.f32 %v667_v34, %v3442_v33 }
 0x13c   :  { %v678_v39 = vmul.f32 0.25, %v2560_v32  ;;  %v682_v54 = vmax.f32 %v2575_v43, 0.0 }
 0x13d   :  { %v675_v41 = vadd.f32 0.5, %v674_v37  ;;  %v683_v61 = vmul.f32 0.25, %v2576_v47 }
 0x13e   :  { %v679_v44 = vadd.f32 0.5, %v678_v39 }
 0x13f   :  { %v676_v48 = vmax.f32 %v675_v41, 0.0  ;;  %v684_v9 = vadd.f32 0.5, %v683_v61 }
 0x140   :  { %v680_v51 = vmax.f32 %v679_v44, 0.0 }
 0x141   :  { %v677_v53 = vmin.f32 %v676_v48, 1.0  ;;  %v685_v12 = vmax.f32 %v684_v9, 0.0 }
 0x142   :  { %v681_v58 = vmin.f32 %v680_v51, 1.0 }
 0x143   :  { %v688_v1 = vmul.f32 %v682_v54, %v677_v53  ;;  %v686_v22 = vmin.f32 %v685_v12, 1.0 }
 0x144   :  { %v687_v4 = vmul.f32 %v681_v58, %v32_v57 }
 0x146   :  { %v3449_v6 = vadd.f32 %v688_v1, %v687_v4 }
 0x148   :  { %v690_v10 = vmul.f32 0.25, %v3449_v6 }
 0x14a   :  { %v691_v15 = vadd.f32 0.5, %v690_v10 }
 0x14c   :  { %v692_v19 = vmax.f32 %v691_v15, 0.0 }
 0x14e   :  { %v693_v23 = vmin.f32 %v692_v19, 1.0 }
 0x150   :  { %v694_v27 = vmul.f32 %v693_v23, %v686_v22 }
 0x152   :  { %695 = vst [vmem:[%s3739_s6] sm:$0xff] %v694_v27  ;;  %765 = vmatmul.mubr.f32.vlgmr.msra.gmra.mrb[2].mxu0 %v694_v27  ;;  %836 = vmatmul.mubr.f32.vlgmr.msra.gmra.mrb[2].mxu1 %v694_v27 }
 0x153   :  { %2178 = vmatpush1.bf16.msra.mxu0 %v3094_v14  ;;  %2210 = vmatpush1.bf16.msra.mxu1 %v3103_v17 }
 0x154   :  { %2180 = vmatprep.subr.bf16.mxu0 %v3115_v21  ;;  %2212 = vmatprep.subr.bf16.mxu1 %v3123_v24 }
 0x155   :  { %936 = vmatprep.mubr.f32.mxu0 %v2624_v3  ;;  %1007 = vmatprep.mubr.f32.mxu1 %v2624_v3 }
 0x157   :  { %2182 = vmatpush1.bf16.msra.mxu0 %v3135_v28  ;;  %2214 = vmatpush1.bf16.msra.mxu1 %v3144_v31 }
 0x158   :  { %2184 = vmatprep.subr.bf16.mxu0 %v3156_v35  ;;  %2216 = vmatprep.subr.bf16.mxu1 %v3165_v38 }
 0x15b   :  { %2186 = vmatpush1.bf16.msra.mxu0 %v3177_v42  ;;  %2218 = vmatpush1.bf16.msra.mxu1 %v3186_v45 }
 0x15c   :  { %2188 = vmatprep.subr.bf16.mxu0 %v3198_v49  ;;  %2220 = vmatprep.subr.bf16.mxu1 %v3207_v52 }
 0x15f   :  { %2190 = vmatpush1.bf16.msra.mxu0 %v3219_v56  ;;  %2222 = vmatpush1.bf16.msra.mxu1 %v3228_v59 }
 0x160   :  { %2192 = vmatprep.subr.bf16.mxu0 %v3240_v63  ;;  %2224 = vmatprep.subr.bf16.mxu1 %v3249_v2 }
 0x163   :  { %2194 = vmatpush1.bf16.msra.mxu0 %v3261_v7  ;;  %2226 = vmatpush1.bf16.msra.mxu1 %v3270_v11 }
 0x164   :  { %2196 = vmatprep.subr.bf16.mxu0 %v3282_v16  ;;  %2228 = vmatprep.subr.bf16.mxu1 %v3291_v20 }
 0x167   :  { %2198 = vmatpush1.bf16.msra.mxu0 %v3303_v26  ;;  %2230 = vmatpush1.bf16.msra.mxu1 %v3312_v30 }
 0x168   :  { %2200 = vmatprep.subr.bf16.mxu0 %v3324_v36  ;;  %2232 = vmatprep.subr.bf16.mxu1 %v3333_v40 }
 0x16b   :  { %2202 = vmatpush1.bf16.msra.mxu0 %v3345_v46  ;;  %2234 = vmatpush1.bf16.msra.mxu1 %v3354_v50 }
 0x16c   :  { %2204 = vmatprep.subr.bf16.mxu0 %v3366_v55  ;;  %2236 = vmatprep.subr.bf16.mxu1 %v3375_v60 }
 0x16f   :  { %2206 = vmatpush1.bf16.msra.mxu0 %v3381_v62  ;;  %2238 = vmatpush1.bf16.msra.mxu1 %v3384_v0 }
 0x170   :  { %2240 = vmatprep.subr.bf16.mxu0 %v3069_v5  ;;  %2272 = vmatprep.subr.bf16.mxu1 %v3077_v8 }
 0x225   :  { %v766_v29 = vpop.f32.mrb[2].mxu0  ;;  %v837_v32 = vpop.f32.mrb[2].mxu1 }
 0x226   :  { %v2561_v34 = vadd.f32 %v766_v29, %v3434_v13  ;;  %v768_v37 = vpop.f32.mrb[3].mxu0  ;;  %v839_v39 = vpop.f32.mrb[3].mxu1  ;;  %v2577_v48 = vadd.f32 %v837_v32, %v3439_v25 }
 0x227   :  { %v2562_v41 = vadd.f32 %v768_v37, %v3436_v18  ;;  %v2578_v53 = vadd.f32 %v839_v39, %v3442_v33 }
 0x228   :  { %v846_v43 = vmul.f32 0.25, %v2561_v34  ;;  %v854_v61 = vmax.f32 %v2577_v48, 0.0 }
 0x229   :  { %v850_v44 = vmul.f32 0.25, %v2562_v41  ;;  %v855_v4 = vmul.f32 0.25, %v2578_v53 }
 0x22a   :  { %v847_v47 = vadd.f32 0.5, %v846_v43 }
 0x22b   :  { %v851_v51 = vadd.f32 0.5, %v850_v44  ;;  %v856_v15 = vadd.f32 0.5, %v855_v4 }
 0x22c   :  { %v848_v54 = vmax.f32 %v847_v47, 0.0 }
 0x22d   :  { %v852_v57 = vmax.f32 %v851_v51, 0.0  ;;  %v857_v22 = vmax.f32 %v856_v15, 0.0 }
 0x22e   :  { %v849_v58 = vmin.f32 %v848_v54, 1.0 }
 0x22f   :  { %v853_v1 = vmin.f32 %v852_v57, 1.0  ;;  %v858_v29 = vmin.f32 %v857_v22, 1.0 }
 0x230   :  { %v860_v9 = vmul.f32 %v854_v61, %v849_v58 }
 0x231   :  { %v859_v10 = vmul.f32 %v853_v1, %v3449_v6 }
 0x233   :  { %v3494_v12 = vadd.f32 %v860_v9, %v859_v10 }
 0x235   :  { %v862_v19 = vmul.f32 0.25, %v3494_v12 }
 0x237   :  { %v863_v23 = vadd.f32 0.5, %v862_v19 }
 0x239   :  { %v864_v27 = vmax.f32 %v863_v23, 0.0 }
 0x23b   :  { %v865_v32 = vmin.f32 %v864_v27, 1.0 }
 0x23d   :  { %v866_v34 = vmul.f32 %v865_v32, %v858_v29 }
 0x23f   :  { %867 = vst [vmem:[%s3739_s6 + $0x8] sm:$0xff] %v866_v34  ;;  %937 = vmatmul.mubr.f32.vlgmr.msra.gmra.mrb[4].mxu0 %v866_v34  ;;  %1008 = vmatmul.mubr.f32.vlgmr.msra.gmra.mrb[4].mxu1 %v866_v34 }
 0x240   :  { %2242 = vmatpush1.bf16.msra.mxu0 %v3094_v14  ;;  %2274 = vmatpush1.bf16.msra.mxu1 %v3103_v17 }
 0x241   :  { %2244 = vmatprep.subr.bf16.mxu0 %v3115_v21  ;;  %2276 = vmatprep.subr.bf16.mxu1 %v3123_v24 }
 0x242   :  { %1108 = vmatprep.mubr.f32.mxu0 %v2624_v3  ;;  %1179 = vmatprep.mubr.f32.mxu1 %v2624_v3 }
 0x244   :  { %2246 = vmatpush1.bf16.msra.mxu0 %v3135_v28  ;;  %2278 = vmatpush1.bf16.msra.mxu1 %v3144_v31 }
 0x245   :  { %2248 = vmatprep.subr.bf16.mxu0 %v3156_v35  ;;  %2280 = vmatprep.subr.bf16.mxu1 %v3165_v38 }
 0x248   :  { %2250 = vmatpush1.bf16.msra.mxu0 %v3177_v42  ;;  %2282 = vmatpush1.bf16.msra.mxu1 %v3186_v45 }
 0x249   :  { %2252 = vmatprep.subr.bf16.mxu0 %v3198_v49  ;;  %2284 = vmatprep.subr.bf16.mxu1 %v3207_v52 }
 0x24c   :  { %2254 = vmatpush1.bf16.msra.mxu0 %v3219_v56  ;;  %2286 = vmatpush1.bf16.msra.mxu1 %v3228_v59 }
 0x24d   :  { %2256 = vmatprep.subr.bf16.mxu0 %v3240_v63  ;;  %2288 = vmatprep.subr.bf16.mxu1 %v3249_v2 }
 0x250   :  { %2258 = vmatpush1.bf16.msra.mxu0 %v3261_v7  ;;  %2290 = vmatpush1.bf16.msra.mxu1 %v3270_v11 }
 0x251   :  { %2260 = vmatprep.subr.bf16.mxu0 %v3282_v16  ;;  %2292 = vmatprep.subr.bf16.mxu1 %v3291_v20 }
 0x254   :  { %2262 = vmatpush1.bf16.msra.mxu0 %v3303_v26  ;;  %2294 = vmatpush1.bf16.msra.mxu1 %v3312_v30 }
 0x255   :  { %2264 = vmatprep.subr.bf16.mxu0 %v3324_v36  ;;  %2296 = vmatprep.subr.bf16.mxu1 %v3333_v40 }
 0x258   :  { %2266 = vmatpush1.bf16.msra.mxu0 %v3345_v46  ;;  %2298 = vmatpush1.bf16.msra.mxu1 %v3354_v50 }
 0x259   :  { %2268 = vmatprep.subr.bf16.mxu0 %v3366_v55  ;;  %2300 = vmatprep.subr.bf16.mxu1 %v3375_v60 }
 0x25c   :  { %2270 = vmatpush1.bf16.msra.mxu0 %v3381_v62  ;;  %2302 = vmatpush1.bf16.msra.mxu1 %v3384_v0 }
 0x25d   :  { %2304 = vmatprep.subr.bf16.mxu0 %v3069_v5  ;;  %2336 = vmatprep.subr.bf16.mxu1 %v3077_v8 }
 0x312   :  { %v938_v6 = vpop.f32.mrb[4].mxu0  ;;  %v1009_v37 = vpop.f32.mrb[4].mxu1 }
 0x313   :  { %v2563_v39 = vadd.f32 %v938_v6, %v3434_v13  ;;  %v940_v41 = vpop.f32.mrb[5].mxu0  ;;  %v1011_v43 = vpop.f32.mrb[5].mxu1  ;;  %v2579_v53 = vadd.f32 %v1009_v37, %v3439_v25 }
 0x314   :  { %v2564_v44 = vadd.f32 %v940_v41, %v3436_v18  ;;  %v2580_v57 = vadd.f32 %v1011_v43, %v3442_v33 }
 0x315   :  { %v1018_v47 = vmul.f32 0.25, %v2563_v39  ;;  %v1026_v4 = vmax.f32 %v2579_v53, 0.0 }
 0x316   :  { %v1022_v48 = vmul.f32 0.25, %v2564_v44  ;;  %v1027_v10 = vmul.f32 0.25, %v2580_v57 }
 0x317   :  { %v1019_v51 = vadd.f32 0.5, %v1018_v47 }
 0x318   :  { %v1023_v54 = vadd.f32 0.5, %v1022_v48  ;;  %v1028_v23 = vadd.f32 0.5, %v1027_v10 }
 0x319   :  { %v1020_v58 = vmax.f32 %v1019_v51, 0.0 }
 0x31a   :  { %v1024_v61 = vmax.f32 %v1023_v54, 0.0  ;;  %v1029_v29 = vmax.f32 %v1028_v23, 0.0 }
 0x31b   :  { %v1021_v1 = vmin.f32 %v1020_v58, 1.0 }
 0x31c   :  { %v1025_v9 = vmin.f32 %v1024_v61, 1.0  ;;  %v1030_v6 = vmin.f32 %v1029_v29, 1.0 }
 0x31d   :  { %v1032_v15 = vmul.f32 %v1026_v4, %v1021_v1 }
 0x31e   :  { %v1031_v19 = vmul.f32 %v1025_v9, %v3494_v12 }
 0x320   :  { %v3539_v22 = vadd.f32 %v1032_v15, %v1031_v19 }
 0x322   :  { %v1034_v27 = vmul.f32 0.25, %v3539_v22 }
 0x324   :  { %v1035_v32 = vadd.f32 0.5, %v1034_v27 }
 0x326   :  { %v1036_v34 = vmax.f32 %v1035_v32, 0.0 }
 0x328   :  { %v1037_v37 = vmin.f32 %v1036_v34, 1.0 }
 0x32a   :  { %v1038_v39 = vmul.f32 %v1037_v37, %v1030_v6 }
 0x32c   :  { %1039 = vst [vmem:[%s3739_s6 + $0x10] sm:$0xff] %v1038_v39  ;;  %1109 = vmatmul.mubr.f32.vlgmr.msra.gmra.mrb[6].mxu0 %v1038_v39  ;;  %1180 = vmatmul.mubr.f32.vlgmr.msra.gmra.mrb[6].mxu1 %v1038_v39 }
 0x32d   :  { %2306 = vmatpush1.bf16.msra.mxu0 %v3094_v14  ;;  %2338 = vmatpush1.bf16.msra.mxu1 %v3103_v17 }
 0x32e   :  { %2308 = vmatprep.subr.bf16.mxu0 %v3115_v21  ;;  %2340 = vmatprep.subr.bf16.mxu1 %v3123_v24 }
 0x32f   :  { %1280 = vmatprep.mubr.f32.mxu0 %v2624_v3  ;;  %1351 = vmatprep.mubr.f32.mxu1 %v2624_v3 }
 0x331   :  { %2310 = vmatpush1.bf16.msra.mxu0 %v3135_v28  ;;  %2342 = vmatpush1.bf16.msra.mxu1 %v3144_v31 }
 0x332   :  { %2312 = vmatprep.subr.bf16.mxu0 %v3156_v35  ;;  %2344 = vmatprep.subr.bf16.mxu1 %v3165_v38 }
 0x335   :  { %2314 = vmatpush1.bf16.msra.mxu0 %v3177_v42  ;;  %2346 = vmatpush1.bf16.msra.mxu1 %v3186_v45 }
 0x336   :  { %2316 = vmatprep.subr.bf16.mxu0 %v3198_v49  ;;  %2348 = vmatprep.subr.bf16.mxu1 %v3207_v52 }
 0x339   :  { %2318 = vmatpush1.bf16.msra.mxu0 %v3219_v56  ;;  %2350 = vmatpush1.bf16.msra.mxu1 %v3228_v59 }
 0x33a   :  { %2320 = vmatprep.subr.bf16.mxu0 %v3240_v63  ;;  %2352 = vmatprep.subr.bf16.mxu1 %v3249_v2 }
 0x33d   :  { %2322 = vmatpush1.bf16.msra.mxu0 %v3261_v7  ;;  %2354 = vmatpush1.bf16.msra.mxu1 %v3270_v11 }
 0x33e   :  { %2324 = vmatprep.subr.bf16.mxu0 %v3282_v16  ;;  %2356 = vmatprep.subr.bf16.mxu1 %v3291_v20 }
 0x341   :  { %2326 = vmatpush1.bf16.msra.mxu0 %v3303_v26  ;;  %2358 = vmatpush1.bf16.msra.mxu1 %v3312_v30 }
 0x342   :  { %2328 = vmatprep.subr.bf16.mxu0 %v3324_v36  ;;  %2360 = vmatprep.subr.bf16.mxu1 %v3333_v40 }
 0x345   :  { %2330 = vmatpush1.bf16.msra.mxu0 %v3345_v46  ;;  %2362 = vmatpush1.bf16.msra.mxu1 %v3354_v50 }
 0x346   :  { %2332 = vmatprep.subr.bf16.mxu0 %v3366_v55  ;;  %2364 = vmatprep.subr.bf16.mxu1 %v3375_v60 }
 0x349   :  { %2334 = vmatpush1.bf16.msra.mxu0 %v3381_v62  ;;  %2366 = vmatpush1.bf16.msra.mxu1 %v3384_v0 }
 0x34a   :  { %2368 = vmatprep.subr.bf16.mxu0 %v3069_v5  ;;  %2400 = vmatprep.subr.bf16.mxu1 %v3077_v8 }
 0x3ff   :  { %v1110_v12 = vpop.f32.mrb[6].mxu0  ;;  %v1181_v41 = vpop.f32.mrb[6].mxu1 }
 0x400   :  { %v2565_v43 = vadd.f32 %v1110_v12, %v3434_v13  ;;  %v1112_v44 = vpop.f32.mrb[7].mxu0  ;;  %v1183_v47 = vpop.f32.mrb[7].mxu1  ;;  %v2581_v57 = vadd.f32 %v1181_v41, %v3439_v25 }
 0x401   :  { %v2566_v48 = vadd.f32 %v1112_v44, %v3436_v18  ;;  %v2582_v61 = vadd.f32 %v1183_v47, %v3442_v33 }
 0x402   :  { %v1190_v51 = vmul.f32 0.25, %v2565_v43  ;;  %v1198_v10 = vmax.f32 %v2581_v57, 0.0 }
 0x403   :  { %v1194_v53 = vmul.f32 0.25, %v2566_v48  ;;  %v1199_v19 = vmul.f32 0.25, %v2582_v61 }
 0x404   :  { %v1191_v54 = vadd.f32 0.5, %v1190_v51 }
 0x405   :  { %v1195_v58 = vadd.f32 0.5, %v1194_v53  ;;  %v1200_v32 = vadd.f32 0.5, %v1199_v19 }
 0x406   :  { %v1192_v1 = vmax.f32 %v1191_v54, 0.0 }
 0x407   :  { %v1196_v4 = vmax.f32 %v1195_v58, 0.0  ;;  %v1201_v6 = vmax.f32 %v1200_v32, 0.0 }
 0x408   :  { %v1193_v9 = vmin.f32 %v1192_v1, 1.0 }
 0x409   :  { %v1197_v15 = vmin.f32 %v1196_v4, 1.0  ;;  %v1202_v12 = vmin.f32 %v1201_v6, 1.0 }
 0x40a   :  { %v1204_v23 = vmul.f32 %v1198_v10, %v1193_v9 }
 0x40b   :  { %v1203_v27 = vmul.f32 %v1197_v15, %v3539_v22 }
 0x40d   :  { %v3584_v29 = vadd.f32 %v1204_v23, %v1203_v27 }
 0x40f   :  { %v1206_v34 = vmul.f32 0.25, %v3584_v29 }
 0x411   :  { %v1207_v37 = vadd.f32 0.5, %v1206_v34 }
 0x413   :  { %v1208_v39 = vmax.f32 %v1207_v37, 0.0 }
 0x415   :  { %v1209_v41 = vmin.f32 %v1208_v39, 1.0 }
 0x417   :  { %v1210_v43 = vmul.f32 %v1209_v41, %v1202_v12 }
 0x419   :  { %1211 = vst [vmem:[%s3739_s6 + $0x18] sm:$0xff] %v1210_v43  ;;  %1281 = vmatmul.mubr.f32.vlgmr.msra.gmra.mrb[8].mxu0 %v1210_v43  ;;  %1352 = vmatmul.mubr.f32.vlgmr.msra.gmra.mrb[8].mxu1 %v1210_v43 }
 0x41a   :  { %2370 = vmatpush1.bf16.msra.mxu0 %v3094_v14  ;;  %2402 = vmatpush1.bf16.msra.mxu1 %v3103_v17 }
 0x41b   :  { %2372 = vmatprep.subr.bf16.mxu0 %v3115_v21  ;;  %2404 = vmatprep.subr.bf16.mxu1 %v3123_v24 }
 0x41c   :  { %1452 = vmatprep.mubr.f32.mxu0 %v2624_v3  ;;  %1523 = vmatprep.mubr.f32.mxu1 %v2624_v3 }
 0x41e   :  { %2374 = vmatpush1.bf16.msra.mxu0 %v3135_v28  ;;  %2406 = vmatpush1.bf16.msra.mxu1 %v3144_v31 }
 0x41f   :  { %2376 = vmatprep.subr.bf16.mxu0 %v3156_v35  ;;  %2408 = vmatprep.subr.bf16.mxu1 %v3165_v38 }
 0x422   :  { %2378 = vmatpush1.bf16.msra.mxu0 %v3177_v42  ;;  %2410 = vmatpush1.bf16.msra.mxu1 %v3186_v45 }
 0x423   :  { %2380 = vmatprep.subr.bf16.mxu0 %v3198_v49  ;;  %2412 = vmatprep.subr.bf16.mxu1 %v3207_v52 }
 0x426   :  { %2382 = vmatpush1.bf16.msra.mxu0 %v3219_v56  ;;  %2414 = vmatpush1.bf16.msra.mxu1 %v3228_v59 }
 0x427   :  { %2384 = vmatprep.subr.bf16.mxu0 %v3240_v63  ;;  %2416 = vmatprep.subr.bf16.mxu1 %v3249_v2 }
 0x42a   :  { %2386 = vmatpush1.bf16.msra.mxu0 %v3261_v7  ;;  %2418 = vmatpush1.bf16.msra.mxu1 %v3270_v11 }
 0x42b   :  { %2388 = vmatprep.subr.bf16.mxu0 %v3282_v16  ;;  %2420 = vmatprep.subr.bf16.mxu1 %v3291_v20 }
 0x42e   :  { %2390 = vmatpush1.bf16.msra.mxu0 %v3303_v26  ;;  %2422 = vmatpush1.bf16.msra.mxu1 %v3312_v30 }
 0x42f   :  { %2392 = vmatprep.subr.bf16.mxu0 %v3324_v36  ;;  %2424 = vmatprep.subr.bf16.mxu1 %v3333_v40 }
 0x432   :  { %2394 = vmatpush1.bf16.msra.mxu0 %v3345_v46  ;;  %2426 = vmatpush1.bf16.msra.mxu1 %v3354_v50 }
 0x433   :  { %2396 = vmatprep.subr.bf16.mxu0 %v3366_v55  ;;  %2428 = vmatprep.subr.bf16.mxu1 %v3375_v60 }
 0x436   :  { %2398 = vmatpush1.bf16.msra.mxu0 %v3381_v62  ;;  %2430 = vmatpush1.bf16.msra.mxu1 %v3384_v0 }
 0x437   :  { %2432 = vmatprep.subr.bf16.mxu0 %v3069_v5  ;;  %2464 = vmatprep.subr.bf16.mxu1 %v3077_v8 }
 0x4ec   :  { %v1282_v22 = vpop.f32.mrb[8].mxu0  ;;  %v1353_v44 = vpop.f32.mrb[8].mxu1 }
 0x4ed   :  { %v2567_v47 = vadd.f32 %v1282_v22, %v3434_v13  ;;  %v1284_v48 = vpop.f32.mrb[9].mxu0  ;;  %v1355_v51 = vpop.f32.mrb[9].mxu1  ;;  %v2583_v61 = vadd.f32 %v1353_v44, %v3439_v25 }
 0x4ee   :  { %v2568_v53 = vadd.f32 %v1284_v48, %v3436_v18  ;;  %v2584_v4 = vadd.f32 %v1355_v51, %v3442_v33 }
 0x4ef   :  { %v1362_v54 = vmul.f32 0.25, %v2567_v47  ;;  %v1370_v19 = vmax.f32 %v2583_v61, 0.0 }
 0x4f0   :  { %v1366_v57 = vmul.f32 0.25, %v2568_v53  ;;  %v1371_v27 = vmul.f32 0.25, %v2584_v4 }
 0x4f1   :  { %v1363_v58 = vadd.f32 0.5, %v1362_v54 }
 0x4f2   :  { %v1367_v1 = vadd.f32 0.5, %v1366_v57  ;;  %v1372_v37 = vadd.f32 0.5, %v1371_v27 }
 0x4f3   :  { %v1364_v9 = vmax.f32 %v1363_v58, 0.0 }
 0x4f4   :  { %v1368_v10 = vmax.f32 %v1367_v1, 0.0  ;;  %v1373_v12 = vmax.f32 %v1372_v37, 0.0 }
 0x4f5   :  { %v1365_v15 = vmin.f32 %v1364_v9, 1.0 }
 0x4f6   :  { %v1369_v23 = vmin.f32 %v1368_v10, 1.0  ;;  %v1374_v22 = vmin.f32 %v1373_v12, 1.0 }
 0x4f7   :  { %v1376_v32 = vmul.f32 %v1370_v19, %v1365_v15 }
 0x4f8   :  { %v1375_v34 = vmul.f32 %v1369_v23, %v3584_v29 }
 0x4fa   :  { %v3629_v6 = vadd.f32 %v1376_v32, %v1375_v34 }
 0x4fc   :  { %v1378_v39 = vmul.f32 0.25, %v3629_v6 }
 0x4fe   :  { %v1379_v41 = vadd.f32 0.5, %v1378_v39 }
 0x500   :  { %v1380_v43 = vmax.f32 %v1379_v41, 0.0 }
 0x502   :  { %v1381_v44 = vmin.f32 %v1380_v43, 1.0 }
 0x504   :  { %v1382_v47 = vmul.f32 %v1381_v44, %v1374_v22 }
 0x506   :  { %1383 = vst [vmem:[%s3739_s6 + $0x20] sm:$0xff] %v1382_v47  ;;  %1453 = vmatmul.mubr.f32.vlgmr.msra.gmra.mrb[10].mxu0 %v1382_v47  ;;  %1524 = vmatmul.mubr.f32.vlgmr.msra.gmra.mrb[10].mxu1 %v1382_v47 }
 0x507   :  { %2434 = vmatpush1.bf16.msra.mxu0 %v3094_v14  ;;  %2466 = vmatpush1.bf16.msra.mxu1 %v3103_v17 }
 0x508   :  { %2436 = vmatprep.subr.bf16.mxu0 %v3115_v21  ;;  %2468 = vmatprep.subr.bf16.mxu1 %v3123_v24 }
 0x509   :  { %1624 = vmatprep.mubr.f32.mxu0 %v2624_v3  ;;  %1695 = vmatprep.mubr.f32.mxu1 %v2624_v3 }
 0x50b   :  { %2438 = vmatpush1.bf16.msra.mxu0 %v3135_v28  ;;  %2470 = vmatpush1.bf16.msra.mxu1 %v3144_v31 }
 0x50c   :  { %2440 = vmatprep.subr.bf16.mxu0 %v3156_v35  ;;  %2472 = vmatprep.subr.bf16.mxu1 %v3165_v38 }
 0x50f   :  { %2442 = vmatpush1.bf16.msra.mxu0 %v3177_v42  ;;  %2474 = vmatpush1.bf16.msra.mxu1 %v3186_v45 }
 0x510   :  { %2444 = vmatprep.subr.bf16.mxu0 %v3198_v49  ;;  %2476 = vmatprep.subr.bf16.mxu1 %v3207_v52 }
 0x513   :  { %2446 = vmatpush1.bf16.msra.mxu0 %v3219_v56  ;;  %2478 = vmatpush1.bf16.msra.mxu1 %v3228_v59 }
 0x514   :  { %2448 = vmatprep.subr.bf16.mxu0 %v3240_v63  ;;  %2480 = vmatprep.subr.bf16.mxu1 %v3249_v2 }
 0x517   :  { %2450 = vmatpush1.bf16.msra.mxu0 %v3261_v7  ;;  %2482 = vmatpush1.bf16.msra.mxu1 %v3270_v11 }
 0x518   :  { %2452 = vmatprep.subr.bf16.mxu0 %v3282_v16  ;;  %2484 = vmatprep.subr.bf16.mxu1 %v3291_v20 }
 0x51b   :  { %2454 = vmatpush1.bf16.msra.mxu0 %v3303_v26  ;;  %2486 = vmatpush1.bf16.msra.mxu1 %v3312_v30 }
 0x51c   :  { %2456 = vmatprep.subr.bf16.mxu0 %v3324_v36  ;;  %2488 = vmatprep.subr.bf16.mxu1 %v3333_v40 }
 0x51f   :  { %2458 = vmatpush1.bf16.msra.mxu0 %v3345_v46  ;;  %2490 = vmatpush1.bf16.msra.mxu1 %v3354_v50 }
 0x520   :  { %2460 = vmatprep.subr.bf16.mxu0 %v3366_v55  ;;  %2492 = vmatprep.subr.bf16.mxu1 %v3375_v60 }
 0x523   :  { %2462 = vmatpush1.bf16.msra.mxu0 %v3381_v62  ;;  %2494 = vmatpush1.bf16.msra.mxu1 %v3384_v0 }
 0x524   :  { %2496 = vmatprep.subr.bf16.mxu0 %v3069_v5  ;;  %2528 = vmatprep.subr.bf16.mxu1 %v3077_v8 }
 0x5d9   :  { %v1454_v29 = vpop.f32.mrb[10].mxu0  ;;  %v1525_v48 = vpop.f32.mrb[10].mxu1 }
 0x5da   :  { %v2569_v51 = vadd.f32 %v1454_v29, %v3434_v13  ;;  %v1456_v53 = vpop.f32.mrb[11].mxu0  ;;  %v1527_v54 = vpop.f32.mrb[11].mxu1  ;;  %v2585_v4 = vadd.f32 %v1525_v48, %v3439_v25 }
 0x5db   :  { %v2570_v57 = vadd.f32 %v1456_v53, %v3436_v18  ;;  %v2586_v10 = vadd.f32 %v1527_v54, %v3442_v33 }
 0x5dc   :  { %v1534_v58 = vmul.f32 0.25, %v2569_v51  ;;  %v1542_v8 = vmax.f32 %v2585_v4, 0.0 }
 0x5dd   :  { %v1538_v61 = vmul.f32 0.25, %v2570_v57  ;;  %v1543_v27 = vmul.f32 0.25, %v2586_v10 }
 0x5de   :  { %v1535_v1 = vadd.f32 0.5, %v1534_v58 }
 0x5df   :  { %v1539_v9 = vadd.f32 0.5, %v1538_v61  ;;  %v1544_v39 = vadd.f32 0.5, %v1543_v27 }
 0x5e0   :  { %v1536_v15 = vmax.f32 %v1535_v1, 0.0 }
 0x5e1   :  { %v1540_v5 = vmax.f32 %v1539_v9, 0.0  ;;  %v1545_v41 = vmax.f32 %v1544_v39, 0.0 }
 0x5e2   :  { %v1537_v19 = vmin.f32 %v1536_v15, 1.0 }
 0x5e3   :  { %v1541_v23 = vmin.f32 %v1540_v5, 1.0  ;;  %v1546_v44 = vmin.f32 %v1545_v41, 1.0 }
 0x5e4   :  { %v1548_v32 = vmul.f32 %v1542_v8, %v1537_v19 }
 0x5e5   :  { %v1547_v34 = vmul.f32 %v1541_v23, %v3629_v6 }
 0x5e7   :  { %v3674_v37 = vadd.f32 %v1548_v32, %v1547_v34 }
 0x5e9   :  { %v1550_v12 = vmul.f32 0.25, %v3674_v37 }
 0x5eb   :  { %v1551_v43 = vadd.f32 0.5, %v1550_v12 }
 0x5ed   :  { %v1552_v22 = vmax.f32 %v1551_v43, 0.0 }
 0x5ef   :  { %v1553_v47 = vmin.f32 %v1552_v22, 1.0 }
 0x5f1   :  { %v1554_v29 = vmul.f32 %v1553_v47, %v1546_v44 }
 0x5f3   :  { %1555 = vst [vmem:[%s3739_s6 + $0x28] sm:$0xff] %v1554_v29  ;;  %1625 = vmatmul.mubr.f32.vlgmr.msra.gmra.mrb[12].mxu0 %v1554_v29  ;;  %1696 = vmatmul.mubr.f32.vlgmr.msra.gmra.mrb[12].mxu1 %v1554_v29 }
 0x5f4   :  { %2498 = vmatpush1.bf16.msra.mxu0 %v3094_v14  ;;  %2530 = vmatpush1.bf16.msra.mxu1 %v3103_v17 }
 0x5f5   :  { %2500 = vmatprep.subr.bf16.mxu0 %v3115_v21  ;;  %2532 = vmatprep.subr.bf16.mxu1 %v3123_v24 }
 0x5f6   :  { %1796 = vmatprep.mubr.f32.mxu0 %v2624_v3  ;;  %1867 = vmatprep.mubr.f32.mxu1 %v2624_v3 }
 0x5f8   :  { %2502 = vmatpush1.bf16.msra.mxu0 %v3135_v28  ;;  %2534 = vmatpush1.bf16.msra.mxu1 %v3144_v31 }
 0x5f9   :  { %2504 = vmatprep.subr.bf16.mxu0 %v3156_v35  ;;  %2536 = vmatprep.subr.bf16.mxu1 %v3165_v38 }
 0x5fc   :  { %2506 = vmatpush1.bf16.msra.mxu0 %v3177_v42  ;;  %2538 = vmatpush1.bf16.msra.mxu1 %v3186_v45 }
 0x5fd   :  { %2508 = vmatprep.subr.bf16.mxu0 %v3198_v49  ;;  %2540 = vmatprep.subr.bf16.mxu1 %v3207_v52 }
 0x600   :  { %2510 = vmatpush1.bf16.msra.mxu0 %v3219_v56  ;;  %2542 = vmatpush1.bf16.msra.mxu1 %v3228_v59 }
 0x601   :  { %2512 = vmatprep.subr.bf16.mxu0 %v3240_v63  ;;  %2544 = vmatprep.subr.bf16.mxu1 %v3249_v2 }
 0x604   :  { %2514 = vmatpush1.bf16.msra.mxu0 %v3261_v7  ;;  %2546 = vmatpush1.bf16.msra.mxu1 %v3270_v11 }
 0x605   :  { %2516 = vmatprep.subr.bf16.mxu0 %v3282_v16  ;;  %2548 = vmatprep.subr.bf16.mxu1 %v3291_v20 }
 0x608   :  { %2518 = vmatpush1.bf16.msra.mxu0 %v3303_v26  ;;  %2550 = vmatpush1.bf16.msra.mxu1 %v3312_v30 }
 0x609   :  { %2520 = vmatprep.subr.bf16.mxu0 %v3324_v36  ;;  %2552 = vmatprep.subr.bf16.mxu1 %v3333_v40 }
 0x60c   :  { %2522 = vmatpush1.bf16.msra.mxu0 %v3345_v46  ;;  %2554 = vmatpush1.bf16.msra.mxu1 %v3354_v50 }
 0x60d   :  { %2524 = vmatprep.subr.bf16.mxu0 %v3366_v55  ;;  %2556 = vmatprep.subr.bf16.mxu1 %v3375_v60 }
 0x610   :  { %2526 = vmatpush1.bf16.msra.mxu0 %v3381_v62  ;;  %2558 = vmatpush1.bf16.msra.mxu1 %v3384_v0 }
 0x6c6   :  { %v1626_v14 = vpop.f32.mrb[12].mxu0  ;;  %v1697_v17 = vpop.f32.mrb[12].mxu1 }
 0x6c7   :  { %v2571_v21 = vadd.f32 %v1626_v14, %v3434_v13  ;;  %v1628_v24 = vpop.f32.mrb[13].mxu0  ;;  %v1699_v28 = vpop.f32.mrb[13].mxu1  ;;  %v2587_v45 = vadd.f32 %v1697_v17, %v3439_v25 }
 0x6c8   :  { %v2572_v31 = vadd.f32 %v1628_v24, %v3436_v18  ;;  %v2588_v52 = vadd.f32 %v1699_v28, %v3442_v33 }
 0x6c9   :  { %v1706_v35 = vmul.f32 0.25, %v2571_v21  ;;  %v1714_v2 = vmax.f32 %v2587_v45, 0.0 }
 0x6ca   :  { %v1710_v38 = vmul.f32 0.25, %v2572_v31  ;;  %v1715_v11 = vmul.f32 0.25, %v2588_v52 }
 0x6cb   :  { %v1707_v42 = vadd.f32 0.5, %v1706_v35 }
 0x6cc   :  { %v1711_v49 = vadd.f32 0.5, %v1710_v38  ;;  %v1716_v30 = vadd.f32 0.5, %v1715_v11 }
 0x6cd   :  { %v1708_v56 = vmax.f32 %v1707_v42, 0.0 }
 0x6ce   :  { %v1712_v59 = vmax.f32 %v1711_v49, 0.0  ;;  %v1717_v40 = vmax.f32 %v1716_v30, 0.0 }
 0x6cf   :  { %v1709_v63 = vmin.f32 %v1708_v56, 1.0 }
 0x6d0   :  { %v1713_v7 = vmin.f32 %v1712_v59, 1.0  ;;  %v1718_v55 = vmin.f32 %v1717_v40, 1.0 }
 0x6d1   :  { %v1720_v16 = vmul.f32 %v1714_v2, %v1709_v63 }
 0x6d2   :  { %v1719_v20 = vmul.f32 %v1713_v7, %v3674_v37 }
 0x6d4   :  { %v1721_v26 = vadd.f32 %v1720_v16, %v1719_v20 }
 0x6d6   :  { %v1722_v36 = vmul.f32 0.25, %v1721_v26 }
 0x6d8   :  { %v1723_v46 = vadd.f32 0.5, %v1722_v36 }
 0x6da   :  { %v1724_v50 = vmax.f32 %v1723_v46, 0.0 }
 0x6dc   :  { %v1725_v60 = vmin.f32 %v1724_v50, 1.0 }
 0x6de   :  { %v1726_v62 = vmul.f32 %v1725_v60, %v1718_v55 }
 0x6e0   :  { %1727 = vst [vmem:[%s3739_s6 + $0x30] sm:$0xff] %v1726_v62  ;;  %1797 = vmatmul.mubr.f32.vlgmr.msra.gmra.mrb[14].mxu0 %v1726_v62  ;;  %1868 = vmatmul.mubr.f32.vlgmr.msra.gmra.mrb[14].mxu1 %v1726_v62 }
 0x7b3   :  { %v1798_v0 = vpop.f32.mrb[14].mxu0  ;;  %v1869_v3 = vpop.f32.mrb[14].mxu1 }
 0x7b4   :  { %v2573_v6 = vadd.f32 %v1798_v0, %v3434_v13  ;;  %v1800_v48 = vpop.f32.mrb[15].mxu0  ;;  %v1871_v51 = vpop.f32.mrb[15].mxu1  ;;  %v2589_v61 = vadd.f32 %v1869_v3, %v3439_v25 }
 0x7b5   :  { %v2574_v53 = vadd.f32 %v1800_v48, %v3436_v18  ;;  %v2590_v4 = vadd.f32 %v1871_v51, %v3442_v33 }
 0x7b6   :  { %v1878_v54 = vmul.f32 0.25, %v2573_v6  ;;  %v1886_v5 = vmax.f32 %v2589_v61, 0.0 }
 0x7b7   :  { %v1882_v57 = vmul.f32 0.25, %v2574_v53  ;;  %v1887_v8 = vmul.f32 0.25, %v2590_v4 }
 0x7b8   :  { %v1879_v58 = vadd.f32 0.5, %v1878_v54 }
 0x7b9   :  { %v1883_v1 = vadd.f32 0.5, %v1882_v57  ;;  %v1888_v32 = vadd.f32 0.5, %v1887_v8 }
 0x7ba   :  { %v1880_v9 = vmax.f32 %v1879_v58, 0.0 }
 0x7bb   :  { %v1884_v10 = vmax.f32 %v1883_v1, 0.0  ;;  %v1889_v34 = vmax.f32 %v1888_v32, 0.0 }
 0x7bc   :  { %v1881_v15 = vmin.f32 %v1880_v9, 1.0 }
 0x7bd   :  { %v1885_v19 = vmin.f32 %v1884_v10, 1.0  ;;  %v1890_v39 = vmin.f32 %v1889_v34, 1.0 }
 0x7be   :  { %v1892_v23 = vmul.f32 %v1886_v5, %v1881_v15 }
 0x7bf   :  { %v1891_v13 = vmul.f32 %v1885_v19, %v1721_v26 }
 0x7c1   :  { %v1893_v27 = vadd.f32 %v1892_v23, %v1891_v13 }
 0x7c3   :  { %1906 = vst [vmem:[%s3740_s8] sm:$0xff] %v1893_v27  ;;  %v1894_v18 = vmul.f32 0.25, %v1893_v27 }
 0x7c5   :  { %v1895_v25 = vadd.f32 0.5, %v1894_v18 }
 0x7c7   :  { %v1896_v37 = vmax.f32 %v1895_v25, 0.0 }
 0x7c9   :  { %v1897_v33 = vmin.f32 %v1896_v37, 1.0 }
 0x7cb   :  { %v1898_v12 = vmul.f32 %v1897_v33, %v1890_v39 }
 0x7cd   :  { %1899 = vst [vmem:[%s3739_s6 + $0x38] sm:$0xff] %v1898_v12  ;;  %1905 = vst [vmem:[%s3741_s7] sm:$0xff] %v1898_v12 }

// kernel: quantized_lstm_forward.7
= control target key start
LH: loop header
LB: loop body
LE: loop exit
PB: predicated region body
PF: predicated region fallthrough
CT: control target
= control target key end

     0   :  { %s3800_s1 = inlined_call_operand.vmem [shape: f32[256,512], index: 1, kind: input, shape index: {}]   ;;  %s3801_s0 = inlined_call_operand.vmem [shape: f32[64,256], index: 0, kind: input, shape index: {}]   ;;  %s3802_s2 = inlined_call_operand.vmem [shape: f32[128,512], index: 2, kind: input, shape index: {}]   ;;  %s3803_s4 = inlined_call_operand.vmem [shape: f32[8,128], index: 4, kind: input, shape index: {}]   ;;  %s3804_s3 = inlined_call_operand.vmem [shape: f32[1,512], index: 3, kind: input, shape index: {}]   ;;  %s3805_s5 = inlined_call_operand.vmem [shape: f32[8,128], index: 5, kind: input, shape index: {}]   ;;  %s3806_s6 = inlined_call_operand.vmem [shape: f32[64,128], index: 6, kind: output, shape index: {0}]   ;;  %s3807_s8 = inlined_call_operand.vmem [shape: f32[8,128], index: 8, kind: output, shape index: {2}]   ;;  %s3808_s7 = inlined_call_operand.vmem [shape: f32[8,128], index: 7, kind: output, shape index: {1}]  }
   0x1   :  { %v90_v0 = vld [vmem:[%s3800_s1 + $0x8] sm:$0xff]  ;;  %v92_v2 = vld [vmem:[%s3800_s1 + $0x18] sm:$0xff]  ;;  %v89_v5 = vld [vmem:[%s3800_s1] sm:$0xff] }
   0x2   :  { %v94_v1 = vld [vmem:[%s3800_s1 + $0x28] sm:$0xff]  ;;  %v96_v4 = vld [vmem:[%s3800_s1 + $0x38] sm:$0xff]  ;;  %v93_v6 = vld [vmem:[%s3800_s1 + $0x20] sm:$0xff] }
   0x3   :  { %v1986_v3 = vpack.c.bf16 %v94_v1, %v90_v0  ;;  %v2050_v7 = vpack.c.bf16 %v96_v4, %v92_v2  ;;  %v1988_v8 = vpack.c.bf16 %v93_v6, %v89_v5  ;;  %v91_v9 = vld [vmem:[%s3800_s1 + $0x10] sm:$0xff]  ;;  %v98_v11 = vld [vmem:[%s3800_s1 + $0x48] sm:$0xff]  ;;  %v100_v14 = vld [vmem:[%s3800_s1 + $0x58] sm:$0xff] }
   0x4   :  { %v95_v10 = vld [vmem:[%s3800_s1 + $0x30] sm:$0xff]  ;;  %v102_v13 = vld [vmem:[%s3800_s1 + $0x68] sm:$0xff]  ;;  %v104_v15 = vld [vmem:[%s3800_s1 + $0x78] sm:$0xff] }
   0x5   :  { %1987 = vmatprep.subr.bf16.mxu0 %v1986_v3  ;;  %v2052_v12 = vpack.c.bf16 %v95_v10, %v91_v9  ;;  %2051 = vmatprep.subr.bf16.mxu1 %v2050_v7  ;;  %v1990_v16 = vpack.c.bf16 %v102_v13, %v98_v11  ;;  %v2054_v17 = vpack.c.bf16 %v104_v15, %v100_v14  ;;  %v97_v18 = vld [vmem:[%s3800_s1 + $0x40] sm:$0xff]  ;;  %v99_v20 = vld [vmem:[%s3800_s1 + $0x50] sm:$0xff]  ;;  %v106_v23 = vld [vmem:[%s3800_s1 + $0x88] sm:$0xff] }
   0x6   :  { %1989 = vmatpush1.bf16.msra.mxu0 %v1988_v8  ;;  %v101_v19 = vld [vmem:[%s3800_s1 + $0x60] sm:$0xff]  ;;  %v103_v22 = vld [vmem:[%s3800_s1 + $0x70] sm:$0xff]  ;;  %v110_v24 = vld [vmem:[%s3800_s1 + $0xa8] sm:$0xff] }
   0x7   :  { %2053 = vmatpush1.bf16.msra.mxu1 %v2052_v12  ;;  %v1992_v21 = vpack.c.bf16 %v101_v19, %v97_v18  ;;  %1991 = vmatprep.subr.bf16.mxu0 %v1990_v16  ;;  %v2056_v25 = vpack.c.bf16 %v103_v22, %v99_v20  ;;  %v1994_v26 = vpack.c.bf16 %v110_v24, %v106_v23  ;;  %v108_v27 = vld [vmem:[%s3800_s1 + $0x98] sm:$0xff]  ;;  %v105_v29 = vld [vmem:[%s3800_s1 + $0x80] sm:$0xff]  ;;  %v107_v32 = vld [vmem:[%s3800_s1 + $0x90] sm:$0xff] }
   0x8   :  { %2055 = vmatprep.subr.bf16.mxu1 %v2054_v17  ;;  %v112_v28 = vld [vmem:[%s3800_s1 + $0xb8] sm:$0xff]  ;;  %v109_v31 = vld [vmem:[%s3800_s1 + $0xa0] sm:$0xff]  ;;  %v111_v33 = vld [vmem:[%s3800_s1 + $0xb0] sm:$0xff] }
   0x9   :  { %v2058_v30 = vpack.c.bf16 %v112_v28, %v108_v27  ;;  %v1996_v34 = vpack.c.bf16 %v109_v31, %v105_v29  ;;  %v114_v35 = vld [vmem:[%s3800_s1 + $0xc8] sm:$0xff]  ;;  %v116_v37 = vld [vmem:[%s3800_s1 + $0xd8] sm:$0xff]  ;;  %v2060_v38 = vpack.c.bf16 %v111_v33, %v107_v32  ;;  %v113_v41 = vld [vmem:[%s3800_s1 + $0xc0] sm:$0xff] }
   0xa   :  { %1993 = vmatpush1.bf16.msra.mxu0 %v1992_v21  ;;  %v118_v36 = vld [vmem:[%s3800_s1 + $0xe8] sm:$0xff]  ;;  %v120_v40 = vld [vmem:[%s3800_s1 + $0xf8] sm:$0xff]  ;;  %v117_v42 = vld [vmem:[%s3800_s1 + $0xe0] sm:$0xff] }
   0xb   :  { %2057 = vmatpush1.bf16.msra.mxu1 %v2056_v25  ;;  %1995 = vmatprep.subr.bf16.mxu0 %v1994_v26  ;;  %v1998_v39 = vpack.c.bf16 %v118_v36, %v114_v35  ;;  %v2062_v43 = vpack.c.bf16 %v120_v40, %v116_v37  ;;  %v115_v44 = vld [vmem:[%s3800_s1 + $0xd0] sm:$0xff]  ;;  %v122_v46 = vld [vmem:[%s3800_s1 + $0x108] sm:$0xff]  ;;  %v124_v48 = vld [vmem:[%s3800_s1 + $0x118] sm:$0xff]  ;;  %v2000_v50 = vpack.c.bf16 %v117_v42, %v113_v41 }
   0xc   :  { %2059 = vmatprep.subr.bf16.mxu1 %v2058_v30  ;;  %v119_v45 = vld [vmem:[%s3800_s1 + $0xf0] sm:$0xff]  ;;  %v126_v47 = vld [vmem:[%s3800_s1 + $0x128] sm:$0xff]  ;;  %v128_v49 = vld [vmem:[%s3800_s1 + $0x138] sm:$0xff] }
   0xd   :  { %v2064_v51 = vpack.c.bf16 %v119_v45, %v115_v44  ;;  %v2002_v52 = vpack.c.bf16 %v126_v47, %v122_v46  ;;  %v121_v53 = vld [vmem:[%s3800_s1 + $0x100] sm:$0xff]  ;;  %v123_v55 = vld [vmem:[%s3800_s1 + $0x110] sm:$0xff]  ;;  %v2066_v56 = vpack.c.bf16 %v128_v49, %v124_v48  ;;  %v130_v58 = vld [vmem:[%s3800_s1 + $0x148] sm:$0xff] }
   0xe   :  { %1997 = vmatpush1.bf16.msra.mxu0 %v1996_v34  ;;  %v125_v54 = vld [vmem:[%s3800_s1 + $0x120] sm:$0xff]  ;;  %v127_v57 = vld [vmem:[%s3800_s1 + $0x130] sm:$0xff]  ;;  %v134_v59 = vld [vmem:[%s3800_s1 + $0x168] sm:$0xff] }
   0xf   :  { %2061 = vmatpush1.bf16.msra.mxu1 %v2060_v38  ;;  %1999 = vmatprep.subr.bf16.mxu0 %v1998_v39  ;;  %v132_v60 = vld [vmem:[%s3800_s1 + $0x158] sm:$0xff]  ;;  %v2004_v62 = vpack.c.bf16 %v125_v54, %v121_v53  ;;  %v2068_v63 = vpack.c.bf16 %v127_v57, %v123_v55  ;;  %v2006_v0 = vpack.c.bf16 %v134_v59, %v130_v58  ;;  %v129_v1 = vld [vmem:[%s3800_s1 + $0x140] sm:$0xff]  ;;  %v131_v3 = vld [vmem:[%s3800_s1 + $0x150] sm:$0xff] }
  0x10   :  { %2063 = vmatprep.subr.bf16.mxu1 %v2062_v43  ;;  %v136_v61 = vld [vmem:[%s3800_s1 + $0x178] sm:$0xff]  ;;  %v133_v2 = vld [vmem:[%s3800_s1 + $0x160] sm:$0xff]  ;;  %v135_v5 = vld [vmem:[%s3800_s1 + $0x170] sm:$0xff] }
  0x11   :  { %v2070_v4 = vpack.c.bf16 %v136_v61, %v132_v60  ;;  %v138_v6 = vld [vmem:[%s3800_s1 + $0x188] sm:$0xff]  ;;  %v140_v8 = vld [vmem:[%s3800_s1 + $0x198] sm:$0xff]  ;;  %v2008_v10 = vpack.c.bf16 %v133_v2, %v129_v1  ;;  %v2072_v11 = vpack.c.bf16 %v135_v5, %v131_v3  ;;  %v137_v13 = vld [vmem:[%s3800_s1 + $0x180] sm:$0xff] }
  0x12   :  { %2001 = vmatpush1.bf16.msra.mxu0 %v2000_v50  ;;  %v142_v7 = vld [vmem:[%s3800_s1 + $0x1a8] sm:$0xff]  ;;  %v144_v9 = vld [vmem:[%s3800_s1 + $0x1b8] sm:$0xff]  ;;  %v141_v14 = vld [vmem:[%s3800_s1 + $0x1a0] sm:$0xff] }
  0x13   :  { %2065 = vmatpush1.bf16.msra.mxu1 %v2064_v51  ;;  %2003 = vmatprep.subr.bf16.mxu0 %v2002_v52  ;;  %v2010_v12 = vpack.c.bf16 %v142_v7, %v138_v6  ;;  %v139_v15 = vld [vmem:[%s3800_s1 + $0x190] sm:$0xff]  ;;  %v2074_v16 = vpack.c.bf16 %v144_v9, %v140_v8  ;;  %v146_v18 = vld [vmem:[%s3800_s1 + $0x1c8] sm:$0xff]  ;;  %v148_v20 = vld [vmem:[%s3800_s1 + $0x1d8] sm:$0xff]  ;;  %v2012_v22 = vpack.c.bf16 %v141_v14, %v137_v13 }
  0x14   :  { %2067 = vmatprep.subr.bf16.mxu1 %v2066_v56  ;;  %v143_v17 = vld [vmem:[%s3800_s1 + $0x1b0] sm:$0xff]  ;;  %v150_v19 = vld [vmem:[%s3800_s1 + $0x1e8] sm:$0xff]  ;;  %v152_v21 = vld [vmem:[%s3800_s1 + $0x1f8] sm:$0xff] }
  0x15   :  { %v2076_v23 = vpack.c.bf16 %v143_v17, %v139_v15  ;;  %v2014_v24 = vpack.c.bf16 %v150_v19, %v146_v18  ;;  %v145_v25 = vld [vmem:[%s3800_s1 + $0x1c0] sm:$0xff]  ;;  %v147_v27 = vld [vmem:[%s3800_s1 + $0x1d0] sm:$0xff]  ;;  %v2078_v28 = vpack.c.bf16 %v152_v21, %v148_v20  ;;  %v154_v30 = vld [vmem:[%s3800_s1 + $0x208] sm:$0xff] }
  0x16   :  { %2005 = vmatpush1.bf16.msra.mxu0 %v2004_v62  ;;  %v149_v26 = vld [vmem:[%s3800_s1 + $0x1e0] sm:$0xff]  ;;  %v151_v29 = vld [vmem:[%s3800_s1 + $0x1f0] sm:$0xff]  ;;  %v158_v31 = vld [vmem:[%s3800_s1 + $0x228] sm:$0xff] }
  0x17   :  { %2069 = vmatpush1.bf16.msra.mxu1 %v2068_v63  ;;  %2007 = vmatprep.subr.bf16.mxu0 %v2006_v0  ;;  %v156_v32 = vld [vmem:[%s3800_s1 + $0x218] sm:$0xff]  ;;  %v2016_v34 = vpack.c.bf16 %v149_v26, %v145_v25  ;;  %v2080_v35 = vpack.c.bf16 %v151_v29, %v147_v27  ;;  %v2018_v36 = vpack.c.bf16 %v158_v31, %v154_v30  ;;  %v153_v37 = vld [vmem:[%s3800_s1 + $0x200] sm:$0xff]  ;;  %v155_v39 = vld [vmem:[%s3800_s1 + $0x210] sm:$0xff] }
  0x18   :  { %2071 = vmatprep.subr.bf16.mxu1 %v2070_v4  ;;  %v160_v33 = vld [vmem:[%s3800_s1 + $0x238] sm:$0xff]  ;;  %v157_v38 = vld [vmem:[%s3800_s1 + $0x220] sm:$0xff]  ;;  %v159_v41 = vld [vmem:[%s3800_s1 + $0x230] sm:$0xff] }
  0x19   :  { %v2082_v40 = vpack.c.bf16 %v160_v33, %v156_v32  ;;  %v162_v42 = vld [vmem:[%s3800_s1 + $0x248] sm:$0xff]  ;;  %v164_v44 = vld [vmem:[%s3800_s1 + $0x258] sm:$0xff]  ;;  %v2020_v46 = vpack.c.bf16 %v157_v38, %v153_v37  ;;  %v2084_v47 = vpack.c.bf16 %v159_v41, %v155_v39  ;;  %v161_v49 = vld [vmem:[%s3800_s1 + $0x240] sm:$0xff] }
  0x1a   :  { %2009 = vmatpush1.bf16.msra.mxu0 %v2008_v10  ;;  %v166_v43 = vld [vmem:[%s3800_s1 + $0x268] sm:$0xff]  ;;  %v168_v45 = vld [vmem:[%s3800_s1 + $0x278] sm:$0xff]  ;;  %v165_v50 = vld [vmem:[%s3800_s1 + $0x260] sm:$0xff] }
  0x1b   :  { %2073 = vmatpush1.bf16.msra.mxu1 %v2072_v11  ;;  %2011 = vmatprep.subr.bf16.mxu0 %v2010_v12  ;;  %v2022_v48 = vpack.c.bf16 %v166_v43, %v162_v42  ;;  %v163_v51 = vld [vmem:[%s3800_s1 + $0x250] sm:$0xff]  ;;  %v2086_v52 = vpack.c.bf16 %v168_v45, %v164_v44  ;;  %v170_v54 = vld [vmem:[%s3800_s1 + $0x288] sm:$0xff]  ;;  %v172_v56 = vld [vmem:[%s3800_s1 + $0x298] sm:$0xff]  ;;  %v2024_v58 = vpack.c.bf16 %v165_v50, %v161_v49 }
  0x1c   :  { %2075 = vmatprep.subr.bf16.mxu1 %v2074_v16  ;;  %v167_v53 = vld [vmem:[%s3800_s1 + $0x270] sm:$0xff]  ;;  %v174_v55 = vld [vmem:[%s3800_s1 + $0x2a8] sm:$0xff]  ;;  %v176_v57 = vld [vmem:[%s3800_s1 + $0x2b8] sm:$0xff] }
  0x1d   :  { %v2088_v59 = vpack.c.bf16 %v167_v53, %v163_v51  ;;  %v2026_v60 = vpack.c.bf16 %v174_v55, %v170_v54  ;;  %v169_v61 = vld [vmem:[%s3800_s1 + $0x280] sm:$0xff]  ;;  %v171_v63 = vld [vmem:[%s3800_s1 + $0x290] sm:$0xff]  ;;  %v2090_v0 = vpack.c.bf16 %v176_v57, %v172_v56  ;;  %v178_v2 = vld [vmem:[%s3800_s1 + $0x2c8] sm:$0xff] }
  0x1e   :  { %2013 = vmatpush1.bf16.msra.mxu0 %v2012_v22  ;;  %v173_v62 = vld [vmem:[%s3800_s1 + $0x2a0] sm:$0xff]  ;;  %v175_v1 = vld [vmem:[%s3800_s1 + $0x2b0] sm:$0xff]  ;;  %v182_v3 = vld [vmem:[%s3800_s1 + $0x2e8] sm:$0xff] }
  0x1f   :  { %2077 = vmatpush1.bf16.msra.mxu1 %v2076_v23  ;;  %2015 = vmatprep.subr.bf16.mxu0 %v2014_v24  ;;  %v180_v4 = vld [vmem:[%s3800_s1 + $0x2d8] sm:$0xff]  ;;  %v2028_v6 = vpack.c.bf16 %v173_v62, %v169_v61  ;;  %v177_v7 = vld [vmem:[%s3800_s1 + $0x2c0] sm:$0xff]  ;;  %v2092_v8 = vpack.c.bf16 %v175_v1, %v171_v63  ;;  %v2030_v9 = vpack.c.bf16 %v182_v3, %v178_v2  ;;  %v179_v11 = vld [vmem:[%s3800_s1 + $0x2d0] sm:$0xff] }
  0x20   :  { %2079 = vmatprep.subr.bf16.mxu1 %v2078_v28  ;;  %v184_v5 = vld [vmem:[%s3800_s1 + $0x2f8] sm:$0xff]  ;;  %v181_v10 = vld [vmem:[%s3800_s1 + $0x2e0] sm:$0xff]  ;;  %v183_v12 = vld [vmem:[%s3800_s1 + $0x2f0] sm:$0xff] }
  0x21   :  { %v2094_v13 = vpack.c.bf16 %v184_v5, %v180_v4  ;;  %v186_v14 = vld [vmem:[%s3800_s1 + $0x308] sm:$0xff]  ;;  %v188_v17 = vld [vmem:[%s3800_s1 + $0x318] sm:$0xff]  ;;  %v2032_v19 = vpack.c.bf16 %v181_v10, %v177_v7  ;;  %v2096_v20 = vpack.c.bf16 %v183_v12, %v179_v11  ;;  %v185_v22 = vld [vmem:[%s3800_s1 + $0x300] sm:$0xff] }
  0x22   :  { %2017 = vmatpush1.bf16.msra.mxu0 %v2016_v34  ;;  %v190_v15 = vld [vmem:[%s3800_s1 + $0x328] sm:$0xff]  ;;  %v192_v18 = vld [vmem:[%s3800_s1 + $0x338] sm:$0xff]  ;;  %v189_v23 = vld [vmem:[%s3800_s1 + $0x320] sm:$0xff] }
  0x23   :  { %2081 = vmatpush1.bf16.msra.mxu1 %v2080_v35  ;;  %2019 = vmatprep.subr.bf16.mxu0 %v2018_v36  ;;  %v74_v16 = vld [vmem:[%s3801_s0 + $0x8] sm:$0xff]  ;;  %v2034_v21 = vpack.c.bf16 %v190_v15, %v186_v14  ;;  %v187_v24 = vld [vmem:[%s3800_s1 + $0x310] sm:$0xff]  ;;  %v2098_v25 = vpack.c.bf16 %v192_v18, %v188_v17  ;;  %v196_v29 = vld [vmem:[%s3800_s1 + $0x358] sm:$0xff]  ;;  %v2036_v31 = vpack.c.bf16 %v189_v23, %v185_v22 }
  0x24   :  { %2083 = vmatprep.subr.bf16.mxu1 %v2082_v40  ;;  %303 = vmatprep.mubr.f32.mxu0 %v74_v16  ;;  %v191_v26 = vld [vmem:[%s3800_s1 + $0x330] sm:$0xff]  ;;  %v194_v27 = vld [vmem:[%s3800_s1 + $0x348] sm:$0xff]  ;;  %v200_v30 = vld [vmem:[%s3800_s1 + $0x378] sm:$0xff] }
  0x25   :  { %416 = vmatprep.mubr.f32.mxu1 %v74_v16  ;;  %v198_v28 = vld [vmem:[%s3800_s1 + $0x368] sm:$0xff]  ;;  %v2100_v32 = vpack.c.bf16 %v191_v26, %v187_v24  ;;  %v193_v34 = vld [vmem:[%s3800_s1 + $0x340] sm:$0xff]  ;;  %v195_v36 = vld [vmem:[%s3800_s1 + $0x350] sm:$0xff]  ;;  %v2102_v37 = vpack.c.bf16 %v200_v30, %v196_v29 }
  0x26   :  { %2021 = vmatpush1.bf16.msra.mxu0 %v2020_v46  ;;  %v2038_v33 = vpack.c.bf16 %v198_v28, %v194_v27  ;;  %v197_v35 = vld [vmem:[%s3800_s1 + $0x360] sm:$0xff]  ;;  %v199_v38 = vld [vmem:[%s3800_s1 + $0x370] sm:$0xff]  ;;  %v202_v39 = vld [vmem:[%s3800_s1 + $0x388] sm:$0xff] }
  0x27   :  { %2085 = vmatpush1.bf16.msra.mxu1 %v2084_v47  ;;  %2023 = vmatprep.subr.bf16.mxu0 %v2022_v48  ;;  %v206_v40 = vld [vmem:[%s3800_s1 + $0x3a8] sm:$0xff]  ;;  %v204_v41 = vld [vmem:[%s3800_s1 + $0x398] sm:$0xff]  ;;  %v2040_v43 = vpack.c.bf16 %v197_v35, %v193_v34  ;;  %v2104_v44 = vpack.c.bf16 %v199_v38, %v195_v36  ;;  %v201_v46 = vld [vmem:[%s3800_s1 + $0x380] sm:$0xff] }
  0x28   :  { %2087 = vmatprep.subr.bf16.mxu1 %v2086_v52  ;;  %v208_v42 = vld [vmem:[%s3800_s1 + $0x3b8] sm:$0xff]  ;;  %v2042_v45 = vpack.c.bf16 %v206_v40, %v202_v39  ;;  %v205_v47 = vld [vmem:[%s3800_s1 + $0x3a0] sm:$0xff]  ;;  %v203_v48 = vld [vmem:[%s3800_s1 + $0x390] sm:$0xff] }
  0x29   :  { %v2106_v49 = vpack.c.bf16 %v208_v42, %v204_v41  ;;  %v207_v50 = vld [vmem:[%s3800_s1 + $0x3b0] sm:$0xff]  ;;  %v210_v51 = vld [vmem:[%s3800_s1 + $0x3c8] sm:$0xff]  ;;  %v212_v53 = vld [vmem:[%s3800_s1 + $0x3d8] sm:$0xff]  ;;  %v2044_v55 = vpack.c.bf16 %v205_v47, %v201_v46 }
  0x2a   :  { %2025 = vmatpush1.bf16.msra.mxu0 %v2024_v58  ;;  %v214_v52 = vld [vmem:[%s3800_s1 + $0x3e8] sm:$0xff]  ;;  %v216_v54 = vld [vmem:[%s3800_s1 + $0x3f8] sm:$0xff]  ;;  %v2108_v56 = vpack.c.bf16 %v207_v50, %v203_v48  ;;  %v209_v58 = vld [vmem:[%s3800_s1 + $0x3c0] sm:$0xff] }
  0x2b   :  { %2089 = vmatpush1.bf16.msra.mxu1 %v2088_v59  ;;  %2027 = vmatprep.subr.bf16.mxu0 %v2026_v60  ;;  %v2046_v57 = vpack.c.bf16 %v214_v52, %v210_v51  ;;  %v213_v59 = vld [vmem:[%s3800_s1 + $0x3e0] sm:$0xff]  ;;  %v211_v60 = vld [vmem:[%s3800_s1 + $0x3d0] sm:$0xff]  ;;  %v2110_v61 = vpack.c.bf16 %v216_v54, %v212_v53  ;;  %v500_v63 = vld [vmem:[%s3802_s2 + $0x8] sm:$0xff] }
  0x2c   :  { %2091 = vmatprep.subr.bf16.mxu1 %v2090_v0  ;;  %v215_v62 = vld [vmem:[%s3800_s1 + $0x3f0] sm:$0xff]  ;;  %v504_v0 = vld [vmem:[%s3802_s2 + $0x28] sm:$0xff]  ;;  %v502_v1 = vld [vmem:[%s3802_s2 + $0x18] sm:$0xff]  ;;  %v2048_v3 = vpack.c.bf16 %v213_v59, %v209_v58 }
  0x2d   :  { %v506_v2 = vld [vmem:[%s3802_s2 + $0x38] sm:$0xff]  ;;  %v2112_v4 = vpack.c.bf16 %v215_v62, %v211_v60  ;;  %v3136_v5 = vpack.c.bf16 %v504_v0, %v500_v63  ;;  %v503_v7 = vld [vmem:[%s3802_s2 + $0x20] sm:$0xff]  ;;  %v512_v10 = vld [vmem:[%s3802_s2 + $0x68] sm:$0xff] }
  0x2e   :  { %2029 = vmatpush1.bf16.msra.mxu0 %v2028_v6  ;;  %v499_v6 = vld [vmem:[%s3802_s2] sm:$0xff]  ;;  %v501_v11 = vld [vmem:[%s3802_s2 + $0x10] sm:$0xff]  ;;  %v510_v15 = vld [vmem:[%s3802_s2 + $0x58] sm:$0xff] }
  0x2f   :  { %2093 = vmatpush1.bf16.msra.mxu1 %v2092_v8  ;;  %2031 = vmatprep.subr.bf16.mxu0 %v2030_v9  ;;  %v3144_v8 = vpack.c.bf16 %v506_v2, %v502_v1  ;;  %v508_v9 = vld [vmem:[%s3802_s2 + $0x48] sm:$0xff]  ;;  %v505_v12 = vld [vmem:[%s3802_s2 + $0x30] sm:$0xff]  ;;  %v3161_v14 = vpack.c.bf16 %v503_v7, %v499_v6  ;;  %v514_v16 = vld [vmem:[%s3802_s2 + $0x78] sm:$0xff] }
  0x30   :  { %2095 = vmatprep.subr.bf16.mxu1 %v2094_v13  ;;  %v73_v13 = vld [vmem:[%s3801_s0] sm:$0xff]  ;;  %v516_v22 = vld [vmem:[%s3802_s2 + $0x88] sm:$0xff]  ;;  %v3187_v23 = vpack.c.bf16 %v514_v16, %v510_v15  ;;  %v513_v26 = vld [vmem:[%s3802_s2 + $0x70] sm:$0xff] }
  0x31   :  { %v507_v17 = vld [vmem:[%s3802_s2 + $0x40] sm:$0xff]  ;;  %v520_v24 = vld [vmem:[%s3802_s2 + $0xa8] sm:$0xff]  ;;  %v75_v27 = vld [vmem:[%s3801_s0 + $0x10] sm:$0xff] }
  0x32   :  { %2033 = vmatpush1.bf16.msra.mxu0 %v2032_v19  ;;  %v511_v18 = vld [vmem:[%s3802_s2 + $0x60] sm:$0xff]  ;;  %v76_v19 = vld [vmem:[%s3801_s0 + $0x18] sm:$0xff]  ;;  %v3221_v34 = vpack.c.bf16 %v520_v24, %v516_v22  ;;  %v517_v36 = vld [vmem:[%s3802_s2 + $0x90] sm:$0xff] }
  0x33   :  { %2097 = vmatpush1.bf16.msra.mxu1 %v2096_v20  ;;  %2035 = vmatprep.subr.bf16.mxu0 %v2034_v21  ;;  %v3180_v20 = vpack.c.bf16 %v512_v10, %v508_v9  ;;  %v3182_v21 = vpack.c.bf16 %v505_v12, %v501_v11  ;;  %v3202_v28 = vpack.c.bf16 %v511_v18, %v507_v17  ;;  %v518_v29 = vld [vmem:[%s3802_s2 + $0x98] sm:$0xff]  ;;  %v521_v38 = vld [vmem:[%s3802_s2 + $0xb0] sm:$0xff]  ;;  %v524_v39 = vld [vmem:[%s3802_s2 + $0xc8] sm:$0xff] }
  0x34   :  { %2099 = vmatprep.subr.bf16.mxu1 %v2098_v25  ;;  %v509_v25 = vld [vmem:[%s3802_s2 + $0x50] sm:$0xff]  ;;  %v522_v30 = vld [vmem:[%s3802_s2 + $0xb8] sm:$0xff]  ;;  %v528_v40 = vld [vmem:[%s3802_s2 + $0xe8] sm:$0xff]  ;;  %v3257_v46 = vpack.c.bf16 %v521_v38, %v517_v36 }
  0x35   :  { %v3223_v35 = vpack.c.bf16 %v513_v26, %v509_v25  ;;  %v77_v41 = vld [vmem:[%s3801_s0 + $0x20] sm:$0xff]  ;;  %v3259_v47 = vpack.c.bf16 %v528_v40, %v524_v39  ;;  %v525_v50 = vld [vmem:[%s3802_s2 + $0xd0] sm:$0xff]  ;;  %v532_v53 = vld [vmem:[%s3802_s2 + $0x108] sm:$0xff] }
  0x36   :  { %2037 = vmatpush1.bf16.msra.mxu0 %v2036_v31  ;;  %v515_v31 = vld [vmem:[%s3802_s2 + $0x80] sm:$0xff]  ;;  %v529_v52 = vld [vmem:[%s3802_s2 + $0xf0] sm:$0xff]  ;;  %v536_v54 = vld [vmem:[%s3802_s2 + $0x128] sm:$0xff] }
  0x37   :  { %2101 = vmatpush1.bf16.msra.mxu1 %v2100_v32  ;;  %2039 = vmatprep.subr.bf16.mxu0 %v2038_v33  ;;  %v519_v32 = vld [vmem:[%s3802_s2 + $0xa0] sm:$0xff]  ;;  %v78_v33 = vld [vmem:[%s3801_s0 + $0x28] sm:$0xff]  ;;  %v3299_v60 = vpack.c.bf16 %v529_v52, %v525_v50  ;;  %v533_v0 = vld [vmem:[%s3802_s2 + $0x110] sm:$0xff] }
  0x38   :  { %2103 = vmatprep.subr.bf16.mxu1 %v2102_v37  ;;  %v3229_v37 = vpack.c.bf16 %v522_v30, %v518_v29  ;;  %v3244_v42 = vpack.c.bf16 %v519_v32, %v515_v31  ;;  %v523_v48 = vld [vmem:[%s3802_s2 + $0xc0] sm:$0xff]  ;;  %v82_v58 = vld [vmem:[%s3801_s0 + $0x48] sm:$0xff]  ;;  %v537_v2 = vld [vmem:[%s3802_s2 + $0x130] sm:$0xff] }
  0x39   :  { %v531_v62 = vld [vmem:[%s3802_s2 + $0x100] sm:$0xff]  ;;  %v542_v7 = vld [vmem:[%s3802_s2 + $0x158] sm:$0xff]  ;;  %v3341_v12 = vpack.c.bf16 %v537_v2, %v533_v0  ;;  %v541_v17 = vld [vmem:[%s3802_s2 + $0x150] sm:$0xff]  ;;  %v2691_v2 = vmov 0.0  }
  0x3a   :  { %2041 = vmatpush1.bf16.msra.mxu0 %v2040_v43  ;;  %v526_v43 = vld [vmem:[%s3802_s2 + $0xd8] sm:$0xff]  ;;  %v535_v63 = vld [vmem:[%s3802_s2 + $0x120] sm:$0xff]  ;;  %v548_v22 = vld [vmem:[%s3802_s2 + $0x188] sm:$0xff] }
  0x3b   :  { %2105 = vmatpush1.bf16.msra.mxu1 %v2104_v44  ;;  %2043 = vmatprep.subr.bf16.mxu0 %v2042_v45  ;;  %v530_v44 = vld [vmem:[%s3802_s2 + $0xf8] sm:$0xff]  ;;  %v81_v6 = vld [vmem:[%s3801_s0 + $0x40] sm:$0xff]  ;;  %v3337_v11 = vpack.c.bf16 %v535_v63, %v531_v62  ;;  %v552_v24 = vld [vmem:[%s3802_s2 + $0x1a8] sm:$0xff] }
  0x3c   :  { %2107 = vmatprep.subr.bf16.mxu1 %v2106_v49  ;;  %v80_v45 = vld [vmem:[%s3801_s0 + $0x38] sm:$0xff]  ;;  %v527_v49 = vld [vmem:[%s3802_s2 + $0xe0] sm:$0xff]  ;;  %v3271_v51 = vpack.c.bf16 %v530_v44, %v526_v43  ;;  %v83_v25 = vld [vmem:[%s3801_s0 + $0x50] sm:$0xff]  ;;  %v3385_v32 = vpack.c.bf16 %v552_v24, %v548_v22 }
  0x3d   :  { %v3295_v59 = vpack.c.bf16 %v527_v49, %v523_v48  ;;  %v546_v9 = vld [vmem:[%s3802_s2 + $0x178] sm:$0xff]  ;;  %v539_v15 = vld [vmem:[%s3802_s2 + $0x140] sm:$0xff]  ;;  %v86_v29 = vld [vmem:[%s3801_s0 + $0x68] sm:$0xff] }
  0x3e   :  { %2045 = vmatpush1.bf16.msra.mxu0 %v2044_v55  ;;  %v79_v55 = vld [vmem:[%s3801_s0 + $0x30] sm:$0xff]  ;;  %v84_v10 = vld [vmem:[%s3801_s0 + $0x58] sm:$0xff]  ;;  %v543_v16 = vld [vmem:[%s3802_s2 + $0x160] sm:$0xff]  ;;  %v3355_v18 = vpack.c.bf16 %v546_v9, %v542_v7 }
  0x3f   :  { %2109 = vmatpush1.bf16.msra.mxu1 %v2108_v56  ;;  %2047 = vmatprep.subr.bf16.mxu0 %v2046_v57  ;;  %v534_v56 = vld [vmem:[%s3802_s2 + $0x118] sm:$0xff]  ;;  %v3379_v30 = vpack.c.bf16 %v543_v16, %v539_v15  ;;  %v551_v36 = vld [vmem:[%s3802_s2 + $0x1a0] sm:$0xff]  ;;  %v549_v38 = vld [vmem:[%s3802_s2 + $0x190] sm:$0xff] }
  0x40   :  { %2111 = vmatprep.subr.bf16.mxu1 %v2110_v61  ;;  %v538_v57 = vld [vmem:[%s3802_s2 + $0x138] sm:$0xff]  ;;  %v3301_v61 = vpack.c.bf16 %v536_v54, %v532_v53  ;;  %v553_v40 = vld [vmem:[%s3802_s2 + $0x1b0] sm:$0xff]  ;;  %v560_v43 = vld [vmem:[%s3802_s2 + $0x1e8] sm:$0xff] }
  0x41   :  { %v3313_v1 = vpack.c.bf16 %v538_v57, %v534_v56  ;;  %v550_v26 = vld [vmem:[%s3802_s2 + $0x198] sm:$0xff]  ;;  %v85_v44 = vld [vmem:[%s3801_s0 + $0x60] sm:$0xff]  ;;  %v3425_v52 = vpack.c.bf16 %v553_v40, %v549_v38  ;;  %v557_v57 = vld [vmem:[%s3802_s2 + $0x1d0] sm:$0xff] }
  0x42   :  { %2049 = vmatpush1.bf16.msra.mxu0 %v2048_v3  ;;  %v540_v3 = vld [vmem:[%s3802_s2 + $0x148] sm:$0xff]  ;;  %v562_v48 = vld [vmem:[%s3802_s2 + $0x1f8] sm:$0xff]  ;;  %v555_v54 = vld [vmem:[%s3802_s2 + $0x1c0] sm:$0xff] }
  0x43   :  { %2113 = vmatpush1.bf16.msra.mxu1 %v2112_v4  ;;  %2115 = vmatprep.subr.bf16.mxu0 %v3136_v5  ;;  %v544_v4 = vld [vmem:[%s3802_s2 + $0x168] sm:$0xff]  ;;  %v88_v49 = vld [vmem:[%s3801_s0 + $0x78] sm:$0xff]  ;;  %v87_v62 = vld [vmem:[%s3801_s0 + $0x70] sm:$0xff] }
  0x44   :  { %2147 = vmatprep.subr.bf16.mxu1 %v3144_v8  ;;  %v217_v9 = vld [vmem:[%s3804_s3] sm:$0xf] }
  0x45   :  { %304 = vmatmul.mubr.f32.vlgmr.msra.gmra.mrb[0].mxu0 %v73_v13 }
  0x46   :  { %417 = vmatmul.mubr.f32.vlgmr.msra.gmra.mrb[0].mxu1 %v73_v13  ;;  %2117 = vmatpush1.bf16.msra.mxu0 %v3161_v14  ;;  %v3343_v13 = vpack.c.bf16 %v544_v4, %v540_v3  ;;  %v69_v3 = vld [vmem:[%s3803_s4] sm:$0xff]  ;;  %v219_v4 = vlaneseq }
  0x47   :  { %309 = vmatprep.mubr.f32.mxu0 %v76_v19  ;;  %422 = vmatprep.mubr.f32.mxu1 %v76_v19  ;;  %v545_v19 = vld [vmem:[%s3802_s2 + $0x170] sm:$0xff] }
  0x48   :  { %2119 = vmatprep.subr.bf16.mxu0 %v3180_v20  ;;  %2149 = vmatpush1.bf16.msra.mxu1 %v3182_v21  ;;  %v3383_v31 = vpack.c.bf16 %v545_v19, %v541_v17 }
  0x49   :  { %310 = vmatmul.mubr.f32.gmra.mrb[2].mxu0 %v75_v27  ;;  %2151 = vmatprep.subr.bf16.mxu1 %v3187_v23 }
  0x4a   :  { %423 = vmatmul.mubr.f32.gmra.mrb[2].mxu1 %v75_v27  ;;  %2121 = vmatpush1.bf16.msra.mxu0 %v3202_v28  ;;  %v554_v27 = vld [vmem:[%s3802_s2 + $0x1b8] sm:$0xff] }
  0x4b   :  { %315 = vmatprep.mubr.f32.mxu0 %v78_v33  ;;  %428 = vmatprep.mubr.f32.mxu1 %v78_v33  ;;  %v547_v33 = vld [vmem:[%s3802_s2 + $0x180] sm:$0xff]  ;;  %v3397_v39 = vpack.c.bf16 %v554_v27, %v550_v26 }
  0x4c   :  { %2123 = vmatprep.subr.bf16.mxu0 %v3221_v34  ;;  %2153 = vmatpush1.bf16.msra.mxu1 %v3223_v35  ;;  %v3421_v50 = vpack.c.bf16 %v551_v36, %v547_v33 }
  0x4d   :  { %316 = vmatmul.mubr.f32.gmra.mrb[4].mxu0 %v77_v41  ;;  %2155 = vmatprep.subr.bf16.mxu1 %v3229_v37 }
  0x4e   :  { %429 = vmatmul.mubr.f32.gmra.mrb[4].mxu1 %v77_v41  ;;  %2125 = vmatpush1.bf16.msra.mxu0 %v3244_v42  ;;  %v556_v41 = vld [vmem:[%s3802_s2 + $0x1c8] sm:$0xff] }
  0x4f   :  { %321 = vmatprep.mubr.f32.mxu0 %v80_v45  ;;  %434 = vmatprep.mubr.f32.mxu1 %v80_v45  ;;  %v558_v45 = vld [vmem:[%s3802_s2 + $0x1d8] sm:$0xff]  ;;  %v3427_v53 = vpack.c.bf16 %v560_v43, %v556_v41 }
  0x50   :  { %2157 = vmatpush1.bf16.msra.mxu1 %v3257_v46  ;;  %2127 = vmatprep.subr.bf16.mxu0 %v3259_v47  ;;  %v3436_v56 = vpack.c.bf16 %v562_v48, %v558_v45 }
  0x51   :  { %322 = vmatmul.mubr.f32.gmra.mrb[6].mxu0 %v79_v55  ;;  %2159 = vmatprep.subr.bf16.mxu1 %v3271_v51 }
  0x52   :  { %435 = vmatmul.mubr.f32.gmra.mrb[6].mxu1 %v79_v55  ;;  %327 = vmatprep.mubr.f32.mxu0 %v82_v58  ;;  %v559_v55 = vld [vmem:[%s3802_s2 + $0x1e0] sm:$0xff] }
  0x53   :  { %440 = vmatprep.mubr.f32.mxu1 %v82_v58  ;;  %2129 = vmatpush1.bf16.msra.mxu0 %v3295_v59  ;;  %v561_v58 = vld [vmem:[%s3802_s2 + $0x1f0] sm:$0xff]  ;;  %v3448_v63 = vpack.c.bf16 %v559_v55, %v555_v54 }
  0x54   :  { %2161 = vmatpush1.bf16.msra.mxu1 %v3299_v60  ;;  %2131 = vmatprep.subr.bf16.mxu0 %v3301_v61  ;;  %v3452_v0 = vpack.c.bf16 %v561_v58, %v557_v57  ;;  %v71_v57 = vld [vmem:[%s3805_s5] sm:$0xff] }
  0x55   :  { %328 = vmatmul.mubr.f32.gmra.mrb[8].mxu0 %v81_v6  ;;  %2163 = vmatprep.subr.bf16.mxu1 %v3313_v1 }
  0x56   :  { %441 = vmatmul.mubr.f32.gmra.mrb[8].mxu1 %v81_v6  ;;  %333 = vmatprep.mubr.f32.mxu0 %v84_v10  ;;  %v220_v6 = vshrl.u32 %v219_v4, 7 }
  0x57   :  { %446 = vmatprep.mubr.f32.mxu1 %v84_v10  ;;  %2133 = vmatpush1.bf16.msra.mxu0 %v3337_v11 }
  0x58   :  { %2165 = vmatpush1.bf16.msra.mxu1 %v3341_v12  ;;  %2135 = vmatprep.subr.bf16.mxu0 %v3343_v13  ;;  %v221_v7 = vsub.s32 0, %v220_v6  ;;  %v225_v10 = vsub.s32 1, %v220_v6  ;;  %v229_v16 = vsub.s32 2, %v220_v6  ;;  %v233_v19 = vsub.s32 3, %v220_v6 }
  0x59   :  { %334 = vmatmul.mubr.f32.gmra.mrb[10].mxu0 %v83_v25  ;;  %2167 = vmatprep.subr.bf16.mxu1 %v3355_v18 }
  0x5a   :  { %447 = vmatmul.mubr.f32.gmra.mrb[10].mxu1 %v83_v25  ;;  %339 = vmatprep.mubr.f32.mxu0 %v86_v29  ;;  %v3501_v15 = vrot.slane %v217_v9, %v221_v7  ;;  %v3503_v17 = vrot.slane %v217_v9, %v225_v10  ;;  %v3506_v25 = vrot.slane %v217_v9, %v229_v16 }
  0x5b   :  { %452 = vmatprep.mubr.f32.mxu1 %v86_v29  ;;  %2137 = vmatpush1.bf16.msra.mxu0 %v3379_v30  ;;  %v3509_v33 = vrot.slane %v217_v9, %v233_v19 }
  0x5c   :  { %2169 = vmatpush1.bf16.msra.mxu1 %v3383_v31  ;;  %2139 = vmatprep.subr.bf16.mxu0 %v3385_v32 }
  0x5d   :  { %340 = vmatmul.mubr.f32.gmra.mrb[12].mxu0 %v85_v44  ;;  %2171 = vmatprep.subr.bf16.mxu1 %v3397_v39 }
  0x5e   :  { %453 = vmatmul.mubr.f32.gmra.mrb[12].mxu1 %v85_v44  ;;  %345 = vmatprep.mubr.f32.mxu0 %v88_v49 }
  0x5f   :  { %458 = vmatprep.mubr.f32.mxu1 %v88_v49  ;;  %2141 = vmatpush1.bf16.msra.mxu0 %v3421_v50 }
  0x60   :  { %2173 = vmatpush1.bf16.msra.mxu1 %v3425_v52  ;;  %2143 = vmatprep.subr.bf16.mxu0 %v3427_v53 }
  0x61   :  { %346 = vmatmul.mubr.f32.gmra.mrb[14].mxu0 %v87_v62  ;;  %2175 = vmatprep.subr.bf16.mxu1 %v3436_v56 }
  0x62   :  { %459 = vmatmul.mubr.f32.gmra.mrb[14].mxu1 %v87_v62  ;;  %631 = vmatprep.mubr.f32.mxu0 %v2691_v2 }
  0x63   :  { %2145 = vmatpush1.bf16.msra.mxu0 %v3448_v63  ;;  %702 = vmatprep.mubr.f32.mxu1 %v2691_v2 }
  0x64   :  { %2177 = vmatpush1.bf16.msra.mxu1 %v3452_v0  ;;  %2179 = vmatprep.subr.bf16.mxu0 %v3136_v5 }
  0x65   :  { %2211 = vmatprep.subr.bf16.mxu1 %v3144_v8 }
  0x69   :  { %632 = vmatmul.mubr.f32.vlgmr.msra.gmra.mrb[14].mxu0 %v69_v3 }
  0x6a   :  { %703 = vmatmul.mubr.f32.vlgmr.msra.gmra.mrb[14].mxu1 %v69_v3  ;;  %2181 = vmatpush1.bf16.msra.mxu0 %v3161_v14 }
  0x6b   :  { %2213 = vmatpush1.bf16.msra.mxu1 %v3182_v21  ;;  %2183 = vmatprep.subr.bf16.mxu0 %v3180_v20 }
  0x6c   :  { %2215 = vmatprep.subr.bf16.mxu1 %v3187_v23  ;;  %803 = vmatprep.mubr.f32.mxu0 %v2691_v2 }
  0x6d   :  { %874 = vmatprep.mubr.f32.mxu1 %v2691_v2 }
  0x6e   :  { %2185 = vmatpush1.bf16.msra.mxu0 %v3202_v28 }
  0x6f   :  { %2217 = vmatpush1.bf16.msra.mxu1 %v3223_v35  ;;  %2187 = vmatprep.subr.bf16.mxu0 %v3221_v34 }
  0x70   :  { %2219 = vmatprep.subr.bf16.mxu1 %v3229_v37 }
  0x72   :  { %2189 = vmatpush1.bf16.msra.mxu0 %v3244_v42 }
  0x73   :  { %2221 = vmatpush1.bf16.msra.mxu1 %v3257_v46  ;;  %2191 = vmatprep.subr.bf16.mxu0 %v3259_v47 }
  0x74   :  { %2223 = vmatprep.subr.bf16.mxu1 %v3271_v51 }
  0x76   :  { %2193 = vmatpush1.bf16.msra.mxu0 %v3295_v59 }
  0x77   :  { %2225 = vmatpush1.bf16.msra.mxu1 %v3299_v60  ;;  %2195 = vmatprep.subr.bf16.mxu0 %v3301_v61 }
  0x78   :  { %2227 = vmatprep.subr.bf16.mxu1 %v3313_v1 }
  0x7a   :  { %2197 = vmatpush1.bf16.msra.mxu0 %v3337_v11 }
  0x7b   :  { %2229 = vmatpush1.bf16.msra.mxu1 %v3341_v12  ;;  %2199 = vmatprep.subr.bf16.mxu0 %v3343_v13 }
  0x7c   :  { %2231 = vmatprep.subr.bf16.mxu1 %v3355_v18 }
  0x7e   :  { %2201 = vmatpush1.bf16.msra.mxu0 %v3379_v30 }
  0x7f   :  { %2233 = vmatpush1.bf16.msra.mxu1 %v3383_v31  ;;  %2203 = vmatprep.subr.bf16.mxu0 %v3385_v32 }
  0x80   :  { %2235 = vmatprep.subr.bf16.mxu1 %v3397_v39 }
  0x82   :  { %2205 = vmatpush1.bf16.msra.mxu0 %v3421_v50 }
  0x83   :  { %2237 = vmatpush1.bf16.msra.mxu1 %v3425_v52  ;;  %2207 = vmatprep.subr.bf16.mxu0 %v3427_v53 }
  0x84   :  { %2239 = vmatprep.subr.bf16.mxu1 %v3436_v56 }
  0x86   :  { %2209 = vmatpush1.bf16.msra.mxu0 %v3448_v63 }
  0x87   :  { %2241 = vmatpush1.bf16.msra.mxu1 %v3452_v0  ;;  %2243 = vmatprep.subr.bf16.mxu0 %v3136_v5 }
  0x88   :  { %2275 = vmatprep.subr.bf16.mxu1 %v3144_v8 }
 0x13c   :  { %v633_v22 = vpop.f32.mrb[14].mxu0 }
 0x13d   :  { %v2640_v24 = vadd.f32 %v633_v22, %v3501_v15  ;;  %v704_v26 = vpop.f32.mrb[14].mxu1  ;;  %v635_v27 = vpop.f32.mrb[15].mxu0 }
 0x13e   :  { %v2641_v29 = vadd.f32 %v635_v27, %v3503_v17  ;;  %v706_v36 = vpop.f32.mrb[15].mxu1  ;;  %v2656_v43 = vadd.f32 %v704_v26, %v3506_v25 }
 0x13f   :  { %v713_v38 = vmul.f32 0.25, %v2640_v24  ;;  %v2657_v45 = vadd.f32 %v706_v36, %v3509_v33 }
 0x140   :  { %v717_v40 = vmul.f32 0.25, %v2641_v29  ;;  %v721_v55 = vmax.f32 %v2656_v43, 0.0 }
 0x141   :  { %v714_v41 = vadd.f32 0.5, %v713_v38  ;;  %v722_v62 = vmul.f32 0.25, %v2657_v45 }
 0x142   :  { %v718_v44 = vadd.f32 0.5, %v717_v40 }
 0x143   :  { %v715_v48 = vmax.f32 %v714_v41, 0.0  ;;  %v723_v7 = vadd.f32 0.5, %v722_v62 }
 0x144   :  { %v719_v49 = vmax.f32 %v718_v44, 0.0 }
 0x145   :  { %v716_v54 = vmin.f32 %v715_v48, 1.0  ;;  %v724_v10 = vmax.f32 %v723_v7, 0.0 }
 0x146   :  { %v720_v58 = vmin.f32 %v719_v49, 1.0 }
 0x147   :  { %v727_v3 = vmul.f32 %v721_v55, %v716_v54  ;;  %v725_v22 = vmin.f32 %v724_v10, 1.0 }
 0x148   :  { %v726_v4 = vmul.f32 %v720_v58, %v71_v57 }
 0x14a   :  { %v3516_v6 = vadd.f32 %v727_v3, %v726_v4 }
 0x14c   :  { %v729_v9 = vmul.f32 0.25, %v3516_v6 }
 0x14e   :  { %v730_v16 = vadd.f32 0.5, %v729_v9 }
 0x150   :  { %v731_v19 = vmax.f32 %v730_v16, 0.0 }
 0x152   :  { %v732_v24 = vmin.f32 %v731_v19, 1.0 }
 0x154   :  { %v733_v26 = vmul.f32 %v732_v24, %v725_v22 }
 0x156   :  { %734 = vst [vmem:[%s3806_s6 + $0x38] sm:$0xff] %v733_v26  ;;  %804 = vmatmul.mubr.f32.vlgmr.msra.gmra.mrb[12].mxu0 %v733_v26  ;;  %875 = vmatmul.mubr.f32.vlgmr.msra.gmra.mrb[12].mxu1 %v733_v26 }
 0x157   :  { %2245 = vmatpush1.bf16.msra.mxu0 %v3161_v14  ;;  %2277 = vmatpush1.bf16.msra.mxu1 %v3182_v21 }
 0x158   :  { %2247 = vmatprep.subr.bf16.mxu0 %v3180_v20  ;;  %2279 = vmatprep.subr.bf16.mxu1 %v3187_v23 }
 0x159   :  { %975 = vmatprep.mubr.f32.mxu0 %v2691_v2  ;;  %1046 = vmatprep.mubr.f32.mxu1 %v2691_v2 }
 0x15b   :  { %2249 = vmatpush1.bf16.msra.mxu0 %v3202_v28  ;;  %2281 = vmatpush1.bf16.msra.mxu1 %v3223_v35 }
 0x15c   :  { %2251 = vmatprep.subr.bf16.mxu0 %v3221_v34  ;;  %2283 = vmatprep.subr.bf16.mxu1 %v3229_v37 }
 0x15f   :  { %2253 = vmatpush1.bf16.msra.mxu0 %v3244_v42  ;;  %2285 = vmatpush1.bf16.msra.mxu1 %v3257_v46 }
 0x160   :  { %2255 = vmatprep.subr.bf16.mxu0 %v3259_v47  ;;  %2287 = vmatprep.subr.bf16.mxu1 %v3271_v51 }
 0x163   :  { %2257 = vmatpush1.bf16.msra.mxu0 %v3295_v59  ;;  %2289 = vmatpush1.bf16.msra.mxu1 %v3299_v60 }
 0x164   :  { %2259 = vmatprep.subr.bf16.mxu0 %v3301_v61  ;;  %2291 = vmatprep.subr.bf16.mxu1 %v3313_v1 }
 0x167   :  { %2261 = vmatpush1.bf16.msra.mxu0 %v3337_v11  ;;  %2293 = vmatpush1.bf16.msra.mxu1 %v3341_v12 }
 0x168   :  { %2263 = vmatprep.subr.bf16.mxu0 %v3343_v13  ;;  %2295 = vmatprep.subr.bf16.mxu1 %v3355_v18 }
 0x16b   :  { %2265 = vmatpush1.bf16.msra.mxu0 %v3379_v30  ;;  %2297 = vmatpush1.bf16.msra.mxu1 %v3383_v31 }
 0x16c   :  { %2267 = vmatprep.subr.bf16.mxu0 %v3385_v32  ;;  %2299 = vmatprep.subr.bf16.mxu1 %v3397_v39 }
 0x16f   :  { %2269 = vmatpush1.bf16.msra.mxu0 %v3421_v50  ;;  %2301 = vmatpush1.bf16.msra.mxu1 %v3425_v52 }
 0x170   :  { %2271 = vmatprep.subr.bf16.mxu0 %v3427_v53  ;;  %2303 = vmatprep.subr.bf16.mxu1 %v3436_v56 }
 0x173   :  { %2273 = vmatpush1.bf16.msra.mxu0 %v3448_v63  ;;  %2305 = vmatpush1.bf16.msra.mxu1 %v3452_v0 }
 0x174   :  { %2307 = vmatprep.subr.bf16.mxu0 %v3136_v5  ;;  %2339 = vmatprep.subr.bf16.mxu1 %v3144_v8 }
 0x229   :  { %v805_v27 = vpop.f32.mrb[12].mxu0  ;;  %v876_v29 = vpop.f32.mrb[12].mxu1 }
 0x22a   :  { %v2638_v36 = vadd.f32 %v805_v27, %v3501_v15  ;;  %v807_v38 = vpop.f32.mrb[13].mxu0  ;;  %v878_v40 = vpop.f32.mrb[13].mxu1  ;;  %v2654_v48 = vadd.f32 %v876_v29, %v3506_v25 }
 0x22b   :  { %v2639_v41 = vadd.f32 %v807_v38, %v3503_v17  ;;  %v2655_v54 = vadd.f32 %v878_v40, %v3509_v33 }
 0x22c   :  { %v885_v43 = vmul.f32 0.25, %v2638_v36  ;;  %v893_v62 = vmax.f32 %v2654_v48, 0.0 }
 0x22d   :  { %v889_v44 = vmul.f32 0.25, %v2639_v41  ;;  %v894_v4 = vmul.f32 0.25, %v2655_v54 }
 0x22e   :  { %v886_v45 = vadd.f32 0.5, %v885_v43 }
 0x22f   :  { %v890_v49 = vadd.f32 0.5, %v889_v44  ;;  %v895_v16 = vadd.f32 0.5, %v894_v4 }
 0x230   :  { %v887_v55 = vmax.f32 %v886_v45, 0.0 }
 0x231   :  { %v891_v57 = vmax.f32 %v890_v49, 0.0  ;;  %v896_v22 = vmax.f32 %v895_v16, 0.0 }
 0x232   :  { %v888_v58 = vmin.f32 %v887_v55, 1.0 }
 0x233   :  { %v892_v3 = vmin.f32 %v891_v57, 1.0  ;;  %v897_v27 = vmin.f32 %v896_v22, 1.0 }
 0x234   :  { %v899_v7 = vmul.f32 %v893_v62, %v888_v58 }
 0x235   :  { %v898_v9 = vmul.f32 %v892_v3, %v3516_v6 }
 0x237   :  { %v3561_v10 = vadd.f32 %v899_v7, %v898_v9 }
 0x239   :  { %v901_v19 = vmul.f32 0.25, %v3561_v10 }
 0x23b   :  { %v902_v24 = vadd.f32 0.5, %v901_v19 }
 0x23d   :  { %v903_v26 = vmax.f32 %v902_v24, 0.0 }
 0x23f   :  { %v904_v29 = vmin.f32 %v903_v26, 1.0 }
 0x241   :  { %v905_v36 = vmul.f32 %v904_v29, %v897_v27 }
 0x243   :  { %906 = vst [vmem:[%s3806_s6 + $0x30] sm:$0xff] %v905_v36  ;;  %976 = vmatmul.mubr.f32.vlgmr.msra.gmra.mrb[10].mxu0 %v905_v36  ;;  %1047 = vmatmul.mubr.f32.vlgmr.msra.gmra.mrb[10].mxu1 %v905_v36 }
 0x244   :  { %2309 = vmatpush1.bf16.msra.mxu0 %v3161_v14  ;;  %2341 = vmatpush1.bf16.msra.mxu1 %v3182_v21 }
 0x245   :  { %2311 = vmatprep.subr.bf16.mxu0 %v3180_v20  ;;  %2343 = vmatprep.subr.bf16.mxu1 %v3187_v23 }
 0x246   :  { %1147 = vmatprep.mubr.f32.mxu0 %v2691_v2  ;;  %1218 = vmatprep.mubr.f32.mxu1 %v2691_v2 }
 0x248   :  { %2313 = vmatpush1.bf16.msra.mxu0 %v3202_v28  ;;  %2345 = vmatpush1.bf16.msra.mxu1 %v3223_v35 }
 0x249   :  { %2315 = vmatprep.subr.bf16.mxu0 %v3221_v34  ;;  %2347 = vmatprep.subr.bf16.mxu1 %v3229_v37 }
 0x24c   :  { %2317 = vmatpush1.bf16.msra.mxu0 %v3244_v42  ;;  %2349 = vmatpush1.bf16.msra.mxu1 %v3257_v46 }
 0x24d   :  { %2319 = vmatprep.subr.bf16.mxu0 %v3259_v47  ;;  %2351 = vmatprep.subr.bf16.mxu1 %v3271_v51 }
 0x250   :  { %2321 = vmatpush1.bf16.msra.mxu0 %v3295_v59  ;;  %2353 = vmatpush1.bf16.msra.mxu1 %v3299_v60 }
 0x251   :  { %2323 = vmatprep.subr.bf16.mxu0 %v3301_v61  ;;  %2355 = vmatprep.subr.bf16.mxu1 %v3313_v1 }
 0x254   :  { %2325 = vmatpush1.bf16.msra.mxu0 %v3337_v11  ;;  %2357 = vmatpush1.bf16.msra.mxu1 %v3341_v12 }
 0x255   :  { %2327 = vmatprep.subr.bf16.mxu0 %v3343_v13  ;;  %2359 = vmatprep.subr.bf16.mxu1 %v3355_v18 }
 0x258   :  { %2329 = vmatpush1.bf16.msra.mxu0 %v3379_v30  ;;  %2361 = vmatpush1.bf16.msra.mxu1 %v3383_v31 }
 0x259   :  { %2331 = vmatprep.subr.bf16.mxu0 %v3385_v32  ;;  %2363 = vmatprep.subr.bf16.mxu1 %v3397_v39 }
 0x25c   :  { %2333 = vmatpush1.bf16.msra.mxu0 %v3421_v50  ;;  %2365 = vmatpush1.bf16.msra.mxu1 %v3425_v52 }
 0x25d   :  { %2335 = vmatprep.subr.bf16.mxu0 %v3427_v53  ;;  %2367 = vmatprep.subr.bf16.mxu1 %v3436_v56 }
 0x260   :  { %2337 = vmatpush1.bf16.msra.mxu0 %v3448_v63  ;;  %2369 = vmatpush1.bf16.msra.mxu1 %v3452_v0 }
 0x261   :  { %2371 = vmatprep.subr.bf16.mxu0 %v3136_v5  ;;  %2403 = vmatprep.subr.bf16.mxu1 %v3144_v8 }
 0x316   :  { %v977_v6 = vpop.f32.mrb[10].mxu0  ;;  %v1048_v38 = vpop.f32.mrb[10].mxu1 }
 0x317   :  { %v2636_v40 = vadd.f32 %v977_v6, %v3501_v15  ;;  %v979_v41 = vpop.f32.mrb[11].mxu0  ;;  %v1050_v43 = vpop.f32.mrb[11].mxu1  ;;  %v2652_v54 = vadd.f32 %v1048_v38, %v3506_v25 }
 0x318   :  { %v2637_v44 = vadd.f32 %v979_v41, %v3503_v17  ;;  %v2653_v57 = vadd.f32 %v1050_v43, %v3509_v33 }
 0x319   :  { %v1057_v45 = vmul.f32 0.25, %v2636_v40  ;;  %v1065_v4 = vmax.f32 %v2652_v54, 0.0 }
 0x31a   :  { %v1061_v48 = vmul.f32 0.25, %v2637_v44  ;;  %v1066_v9 = vmul.f32 0.25, %v2653_v57 }
 0x31b   :  { %v1058_v49 = vadd.f32 0.5, %v1057_v45 }
 0x31c   :  { %v1062_v55 = vadd.f32 0.5, %v1061_v48  ;;  %v1067_v24 = vadd.f32 0.5, %v1066_v9 }
 0x31d   :  { %v1059_v58 = vmax.f32 %v1058_v49, 0.0 }
 0x31e   :  { %v1063_v62 = vmax.f32 %v1062_v55, 0.0  ;;  %v1068_v27 = vmax.f32 %v1067_v24, 0.0 }
 0x31f   :  { %v1060_v3 = vmin.f32 %v1059_v58, 1.0 }
 0x320   :  { %v1064_v7 = vmin.f32 %v1063_v62, 1.0  ;;  %v1069_v6 = vmin.f32 %v1068_v27, 1.0 }
 0x321   :  { %v1071_v16 = vmul.f32 %v1065_v4, %v1060_v3 }
 0x322   :  { %v1070_v19 = vmul.f32 %v1064_v7, %v3561_v10 }
 0x324   :  { %v3606_v22 = vadd.f32 %v1071_v16, %v1070_v19 }
 0x326   :  { %v1073_v26 = vmul.f32 0.25, %v3606_v22 }
 0x328   :  { %v1074_v29 = vadd.f32 0.5, %v1073_v26 }
 0x32a   :  { %v1075_v36 = vmax.f32 %v1074_v29, 0.0 }
 0x32c   :  { %v1076_v38 = vmin.f32 %v1075_v36, 1.0 }
 0x32e   :  { %v1077_v40 = vmul.f32 %v1076_v38, %v1069_v6 }
 0x330   :  { %1078 = vst [vmem:[%s3806_s6 + $0x28] sm:$0xff] %v1077_v40  ;;  %1148 = vmatmul.mubr.f32.vlgmr.msra.gmra.mrb[8].mxu0 %v1077_v40  ;;  %1219 = vmatmul.mubr.f32.vlgmr.msra.gmra.mrb[8].mxu1 %v1077_v40 }
 0x331   :  { %2373 = vmatpush1.bf16.msra.mxu0 %v3161_v14  ;;  %2405 = vmatpush1.bf16.msra.mxu1 %v3182_v21 }
 0x332   :  { %2375 = vmatprep.subr.bf16.mxu0 %v3180_v20  ;;  %2407 = vmatprep.subr.bf16.mxu1 %v3187_v23 }
 0x333   :  { %1319 = vmatprep.mubr.f32.mxu0 %v2691_v2  ;;  %1390 = vmatprep.mubr.f32.mxu1 %v2691_v2 }
 0x335   :  { %2377 = vmatpush1.bf16.msra.mxu0 %v3202_v28  ;;  %2409 = vmatpush1.bf16.msra.mxu1 %v3223_v35 }
 0x336   :  { %2379 = vmatprep.subr.bf16.mxu0 %v3221_v34  ;;  %2411 = vmatprep.subr.bf16.mxu1 %v3229_v37 }
 0x339   :  { %2381 = vmatpush1.bf16.msra.mxu0 %v3244_v42  ;;  %2413 = vmatpush1.bf16.msra.mxu1 %v3257_v46 }
 0x33a   :  { %2383 = vmatprep.subr.bf16.mxu0 %v3259_v47  ;;  %2415 = vmatprep.subr.bf16.mxu1 %v3271_v51 }
 0x33d   :  { %2385 = vmatpush1.bf16.msra.mxu0 %v3295_v59  ;;  %2417 = vmatpush1.bf16.msra.mxu1 %v3299_v60 }
 0x33e   :  { %2387 = vmatprep.subr.bf16.mxu0 %v3301_v61  ;;  %2419 = vmatprep.subr.bf16.mxu1 %v3313_v1 }
 0x341   :  { %2389 = vmatpush1.bf16.msra.mxu0 %v3337_v11  ;;  %2421 = vmatpush1.bf16.msra.mxu1 %v3341_v12 }
 0x342   :  { %2391 = vmatprep.subr.bf16.mxu0 %v3343_v13  ;;  %2423 = vmatprep.subr.bf16.mxu1 %v3355_v18 }
 0x345   :  { %2393 = vmatpush1.bf16.msra.mxu0 %v3379_v30  ;;  %2425 = vmatpush1.bf16.msra.mxu1 %v3383_v31 }
 0x346   :  { %2395 = vmatprep.subr.bf16.mxu0 %v3385_v32  ;;  %2427 = vmatprep.subr.bf16.mxu1 %v3397_v39 }
 0x349   :  { %2397 = vmatpush1.bf16.msra.mxu0 %v3421_v50  ;;  %2429 = vmatpush1.bf16.msra.mxu1 %v3425_v52 }
 0x34a   :  { %2399 = vmatprep.subr.bf16.mxu0 %v3427_v53  ;;  %2431 = vmatprep.subr.bf16.mxu1 %v3436_v56 }
 0x34d   :  { %2401 = vmatpush1.bf16.msra.mxu0 %v3448_v63  ;;  %2433 = vmatpush1.bf16.msra.mxu1 %v3452_v0 }
 0x34e   :  { %2435 = vmatprep.subr.bf16.mxu0 %v3136_v5  ;;  %2467 = vmatprep.subr.bf16.mxu1 %v3144_v8 }
 0x403   :  { %v1149_v10 = vpop.f32.mrb[8].mxu0  ;;  %v1220_v41 = vpop.f32.mrb[8].mxu1 }
 0x404   :  { %v2634_v43 = vadd.f32 %v1149_v10, %v3501_v15  ;;  %v1151_v44 = vpop.f32.mrb[9].mxu0  ;;  %v1222_v45 = vpop.f32.mrb[9].mxu1  ;;  %v2650_v57 = vadd.f32 %v1220_v41, %v3506_v25 }
 0x405   :  { %v2635_v48 = vadd.f32 %v1151_v44, %v3503_v17  ;;  %v2651_v62 = vadd.f32 %v1222_v45, %v3509_v33 }
 0x406   :  { %v1229_v49 = vmul.f32 0.25, %v2634_v43  ;;  %v1237_v9 = vmax.f32 %v2650_v57, 0.0 }
 0x407   :  { %v1233_v54 = vmul.f32 0.25, %v2635_v48  ;;  %v1238_v19 = vmul.f32 0.25, %v2651_v62 }
 0x408   :  { %v1230_v55 = vadd.f32 0.5, %v1229_v49 }
 0x409   :  { %v1234_v58 = vadd.f32 0.5, %v1233_v54  ;;  %v1239_v29 = vadd.f32 0.5, %v1238_v19 }
 0x40a   :  { %v1231_v3 = vmax.f32 %v1230_v55, 0.0 }
 0x40b   :  { %v1235_v4 = vmax.f32 %v1234_v58, 0.0  ;;  %v1240_v6 = vmax.f32 %v1239_v29, 0.0 }
 0x40c   :  { %v1232_v7 = vmin.f32 %v1231_v3, 1.0 }
 0x40d   :  { %v1236_v16 = vmin.f32 %v1235_v4, 1.0  ;;  %v1241_v10 = vmin.f32 %v1240_v6, 1.0 }
 0x40e   :  { %v1243_v24 = vmul.f32 %v1237_v9, %v1232_v7 }
 0x40f   :  { %v1242_v26 = vmul.f32 %v1236_v16, %v3606_v22 }
 0x411   :  { %v3651_v27 = vadd.f32 %v1243_v24, %v1242_v26 }
 0x413   :  { %v1245_v36 = vmul.f32 0.25, %v3651_v27 }
 0x415   :  { %v1246_v38 = vadd.f32 0.5, %v1245_v36 }
 0x417   :  { %v1247_v40 = vmax.f32 %v1246_v38, 0.0 }
 0x419   :  { %v1248_v41 = vmin.f32 %v1247_v40, 1.0 }
 0x41b   :  { %v1249_v43 = vmul.f32 %v1248_v41, %v1241_v10 }
 0x41d   :  { %1250 = vst [vmem:[%s3806_s6 + $0x20] sm:$0xff] %v1249_v43  ;;  %1320 = vmatmul.mubr.f32.vlgmr.msra.gmra.mrb[6].mxu0 %v1249_v43  ;;  %1391 = vmatmul.mubr.f32.vlgmr.msra.gmra.mrb[6].mxu1 %v1249_v43 }
 0x41e   :  { %2437 = vmatpush1.bf16.msra.mxu0 %v3161_v14  ;;  %2469 = vmatpush1.bf16.msra.mxu1 %v3182_v21 }
 0x41f   :  { %2439 = vmatprep.subr.bf16.mxu0 %v3180_v20  ;;  %2471 = vmatprep.subr.bf16.mxu1 %v3187_v23 }
 0x420   :  { %1491 = vmatprep.mubr.f32.mxu0 %v2691_v2  ;;  %1562 = vmatprep.mubr.f32.mxu1 %v2691_v2 }
 0x422   :  { %2441 = vmatpush1.bf16.msra.mxu0 %v3202_v28  ;;  %2473 = vmatpush1.bf16.msra.mxu1 %v3223_v35 }
 0x423   :  { %2443 = vmatprep.subr.bf16.mxu0 %v3221_v34  ;;  %2475 = vmatprep.subr.bf16.mxu1 %v3229_v37 }
 0x426   :  { %2445 = vmatpush1.bf16.msra.mxu0 %v3244_v42  ;;  %2477 = vmatpush1.bf16.msra.mxu1 %v3257_v46 }
 0x427   :  { %2447 = vmatprep.subr.bf16.mxu0 %v3259_v47  ;;  %2479 = vmatprep.subr.bf16.mxu1 %v3271_v51 }
 0x42a   :  { %2449 = vmatpush1.bf16.msra.mxu0 %v3295_v59  ;;  %2481 = vmatpush1.bf16.msra.mxu1 %v3299_v60 }
 0x42b   :  { %2451 = vmatprep.subr.bf16.mxu0 %v3301_v61  ;;  %2483 = vmatprep.subr.bf16.mxu1 %v3313_v1 }
 0x42e   :  { %2453 = vmatpush1.bf16.msra.mxu0 %v3337_v11  ;;  %2485 = vmatpush1.bf16.msra.mxu1 %v3341_v12 }
 0x42f   :  { %2455 = vmatprep.subr.bf16.mxu0 %v3343_v13  ;;  %2487 = vmatprep.subr.bf16.mxu1 %v3355_v18 }
 0x432   :  { %2457 = vmatpush1.bf16.msra.mxu0 %v3379_v30  ;;  %2489 = vmatpush1.bf16.msra.mxu1 %v3383_v31 }
 0x433   :  { %2459 = vmatprep.subr.bf16.mxu0 %v3385_v32  ;;  %2491 = vmatprep.subr.bf16.mxu1 %v3397_v39 }
 0x436   :  { %2461 = vmatpush1.bf16.msra.mxu0 %v3421_v50  ;;  %2493 = vmatpush1.bf16.msra.mxu1 %v3425_v52 }
 0x437   :  { %2463 = vmatprep.subr.bf16.mxu0 %v3427_v53  ;;  %2495 = vmatprep.subr.bf16.mxu1 %v3436_v56 }
 0x43a   :  { %2465 = vmatpush1.bf16.msra.mxu0 %v3448_v63  ;;  %2497 = vmatpush1.bf16.msra.mxu1 %v3452_v0 }
 0x43b   :  { %2499 = vmatprep.subr.bf16.mxu0 %v3136_v5  ;;  %2531 = vmatprep.subr.bf16.mxu1 %v3144_v8 }
 0x4f0   :  { %v1321_v22 = vpop.f32.mrb[6].mxu0  ;;  %v1392_v44 = vpop.f32.mrb[6].mxu1 }
 0x4f1   :  { %v2632_v45 = vadd.f32 %v1321_v22, %v3501_v15  ;;  %v1323_v48 = vpop.f32.mrb[7].mxu0  ;;  %v1394_v49 = vpop.f32.mrb[7].mxu1  ;;  %v2648_v62 = vadd.f32 %v1392_v44, %v3506_v25 }
 0x4f2   :  { %v2633_v54 = vadd.f32 %v1323_v48, %v3503_v17  ;;  %v2649_v4 = vadd.f32 %v1394_v49, %v3509_v33 }
 0x4f3   :  { %v1401_v55 = vmul.f32 0.25, %v2632_v45  ;;  %v1409_v19 = vmax.f32 %v2648_v62, 0.0 }
 0x4f4   :  { %v1405_v57 = vmul.f32 0.25, %v2633_v54  ;;  %v1410_v26 = vmul.f32 0.25, %v2649_v4 }
 0x4f5   :  { %v1402_v58 = vadd.f32 0.5, %v1401_v55 }
 0x4f6   :  { %v1406_v3 = vadd.f32 0.5, %v1405_v57  ;;  %v1411_v38 = vadd.f32 0.5, %v1410_v26 }
 0x4f7   :  { %v1403_v7 = vmax.f32 %v1402_v58, 0.0 }
 0x4f8   :  { %v1407_v9 = vmax.f32 %v1406_v3, 0.0  ;;  %v1412_v10 = vmax.f32 %v1411_v38, 0.0 }
 0x4f9   :  { %v1404_v16 = vmin.f32 %v1403_v7, 1.0 }
 0x4fa   :  { %v1408_v24 = vmin.f32 %v1407_v9, 1.0  ;;  %v1413_v22 = vmin.f32 %v1412_v10, 1.0 }
 0x4fb   :  { %v1415_v29 = vmul.f32 %v1409_v19, %v1404_v16 }
 0x4fc   :  { %v1414_v36 = vmul.f32 %v1408_v24, %v3651_v27 }
 0x4fe   :  { %v3696_v6 = vadd.f32 %v1415_v29, %v1414_v36 }
 0x500   :  { %v1417_v40 = vmul.f32 0.25, %v3696_v6 }
 0x502   :  { %v1418_v41 = vadd.f32 0.5, %v1417_v40 }
 0x504   :  { %v1419_v43 = vmax.f32 %v1418_v41, 0.0 }
 0x506   :  { %v1420_v44 = vmin.f32 %v1419_v43, 1.0 }
 0x508   :  { %v1421_v45 = vmul.f32 %v1420_v44, %v1413_v22 }
 0x50a   :  { %1422 = vst [vmem:[%s3806_s6 + $0x18] sm:$0xff] %v1421_v45  ;;  %1492 = vmatmul.mubr.f32.vlgmr.msra.gmra.mrb[4].mxu0 %v1421_v45  ;;  %1563 = vmatmul.mubr.f32.vlgmr.msra.gmra.mrb[4].mxu1 %v1421_v45 }
 0x50b   :  { %2501 = vmatpush1.bf16.msra.mxu0 %v3161_v14  ;;  %2533 = vmatpush1.bf16.msra.mxu1 %v3182_v21 }
 0x50c   :  { %2503 = vmatprep.subr.bf16.mxu0 %v3180_v20  ;;  %2535 = vmatprep.subr.bf16.mxu1 %v3187_v23 }
 0x50d   :  { %1663 = vmatprep.mubr.f32.mxu0 %v2691_v2  ;;  %1734 = vmatprep.mubr.f32.mxu1 %v2691_v2 }
 0x50f   :  { %2505 = vmatpush1.bf16.msra.mxu0 %v3202_v28  ;;  %2537 = vmatpush1.bf16.msra.mxu1 %v3223_v35 }
 0x510   :  { %2507 = vmatprep.subr.bf16.mxu0 %v3221_v34  ;;  %2539 = vmatprep.subr.bf16.mxu1 %v3229_v37 }
 0x513   :  { %2509 = vmatpush1.bf16.msra.mxu0 %v3244_v42  ;;  %2541 = vmatpush1.bf16.msra.mxu1 %v3257_v46 }
 0x514   :  { %2511 = vmatprep.subr.bf16.mxu0 %v3259_v47  ;;  %2543 = vmatprep.subr.bf16.mxu1 %v3271_v51 }
 0x517   :  { %2513 = vmatpush1.bf16.msra.mxu0 %v3295_v59  ;;  %2545 = vmatpush1.bf16.msra.mxu1 %v3299_v60 }
 0x518   :  { %2515 = vmatprep.subr.bf16.mxu0 %v3301_v61  ;;  %2547 = vmatprep.subr.bf16.mxu1 %v3313_v1 }
 0x51b   :  { %2517 = vmatpush1.bf16.msra.mxu0 %v3337_v11  ;;  %2549 = vmatpush1.bf16.msra.mxu1 %v3341_v12 }
 0x51c   :  { %2519 = vmatprep.subr.bf16.mxu0 %v3343_v13  ;;  %2551 = vmatprep.subr.bf16.mxu1 %v3355_v18 }
 0x51f   :  { %2521 = vmatpush1.bf16.msra.mxu0 %v3379_v30  ;;  %2553 = vmatpush1.bf16.msra.mxu1 %v3383_v31 }
 0x520   :  { %2523 = vmatprep.subr.bf16.mxu0 %v3385_v32  ;;  %2555 = vmatprep.subr.bf16.mxu1 %v3397_v39 }
 0x523   :  { %2525 = vmatpush1.bf16.msra.mxu0 %v3421_v50  ;;  %2557 = vmatpush1.bf16.msra.mxu1 %v3425_v52 }
 0x524   :  { %2527 = vmatprep.subr.bf16.mxu0 %v3427_v53  ;;  %2559 = vmatprep.subr.bf16.mxu1 %v3436_v56 }
 0x527   :  { %2529 = vmatpush1.bf16.msra.mxu0 %v3448_v63  ;;  %2561 = vmatpush1.bf16.msra.mxu1 %v3452_v0 }
 0x528   :  { %2563 = vmatprep.subr.bf16.mxu0 %v3136_v5  ;;  %2595 = vmatprep.subr.bf16.mxu1 %v3144_v8 }
 0x5dd   :  { %v1493_v27 = vpop.f32.mrb[4].mxu0  ;;  %v1564_v48 = vpop.f32.mrb[4].mxu1 }
 0x5de   :  { %v2630_v49 = vadd.f32 %v1493_v27, %v3501_v15  ;;  %v1495_v54 = vpop.f32.mrb[5].mxu0  ;;  %v1566_v55 = vpop.f32.mrb[5].mxu1  ;;  %v2646_v4 = vadd.f32 %v1564_v48, %v3506_v25 }
 0x5df   :  { %v2631_v57 = vadd.f32 %v1495_v54, %v3503_v17  ;;  %v2647_v9 = vadd.f32 %v1566_v55, %v3509_v33 }
 0x5e0   :  { %v1573_v58 = vmul.f32 0.25, %v2630_v49  ;;  %v1581_v8 = vmax.f32 %v2646_v4, 0.0 }
 0x5e1   :  { %v1577_v62 = vmul.f32 0.25, %v2631_v57  ;;  %v1582_v26 = vmul.f32 0.25, %v2647_v9 }
 0x5e2   :  { %v1574_v3 = vadd.f32 0.5, %v1573_v58 }
 0x5e3   :  { %v1578_v7 = vadd.f32 0.5, %v1577_v62  ;;  %v1583_v40 = vadd.f32 0.5, %v1582_v26 }
 0x5e4   :  { %v1575_v16 = vmax.f32 %v1574_v3, 0.0 }
 0x5e5   :  { %v1579_v5 = vmax.f32 %v1578_v7, 0.0  ;;  %v1584_v41 = vmax.f32 %v1583_v40, 0.0 }
 0x5e6   :  { %v1576_v19 = vmin.f32 %v1575_v16, 1.0 }
 0x5e7   :  { %v1580_v24 = vmin.f32 %v1579_v5, 1.0  ;;  %v1585_v44 = vmin.f32 %v1584_v41, 1.0 }
 0x5e8   :  { %v1587_v29 = vmul.f32 %v1581_v8, %v1576_v19 }
 0x5e9   :  { %v1586_v36 = vmul.f32 %v1580_v24, %v3696_v6 }
 0x5eb   :  { %v3741_v38 = vadd.f32 %v1587_v29, %v1586_v36 }
 0x5ed   :  { %v1589_v10 = vmul.f32 0.25, %v3741_v38 }
 0x5ef   :  { %v1590_v43 = vadd.f32 0.5, %v1589_v10 }
 0x5f1   :  { %v1591_v22 = vmax.f32 %v1590_v43, 0.0 }
 0x5f3   :  { %v1592_v45 = vmin.f32 %v1591_v22, 1.0 }
 0x5f5   :  { %v1593_v27 = vmul.f32 %v1592_v45, %v1585_v44 }
 0x5f7   :  { %1594 = vst [vmem:[%s3806_s6 + $0x10] sm:$0xff] %v1593_v27  ;;  %1664 = vmatmul.mubr.f32.vlgmr.msra.gmra.mrb[2].mxu0 %v1593_v27  ;;  %1735 = vmatmul.mubr.f32.vlgmr.msra.gmra.mrb[2].mxu1 %v1593_v27 }
 0x5f8   :  { %2565 = vmatpush1.bf16.msra.mxu0 %v3161_v14  ;;  %2597 = vmatpush1.bf16.msra.mxu1 %v3182_v21 }
 0x5f9   :  { %2567 = vmatprep.subr.bf16.mxu0 %v3180_v20  ;;  %2599 = vmatprep.subr.bf16.mxu1 %v3187_v23 }
 0x5fa   :  { %1835 = vmatprep.mubr.f32.mxu0 %v2691_v2  ;;  %1906 = vmatprep.mubr.f32.mxu1 %v2691_v2 }
 0x5fc   :  { %2569 = vmatpush1.bf16.msra.mxu0 %v3202_v28  ;;  %2601 = vmatpush1.bf16.msra.mxu1 %v3223_v35 }
 0x5fd   :  { %2571 = vmatprep.subr.bf16.mxu0 %v3221_v34  ;;  %2603 = vmatprep.subr.bf16.mxu1 %v3229_v37 }
 0x600   :  { %2573 = vmatpush1.bf16.msra.mxu0 %v3244_v42  ;;  %2605 = vmatpush1.bf16.msra.mxu1 %v3257_v46 }
 0x601   :  { %2575 = vmatprep.subr.bf16.mxu0 %v3259_v47  ;;  %2607 = vmatprep.subr.bf16.mxu1 %v3271_v51 }
 0x604   :  { %2577 = vmatpush1.bf16.msra.mxu0 %v3295_v59  ;;  %2609 = vmatpush1.bf16.msra.mxu1 %v3299_v60 }
 0x605   :  { %2579 = vmatprep.subr.bf16.mxu0 %v3301_v61  ;;  %2611 = vmatprep.subr.bf16.mxu1 %v3313_v1 }
 0x608   :  { %2581 = vmatpush1.bf16.msra.mxu0 %v3337_v11  ;;  %2613 = vmatpush1.bf16.msra.mxu1 %v3341_v12 }
 0x609   :  { %2583 = vmatprep.subr.bf16.mxu0 %v3343_v13  ;;  %2615 = vmatprep.subr.bf16.mxu1 %v3355_v18 }
 0x60c   :  { %2585 = vmatpush1.bf16.msra.mxu0 %v3379_v30  ;;  %2617 = vmatpush1.bf16.msra.mxu1 %v3383_v31 }
 0x60d   :  { %2587 = vmatprep.subr.bf16.mxu0 %v3385_v32  ;;  %2619 = vmatprep.subr.bf16.mxu1 %v3397_v39 }
 0x610   :  { %2589 = vmatpush1.bf16.msra.mxu0 %v3421_v50  ;;  %2621 = vmatpush1.bf16.msra.mxu1 %v3425_v52 }
 0x611   :  { %2591 = vmatprep.subr.bf16.mxu0 %v3427_v53  ;;  %2623 = vmatprep.subr.bf16.mxu1 %v3436_v56 }
 0x614   :  { %2593 = vmatpush1.bf16.msra.mxu0 %v3448_v63  ;;  %2625 = vmatpush1.bf16.msra.mxu1 %v3452_v0 }
 0x6ca   :  { %v1665_v14 = vpop.f32.mrb[2].mxu0  ;;  %v1736_v20 = vpop.f32.mrb[2].mxu1 }
 0x6cb   :  { %v2628_v21 = vadd.f32 %v1665_v14, %v3501_v15  ;;  %v1667_v23 = vpop.f32.mrb[3].mxu0  ;;  %v1738_v28 = vpop.f32.mrb[3].mxu1  ;;  %v2644_v46 = vadd.f32 %v1736_v20, %v3506_v25 }
 0x6cc   :  { %v2629_v34 = vadd.f32 %v1667_v23, %v3503_v17  ;;  %v2645_v51 = vadd.f32 %v1738_v28, %v3509_v33 }
 0x6cd   :  { %v1745_v35 = vmul.f32 0.25, %v2628_v21  ;;  %v1753_v1 = vmax.f32 %v2644_v46, 0.0 }
 0x6ce   :  { %v1749_v37 = vmul.f32 0.25, %v2629_v34  ;;  %v1754_v12 = vmul.f32 0.25, %v2645_v51 }
 0x6cf   :  { %v1746_v42 = vadd.f32 0.5, %v1745_v35 }
 0x6d0   :  { %v1750_v47 = vadd.f32 0.5, %v1749_v37  ;;  %v1755_v31 = vadd.f32 0.5, %v1754_v12 }
 0x6d1   :  { %v1747_v59 = vmax.f32 %v1746_v42, 0.0 }
 0x6d2   :  { %v1751_v60 = vmax.f32 %v1750_v47, 0.0  ;;  %v1756_v39 = vmax.f32 %v1755_v31, 0.0 }
 0x6d3   :  { %v1748_v61 = vmin.f32 %v1747_v59, 1.0 }
 0x6d4   :  { %v1752_v11 = vmin.f32 %v1751_v60, 1.0  ;;  %v1757_v53 = vmin.f32 %v1756_v39, 1.0 }
 0x6d5   :  { %v1759_v13 = vmul.f32 %v1753_v1, %v1748_v61 }
 0x6d6   :  { %v1758_v18 = vmul.f32 %v1752_v11, %v3741_v38 }
 0x6d8   :  { %v1760_v30 = vadd.f32 %v1759_v13, %v1758_v18 }
 0x6da   :  { %v1761_v32 = vmul.f32 0.25, %v1760_v30 }
 0x6dc   :  { %v1762_v50 = vadd.f32 0.5, %v1761_v32 }
 0x6de   :  { %v1763_v52 = vmax.f32 %v1762_v50, 0.0 }
 0x6e0   :  { %v1764_v56 = vmin.f32 %v1763_v52, 1.0 }
 0x6e2   :  { %v1765_v63 = vmul.f32 %v1764_v56, %v1757_v53 }
 0x6e4   :  { %1766 = vst [vmem:[%s3806_s6 + $0x8] sm:$0xff] %v1765_v63  ;;  %1836 = vmatmul.mubr.f32.vlgmr.msra.gmra.mrb[0].mxu0 %v1765_v63  ;;  %1907 = vmatmul.mubr.f32.vlgmr.msra.gmra.mrb[0].mxu1 %v1765_v63 }
 0x7b7   :  { %v1837_v0 = vpop.f32.mrb[0].mxu0  ;;  %v1908_v2 = vpop.f32.mrb[0].mxu1 }
 0x7b8   :  { %v2626_v6 = vadd.f32 %v1837_v0, %v3501_v15  ;;  %v1839_v48 = vpop.f32.mrb[1].mxu0  ;;  %v1910_v49 = vpop.f32.mrb[1].mxu1  ;;  %v2642_v62 = vadd.f32 %v1908_v2, %v3506_v25 }
 0x7b9   :  { %v2627_v54 = vadd.f32 %v1839_v48, %v3503_v17  ;;  %v2643_v4 = vadd.f32 %v1910_v49, %v3509_v33 }
 0x7ba   :  { %v1917_v55 = vmul.f32 0.25, %v2626_v6  ;;  %v1925_v5 = vmax.f32 %v2642_v62, 0.0 }
 0x7bb   :  { %v1921_v57 = vmul.f32 0.25, %v2627_v54  ;;  %v1926_v8 = vmul.f32 0.25, %v2643_v4 }
 0x7bc   :  { %v1918_v58 = vadd.f32 0.5, %v1917_v55 }
 0x7bd   :  { %v1922_v3 = vadd.f32 0.5, %v1921_v57  ;;  %v1927_v29 = vadd.f32 0.5, %v1926_v8 }
 0x7be   :  { %v1919_v7 = vmax.f32 %v1918_v58, 0.0 }
 0x7bf   :  { %v1923_v9 = vmax.f32 %v1922_v3, 0.0  ;;  %v1928_v36 = vmax.f32 %v1927_v29, 0.0 }
 0x7c0   :  { %v1920_v16 = vmin.f32 %v1919_v7, 1.0 }
 0x7c1   :  { %v1924_v19 = vmin.f32 %v1923_v9, 1.0  ;;  %v1929_v40 = vmin.f32 %v1928_v36, 1.0 }
 0x7c2   :  { %v1931_v24 = vmul.f32 %v1925_v5, %v1920_v16 }
 0x7c3   :  { %v1930_v15 = vmul.f32 %v1924_v19, %v1760_v30 }
 0x7c5   :  { %v1932_v26 = vadd.f32 %v1931_v24, %v1930_v15 }
 0x7c7   :  { %1945 = vst [vmem:[%s3807_s8] sm:$0xff] %v1932_v26  ;;  %v1933_v17 = vmul.f32 0.25, %v1932_v26 }
 0x7c9   :  { %v1934_v25 = vadd.f32 0.5, %v1933_v17 }
 0x7cb   :  { %v1935_v38 = vmax.f32 %v1934_v25, 0.0 }
 0x7cd   :  { %v1936_v33 = vmin.f32 %v1935_v38, 1.0 }
 0x7cf   :  { %v1937_v10 = vmul.f32 %v1936_v33, %v1929_v40 }
 0x7d1   :  { %1938 = vst [vmem:[%s3806_s6] sm:$0xff] %v1937_v10  ;;  %1944 = vst [vmem:[%s3808_s7] sm:$0xff] %v1937_v10 }

</bundles_post_ra>
